<compile_context>
chip_gen: v5e
topology: v5e:2x2
jax: 0.10.0
libtpu: 0.0.40
codegen_flags: <defaults>
</compile_context>

<pallas_src>
import functools

import jax
import jax.numpy as jnp
from jax.experimental import pallas as pl
from jax.experimental.pallas import tpu as pltpu


# ---------------------------------------------------------------------------
# Shared in-kernel helper (transposed layout: features on sublanes, N on lanes)
#   gx_f_ref / gx_b_ref : (T, 3H, N)  precomputed input projections (fwd/bwd)
#   wh_ref              : (6H, 2H)    block-diagonal fused recurrent weights
#   bhn_ref             : (2H, 1)     [b_hn fwd ; b_hn bwd]
# Returns (att (T, N), pooled (2H, N)).
# ---------------------------------------------------------------------------
def _bigru_attention(gx_f_ref, gx_b_ref, wh_ref, bhn_ref,
                     ln_g_ref, ln_b_ref, att_w_ref, att_b_ref, ctx_ref,
                     h_ref):
    T = gx_f_ref.shape[0]
    N = gx_f_ref.shape[-1]
    H = wh_ref.shape[1] // 2

    wh = wh_ref[...]                                    # (6H, 2H)
    # Hoist the b_hn broadcasts out of the serial recurrence.
    bhn_f = jnp.broadcast_to(bhn_ref[:H], (H, N))
    bhn_b = jnp.broadcast_to(bhn_ref[H:], (H, N))

    def gate(gx, gh, bhn, h_prev):
        # PyTorch gate order: r, z, n ; b_hn stays inside r * (.)
        r = jax.nn.sigmoid(gx[:H] + gh[:H])
        z = jax.nn.sigmoid(gx[H:2 * H] + gh[H:2 * H])
        n = jnp.tanh(gx[2 * H:] + r * (gh[2 * H:] + bhn))
        return (1.0 - z) * n + z * h_prev

    def body(t, carry):
        h_f, h_b = carry
        tb = T - 1 - t
        # One fused recurrent matmul for both directions (block-diag weights).
        h_cat = jnp.concatenate([h_f, h_b], axis=0)                 # (2H, N)
        gh = jnp.dot(wh, h_cat, preferred_element_type=jnp.float32)  # (6H, N)
        h_f = gate(gx_f_ref[t], gh[:3 * H], bhn_f, h_f)
        h_b = gate(gx_b_ref[tb], gh[3 * H:], bhn_b, h_b)
        h_ref[t, :H, :] = h_f            # sublane-aligned, lane-dense stores
        h_ref[tb, H:, :] = h_b
        return h_f, h_b

    h0 = jnp.zeros((H, N), jnp.float32)
    jax.lax.fori_loop(0, T, body, (h0, h0),
                      unroll=(True if T <= 16 else 4))

    h_all = h_ref[...]                                  # (T, 2H, N) raw GRU out

    # LayerNorm over the feature (sublane) dim (eps=1e-5, elementwise affine).
    mu = jnp.mean(h_all, axis=1, keepdims=True)
    var = jnp.mean(jnp.square(h_all - mu), axis=1, keepdims=True)
    normed = ((h_all - mu) * jax.lax.rsqrt(var + 1e-5)
              * ln_g_ref[...][None] + ln_b_ref[...][None])

    # Additive attention: tanh(W x + b) . ctx -> softmax over time.
    att_w = jnp.broadcast_to(att_w_ref[...][None], (T,) + att_w_ref.shape)
    a = jnp.tanh(jnp.einsum('tah,thn->tan', att_w, normed,
                            preferred_element_type=jnp.float32)
                 + att_b_ref[...][None])                # (T, A, N)
    score = jnp.sum(a * ctx_ref[...][None], axis=1)     # (T, N)

    m = jnp.max(score, axis=0, keepdims=True)
    e = jnp.exp(score - m)
    att = e * pl.reciprocal(jnp.sum(e, axis=0, keepdims=True), approx=True)

    # Pooled vector uses the RAW GRU outputs (matches PyTorch reference).
    pooled = jnp.sum(h_all * att[:, None, :], axis=0)   # (2H, N)
    return att, pooled


# ---------------------------------------------------------------------------
# Word-level kernel: biGRU + LN + word attention -> pooled sentence vectors.
# ---------------------------------------------------------------------------
def word_kernel(gx_f_ref, gx_b_ref, wh_ref, bhn_ref, ln_g_ref, ln_b_ref,
                att_w_ref, att_b_ref, ctx_ref,
                pooled_ref, watt_ref,
                h_ref):
    att, pooled = _bigru_attention(gx_f_ref, gx_b_ref, wh_ref, bhn_ref,
                                   ln_g_ref, ln_b_ref, att_w_ref, att_b_ref,
                                   ctx_ref, h_ref)
    pooled_ref[...] = pooled          # (2H, Nb)  lane-dense over Nb
    watt_ref[...] = att               # (W,  Nb)  time-major, lane-dense


# ---------------------------------------------------------------------------
# Sentence-level kernel: biGRU + LN + sentence attention + fc + sigmoid.
# ---------------------------------------------------------------------------
def sent_kernel(gx_f_ref, gx_b_ref, wh_ref, bhn_ref, ln_g_ref, ln_b_ref,
                att_w_ref, att_b_ref, ctx_ref, fc_w_ref, fc_b_ref,
                score_ref, satt_ref,
                h_ref):
    att, pooled = _bigru_attention(gx_f_ref, gx_b_ref, wh_ref, bhn_ref,
                                   ln_g_ref, ln_b_ref, att_w_ref, att_b_ref,
                                   ctx_ref, h_ref)
    # fc (2H -> 1) as VPU mul + sublane reduce (avoids 1-output MXU matmul).
    logits = jnp.sum(pooled * fc_w_ref[...], axis=0, keepdims=True) + fc_b_ref[...]
    score_ref[...] = jax.nn.sigmoid(logits)      # (1, Nb) lane-dense
    satt_ref[...] = att                          # (L, Nb) time-major


# ---------------------------------------------------------------------------
# Wrappers
# ---------------------------------------------------------------------------
def _vmem_limit_bytes():
    try:
        cap = int(pltpu.get_tpu_info().vmem_capacity_bytes)
    except Exception:
        cap = 64 * 1024 * 1024
    # 75% of physical, capped at 100 MiB (v7x -> ~48 MiB, v5e/v6e -> ~96 MiB).
    return max(32 * 1024 * 1024, min(cap * 3 // 4, 100 * 1024 * 1024))


def _block_cap(T, H, vmem_limit):
    """Largest lane-block such that gx inputs (double-buffered) + h scratch
    fit in roughly half of the per-generation VMEM budget."""
    per_lane = (2 * 2 * T * 3 * H + T * 2 * H) * 4   # bytes per lane of block
    cap = (vmem_limit // 2) // per_lane
    cap = max(128, (cap // 128) * 128)
    return min(cap, 512)


def _choose_block(n, cap):
    n128 = ((n + 127) // 128) * 128
    blk = min(cap, n128)
    # Prefer >=2 grid blocks when there is enough work (v7x has 2 TensorCores).
    if blk == n128 and n128 >= 256:
        blk = ((n128 // 2 + 127) // 128) * 128
    n_pad = ((n128 + blk - 1) // blk) * blk
    return blk, n_pad


def _full_spec(shape):
    nd = len(shape)
    return pl.BlockSpec(shape, lambda *_, _nd=nd: (0,) * _nd)


def _prep_gru_params(p, H):
    """Fuse directions, fold r/z recurrent biases, and pre-transpose for the
    feature-on-sublane / N-on-lane kernel layout."""
    win = jnp.concatenate([p['wif'], p['wib']], axis=1)            # (E, 6H)

    def fold(b_i, b_h):
        return jnp.concatenate([b_i[:, :2 * H] + b_h[:, :2 * H],
                                b_i[:, 2 * H:]], axis=1)

    b_in = jnp.concatenate([fold(p['bif'], p['bhf']),
                            fold(p['bib'], p['bhb'])], axis=1)     # (1, 6H)

    wh = jnp.zeros((6 * H, 2 * H), jnp.float32)
    wh = wh.at[:3 * H, :H].set(p['whf'].T).at[3 * H:, H:].set(p['whb'].T)

    bhn = jnp.concatenate([p['bhf'][:, 2 * H:],
                           p['bhb'][:, 2 * H:]], axis=1).T          # (2H, 1)
    ln_g = p['ln_g'].T                                               # (2H, 1)
    ln_b = p['ln_b'].T
    att_wT = p['att_w'].T                                            # (A, 2H)
    att_b = p['att_b'].T                                             # (A, 1)
    ctx = p['ctx']                                                   # (A, 1)
    return win, b_in, wh, bhn, ln_g, ln_b, att_wT, att_b, ctx


def word_attention_forward(ids_flat, p):
    N, W = ids_flat.shape
    Hw = p['whf'].shape[0]
    win, b_in, wh, bhn, ln_g, ln_b, att_wT, att_b, ctx = _prep_gru_params(p, Hw)

    # Embedding + GRU input projection + folded biases as ONE lookup table,
    # gathered in the wrapper (no one-hot / vocab-sized matmul in the kernel).
    emb_win = jnp.dot(p['emb'], win) + b_in               # (V, 6Hw)
    gx = jnp.take(emb_win, ids_flat, axis=0)              # (N, W, 6Hw)
    gx = gx.transpose(1, 2, 0)                            # (W, 6Hw, N)

    vmem_limit = _vmem_limit_bytes()
    n_blk, n_pad = _choose_block(N, _block_cap(W, Hw, vmem_limit))
    if n_pad != N:
        gx = jnp.pad(gx, ((0, 0), (0, 0), (0, n_pad - N)))
    gx_f = gx[:, :3 * Hw, :]
    gx_b = gx[:, 3 * Hw:, :]

    pooled_pad, watt_tm = pl.pallas_call(
        word_kernel,
        out_shape=(jax.ShapeDtypeStruct((2 * Hw, n_pad), jnp.float32),
                   jax.ShapeDtypeStruct((W, n_pad), jnp.float32)),
        grid_spec=pltpu.PrefetchScalarGridSpec(
            num_scalar_prefetch=0,
            grid=(n_pad // n_blk,),
            in_specs=[pl.BlockSpec((W, 3 * Hw, n_blk), lambda i: (0, 0, i)),
                      pl.BlockSpec((W, 3 * Hw, n_blk), lambda i: (0, 0, i)),
                      _full_spec(wh.shape), _full_spec(bhn.shape),
                      _full_spec(ln_g.shape), _full_spec(ln_b.shape),
                      _full_spec(att_wT.shape), _full_spec(att_b.shape),
                      _full_spec(ctx.shape)],
            out_specs=[pl.BlockSpec((2 * Hw, n_blk), lambda i: (0, i)),
                       pl.BlockSpec((W, n_blk), lambda i: (0, i))],
            scratch_shapes=[pltpu.VMEM((W, 2 * Hw, n_blk), jnp.float32)]),
        compiler_params=pltpu.CompilerParams(
            dimension_semantics=("parallel",),
            vmem_limit_bytes=vmem_limit),
    )(gx_f, gx_b, wh, bhn, ln_g, ln_b, att_wT, att_b, ctx)

    pooled = pooled_pad[:, :N]         # (2Hw, N) lane-dense kernel output
    watt = watt_tm[:, :N].T            # (N, W)
    return pooled, watt


def sentence_forward(pooled_w, B, L, p):
    Hs = p['whf'].shape[0]
    win, b_in, wh, bhn, ln_g, ln_b, att_wT, att_b, ctx = _prep_gru_params(p, Hs)

    # Dropout on pooled sentence vectors is identity (eval mode).
    # Input projection done in the wrapper, directly in (L, 6Hs, B) layout.
    gx = jnp.dot(win.T, pooled_w) + b_in.T                # (6Hs, B*L)
    gx = gx.reshape(6 * Hs, B, L).transpose(2, 0, 1)      # (L, 6Hs, B)

    vmem_limit = _vmem_limit_bytes()
    b_blk, b_pad = _choose_block(B, _block_cap(L, Hs, vmem_limit))
    if b_pad != B:
        gx = jnp.pad(gx, ((0, 0), (0, 0), (0, b_pad - B)))
    gx_f = gx[:, :3 * Hs, :]
    gx_b = gx[:, 3 * Hs:, :]

    score_pad, satt_tm = pl.pallas_call(
        sent_kernel,
        out_shape=(jax.ShapeDtypeStruct((1, b_pad), jnp.float32),
                   jax.ShapeDtypeStruct((L, b_pad), jnp.float32)),
        grid_spec=pltpu.PrefetchScalarGridSpec(
            num_scalar_prefetch=0,
            grid=(b_pad // b_blk,),
            in_specs=[pl.BlockSpec((L, 3 * Hs, b_blk), lambda i: (0, 0, i)),
                      pl.BlockSpec((L, 3 * Hs, b_blk), lambda i: (0, 0, i)),
                      _full_spec(wh.shape), _full_spec(bhn.shape),
                      _full_spec(ln_g.shape), _full_spec(ln_b.shape),
                      _full_spec(att_wT.shape), _full_spec(att_b.shape),
                      _full_spec(ctx.shape),
                      _full_spec(p['fc_w'].shape), _full_spec(p['fc_b'].shape)],
            out_specs=[pl.BlockSpec((1, b_blk), lambda i: (0, i)),
                       pl.BlockSpec((L, b_blk), lambda i: (0, i))],
            scratch_shapes=[pltpu.VMEM((L, 2 * Hs, b_blk), jnp.float32)]),
        compiler_params=pltpu.CompilerParams(
            dimension_semantics=("parallel",),
            vmem_limit_bytes=vmem_limit),
    )(gx_f, gx_b, wh, bhn, ln_g, ln_b, att_wT, att_b, ctx,
      p['fc_w'], p['fc_b'])

    scores = score_pad[:, :B].T        # (B, 1)
    satt = satt_tm[:, :B].T            # (B, L)
    return scores, satt


def han_forward(code_tensor, params):
    """code_tensor: (B, L, W) int32 token ids."""
    B, L, W = code_tensor.shape
    ids_flat = code_tensor.reshape(B * L, W)

    pooled_w, watt = word_attention_forward(ids_flat, params['word'])
    word_att_weights = watt.reshape(B, L, W)

    Hw2 = pooled_w.shape[0]
    # PyTorch returns `sents` in packed (time-major) order: element t*B + b.
    sents_packed = pooled_w.reshape(Hw2, B, L).transpose(2, 1, 0).reshape(L * B, Hw2)

    scores, sent_att_weights = sentence_forward(pooled_w, B, L, params['sent'])
    return scores, word_att_weights, sent_att_weights, sents_packed


# ---------------------------------------------------------------------------
# Deterministic parameter init (synthetic; GRU weights stored pre-transposed)
# ---------------------------------------------------------------------------
def init_params(key, V, E, Hw, Hs, Aw, As):
    keys = iter(jax.random.split(key, 40))

    def w(shape, scale=0.1):
        return (scale * jax.random.normal(next(keys), shape)).astype(jnp.float32)

    word = dict(
        emb=w((V, E)),
        wif=w((E, 3 * Hw)), whf=w((Hw, 3 * Hw)),
        bif=w((1, 3 * Hw)), bhf=w((1, 3 * Hw)),
        wib=w((E, 3 * Hw)), whb=w((Hw, 3 * Hw)),
        bib=w((1, 3 * Hw)), bhb=w((1, 3 * Hw)),
        ln_g=jnp.ones((1, 2 * Hw), jnp.float32),
        ln_b=jnp.zeros((1, 2 * Hw), jnp.float32),
        att_w=w((2 * Hw, Aw)), att_b=w((1, Aw)), ctx=w((Aw, 1)),
    )
    sent = dict(
        wif=w((2 * Hw, 3 * Hs)), whf=w((Hs, 3 * Hs)),
        bif=w((1, 3 * Hs)), bhf=w((1, 3 * Hs)),
        wib=w((2 * Hw, 3 * Hs)), whb=w((Hs, 3 * Hs)),
        bib=w((1, 3 * Hs)), bhb=w((1, 3 * Hs)),
        ln_g=jnp.ones((1, 2 * Hs), jnp.float32),
        ln_b=jnp.zeros((1, 2 * Hs), jnp.float32),
        att_w=w((2 * Hs, As)), att_b=w((1, As)), ctx=w((As, 1)),
        fc_w=w((2 * Hs, 1)), fc_b=w((1, 1)),
    )
    return dict(word=word, sent=sent)


if __name__ == "__main__":
    # Config (word/sent GRU num_layers = 1, use_layer_norm = True, dropout = 0.0)
    V, E, Hw, Hs, Aw, As = 50, 16, 16, 16, 16, 16
    B, L, W = 2, 8, 8

    key = jax.random.PRNGKey(0)
    k_params, k_data = jax.random.split(key)
    params = init_params(k_params, V, E, Hw, Hs, Aw, As)
    code_tensor = jax.random.randint(k_data, (B, L, W), 0, V, dtype=jnp.int32)

    fwd = jax.jit(functools.partial(han_forward, params=params))
    scores, word_att_weights, sent_att_weights, sents = fwd(code_tensor)
    jax.block_until_ready((scores, word_att_weights, sent_att_weights, sents))

    assert scores.shape == (B, 1)
    assert word_att_weights.shape == (B, L, W)
    assert sent_att_weights.shape == (B, L)
    assert sents.shape == (L * B, 2 * Hw)
    print("KERNEL_OK")
</pallas_src>

<mosaic_0001>
module attributes {stable_mosaic.version = 11 : i64} {
  func.func @word_kernel(%arg0: i32, %arg1: memref<8x48x128xf32, #tpu.memory_space<vmem>>, %arg2: memref<8x48x128xf32, #tpu.memory_space<vmem>>, %arg3: memref<96x32xf32, #tpu.memory_space<vmem>>, %arg4: memref<32x1xf32, #tpu.memory_space<vmem>>, %arg5: memref<32x1xf32, #tpu.memory_space<vmem>>, %arg6: memref<32x1xf32, #tpu.memory_space<vmem>>, %arg7: memref<16x32xf32, #tpu.memory_space<vmem>>, %arg8: memref<16x1xf32, #tpu.memory_space<vmem>>, %arg9: memref<16x1xf32, #tpu.memory_space<vmem>>, %arg10: memref<32x128xf32, #tpu.memory_space<vmem>>, %arg11: memref<8x128xf32, #tpu.memory_space<vmem>>, %arg12: memref<8x32x128xf32, #tpu.memory_space<vmem>>) attributes {dimension_semantics = [#tpu.dimension_semantics<parallel>], iteration_bounds = array<i64: 1>, scalar_prefetch = 0 : i64, scratch_operands = 1 : i64, tpu.core_type = #tpu.core_type<tc>, window_params = [{transform_indices = @transform_0, window_bounds = array<i64: 8, 48, 128>}, {transform_indices = @transform_1, window_bounds = array<i64: 8, 48, 128>}, {pipeline_mode = #tpu.pipeline_mode<synchronous>, transform_indices = @transform_2, window_bounds = array<i64: 96, 32>}, {pipeline_mode = #tpu.pipeline_mode<synchronous>, transform_indices = @transform_3, window_bounds = array<i64: 32, 1>}, {pipeline_mode = #tpu.pipeline_mode<synchronous>, transform_indices = @transform_4, window_bounds = array<i64: 32, 1>}, {pipeline_mode = #tpu.pipeline_mode<synchronous>, transform_indices = @transform_5, window_bounds = array<i64: 32, 1>}, {pipeline_mode = #tpu.pipeline_mode<synchronous>, transform_indices = @transform_6, window_bounds = array<i64: 16, 32>}, {pipeline_mode = #tpu.pipeline_mode<synchronous>, transform_indices = @transform_7, window_bounds = array<i64: 16, 1>}, {pipeline_mode = #tpu.pipeline_mode<synchronous>, transform_indices = @transform_8, window_bounds = array<i64: 16, 1>}, {transform_indices = @transform_9, window_bounds = array<i64: 32, 128>}, {transform_indices = @transform_10, window_bounds = array<i64: 8, 128>}]} {
    %c0 = arith.constant 0 : index
    %c0_0 = arith.constant 0 : index
    %0 = vector.load %arg3[%c0, %c0_0] : memref<96x32xf32, #tpu.memory_space<vmem>>, vector<96x32xf32>
    %c0_1 = arith.constant 0 : index
    %c0_2 = arith.constant 0 : index
    %1 = vector.load %arg4[%c0_1, %c0_2] : memref<32x1xf32, #tpu.memory_space<vmem>>, vector<16x1xf32>
    %2 = vector.shape_cast %1 : vector<16x1xf32> to vector<16x1xf32>
    %3 = vector.broadcast %2 : vector<16x1xf32> to vector<16x128xf32>
    %c16 = arith.constant 16 : index
    %c0_3 = arith.constant 0 : index
    %4 = vector.load %arg4[%c16, %c0_3] : memref<32x1xf32, #tpu.memory_space<vmem>>, vector<16x1xf32>
    %5 = vector.shape_cast %4 : vector<16x1xf32> to vector<16x1xf32>
    %6 = vector.broadcast %5 : vector<16x1xf32> to vector<16x128xf32>
    %cst = arith.constant 0.000000e+00 : f32
    %7 = vector.broadcast %cst : f32 to vector<16x128xf32>
    %c0_i32 = arith.constant 0 : i32
    %c7_i32 = arith.constant 7 : i32
    %8 = arith.subi %c7_i32, %c0_i32 : i32
    %9 = tpu.concatenate %7, %7 in 0 : vector<16x128xf32>, vector<16x128xf32> -> vector<32x128xf32>
    %cst_4 = arith.constant dense<0.000000e+00> : vector<96x128xf32>
    %10 = tpu.matmul %0, %9, %cst_4 {dimension_numbers = #tpu.dot_dimension_numbers<[1], [0], [0], [1], [0, 0, 1, 1], [], []>} : vector<96x32xf32>, vector<32x128xf32>, vector<96x128xf32> -> vector<96x128xf32>
    %11 = arith.index_cast %c0_i32 : i32 to index
    %c0_5 = arith.constant 0 : index
    %c0_6 = arith.constant 0 : index
    %12 = vector.load %arg1[%11, %c0_5, %c0_6] : memref<8x48x128xf32, #tpu.memory_space<vmem>>, vector<1x48x128xf32>
    %13 = vector.shape_cast %12 : vector<1x48x128xf32> to vector<48x128xf32>
    %14 = vector.extract_strided_slice %10 {offsets = [0, 0], sizes = [48, 128], strides = [1, 1]} : vector<96x128xf32> to vector<48x128xf32>
    %15 = vector.extract_strided_slice %13 {offsets = [0, 0], sizes = [16, 128], strides = [1, 1]} : vector<48x128xf32> to vector<16x128xf32>
    %16 = vector.extract_strided_slice %14 {offsets = [0, 0], sizes = [16, 128], strides = [1, 1]} : vector<48x128xf32> to vector<16x128xf32>
    %17 = arith.addf %15, %16 : vector<16x128xf32>
    %18 = arith.negf %17 : vector<16x128xf32>
    %19 = math.exp %18 : vector<16x128xf32>
    %cst_7 = arith.constant 1.000000e+00 : f32
    %20 = vector.broadcast %cst_7 : f32 to vector<16x128xf32>
    %21 = arith.addf %20, %19 : vector<16x128xf32>
    %22 = arith.divf %20, %21 : vector<16x128xf32>
    %23 = vector.extract_strided_slice %13 {offsets = [16, 0], sizes = [16, 128], strides = [1, 1]} : vector<48x128xf32> to vector<16x128xf32>
    %24 = vector.extract_strided_slice %14 {offsets = [16, 0], sizes = [16, 128], strides = [1, 1]} : vector<48x128xf32> to vector<16x128xf32>
    %25 = arith.addf %23, %24 : vector<16x128xf32>
    %26 = arith.negf %25 : vector<16x128xf32>
    %27 = math.exp %26 : vector<16x128xf32>
    %cst_8 = arith.constant 1.000000e+00 : f32
    %28 = vector.broadcast %cst_8 : f32 to vector<16x128xf32>
    %29 = arith.addf %28, %27 : vector<16x128xf32>
    %30 = arith.divf %28, %29 : vector<16x128xf32>
    %31 = vector.extract_strided_slice %13 {offsets = [32, 0], sizes = [16, 128], strides = [1, 1]} : vector<48x128xf32> to vector<16x128xf32>
    %32 = vector.extract_strided_slice %14 {offsets = [32, 0], sizes = [16, 128], strides = [1, 1]} : vector<48x128xf32> to vector<16x128xf32>
    %33 = arith.addf %32, %3 : vector<16x128xf32>
    %34 = arith.mulf %22, %33 : vector<16x128xf32>
    %35 = arith.addf %31, %34 : vector<16x128xf32>
    %36 = math.tanh %35 : vector<16x128xf32>
    %cst_9 = arith.constant 1.000000e+00 : f32
    %37 = vector.broadcast %cst_9 : f32 to vector<16x128xf32>
    %38 = arith.subf %37, %30 : vector<16x128xf32>
    %39 = arith.mulf %38, %36 : vector<16x128xf32>
    %40 = arith.mulf %30, %7 : vector<16x128xf32>
    %41 = arith.addf %39, %40 : vector<16x128xf32>
    %42 = arith.index_cast %8 : i32 to index
    %c0_10 = arith.constant 0 : index
    %c0_11 = arith.constant 0 : index
    %43 = vector.load %arg2[%42, %c0_10, %c0_11] : memref<8x48x128xf32, #tpu.memory_space<vmem>>, vector<1x48x128xf32>
    %44 = vector.shape_cast %43 : vector<1x48x128xf32> to vector<48x128xf32>
    %45 = vector.extract_strided_slice %10 {offsets = [48, 0], sizes = [48, 128], strides = [1, 1]} : vector<96x128xf32> to vector<48x128xf32>
    %46 = vector.extract_strided_slice %44 {offsets = [0, 0], sizes = [16, 128], strides = [1, 1]} : vector<48x128xf32> to vector<16x128xf32>
    %47 = vector.extract_strided_slice %45 {offsets = [0, 0], sizes = [16, 128], strides = [1, 1]} : vector<48x128xf32> to vector<16x128xf32>
    %48 = arith.addf %46, %47 : vector<16x128xf32>
    %49 = arith.negf %48 : vector<16x128xf32>
    %50 = math.exp %49 : vector<16x128xf32>
    %cst_12 = arith.constant 1.000000e+00 : f32
    %51 = vector.broadcast %cst_12 : f32 to vector<16x128xf32>
    %52 = arith.addf %51, %50 : vector<16x128xf32>
    %53 = arith.divf %51, %52 : vector<16x128xf32>
    %54 = vector.extract_strided_slice %44 {offsets = [16, 0], sizes = [16, 128], strides = [1, 1]} : vector<48x128xf32> to vector<16x128xf32>
    %55 = vector.extract_strided_slice %45 {offsets = [16, 0], sizes = [16, 128], strides = [1, 1]} : vector<48x128xf32> to vector<16x128xf32>
    %56 = arith.addf %54, %55 : vector<16x128xf32>
    %57 = arith.negf %56 : vector<16x128xf32>
    %58 = math.exp %57 : vector<16x128xf32>
    %cst_13 = arith.constant 1.000000e+00 : f32
    %59 = vector.broadcast %cst_13 : f32 to vector<16x128xf32>
    %60 = arith.addf %59, %58 : vector<16x128xf32>
    %61 = arith.divf %59, %60 : vector<16x128xf32>
    %62 = vector.extract_strided_slice %44 {offsets = [32, 0], sizes = [16, 128], strides = [1, 1]} : vector<48x128xf32> to vector<16x128xf32>
    %63 = vector.extract_strided_slice %45 {offsets = [32, 0], sizes = [16, 128], strides = [1, 1]} : vector<48x128xf32> to vector<16x128xf32>
    %64 = arith.addf %63, %6 : vector<16x128xf32>
    %65 = arith.mulf %53, %64 : vector<16x128xf32>
    %66 = arith.addf %62, %65 : vector<16x128xf32>
    %67 = math.tanh %66 : vector<16x128xf32>
    %cst_14 = arith.constant 1.000000e+00 : f32
    %68 = vector.broadcast %cst_14 : f32 to vector<16x128xf32>
    %69 = arith.subf %68, %61 : vector<16x128xf32>
    %70 = arith.mulf %69, %67 : vector<16x128xf32>
    %71 = arith.mulf %61, %7 : vector<16x128xf32>
    %72 = arith.addf %70, %71 : vector<16x128xf32>
    %73 = arith.index_cast %c0_i32 : i32 to index
    %c0_15 = arith.constant 0 : index
    %c0_16 = arith.constant 0 : index
    %74 = vector.load %arg12[%73, %c0_15, %c0_16] : memref<8x32x128xf32, #tpu.memory_space<vmem>>, vector<1x16x128xf32>
    %75 = vector.shape_cast %74 : vector<1x16x128xf32> to vector<16x128xf32>
    %76 = vector.shape_cast %41 : vector<16x128xf32> to vector<1x16x128xf32>
    tpu.vector_store %arg12[%73, %c0_15, %c0_16], %76 {strides = array<i32>} : memref<8x32x128xf32, #tpu.memory_space<vmem>>, vector<1x16x128xf32>,
    %77 = arith.index_cast %8 : i32 to index
    %c16_17 = arith.constant 16 : index
    %c0_18 = arith.constant 0 : index
    %78 = vector.load %arg12[%77, %c16_17, %c0_18] : memref<8x32x128xf32, #tpu.memory_space<vmem>>, vector<1x16x128xf32>
    %79 = vector.shape_cast %78 : vector<1x16x128xf32> to vector<16x128xf32>
    %80 = vector.shape_cast %72 : vector<16x128xf32> to vector<1x16x128xf32>
    tpu.vector_store %arg12[%77, %c16_17, %c0_18], %80 {strides = array<i32>} : memref<8x32x128xf32, #tpu.memory_space<vmem>>, vector<1x16x128xf32>,
    %c1_i32 = arith.constant 1 : i32
    %c7_i32_19 = arith.constant 7 : i32
    %81 = arith.subi %c7_i32_19, %c1_i32 : i32
    %82 = tpu.concatenate %41, %72 in 0 : vector<16x128xf32>, vector<16x128xf32> -> vector<32x128xf32>
    %cst_20 = arith.constant dense<0.000000e+00> : vector<96x128xf32>
    %83 = tpu.matmul %0, %82, %cst_20 {dimension_numbers = #tpu.dot_dimension_numbers<[1], [0], [0], [1], [0, 0, 1, 1], [], []>} : vector<96x32xf32>, vector<32x128xf32>, vector<96x128xf32> -> vector<96x128xf32>
    %84 = arith.index_cast %c1_i32 : i32 to index
    %c0_21 = arith.constant 0 : index
    %c0_22 = arith.constant 0 : index
    %85 = vector.load %arg1[%84, %c0_21, %c0_22] : memref<8x48x128xf32, #tpu.memory_space<vmem>>, vector<1x48x128xf32>
    %86 = vector.shape_cast %85 : vector<1x48x128xf32> to vector<48x128xf32>
    %87 = vector.extract_strided_slice %83 {offsets = [0, 0], sizes = [48, 128], strides = [1, 1]} : vector<96x128xf32> to vector<48x128xf32>
    %88 = vector.extract_strided_slice %86 {offsets = [0, 0], sizes = [16, 128], strides = [1, 1]} : vector<48x128xf32> to vector<16x128xf32>
    %89 = vector.extract_strided_slice %87 {offsets = [0, 0], sizes = [16, 128], strides = [1, 1]} : vector<48x128xf32> to vector<16x128xf32>
    %90 = arith.addf %88, %89 : vector<16x128xf32>
    %91 = arith.negf %90 : vector<16x128xf32>
    %92 = math.exp %91 : vector<16x128xf32>
    %cst_23 = arith.constant 1.000000e+00 : f32
    %93 = vector.broadcast %cst_23 : f32 to vector<16x128xf32>
    %94 = arith.addf %93, %92 : vector<16x128xf32>
    %95 = arith.divf %93, %94 : vector<16x128xf32>
    %96 = vector.extract_strided_slice %86 {offsets = [16, 0], sizes = [16, 128], strides = [1, 1]} : vector<48x128xf32> to vector<16x128xf32>
    %97 = vector.extract_strided_slice %87 {offsets = [16, 0], sizes = [16, 128], strides = [1, 1]} : vector<48x128xf32> to vector<16x128xf32>
    %98 = arith.addf %96, %97 : vector<16x128xf32>
    %99 = arith.negf %98 : vector<16x128xf32>
    %100 = math.exp %99 : vector<16x128xf32>
    %cst_24 = arith.constant 1.000000e+00 : f32
    %101 = vector.broadcast %cst_24 : f32 to vector<16x128xf32>
    %102 = arith.addf %101, %100 : vector<16x128xf32>
    %103 = arith.divf %101, %102 : vector<16x128xf32>
    %104 = vector.extract_strided_slice %86 {offsets = [32, 0], sizes = [16, 128], strides = [1, 1]} : vector<48x128xf32> to vector<16x128xf32>
    %105 = vector.extract_strided_slice %87 {offsets = [32, 0], sizes = [16, 128], strides = [1, 1]} : vector<48x128xf32> to vector<16x128xf32>
    %106 = arith.addf %105, %3 : vector<16x128xf32>
    %107 = arith.mulf %95, %106 : vector<16x128xf32>
    %108 = arith.addf %104, %107 : vector<16x128xf32>
    %109 = math.tanh %108 : vector<16x128xf32>
    %cst_25 = arith.constant 1.000000e+00 : f32
    %110 = vector.broadcast %cst_25 : f32 to vector<16x128xf32>
    %111 = arith.subf %110, %103 : vector<16x128xf32>
    %112 = arith.mulf %111, %109 : vector<16x128xf32>
    %113 = arith.mulf %103, %41 : vector<16x128xf32>
    %114 = arith.addf %112, %113 : vector<16x128xf32>
    %115 = arith.index_cast %81 : i32 to index
    %c0_26 = arith.constant 0 : index
    %c0_27 = arith.constant 0 : index
    %116 = vector.load %arg2[%115, %c0_26, %c0_27] : memref<8x48x128xf32, #tpu.memory_space<vmem>>, vector<1x48x128xf32>
    %117 = vector.shape_cast %116 : vector<1x48x128xf32> to vector<48x128xf32>
    %118 = vector.extract_strided_slice %83 {offsets = [48, 0], sizes = [48, 128], strides = [1, 1]} : vector<96x128xf32> to vector<48x128xf32>
    %119 = vector.extract_strided_slice %117 {offsets = [0, 0], sizes = [16, 128], strides = [1, 1]} : vector<48x128xf32> to vector<16x128xf32>
    %120 = vector.extract_strided_slice %118 {offsets = [0, 0], sizes = [16, 128], strides = [1, 1]} : vector<48x128xf32> to vector<16x128xf32>
    %121 = arith.addf %119, %120 : vector<16x128xf32>
    %122 = arith.negf %121 : vector<16x128xf32>
    %123 = math.exp %122 : vector<16x128xf32>
    %cst_28 = arith.constant 1.000000e+00 : f32
    %124 = vector.broadcast %cst_28 : f32 to vector<16x128xf32>
    %125 = arith.addf %124, %123 : vector<16x128xf32>
    %126 = arith.divf %124, %125 : vector<16x128xf32>
    %127 = vector.extract_strided_slice %117 {offsets = [16, 0], sizes = [16, 128], strides = [1, 1]} : vector<48x128xf32> to vector<16x128xf32>
    %128 = vector.extract_strided_slice %118 {offsets = [16, 0], sizes = [16, 128], strides = [1, 1]} : vector<48x128xf32> to vector<16x128xf32>
    %129 = arith.addf %127, %128 : vector<16x128xf32>
    %130 = arith.negf %129 : vector<16x128xf32>
    %131 = math.exp %130 : vector<16x128xf32>
    %cst_29 = arith.constant 1.000000e+00 : f32
    %132 = vector.broadcast %cst_29 : f32 to vector<16x128xf32>
    %133 = arith.addf %132, %131 : vector<16x128xf32>
    %134 = arith.divf %132, %133 : vector<16x128xf32>
    %135 = vector.extract_strided_slice %117 {offsets = [32, 0], sizes = [16, 128], strides = [1, 1]} : vector<48x128xf32> to vector<16x128xf32>
    %136 = vector.extract_strided_slice %118 {offsets = [32, 0], sizes = [16, 128], strides = [1, 1]} : vector<48x128xf32> to vector<16x128xf32>
    %137 = arith.addf %136, %6 : vector<16x128xf32>
    %138 = arith.mulf %126, %137 : vector<16x128xf32>
    %139 = arith.addf %135, %138 : vector<16x128xf32>
    %140 = math.tanh %139 : vector<16x128xf32>
    %cst_30 = arith.constant 1.000000e+00 : f32
    %141 = vector.broadcast %cst_30 : f32 to vector<16x128xf32>
    %142 = arith.subf %141, %134 : vector<16x128xf32>
    %143 = arith.mulf %142, %140 : vector<16x128xf32>
    %144 = arith.mulf %134, %72 : vector<16x128xf32>
    %145 = arith.addf %143, %144 : vector<16x128xf32>
    %146 = arith.index_cast %c1_i32 : i32 to index
    %c0_31 = arith.constant 0 : index
    %c0_32 = arith.constant 0 : index
    %147 = vector.load %arg12[%146, %c0_31, %c0_32] : memref<8x32x128xf32, #tpu.memory_space<vmem>>, vector<1x16x128xf32>
    %148 = vector.shape_cast %147 : vector<1x16x128xf32> to vector<16x128xf32>
    %149 = vector.shape_cast %114 : vector<16x128xf32> to vector<1x16x128xf32>
    tpu.vector_store %arg12[%146, %c0_31, %c0_32], %149 {strides = array<i32>} : memref<8x32x128xf32, #tpu.memory_space<vmem>>, vector<1x16x128xf32>,
    %150 = arith.index_cast %81 : i32 to index
    %c16_33 = arith.constant 16 : index
    %c0_34 = arith.constant 0 : index
    %151 = vector.load %arg12[%150, %c16_33, %c0_34] : memref<8x32x128xf32, #tpu.memory_space<vmem>>, vector<1x16x128xf32>
    %152 = vector.shape_cast %151 : vector<1x16x128xf32> to vector<16x128xf32>
    %153 = vector.shape_cast %145 : vector<16x128xf32> to vector<1x16x128xf32>
    tpu.vector_store %arg12[%150, %c16_33, %c0_34], %153 {strides = array<i32>} : memref<8x32x128xf32, #tpu.memory_space<vmem>>, vector<1x16x128xf32>,
    %c2_i32 = arith.constant 2 : i32
    %c7_i32_35 = arith.constant 7 : i32
    %154 = arith.subi %c7_i32_35, %c2_i32 : i32
    %155 = tpu.concatenate %114, %145 in 0 : vector<16x128xf32>, vector<16x128xf32> -> vector<32x128xf32>
    %cst_36 = arith.constant dense<0.000000e+00> : vector<96x128xf32>
    %156 = tpu.matmul %0, %155, %cst_36 {dimension_numbers = #tpu.dot_dimension_numbers<[1], [0], [0], [1], [0, 0, 1, 1], [], []>} : vector<96x32xf32>, vector<32x128xf32>, vector<96x128xf32> -> vector<96x128xf32>
    %157 = arith.index_cast %c2_i32 : i32 to index
    %c0_37 = arith.constant 0 : index
    %c0_38 = arith.constant 0 : index
    %158 = vector.load %arg1[%157, %c0_37, %c0_38] : memref<8x48x128xf32, #tpu.memory_space<vmem>>, vector<1x48x128xf32>
    %159 = vector.shape_cast %158 : vector<1x48x128xf32> to vector<48x128xf32>
    %160 = vector.extract_strided_slice %156 {offsets = [0, 0], sizes = [48, 128], strides = [1, 1]} : vector<96x128xf32> to vector<48x128xf32>
    %161 = vector.extract_strided_slice %159 {offsets = [0, 0], sizes = [16, 128], strides = [1, 1]} : vector<48x128xf32> to vector<16x128xf32>
    %162 = vector.extract_strided_slice %160 {offsets = [0, 0], sizes = [16, 128], strides = [1, 1]} : vector<48x128xf32> to vector<16x128xf32>
    %163 = arith.addf %161, %162 : vector<16x128xf32>
    %164 = arith.negf %163 : vector<16x128xf32>
    %165 = math.exp %164 : vector<16x128xf32>
    %cst_39 = arith.constant 1.000000e+00 : f32
    %166 = vector.broadcast %cst_39 : f32 to vector<16x128xf32>
    %167 = arith.addf %166, %165 : vector<16x128xf32>
    %168 = arith.divf %166, %167 : vector<16x128xf32>
    %169 = vector.extract_strided_slice %159 {offsets = [16, 0], sizes = [16, 128], strides = [1, 1]} : vector<48x128xf32> to vector<16x128xf32>
    %170 = vector.extract_strided_slice %160 {offsets = [16, 0], sizes = [16, 128], strides = [1, 1]} : vector<48x128xf32> to vector<16x128xf32>
    %171 = arith.addf %169, %170 : vector<16x128xf32>
    %172 = arith.negf %171 : vector<16x128xf32>
    %173 = math.exp %172 : vector<16x128xf32>
    %cst_40 = arith.constant 1.000000e+00 : f32
    %174 = vector.broadcast %cst_40 : f32 to vector<16x128xf32>
    %175 = arith.addf %174, %173 : vector<16x128xf32>
    %176 = arith.divf %174, %175 : vector<16x128xf32>
    %177 = vector.extract_strided_slice %159 {offsets = [32, 0], sizes = [16, 128], strides = [1, 1]} : vector<48x128xf32> to vector<16x128xf32>
    %178 = vector.extract_strided_slice %160 {offsets = [32, 0], sizes = [16, 128], strides = [1, 1]} : vector<48x128xf32> to vector<16x128xf32>
    %179 = arith.addf %178, %3 : vector<16x128xf32>
    %180 = arith.mulf %168, %179 : vector<16x128xf32>
    %181 = arith.addf %177, %180 : vector<16x128xf32>
    %182 = math.tanh %181 : vector<16x128xf32>
    %cst_41 = arith.constant 1.000000e+00 : f32
    %183 = vector.broadcast %cst_41 : f32 to vector<16x128xf32>
    %184 = arith.subf %183, %176 : vector<16x128xf32>
    %185 = arith.mulf %184, %182 : vector<16x128xf32>
    %186 = arith.mulf %176, %114 : vector<16x128xf32>
    %187 = arith.addf %185, %186 : vector<16x128xf32>
    %188 = arith.index_cast %154 : i32 to index
    %c0_42 = arith.constant 0 : index
    %c0_43 = arith.constant 0 : index
    %189 = vector.load %arg2[%188, %c0_42, %c0_43] : memref<8x48x128xf32, #tpu.memory_space<vmem>>, vector<1x48x128xf32>
    %190 = vector.shape_cast %189 : vector<1x48x128xf32> to vector<48x128xf32>
    %191 = vector.extract_strided_slice %156 {offsets = [48, 0], sizes = [48, 128], strides = [1, 1]} : vector<96x128xf32> to vector<48x128xf32>
    %192 = vector.extract_strided_slice %190 {offsets = [0, 0], sizes = [16, 128], strides = [1, 1]} : vector<48x128xf32> to vector<16x128xf32>
    %193 = vector.extract_strided_slice %191 {offsets = [0, 0], sizes = [16, 128], strides = [1, 1]} : vector<48x128xf32> to vector<16x128xf32>
    %194 = arith.addf %192, %193 : vector<16x128xf32>
    %195 = arith.negf %194 : vector<16x128xf32>
    %196 = math.exp %195 : vector<16x128xf32>
    %cst_44 = arith.constant 1.000000e+00 : f32
    %197 = vector.broadcast %cst_44 : f32 to vector<16x128xf32>
    %198 = arith.addf %197, %196 : vector<16x128xf32>
    %199 = arith.divf %197, %198 : vector<16x128xf32>
    %200 = vector.extract_strided_slice %190 {offsets = [16, 0], sizes = [16, 128], strides = [1, 1]} : vector<48x128xf32> to vector<16x128xf32>
    %201 = vector.extract_strided_slice %191 {offsets = [16, 0], sizes = [16, 128], strides = [1, 1]} : vector<48x128xf32> to vector<16x128xf32>
    %202 = arith.addf %200, %201 : vector<16x128xf32>
    %203 = arith.negf %202 : vector<16x128xf32>
    %204 = math.exp %203 : vector<16x128xf32>
    %cst_45 = arith.constant 1.000000e+00 : f32
    %205 = vector.broadcast %cst_45 : f32 to vector<16x128xf32>
    %206 = arith.addf %205, %204 : vector<16x128xf32>
    %207 = arith.divf %205, %206 : vector<16x128xf32>
    %208 = vector.extract_strided_slice %190 {offsets = [32, 0], sizes = [16, 128], strides = [1, 1]} : vector<48x128xf32> to vector<16x128xf32>
    %209 = vector.extract_strided_slice %191 {offsets = [32, 0], sizes = [16, 128], strides = [1, 1]} : vector<48x128xf32> to vector<16x128xf32>
    %210 = arith.addf %209, %6 : vector<16x128xf32>
    %211 = arith.mulf %199, %210 : vector<16x128xf32>
    %212 = arith.addf %208, %211 : vector<16x128xf32>
    %213 = math.tanh %212 : vector<16x128xf32>
    %cst_46 = arith.constant 1.000000e+00 : f32
    %214 = vector.broadcast %cst_46 : f32 to vector<16x128xf32>
    %215 = arith.subf %214, %207 : vector<16x128xf32>
    %216 = arith.mulf %215, %213 : vector<16x128xf32>
    %217 = arith.mulf %207, %145 : vector<16x128xf32>
    %218 = arith.addf %216, %217 : vector<16x128xf32>
    %219 = arith.index_cast %c2_i32 : i32 to index
    %c0_47 = arith.constant 0 : index
    %c0_48 = arith.constant 0 : index
    %220 = vector.load %arg12[%219, %c0_47, %c0_48] : memref<8x32x128xf32, #tpu.memory_space<vmem>>, vector<1x16x128xf32>
    %221 = vector.shape_cast %220 : vector<1x16x128xf32> to vector<16x128xf32>
    %222 = vector.shape_cast %187 : vector<16x128xf32> to vector<1x16x128xf32>
    tpu.vector_store %arg12[%219, %c0_47, %c0_48], %222 {strides = array<i32>} : memref<8x32x128xf32, #tpu.memory_space<vmem>>, vector<1x16x128xf32>,
    %223 = arith.index_cast %154 : i32 to index
    %c16_49 = arith.constant 16 : index
    %c0_50 = arith.constant 0 : index
    %224 = vector.load %arg12[%223, %c16_49, %c0_50] : memref<8x32x128xf32, #tpu.memory_space<vmem>>, vector<1x16x128xf32>
    %225 = vector.shape_cast %224 : vector<1x16x128xf32> to vector<16x128xf32>
    %226 = vector.shape_cast %218 : vector<16x128xf32> to vector<1x16x128xf32>
    tpu.vector_store %arg12[%223, %c16_49, %c0_50], %226 {strides = array<i32>} : memref<8x32x128xf32, #tpu.memory_space<vmem>>, vector<1x16x128xf32>,
    %c3_i32 = arith.constant 3 : i32
    %c7_i32_51 = arith.constant 7 : i32
    %227 = arith.subi %c7_i32_51, %c3_i32 : i32
    %228 = tpu.concatenate %187, %218 in 0 : vector<16x128xf32>, vector<16x128xf32> -> vector<32x128xf32>
    %cst_52 = arith.constant dense<0.000000e+00> : vector<96x128xf32>
    %229 = tpu.matmul %0, %228, %cst_52 {dimension_numbers = #tpu.dot_dimension_numbers<[1], [0], [0], [1], [0, 0, 1, 1], [], []>} : vector<96x32xf32>, vector<32x128xf32>, vector<96x128xf32> -> vector<96x128xf32>
    %230 = arith.index_cast %c3_i32 : i32 to index
    %c0_53 = arith.constant 0 : index
    %c0_54 = arith.constant 0 : index
    %231 = vector.load %arg1[%230, %c0_53, %c0_54] : memref<8x48x128xf32, #tpu.memory_space<vmem>>, vector<1x48x128xf32>
    %232 = vector.shape_cast %231 : vector<1x48x128xf32> to vector<48x128xf32>
    %233 = vector.extract_strided_slice %229 {offsets = [0, 0], sizes = [48, 128], strides = [1, 1]} : vector<96x128xf32> to vector<48x128xf32>
    %234 = vector.extract_strided_slice %232 {offsets = [0, 0], sizes = [16, 128], strides = [1, 1]} : vector<48x128xf32> to vector<16x128xf32>
    %235 = vector.extract_strided_slice %233 {offsets = [0, 0], sizes = [16, 128], strides = [1, 1]} : vector<48x128xf32> to vector<16x128xf32>
    %236 = arith.addf %234, %235 : vector<16x128xf32>
    %237 = arith.negf %236 : vector<16x128xf32>
    %238 = math.exp %237 : vector<16x128xf32>
    %cst_55 = arith.constant 1.000000e+00 : f32
    %239 = vector.broadcast %cst_55 : f32 to vector<16x128xf32>
    %240 = arith.addf %239, %238 : vector<16x128xf32>
    %241 = arith.divf %239, %240 : vector<16x128xf32>
    %242 = vector.extract_strided_slice %232 {offsets = [16, 0], sizes = [16, 128], strides = [1, 1]} : vector<48x128xf32> to vector<16x128xf32>
    %243 = vector.extract_strided_slice %233 {offsets = [16, 0], sizes = [16, 128], strides = [1, 1]} : vector<48x128xf32> to vector<16x128xf32>
    %244 = arith.addf %242, %243 : vector<16x128xf32>
    %245 = arith.negf %244 : vector<16x128xf32>
    %246 = math.exp %245 : vector<16x128xf32>
    %cst_56 = arith.constant 1.000000e+00 : f32
    %247 = vector.broadcast %cst_56 : f32 to vector<16x128xf32>
    %248 = arith.addf %247, %246 : vector<16x128xf32>
    %249 = arith.divf %247, %248 : vector<16x128xf32>
    %250 = vector.extract_strided_slice %232 {offsets = [32, 0], sizes = [16, 128], strides = [1, 1]} : vector<48x128xf32> to vector<16x128xf32>
    %251 = vector.extract_strided_slice %233 {offsets = [32, 0], sizes = [16, 128], strides = [1, 1]} : vector<48x128xf32> to vector<16x128xf32>
    %252 = arith.addf %251, %3 : vector<16x128xf32>
    %253 = arith.mulf %241, %252 : vector<16x128xf32>
    %254 = arith.addf %250, %253 : vector<16x128xf32>
    %255 = math.tanh %254 : vector<16x128xf32>
    %cst_57 = arith.constant 1.000000e+00 : f32
    %256 = vector.broadcast %cst_57 : f32 to vector<16x128xf32>
    %257 = arith.subf %256, %249 : vector<16x128xf32>
    %258 = arith.mulf %257, %255 : vector<16x128xf32>
    %259 = arith.mulf %249, %187 : vector<16x128xf32>
    %260 = arith.addf %258, %259 : vector<16x128xf32>
    %261 = arith.index_cast %227 : i32 to index
    %c0_58 = arith.constant 0 : index
    %c0_59 = arith.constant 0 : index
    %262 = vector.load %arg2[%261, %c0_58, %c0_59] : memref<8x48x128xf32, #tpu.memory_space<vmem>>, vector<1x48x128xf32>
    %263 = vector.shape_cast %262 : vector<1x48x128xf32> to vector<48x128xf32>
    %264 = vector.extract_strided_slice %229 {offsets = [48, 0], sizes = [48, 128], strides = [1, 1]} : vector<96x128xf32> to vector<48x128xf32>
    %265 = vector.extract_strided_slice %263 {offsets = [0, 0], sizes = [16, 128], strides = [1, 1]} : vector<48x128xf32> to vector<16x128xf32>
    %266 = vector.extract_strided_slice %264 {offsets = [0, 0], sizes = [16, 128], strides = [1, 1]} : vector<48x128xf32> to vector<16x128xf32>
    %267 = arith.addf %265, %266 : vector<16x128xf32>
    %268 = arith.negf %267 : vector<16x128xf32>
    %269 = math.exp %268 : vector<16x128xf32>
    %cst_60 = arith.constant 1.000000e+00 : f32
    %270 = vector.broadcast %cst_60 : f32 to vector<16x128xf32>
    %271 = arith.addf %270, %269 : vector<16x128xf32>
    %272 = arith.divf %270, %271 : vector<16x128xf32>
    %273 = vector.extract_strided_slice %263 {offsets = [16, 0], sizes = [16, 128], strides = [1, 1]} : vector<48x128xf32> to vector<16x128xf32>
    %274 = vector.extract_strided_slice %264 {offsets = [16, 0], sizes = [16, 128], strides = [1, 1]} : vector<48x128xf32> to vector<16x128xf32>
    %275 = arith.addf %273, %274 : vector<16x128xf32>
    %276 = arith.negf %275 : vector<16x128xf32>
    %277 = math.exp %276 : vector<16x128xf32>
    %cst_61 = arith.constant 1.000000e+00 : f32
    %278 = vector.broadcast %cst_61 : f32 to vector<16x128xf32>
    %279 = arith.addf %278, %277 : vector<16x128xf32>
    %280 = arith.divf %278, %279 : vector<16x128xf32>
    %281 = vector.extract_strided_slice %263 {offsets = [32, 0], sizes = [16, 128], strides = [1, 1]} : vector<48x128xf32> to vector<16x128xf32>
    %282 = vector.extract_strided_slice %264 {offsets = [32, 0], sizes = [16, 128], strides = [1, 1]} : vector<48x128xf32> to vector<16x128xf32>
    %283 = arith.addf %282, %6 : vector<16x128xf32>
    %284 = arith.mulf %272, %283 : vector<16x128xf32>
    %285 = arith.addf %281, %284 : vector<16x128xf32>
    %286 = math.tanh %285 : vector<16x128xf32>
    %cst_62 = arith.constant 1.000000e+00 : f32
    %287 = vector.broadcast %cst_62 : f32 to vector<16x128xf32>
    %288 = arith.subf %287, %280 : vector<16x128xf32>
    %289 = arith.mulf %288, %286 : vector<16x128xf32>
    %290 = arith.mulf %280, %218 : vector<16x128xf32>
    %291 = arith.addf %289, %290 : vector<16x128xf32>
    %292 = arith.index_cast %c3_i32 : i32 to index
    %c0_63 = arith.constant 0 : index
    %c0_64 = arith.constant 0 : index
    %293 = vector.load %arg12[%292, %c0_63, %c0_64] : memref<8x32x128xf32, #tpu.memory_space<vmem>>, vector<1x16x128xf32>
    %294 = vector.shape_cast %293 : vector<1x16x128xf32> to vector<16x128xf32>
    %295 = vector.shape_cast %260 : vector<16x128xf32> to vector<1x16x128xf32>
    tpu.vector_store %arg12[%292, %c0_63, %c0_64], %295 {strides = array<i32>} : memref<8x32x128xf32, #tpu.memory_space<vmem>>, vector<1x16x128xf32>,
    %296 = arith.index_cast %227 : i32 to index
    %c16_65 = arith.constant 16 : index
    %c0_66 = arith.constant 0 : index
    %297 = vector.load %arg12[%296, %c16_65, %c0_66] : memref<8x32x128xf32, #tpu.memory_space<vmem>>, vector<1x16x128xf32>
    %298 = vector.shape_cast %297 : vector<1x16x128xf32> to vector<16x128xf32>
    %299 = vector.shape_cast %291 : vector<16x128xf32> to vector<1x16x128xf32>
    tpu.vector_store %arg12[%296, %c16_65, %c0_66], %299 {strides = array<i32>} : memref<8x32x128xf32, #tpu.memory_space<vmem>>, vector<1x16x128xf32>,
    %c4_i32 = arith.constant 4 : i32
    %c7_i32_67 = arith.constant 7 : i32
    %300 = arith.subi %c7_i32_67, %c4_i32 : i32
    %301 = tpu.concatenate %260, %291 in 0 : vector<16x128xf32>, vector<16x128xf32> -> vector<32x128xf32>
    %cst_68 = arith.constant dense<0.000000e+00> : vector<96x128xf32>
    %302 = tpu.matmul %0, %301, %cst_68 {dimension_numbers = #tpu.dot_dimension_numbers<[1], [0], [0], [1], [0, 0, 1, 1], [], []>} : vector<96x32xf32>, vector<32x128xf32>, vector<96x128xf32> -> vector<96x128xf32>
    %303 = arith.index_cast %c4_i32 : i32 to index
    %c0_69 = arith.constant 0 : index
    %c0_70 = arith.constant 0 : index
    %304 = vector.load %arg1[%303, %c0_69, %c0_70] : memref<8x48x128xf32, #tpu.memory_space<vmem>>, vector<1x48x128xf32>
    %305 = vector.shape_cast %304 : vector<1x48x128xf32> to vector<48x128xf32>
    %306 = vector.extract_strided_slice %302 {offsets = [0, 0], sizes = [48, 128], strides = [1, 1]} : vector<96x128xf32> to vector<48x128xf32>
    %307 = vector.extract_strided_slice %305 {offsets = [0, 0], sizes = [16, 128], strides = [1, 1]} : vector<48x128xf32> to vector<16x128xf32>
    %308 = vector.extract_strided_slice %306 {offsets = [0, 0], sizes = [16, 128], strides = [1, 1]} : vector<48x128xf32> to vector<16x128xf32>
    %309 = arith.addf %307, %308 : vector<16x128xf32>
    %310 = arith.negf %309 : vector<16x128xf32>
    %311 = math.exp %310 : vector<16x128xf32>
    %cst_71 = arith.constant 1.000000e+00 : f32
    %312 = vector.broadcast %cst_71 : f32 to vector<16x128xf32>
    %313 = arith.addf %312, %311 : vector<16x128xf32>
    %314 = arith.divf %312, %313 : vector<16x128xf32>
    %315 = vector.extract_strided_slice %305 {offsets = [16, 0], sizes = [16, 128], strides = [1, 1]} : vector<48x128xf32> to vector<16x128xf32>
    %316 = vector.extract_strided_slice %306 {offsets = [16, 0], sizes = [16, 128], strides = [1, 1]} : vector<48x128xf32> to vector<16x128xf32>
    %317 = arith.addf %315, %316 : vector<16x128xf32>
    %318 = arith.negf %317 : vector<16x128xf32>
    %319 = math.exp %318 : vector<16x128xf32>
    %cst_72 = arith.constant 1.000000e+00 : f32
    %320 = vector.broadcast %cst_72 : f32 to vector<16x128xf32>
    %321 = arith.addf %320, %319 : vector<16x128xf32>
    %322 = arith.divf %320, %321 : vector<16x128xf32>
    %323 = vector.extract_strided_slice %305 {offsets = [32, 0], sizes = [16, 128], strides = [1, 1]} : vector<48x128xf32> to vector<16x128xf32>
    %324 = vector.extract_strided_slice %306 {offsets = [32, 0], sizes = [16, 128], strides = [1, 1]} : vector<48x128xf32> to vector<16x128xf32>
    %325 = arith.addf %324, %3 : vector<16x128xf32>
    %326 = arith.mulf %314, %325 : vector<16x128xf32>
    %327 = arith.addf %323, %326 : vector<16x128xf32>
    %328 = math.tanh %327 : vector<16x128xf32>
    %cst_73 = arith.constant 1.000000e+00 : f32
    %329 = vector.broadcast %cst_73 : f32 to vector<16x128xf32>
    %330 = arith.subf %329, %322 : vector<16x128xf32>
    %331 = arith.mulf %330, %328 : vector<16x128xf32>
    %332 = arith.mulf %322, %260 : vector<16x128xf32>
    %333 = arith.addf %331, %332 : vector<16x128xf32>
    %334 = arith.index_cast %300 : i32 to index
    %c0_74 = arith.constant 0 : index
    %c0_75 = arith.constant 0 : index
    %335 = vector.load %arg2[%334, %c0_74, %c0_75] : memref<8x48x128xf32, #tpu.memory_space<vmem>>, vector<1x48x128xf32>
    %336 = vector.shape_cast %335 : vector<1x48x128xf32> to vector<48x128xf32>
    %337 = vector.extract_strided_slice %302 {offsets = [48, 0], sizes = [48, 128], strides = [1, 1]} : vector<96x128xf32> to vector<48x128xf32>
    %338 = vector.extract_strided_slice %336 {offsets = [0, 0], sizes = [16, 128], strides = [1, 1]} : vector<48x128xf32> to vector<16x128xf32>
    %339 = vector.extract_strided_slice %337 {offsets = [0, 0], sizes = [16, 128], strides = [1, 1]} : vector<48x128xf32> to vector<16x128xf32>
    %340 = arith.addf %338, %339 : vector<16x128xf32>
    %341 = arith.negf %340 : vector<16x128xf32>
    %342 = math.exp %341 : vector<16x128xf32>
    %cst_76 = arith.constant 1.000000e+00 : f32
    %343 = vector.broadcast %cst_76 : f32 to vector<16x128xf32>
    %344 = arith.addf %343, %342 : vector<16x128xf32>
    %345 = arith.divf %343, %344 : vector<16x128xf32>
    %346 = vector.extract_strided_slice %336 {offsets = [16, 0], sizes = [16, 128], strides = [1, 1]} : vector<48x128xf32> to vector<16x128xf32>
    %347 = vector.extract_strided_slice %337 {offsets = [16, 0], sizes = [16, 128], strides = [1, 1]} : vector<48x128xf32> to vector<16x128xf32>
    %348 = arith.addf %346, %347 : vector<16x128xf32>
    %349 = arith.negf %348 : vector<16x128xf32>
    %350 = math.exp %349 : vector<16x128xf32>
    %cst_77 = arith.constant 1.000000e+00 : f32
    %351 = vector.broadcast %cst_77 : f32 to vector<16x128xf32>
    %352 = arith.addf %351, %350 : vector<16x128xf32>
    %353 = arith.divf %351, %352 : vector<16x128xf32>
    %354 = vector.extract_strided_slice %336 {offsets = [32, 0], sizes = [16, 128], strides = [1, 1]} : vector<48x128xf32> to vector<16x128xf32>
    %355 = vector.extract_strided_slice %337 {offsets = [32, 0], sizes = [16, 128], strides = [1, 1]} : vector<48x128xf32> to vector<16x128xf32>
    %356 = arith.addf %355, %6 : vector<16x128xf32>
    %357 = arith.mulf %345, %356 : vector<16x128xf32>
    %358 = arith.addf %354, %357 : vector<16x128xf32>
    %359 = math.tanh %358 : vector<16x128xf32>
    %cst_78 = arith.constant 1.000000e+00 : f32
    %360 = vector.broadcast %cst_78 : f32 to vector<16x128xf32>
    %361 = arith.subf %360, %353 : vector<16x128xf32>
    %362 = arith.mulf %361, %359 : vector<16x128xf32>
    %363 = arith.mulf %353, %291 : vector<16x128xf32>
    %364 = arith.addf %362, %363 : vector<16x128xf32>
    %365 = arith.index_cast %c4_i32 : i32 to index
    %c0_79 = arith.constant 0 : index
    %c0_80 = arith.constant 0 : index
    %366 = vector.load %arg12[%365, %c0_79, %c0_80] : memref<8x32x128xf32, #tpu.memory_space<vmem>>, vector<1x16x128xf32>
    %367 = vector.shape_cast %366 : vector<1x16x128xf32> to vector<16x128xf32>
    %368 = vector.shape_cast %333 : vector<16x128xf32> to vector<1x16x128xf32>
    tpu.vector_store %arg12[%365, %c0_79, %c0_80], %368 {strides = array<i32>} : memref<8x32x128xf32, #tpu.memory_space<vmem>>, vector<1x16x128xf32>,
    %369 = arith.index_cast %300 : i32 to index
    %c16_81 = arith.constant 16 : index
    %c0_82 = arith.constant 0 : index
    %370 = vector.load %arg12[%369, %c16_81, %c0_82] : memref<8x32x128xf32, #tpu.memory_space<vmem>>, vector<1x16x128xf32>
    %371 = vector.shape_cast %370 : vector<1x16x128xf32> to vector<16x128xf32>
    %372 = vector.shape_cast %364 : vector<16x128xf32> to vector<1x16x128xf32>
    tpu.vector_store %arg12[%369, %c16_81, %c0_82], %372 {strides = array<i32>} : memref<8x32x128xf32, #tpu.memory_space<vmem>>, vector<1x16x128xf32>,
    %c5_i32 = arith.constant 5 : i32
    %c7_i32_83 = arith.constant 7 : i32
    %373 = arith.subi %c7_i32_83, %c5_i32 : i32
    %374 = tpu.concatenate %333, %364 in 0 : vector<16x128xf32>, vector<16x128xf32> -> vector<32x128xf32>
    %cst_84 = arith.constant dense<0.000000e+00> : vector<96x128xf32>
    %375 = tpu.matmul %0, %374, %cst_84 {dimension_numbers = #tpu.dot_dimension_numbers<[1], [0], [0], [1], [0, 0, 1, 1], [], []>} : vector<96x32xf32>, vector<32x128xf32>, vector<96x128xf32> -> vector<96x128xf32>
    %376 = arith.index_cast %c5_i32 : i32 to index
    %c0_85 = arith.constant 0 : index
    %c0_86 = arith.constant 0 : index
    %377 = vector.load %arg1[%376, %c0_85, %c0_86] : memref<8x48x128xf32, #tpu.memory_space<vmem>>, vector<1x48x128xf32>
    %378 = vector.shape_cast %377 : vector<1x48x128xf32> to vector<48x128xf32>
    %379 = vector.extract_strided_slice %375 {offsets = [0, 0], sizes = [48, 128], strides = [1, 1]} : vector<96x128xf32> to vector<48x128xf32>
    %380 = vector.extract_strided_slice %378 {offsets = [0, 0], sizes = [16, 128], strides = [1, 1]} : vector<48x128xf32> to vector<16x128xf32>
    %381 = vector.extract_strided_slice %379 {offsets = [0, 0], sizes = [16, 128], strides = [1, 1]} : vector<48x128xf32> to vector<16x128xf32>
    %382 = arith.addf %380, %381 : vector<16x128xf32>
    %383 = arith.negf %382 : vector<16x128xf32>
    %384 = math.exp %383 : vector<16x128xf32>
    %cst_87 = arith.constant 1.000000e+00 : f32
    %385 = vector.broadcast %cst_87 : f32 to vector<16x128xf32>
    %386 = arith.addf %385, %384 : vector<16x128xf32>
    %387 = arith.divf %385, %386 : vector<16x128xf32>
    %388 = vector.extract_strided_slice %378 {offsets = [16, 0], sizes = [16, 128], strides = [1, 1]} : vector<48x128xf32> to vector<16x128xf32>
    %389 = vector.extract_strided_slice %379 {offsets = [16, 0], sizes = [16, 128], strides = [1, 1]} : vector<48x128xf32> to vector<16x128xf32>
    %390 = arith.addf %388, %389 : vector<16x128xf32>
    %391 = arith.negf %390 : vector<16x128xf32>
    %392 = math.exp %391 : vector<16x128xf32>
    %cst_88 = arith.constant 1.000000e+00 : f32
    %393 = vector.broadcast %cst_88 : f32 to vector<16x128xf32>
    %394 = arith.addf %393, %392 : vector<16x128xf32>
    %395 = arith.divf %393, %394 : vector<16x128xf32>
    %396 = vector.extract_strided_slice %378 {offsets = [32, 0], sizes = [16, 128], strides = [1, 1]} : vector<48x128xf32> to vector<16x128xf32>
    %397 = vector.extract_strided_slice %379 {offsets = [32, 0], sizes = [16, 128], strides = [1, 1]} : vector<48x128xf32> to vector<16x128xf32>
    %398 = arith.addf %397, %3 : vector<16x128xf32>
    %399 = arith.mulf %387, %398 : vector<16x128xf32>
    %400 = arith.addf %396, %399 : vector<16x128xf32>
    %401 = math.tanh %400 : vector<16x128xf32>
    %cst_89 = arith.constant 1.000000e+00 : f32
    %402 = vector.broadcast %cst_89 : f32 to vector<16x128xf32>
    %403 = arith.subf %402, %395 : vector<16x128xf32>
    %404 = arith.mulf %403, %401 : vector<16x128xf32>
    %405 = arith.mulf %395, %333 : vector<16x128xf32>
    %406 = arith.addf %404, %405 : vector<16x128xf32>
    %407 = arith.index_cast %373 : i32 to index
    %c0_90 = arith.constant 0 : index
    %c0_91 = arith.constant 0 : index
    %408 = vector.load %arg2[%407, %c0_90, %c0_91] : memref<8x48x128xf32, #tpu.memory_space<vmem>>, vector<1x48x128xf32>
    %409 = vector.shape_cast %408 : vector<1x48x128xf32> to vector<48x128xf32>
    %410 = vector.extract_strided_slice %375 {offsets = [48, 0], sizes = [48, 128], strides = [1, 1]} : vector<96x128xf32> to vector<48x128xf32>
    %411 = vector.extract_strided_slice %409 {offsets = [0, 0], sizes = [16, 128], strides = [1, 1]} : vector<48x128xf32> to vector<16x128xf32>
    %412 = vector.extract_strided_slice %410 {offsets = [0, 0], sizes = [16, 128], strides = [1, 1]} : vector<48x128xf32> to vector<16x128xf32>
    %413 = arith.addf %411, %412 : vector<16x128xf32>
    %414 = arith.negf %413 : vector<16x128xf32>
    %415 = math.exp %414 : vector<16x128xf32>
    %cst_92 = arith.constant 1.000000e+00 : f32
    %416 = vector.broadcast %cst_92 : f32 to vector<16x128xf32>
    %417 = arith.addf %416, %415 : vector<16x128xf32>
    %418 = arith.divf %416, %417 : vector<16x128xf32>
    %419 = vector.extract_strided_slice %409 {offsets = [16, 0], sizes = [16, 128], strides = [1, 1]} : vector<48x128xf32> to vector<16x128xf32>
    %420 = vector.extract_strided_slice %410 {offsets = [16, 0], sizes = [16, 128], strides = [1, 1]} : vector<48x128xf32> to vector<16x128xf32>
    %421 = arith.addf %419, %420 : vector<16x128xf32>
    %422 = arith.negf %421 : vector<16x128xf32>
    %423 = math.exp %422 : vector<16x128xf32>
    %cst_93 = arith.constant 1.000000e+00 : f32
    %424 = vector.broadcast %cst_93 : f32 to vector<16x128xf32>
    %425 = arith.addf %424, %423 : vector<16x128xf32>
    %426 = arith.divf %424, %425 : vector<16x128xf32>
    %427 = vector.extract_strided_slice %409 {offsets = [32, 0], sizes = [16, 128], strides = [1, 1]} : vector<48x128xf32> to vector<16x128xf32>
    %428 = vector.extract_strided_slice %410 {offsets = [32, 0], sizes = [16, 128], strides = [1, 1]} : vector<48x128xf32> to vector<16x128xf32>
    %429 = arith.addf %428, %6 : vector<16x128xf32>
    %430 = arith.mulf %418, %429 : vector<16x128xf32>
    %431 = arith.addf %427, %430 : vector<16x128xf32>
    %432 = math.tanh %431 : vector<16x128xf32>
    %cst_94 = arith.constant 1.000000e+00 : f32
    %433 = vector.broadcast %cst_94 : f32 to vector<16x128xf32>
    %434 = arith.subf %433, %426 : vector<16x128xf32>
    %435 = arith.mulf %434, %432 : vector<16x128xf32>
    %436 = arith.mulf %426, %364 : vector<16x128xf32>
    %437 = arith.addf %435, %436 : vector<16x128xf32>
    %438 = arith.index_cast %c5_i32 : i32 to index
    %c0_95 = arith.constant 0 : index
    %c0_96 = arith.constant 0 : index
    %439 = vector.load %arg12[%438, %c0_95, %c0_96] : memref<8x32x128xf32, #tpu.memory_space<vmem>>, vector<1x16x128xf32>
    %440 = vector.shape_cast %439 : vector<1x16x128xf32> to vector<16x128xf32>
    %441 = vector.shape_cast %406 : vector<16x128xf32> to vector<1x16x128xf32>
    tpu.vector_store %arg12[%438, %c0_95, %c0_96], %441 {strides = array<i32>} : memref<8x32x128xf32, #tpu.memory_space<vmem>>, vector<1x16x128xf32>,
    %442 = arith.index_cast %373 : i32 to index
    %c16_97 = arith.constant 16 : index
    %c0_98 = arith.constant 0 : index
    %443 = vector.load %arg12[%442, %c16_97, %c0_98] : memref<8x32x128xf32, #tpu.memory_space<vmem>>, vector<1x16x128xf32>
    %444 = vector.shape_cast %443 : vector<1x16x128xf32> to vector<16x128xf32>
    %445 = vector.shape_cast %437 : vector<16x128xf32> to vector<1x16x128xf32>
    tpu.vector_store %arg12[%442, %c16_97, %c0_98], %445 {strides = array<i32>} : memref<8x32x128xf32, #tpu.memory_space<vmem>>, vector<1x16x128xf32>,
    %c6_i32 = arith.constant 6 : i32
    %c7_i32_99 = arith.constant 7 : i32
    %446 = arith.subi %c7_i32_99, %c6_i32 : i32
    %447 = tpu.concatenate %406, %437 in 0 : vector<16x128xf32>, vector<16x128xf32> -> vector<32x128xf32>
    %cst_100 = arith.constant dense<0.000000e+00> : vector<96x128xf32>
    %448 = tpu.matmul %0, %447, %cst_100 {dimension_numbers = #tpu.dot_dimension_numbers<[1], [0], [0], [1], [0, 0, 1, 1], [], []>} : vector<96x32xf32>, vector<32x128xf32>, vector<96x128xf32> -> vector<96x128xf32>
    %449 = arith.index_cast %c6_i32 : i32 to index
    %c0_101 = arith.constant 0 : index
    %c0_102 = arith.constant 0 : index
    %450 = vector.load %arg1[%449, %c0_101, %c0_102] : memref<8x48x128xf32, #tpu.memory_space<vmem>>, vector<1x48x128xf32>
    %451 = vector.shape_cast %450 : vector<1x48x128xf32> to vector<48x128xf32>
    %452 = vector.extract_strided_slice %448 {offsets = [0, 0], sizes = [48, 128], strides = [1, 1]} : vector<96x128xf32> to vector<48x128xf32>
    %453 = vector.extract_strided_slice %451 {offsets = [0, 0], sizes = [16, 128], strides = [1, 1]} : vector<48x128xf32> to vector<16x128xf32>
    %454 = vector.extract_strided_slice %452 {offsets = [0, 0], sizes = [16, 128], strides = [1, 1]} : vector<48x128xf32> to vector<16x128xf32>
    %455 = arith.addf %453, %454 : vector<16x128xf32>
    %456 = arith.negf %455 : vector<16x128xf32>
    %457 = math.exp %456 : vector<16x128xf32>
    %cst_103 = arith.constant 1.000000e+00 : f32
    %458 = vector.broadcast %cst_103 : f32 to vector<16x128xf32>
    %459 = arith.addf %458, %457 : vector<16x128xf32>
    %460 = arith.divf %458, %459 : vector<16x128xf32>
    %461 = vector.extract_strided_slice %451 {offsets = [16, 0], sizes = [16, 128], strides = [1, 1]} : vector<48x128xf32> to vector<16x128xf32>
    %462 = vector.extract_strided_slice %452 {offsets = [16, 0], sizes = [16, 128], strides = [1, 1]} : vector<48x128xf32> to vector<16x128xf32>
    %463 = arith.addf %461, %462 : vector<16x128xf32>
    %464 = arith.negf %463 : vector<16x128xf32>
    %465 = math.exp %464 : vector<16x128xf32>
    %cst_104 = arith.constant 1.000000e+00 : f32
    %466 = vector.broadcast %cst_104 : f32 to vector<16x128xf32>
    %467 = arith.addf %466, %465 : vector<16x128xf32>
    %468 = arith.divf %466, %467 : vector<16x128xf32>
    %469 = vector.extract_strided_slice %451 {offsets = [32, 0], sizes = [16, 128], strides = [1, 1]} : vector<48x128xf32> to vector<16x128xf32>
    %470 = vector.extract_strided_slice %452 {offsets = [32, 0], sizes = [16, 128], strides = [1, 1]} : vector<48x128xf32> to vector<16x128xf32>
    %471 = arith.addf %470, %3 : vector<16x128xf32>
    %472 = arith.mulf %460, %471 : vector<16x128xf32>
    %473 = arith.addf %469, %472 : vector<16x128xf32>
    %474 = math.tanh %473 : vector<16x128xf32>
    %cst_105 = arith.constant 1.000000e+00 : f32
    %475 = vector.broadcast %cst_105 : f32 to vector<16x128xf32>
    %476 = arith.subf %475, %468 : vector<16x128xf32>
    %477 = arith.mulf %476, %474 : vector<16x128xf32>
    %478 = arith.mulf %468, %406 : vector<16x128xf32>
    %479 = arith.addf %477, %478 : vector<16x128xf32>
    %480 = arith.index_cast %446 : i32 to index
    %c0_106 = arith.constant 0 : index
    %c0_107 = arith.constant 0 : index
    %481 = vector.load %arg2[%480, %c0_106, %c0_107] : memref<8x48x128xf32, #tpu.memory_space<vmem>>, vector<1x48x128xf32>
    %482 = vector.shape_cast %481 : vector<1x48x128xf32> to vector<48x128xf32>
    %483 = vector.extract_strided_slice %448 {offsets = [48, 0], sizes = [48, 128], strides = [1, 1]} : vector<96x128xf32> to vector<48x128xf32>
    %484 = vector.extract_strided_slice %482 {offsets = [0, 0], sizes = [16, 128], strides = [1, 1]} : vector<48x128xf32> to vector<16x128xf32>
    %485 = vector.extract_strided_slice %483 {offsets = [0, 0], sizes = [16, 128], strides = [1, 1]} : vector<48x128xf32> to vector<16x128xf32>
    %486 = arith.addf %484, %485 : vector<16x128xf32>
    %487 = arith.negf %486 : vector<16x128xf32>
    %488 = math.exp %487 : vector<16x128xf32>
    %cst_108 = arith.constant 1.000000e+00 : f32
    %489 = vector.broadcast %cst_108 : f32 to vector<16x128xf32>
    %490 = arith.addf %489, %488 : vector<16x128xf32>
    %491 = arith.divf %489, %490 : vector<16x128xf32>
    %492 = vector.extract_strided_slice %482 {offsets = [16, 0], sizes = [16, 128], strides = [1, 1]} : vector<48x128xf32> to vector<16x128xf32>
    %493 = vector.extract_strided_slice %483 {offsets = [16, 0], sizes = [16, 128], strides = [1, 1]} : vector<48x128xf32> to vector<16x128xf32>
    %494 = arith.addf %492, %493 : vector<16x128xf32>
    %495 = arith.negf %494 : vector<16x128xf32>
    %496 = math.exp %495 : vector<16x128xf32>
    %cst_109 = arith.constant 1.000000e+00 : f32
    %497 = vector.broadcast %cst_109 : f32 to vector<16x128xf32>
    %498 = arith.addf %497, %496 : vector<16x128xf32>
    %499 = arith.divf %497, %498 : vector<16x128xf32>
    %500 = vector.extract_strided_slice %482 {offsets = [32, 0], sizes = [16, 128], strides = [1, 1]} : vector<48x128xf32> to vector<16x128xf32>
    %501 = vector.extract_strided_slice %483 {offsets = [32, 0], sizes = [16, 128], strides = [1, 1]} : vector<48x128xf32> to vector<16x128xf32>
    %502 = arith.addf %501, %6 : vector<16x128xf32>
    %503 = arith.mulf %491, %502 : vector<16x128xf32>
    %504 = arith.addf %500, %503 : vector<16x128xf32>
    %505 = math.tanh %504 : vector<16x128xf32>
    %cst_110 = arith.constant 1.000000e+00 : f32
    %506 = vector.broadcast %cst_110 : f32 to vector<16x128xf32>
    %507 = arith.subf %506, %499 : vector<16x128xf32>
    %508 = arith.mulf %507, %505 : vector<16x128xf32>
    %509 = arith.mulf %499, %437 : vector<16x128xf32>
    %510 = arith.addf %508, %509 : vector<16x128xf32>
    %511 = arith.index_cast %c6_i32 : i32 to index
    %c0_111 = arith.constant 0 : index
    %c0_112 = arith.constant 0 : index
    %512 = vector.load %arg12[%511, %c0_111, %c0_112] : memref<8x32x128xf32, #tpu.memory_space<vmem>>, vector<1x16x128xf32>
    %513 = vector.shape_cast %512 : vector<1x16x128xf32> to vector<16x128xf32>
    %514 = vector.shape_cast %479 : vector<16x128xf32> to vector<1x16x128xf32>
    tpu.vector_store %arg12[%511, %c0_111, %c0_112], %514 {strides = array<i32>} : memref<8x32x128xf32, #tpu.memory_space<vmem>>, vector<1x16x128xf32>,
    %515 = arith.index_cast %446 : i32 to index
    %c16_113 = arith.constant 16 : index
    %c0_114 = arith.constant 0 : index
    %516 = vector.load %arg12[%515, %c16_113, %c0_114] : memref<8x32x128xf32, #tpu.memory_space<vmem>>, vector<1x16x128xf32>
    %517 = vector.shape_cast %516 : vector<1x16x128xf32> to vector<16x128xf32>
    %518 = vector.shape_cast %510 : vector<16x128xf32> to vector<1x16x128xf32>
    tpu.vector_store %arg12[%515, %c16_113, %c0_114], %518 {strides = array<i32>} : memref<8x32x128xf32, #tpu.memory_space<vmem>>, vector<1x16x128xf32>,
    %c7_i32_115 = arith.constant 7 : i32
    %c7_i32_116 = arith.constant 7 : i32
    %519 = arith.subi %c7_i32_116, %c7_i32_115 : i32
    %520 = tpu.concatenate %479, %510 in 0 : vector<16x128xf32>, vector<16x128xf32> -> vector<32x128xf32>
    %cst_117 = arith.constant dense<0.000000e+00> : vector<96x128xf32>
    %521 = tpu.matmul %0, %520, %cst_117 {dimension_numbers = #tpu.dot_dimension_numbers<[1], [0], [0], [1], [0, 0, 1, 1], [], []>} : vector<96x32xf32>, vector<32x128xf32>, vector<96x128xf32> -> vector<96x128xf32>
    %522 = arith.index_cast %c7_i32_115 : i32 to index
    %c0_118 = arith.constant 0 : index
    %c0_119 = arith.constant 0 : index
    %523 = vector.load %arg1[%522, %c0_118, %c0_119] : memref<8x48x128xf32, #tpu.memory_space<vmem>>, vector<1x48x128xf32>
    %524 = vector.shape_cast %523 : vector<1x48x128xf32> to vector<48x128xf32>
    %525 = vector.extract_strided_slice %521 {offsets = [0, 0], sizes = [48, 128], strides = [1, 1]} : vector<96x128xf32> to vector<48x128xf32>
    %526 = vector.extract_strided_slice %524 {offsets = [0, 0], sizes = [16, 128], strides = [1, 1]} : vector<48x128xf32> to vector<16x128xf32>
    %527 = vector.extract_strided_slice %525 {offsets = [0, 0], sizes = [16, 128], strides = [1, 1]} : vector<48x128xf32> to vector<16x128xf32>
    %528 = arith.addf %526, %527 : vector<16x128xf32>
    %529 = arith.negf %528 : vector<16x128xf32>
    %530 = math.exp %529 : vector<16x128xf32>
    %cst_120 = arith.constant 1.000000e+00 : f32
    %531 = vector.broadcast %cst_120 : f32 to vector<16x128xf32>
    %532 = arith.addf %531, %530 : vector<16x128xf32>
    %533 = arith.divf %531, %532 : vector<16x128xf32>
    %534 = vector.extract_strided_slice %524 {offsets = [16, 0], sizes = [16, 128], strides = [1, 1]} : vector<48x128xf32> to vector<16x128xf32>
    %535 = vector.extract_strided_slice %525 {offsets = [16, 0], sizes = [16, 128], strides = [1, 1]} : vector<48x128xf32> to vector<16x128xf32>
    %536 = arith.addf %534, %535 : vector<16x128xf32>
    %537 = arith.negf %536 : vector<16x128xf32>
    %538 = math.exp %537 : vector<16x128xf32>
    %cst_121 = arith.constant 1.000000e+00 : f32
    %539 = vector.broadcast %cst_121 : f32 to vector<16x128xf32>
    %540 = arith.addf %539, %538 : vector<16x128xf32>
    %541 = arith.divf %539, %540 : vector<16x128xf32>
    %542 = vector.extract_strided_slice %524 {offsets = [32, 0], sizes = [16, 128], strides = [1, 1]} : vector<48x128xf32> to vector<16x128xf32>
    %543 = vector.extract_strided_slice %525 {offsets = [32, 0], sizes = [16, 128], strides = [1, 1]} : vector<48x128xf32> to vector<16x128xf32>
    %544 = arith.addf %543, %3 : vector<16x128xf32>
    %545 = arith.mulf %533, %544 : vector<16x128xf32>
    %546 = arith.addf %542, %545 : vector<16x128xf32>
    %547 = math.tanh %546 : vector<16x128xf32>
    %cst_122 = arith.constant 1.000000e+00 : f32
    %548 = vector.broadcast %cst_122 : f32 to vector<16x128xf32>
    %549 = arith.subf %548, %541 : vector<16x128xf32>
    %550 = arith.mulf %549, %547 : vector<16x128xf32>
    %551 = arith.mulf %541, %479 : vector<16x128xf32>
    %552 = arith.addf %550, %551 : vector<16x128xf32>
    %553 = arith.index_cast %519 : i32 to index
    %c0_123 = arith.constant 0 : index
    %c0_124 = arith.constant 0 : index
    %554 = vector.load %arg2[%553, %c0_123, %c0_124] : memref<8x48x128xf32, #tpu.memory_space<vmem>>, vector<1x48x128xf32>
    %555 = vector.shape_cast %554 : vector<1x48x128xf32> to vector<48x128xf32>
    %556 = vector.extract_strided_slice %521 {offsets = [48, 0], sizes = [48, 128], strides = [1, 1]} : vector<96x128xf32> to vector<48x128xf32>
    %557 = vector.extract_strided_slice %555 {offsets = [0, 0], sizes = [16, 128], strides = [1, 1]} : vector<48x128xf32> to vector<16x128xf32>
    %558 = vector.extract_strided_slice %556 {offsets = [0, 0], sizes = [16, 128], strides = [1, 1]} : vector<48x128xf32> to vector<16x128xf32>
    %559 = arith.addf %557, %558 : vector<16x128xf32>
    %560 = arith.negf %559 : vector<16x128xf32>
    %561 = math.exp %560 : vector<16x128xf32>
    %cst_125 = arith.constant 1.000000e+00 : f32
    %562 = vector.broadcast %cst_125 : f32 to vector<16x128xf32>
    %563 = arith.addf %562, %561 : vector<16x128xf32>
    %564 = arith.divf %562, %563 : vector<16x128xf32>
    %565 = vector.extract_strided_slice %555 {offsets = [16, 0], sizes = [16, 128], strides = [1, 1]} : vector<48x128xf32> to vector<16x128xf32>
    %566 = vector.extract_strided_slice %556 {offsets = [16, 0], sizes = [16, 128], strides = [1, 1]} : vector<48x128xf32> to vector<16x128xf32>
    %567 = arith.addf %565, %566 : vector<16x128xf32>
    %568 = arith.negf %567 : vector<16x128xf32>
    %569 = math.exp %568 : vector<16x128xf32>
    %cst_126 = arith.constant 1.000000e+00 : f32
    %570 = vector.broadcast %cst_126 : f32 to vector<16x128xf32>
    %571 = arith.addf %570, %569 : vector<16x128xf32>
    %572 = arith.divf %570, %571 : vector<16x128xf32>
    %573 = vector.extract_strided_slice %555 {offsets = [32, 0], sizes = [16, 128], strides = [1, 1]} : vector<48x128xf32> to vector<16x128xf32>
    %574 = vector.extract_strided_slice %556 {offsets = [32, 0], sizes = [16, 128], strides = [1, 1]} : vector<48x128xf32> to vector<16x128xf32>
    %575 = arith.addf %574, %6 : vector<16x128xf32>
    %576 = arith.mulf %564, %575 : vector<16x128xf32>
    %577 = arith.addf %573, %576 : vector<16x128xf32>
    %578 = math.tanh %577 : vector<16x128xf32>
    %cst_127 = arith.constant 1.000000e+00 : f32
    %579 = vector.broadcast %cst_127 : f32 to vector<16x128xf32>
    %580 = arith.subf %579, %572 : vector<16x128xf32>
    %581 = arith.mulf %580, %578 : vector<16x128xf32>
    %582 = arith.mulf %572, %510 : vector<16x128xf32>
    %583 = arith.addf %581, %582 : vector<16x128xf32>
    %584 = arith.index_cast %c7_i32_115 : i32 to index
    %c0_128 = arith.constant 0 : index
    %c0_129 = arith.constant 0 : index
    %585 = vector.load %arg12[%584, %c0_128, %c0_129] : memref<8x32x128xf32, #tpu.memory_space<vmem>>, vector<1x16x128xf32>
    %586 = vector.shape_cast %585 : vector<1x16x128xf32> to vector<16x128xf32>
    %587 = vector.shape_cast %552 : vector<16x128xf32> to vector<1x16x128xf32>
    tpu.vector_store %arg12[%584, %c0_128, %c0_129], %587 {strides = array<i32>} : memref<8x32x128xf32, #tpu.memory_space<vmem>>, vector<1x16x128xf32>,
    %588 = arith.index_cast %519 : i32 to index
    %c16_130 = arith.constant 16 : index
    %c0_131 = arith.constant 0 : index
    %589 = vector.load %arg12[%588, %c16_130, %c0_131] : memref<8x32x128xf32, #tpu.memory_space<vmem>>, vector<1x16x128xf32>
    %590 = vector.shape_cast %589 : vector<1x16x128xf32> to vector<16x128xf32>
    %591 = vector.shape_cast %583 : vector<16x128xf32> to vector<1x16x128xf32>
    tpu.vector_store %arg12[%588, %c16_130, %c0_131], %591 {strides = array<i32>} : memref<8x32x128xf32, #tpu.memory_space<vmem>>, vector<1x16x128xf32>,
    %c8_i32 = arith.constant 8 : i32
    %c0_132 = arith.constant 0 : index
    %c0_133 = arith.constant 0 : index
    %c0_134 = arith.constant 0 : index
    %592 = vector.load %arg12[%c0_132, %c0_133, %c0_134] : memref<8x32x128xf32, #tpu.memory_space<vmem>>, vector<8x32x128xf32>
    %cst_135 = arith.constant dense<0.000000e+00> : vector<8x128xf32>
    %593 = vector.multi_reduction <add>, %592, %cst_135 [1] : vector<8x32x128xf32> to vector<8x128xf32>
    %594 = vector.shape_cast %593 : vector<8x128xf32> to vector<8x1x128xf32>
    %cst_136 = arith.constant 3.200000e+01 : f32
    %595 = vector.broadcast %cst_136 : f32 to vector<8x1x128xf32>
    %596 = arith.divf %594, %595 : vector<8x1x128xf32>
    %597 = vector.broadcast %596 : vector<8x1x128xf32> to vector<8x32x128xf32>
    %598 = arith.subf %592, %597 : vector<8x32x128xf32>
    %599 = arith.mulf %598, %598 : vector<8x32x128xf32>
    %cst_137 = arith.constant dense<0.000000e+00> : vector<8x128xf32>
    %600 = vector.multi_reduction <add>, %599, %cst_137 [1] : vector<8x32x128xf32> to vector<8x128xf32>
    %601 = vector.shape_cast %600 : vector<8x128xf32> to vector<8x1x128xf32>
    %cst_138 = arith.constant 3.200000e+01 : f32
    %602 = vector.broadcast %cst_138 : f32 to vector<8x1x128xf32>
    %603 = arith.divf %601, %602 : vector<8x1x128xf32>
    %604 = vector.broadcast %596 : vector<8x1x128xf32> to vector<8x32x128xf32>
    %605 = arith.subf %592, %604 : vector<8x32x128xf32>
    %cst_139 = arith.constant 9.99999974E-6 : f32
    %606 = vector.broadcast %cst_139 : f32 to vector<8x1x128xf32>
    %607 = arith.addf %603, %606 : vector<8x1x128xf32>
    %608 = math.rsqrt %607 : vector<8x1x128xf32>
    %609 = vector.broadcast %608 : vector<8x1x128xf32> to vector<8x32x128xf32>
    %610 = arith.mulf %605, %609 : vector<8x32x128xf32>
    %c0_140 = arith.constant 0 : index
    %c0_141 = arith.constant 0 : index
    %611 = vector.load %arg5[%c0_140, %c0_141] : memref<32x1xf32, #tpu.memory_space<vmem>>, vector<32x1xf32>
    %612 = vector.shape_cast %611 : vector<32x1xf32> to vector<1x32x1xf32>
    %613 = vector.broadcast %612 : vector<1x32x1xf32> to vector<8x32x128xf32>
    %614 = arith.mulf %610, %613 : vector<8x32x128xf32>
    %c0_142 = arith.constant 0 : index
    %c0_143 = arith.constant 0 : index
    %615 = vector.load %arg6[%c0_142, %c0_143] : memref<32x1xf32, #tpu.memory_space<vmem>>, vector<32x1xf32>
    %616 = vector.shape_cast %615 : vector<32x1xf32> to vector<1x32x1xf32>
    %617 = vector.broadcast %616 : vector<1x32x1xf32> to vector<8x32x128xf32>
    %618 = arith.addf %614, %617 : vector<8x32x128xf32>
    %c0_144 = arith.constant 0 : index
    %c0_145 = arith.constant 0 : index
    %619 = vector.load %arg7[%c0_144, %c0_145] : memref<16x32xf32, #tpu.memory_space<vmem>>, vector<16x32xf32>
    %620 = vector.shape_cast %619 : vector<16x32xf32> to vector<1x16x32xf32>
    %621 = vector.shape_cast %620 : vector<1x16x32xf32> to vector<1x16x32xf32>
    %622 = vector.broadcast %621 : vector<1x16x32xf32> to vector<8x16x32xf32>
    "tpu.trace_start"() <{level = 10 : i32, message = "tah,thn->tan"}> : () -> ()
    %cst_146 = arith.constant dense<0.000000e+00> : vector<8x16x128xf32>
    %623 = tpu.matmul %622, %618, %cst_146 {dimension_numbers = #tpu.dot_dimension_numbers<[2], [1], [1], [2], [0, 0, 0, 1, 1, 2], [0], [0]>} : vector<8x16x32xf32>, vector<8x32x128xf32>, vector<8x16x128xf32> -> vector<8x16x128xf32>
    "tpu.trace_stop"() : () -> ()
    %c0_147 = arith.constant 0 : index
    %c0_148 = arith.constant 0 : index
    %624 = vector.load %arg8[%c0_147, %c0_148] : memref<16x1xf32, #tpu.memory_space<vmem>>, vector<16x1xf32>
    %625 = vector.shape_cast %624 : vector<16x1xf32> to vector<1x16x1xf32>
    %626 = vector.broadcast %625 : vector<1x16x1xf32> to vector<8x16x128xf32>
    %627 = arith.addf %623, %626 : vector<8x16x128xf32>
    %628 = math.tanh %627 : vector<8x16x128xf32>
    %c0_149 = arith.constant 0 : index
    %c0_150 = arith.constant 0 : index
    %629 = vector.load %arg9[%c0_149, %c0_150] : memref<16x1xf32, #tpu.memory_space<vmem>>, vector<16x1xf32>
    %630 = vector.shape_cast %629 : vector<16x1xf32> to vector<1x16x1xf32>
    %631 = vector.broadcast %630 : vector<1x16x1xf32> to vector<8x16x128xf32>
    %632 = arith.mulf %628, %631 : vector<8x16x128xf32>
    %cst_151 = arith.constant dense<0.000000e+00> : vector<8x128xf32>
    %633 = vector.multi_reduction <add>, %632, %cst_151 [1] : vector<8x16x128xf32> to vector<8x128xf32>
    %cst_152 = arith.constant dense<0xFF800000> : vector<128xf32>
    %634 = vector.multi_reduction <maximumf>, %633, %cst_152 [0] : vector<8x128xf32> to vector<128xf32>
    %635 = vector.shape_cast %634 : vector<128xf32> to vector<1x128xf32>
    %636 = vector.broadcast %635 : vector<1x128xf32> to vector<8x128xf32>
    %637 = arith.subf %633, %636 : vector<8x128xf32>
    %638 = math.exp %637 : vector<8x128xf32>
    %cst_153 = arith.constant dense<0.000000e+00> : vector<128xf32>
    %639 = vector.multi_reduction <add>, %638, %cst_153 [0] : vector<8x128xf32> to vector<128xf32>
    %640 = vector.shape_cast %639 : vector<128xf32> to vector<1x128xf32>
    %641 = tpu.reciprocal %640 {approx = true} : vector<1x128xf32> -> vector<1x128xf32>
    %642 = vector.broadcast %641 : vector<1x128xf32> to vector<8x128xf32>
    %643 = arith.mulf %638, %642 : vector<8x128xf32>
    %644 = vector.shape_cast %643 : vector<8x128xf32> to vector<8x1x128xf32>
    %645 = vector.broadcast %644 : vector<8x1x128xf32> to vector<8x32x128xf32>
    %646 = arith.mulf %592, %645 : vector<8x32x128xf32>
    %cst_154 = arith.constant dense<0.000000e+00> : vector<32x128xf32>
    %647 = vector.multi_reduction <add>, %646, %cst_154 [0] : vector<8x32x128xf32> to vector<32x128xf32>
    %c0_155 = arith.constant 0 : index
    %c0_156 = arith.constant 0 : index
    %648 = vector.load %arg10[%c0_155, %c0_156] : memref<32x128xf32, #tpu.memory_space<vmem>>, vector<32x128xf32>
    tpu.vector_store %arg10[%c0_155, %c0_156], %647 {strides = array<i32>} : memref<32x128xf32, #tpu.memory_space<vmem>>, vector<32x128xf32>,
    %c0_157 = arith.constant 0 : index
    %c0_158 = arith.constant 0 : index
    %649 = vector.load %arg11[%c0_157, %c0_158] : memref<8x128xf32, #tpu.memory_space<vmem>>, vector<8x128xf32>
    tpu.vector_store %arg11[%c0_157, %c0_158], %643 {strides = array<i32>} : memref<8x128xf32, #tpu.memory_space<vmem>>, vector<8x128xf32>,
    return
  }
  func.func @transform_0(%arg0: i32) -> (i32, i32, i32) {
    %c0_i32 = arith.constant 0 : i32
    %c0_i32_0 = arith.constant 0 : i32
    %c0_i32_1 = arith.constant 0 : i32
    return %c0_i32, %c0_i32_0, %arg0 : i32, i32, i32
  }
  func.func @transform_1(%arg0: i32) -> (i32, i32, i32) {
    %c0_i32 = arith.constant 0 : i32
    %c0_i32_0 = arith.constant 0 : i32
    %c0_i32_1 = arith.constant 0 : i32
    return %c0_i32, %c0_i32_0, %arg0 : i32, i32, i32
  }
  func.func @transform_2(%arg0: i32) -> (i32, i32) {
    %c0_i32 = arith.constant 0 : i32
    %c0_i32_0 = arith.constant 0 : i32
    %c0_i32_1 = arith.constant 0 : i32
    return %c0_i32, %c0_i32_0 : i32, i32
  }
  func.func @transform_3(%arg0: i32) -> (i32, i32) {
    %c0_i32 = arith.constant 0 : i32
    %c0_i32_0 = arith.constant 0 : i32
    %c0_i32_1 = arith.constant 0 : i32
    return %c0_i32, %c0_i32_0 : i32, i32
  }
  func.func @transform_4(%arg0: i32) -> (i32, i32) {
    %c0_i32 = arith.constant 0 : i32
    %c0_i32_0 = arith.constant 0 : i32
    %c0_i32_1 = arith.constant 0 : i32
    return %c0_i32, %c0_i32_0 : i32, i32
  }
  func.func @transform_5(%arg0: i32) -> (i32, i32) {
    %c0_i32 = arith.constant 0 : i32
    %c0_i32_0 = arith.constant 0 : i32
    %c0_i32_1 = arith.constant 0 : i32
    return %c0_i32, %c0_i32_0 : i32, i32
  }
  func.func @transform_6(%arg0: i32) -> (i32, i32) {
    %c0_i32 = arith.constant 0 : i32
    %c0_i32_0 = arith.constant 0 : i32
    %c0_i32_1 = arith.constant 0 : i32
    return %c0_i32, %c0_i32_0 : i32, i32
  }
  func.func @transform_7(%arg0: i32) -> (i32, i32) {
    %c0_i32 = arith.constant 0 : i32
    %c0_i32_0 = arith.constant 0 : i32
    %c0_i32_1 = arith.constant 0 : i32
    return %c0_i32, %c0_i32_0 : i32, i32
  }
  func.func @transform_8(%arg0: i32) -> (i32, i32) {
    %c0_i32 = arith.constant 0 : i32
    %c0_i32_0 = arith.constant 0 : i32
    %c0_i32_1 = arith.constant 0 : i32
    return %c0_i32, %c0_i32_0 : i32, i32
  }
  func.func @transform_9(%arg0: i32) -> (i32, i32) {
    %c0_i32 = arith.constant 0 : i32
    %c0_i32_0 = arith.constant 0 : i32
    return %c0_i32, %arg0 : i32, i32
  }
  func.func @transform_10(%arg0: i32) -> (i32, i32) {
    %c0_i32 = arith.constant 0 : i32
    %c0_i32_0 = arith.constant 0 : i32
    return %c0_i32, %arg0 : i32, i32
  }
}

module attributes {stable_mosaic.version = 11 : i64} {
  func.func @sent_kernel(%arg0: i32, %arg1: memref<8x48x128xf32, #tpu.memory_space<vmem>>, %arg2: memref<8x48x128xf32, #tpu.memory_space<vmem>>, %arg3: memref<96x32xf32, #tpu.memory_space<vmem>>, %arg4: memref<32x1xf32, #tpu.memory_space<vmem>>, %arg5: memref<32x1xf32, #tpu.memory_space<vmem>>, %arg6: memref<32x1xf32, #tpu.memory_space<vmem>>, %arg7: memref<16x32xf32, #tpu.memory_space<vmem>>, %arg8: memref<16x1xf32, #tpu.memory_space<vmem>>, %arg9: memref<16x1xf32, #tpu.memory_space<vmem>>, %arg10: memref<32x1xf32, #tpu.memory_space<vmem>>, %arg11: memref<1x1xf32, #tpu.memory_space<vmem>>, %arg12: memref<1x128xf32, #tpu.memory_space<vmem>>, %arg13: memref<8x128xf32, #tpu.memory_space<vmem>>, %arg14: memref<8x32x128xf32, #tpu.memory_space<vmem>>) attributes {dimension_semantics = [#tpu.dimension_semantics<parallel>], iteration_bounds = array<i64: 1>, scalar_prefetch = 0 : i64, scratch_operands = 1 : i64, tpu.core_type = #tpu.core_type<tc>, window_params = [{transform_indices = @transform_0, window_bounds = array<i64: 8, 48, 128>}, {transform_indices = @transform_1, window_bounds = array<i64: 8, 48, 128>}, {pipeline_mode = #tpu.pipeline_mode<synchronous>, transform_indices = @transform_2, window_bounds = array<i64: 96, 32>}, {pipeline_mode = #tpu.pipeline_mode<synchronous>, transform_indices = @transform_3, window_bounds = array<i64: 32, 1>}, {pipeline_mode = #tpu.pipeline_mode<synchronous>, transform_indices = @transform_4, window_bounds = array<i64: 32, 1>}, {pipeline_mode = #tpu.pipeline_mode<synchronous>, transform_indices = @transform_5, window_bounds = array<i64: 32, 1>}, {pipeline_mode = #tpu.pipeline_mode<synchronous>, transform_indices = @transform_6, window_bounds = array<i64: 16, 32>}, {pipeline_mode = #tpu.pipeline_mode<synchronous>, transform_indices = @transform_7, window_bounds = array<i64: 16, 1>}, {pipeline_mode = #tpu.pipeline_mode<synchronous>, transform_indices = @transform_8, window_bounds = array<i64: 16, 1>}, {pipeline_mode = #tpu.pipeline_mode<synchronous>, transform_indices = @transform_9, window_bounds = array<i64: 32, 1>}, {pipeline_mode = #tpu.pipeline_mode<synchronous>, transform_indices = @transform_10, window_bounds = array<i64: 1, 1>}, {transform_indices = @transform_11, window_bounds = array<i64: 1, 128>}, {transform_indices = @transform_12, window_bounds = array<i64: 8, 128>}]} {
    %c0 = arith.constant 0 : index
    %c0_0 = arith.constant 0 : index
    %0 = vector.load %arg3[%c0, %c0_0] : memref<96x32xf32, #tpu.memory_space<vmem>>, vector<96x32xf32>
    %c0_1 = arith.constant 0 : index
    %c0_2 = arith.constant 0 : index
    %1 = vector.load %arg4[%c0_1, %c0_2] : memref<32x1xf32, #tpu.memory_space<vmem>>, vector<16x1xf32>
    %2 = vector.shape_cast %1 : vector<16x1xf32> to vector<16x1xf32>
    %3 = vector.broadcast %2 : vector<16x1xf32> to vector<16x128xf32>
    %c16 = arith.constant 16 : index
    %c0_3 = arith.constant 0 : index
    %4 = vector.load %arg4[%c16, %c0_3] : memref<32x1xf32, #tpu.memory_space<vmem>>, vector<16x1xf32>
    %5 = vector.shape_cast %4 : vector<16x1xf32> to vector<16x1xf32>
    %6 = vector.broadcast %5 : vector<16x1xf32> to vector<16x128xf32>
    %cst = arith.constant 0.000000e+00 : f32
    %7 = vector.broadcast %cst : f32 to vector<16x128xf32>
    %c0_i32 = arith.constant 0 : i32
    %c7_i32 = arith.constant 7 : i32
    %8 = arith.subi %c7_i32, %c0_i32 : i32
    %9 = tpu.concatenate %7, %7 in 0 : vector<16x128xf32>, vector<16x128xf32> -> vector<32x128xf32>
    %cst_4 = arith.constant dense<0.000000e+00> : vector<96x128xf32>
    %10 = tpu.matmul %0, %9, %cst_4 {dimension_numbers = #tpu.dot_dimension_numbers<[1], [0], [0], [1], [0, 0, 1, 1], [], []>} : vector<96x32xf32>, vector<32x128xf32>, vector<96x128xf32> -> vector<96x128xf32>
    %11 = arith.index_cast %c0_i32 : i32 to index
    %c0_5 = arith.constant 0 : index
    %c0_6 = arith.constant 0 : index
    %12 = vector.load %arg1[%11, %c0_5, %c0_6] : memref<8x48x128xf32, #tpu.memory_space<vmem>>, vector<1x48x128xf32>
    %13 = vector.shape_cast %12 : vector<1x48x128xf32> to vector<48x128xf32>
    %14 = vector.extract_strided_slice %10 {offsets = [0, 0], sizes = [48, 128], strides = [1, 1]} : vector<96x128xf32> to vector<48x128xf32>
    %15 = vector.extract_strided_slice %13 {offsets = [0, 0], sizes = [16, 128], strides = [1, 1]} : vector<48x128xf32> to vector<16x128xf32>
    %16 = vector.extract_strided_slice %14 {offsets = [0, 0], sizes = [16, 128], strides = [1, 1]} : vector<48x128xf32> to vector<16x128xf32>
    %17 = arith.addf %15, %16 : vector<16x128xf32>
    %18 = arith.negf %17 : vector<16x128xf32>
    %19 = math.exp %18 : vector<16x128xf32>
    %cst_7 = arith.constant 1.000000e+00 : f32
    %20 = vector.broadcast %cst_7 : f32 to vector<16x128xf32>
    %21 = arith.addf %20, %19 : vector<16x128xf32>
    %22 = arith.divf %20, %21 : vector<16x128xf32>
    %23 = vector.extract_strided_slice %13 {offsets = [16, 0], sizes = [16, 128], strides = [1, 1]} : vector<48x128xf32> to vector<16x128xf32>
    %24 = vector.extract_strided_slice %14 {offsets = [16, 0], sizes = [16, 128], strides = [1, 1]} : vector<48x128xf32> to vector<16x128xf32>
    %25 = arith.addf %23, %24 : vector<16x128xf32>
    %26 = arith.negf %25 : vector<16x128xf32>
    %27 = math.exp %26 : vector<16x128xf32>
    %cst_8 = arith.constant 1.000000e+00 : f32
    %28 = vector.broadcast %cst_8 : f32 to vector<16x128xf32>
    %29 = arith.addf %28, %27 : vector<16x128xf32>
    %30 = arith.divf %28, %29 : vector<16x128xf32>
    %31 = vector.extract_strided_slice %13 {offsets = [32, 0], sizes = [16, 128], strides = [1, 1]} : vector<48x128xf32> to vector<16x128xf32>
    %32 = vector.extract_strided_slice %14 {offsets = [32, 0], sizes = [16, 128], strides = [1, 1]} : vector<48x128xf32> to vector<16x128xf32>
    %33 = arith.addf %32, %3 : vector<16x128xf32>
    %34 = arith.mulf %22, %33 : vector<16x128xf32>
    %35 = arith.addf %31, %34 : vector<16x128xf32>
    %36 = math.tanh %35 : vector<16x128xf32>
    %cst_9 = arith.constant 1.000000e+00 : f32
    %37 = vector.broadcast %cst_9 : f32 to vector<16x128xf32>
    %38 = arith.subf %37, %30 : vector<16x128xf32>
    %39 = arith.mulf %38, %36 : vector<16x128xf32>
    %40 = arith.mulf %30, %7 : vector<16x128xf32>
    %41 = arith.addf %39, %40 : vector<16x128xf32>
    %42 = arith.index_cast %8 : i32 to index
    %c0_10 = arith.constant 0 : index
    %c0_11 = arith.constant 0 : index
    %43 = vector.load %arg2[%42, %c0_10, %c0_11] : memref<8x48x128xf32, #tpu.memory_space<vmem>>, vector<1x48x128xf32>
    %44 = vector.shape_cast %43 : vector<1x48x128xf32> to vector<48x128xf32>
    %45 = vector.extract_strided_slice %10 {offsets = [48, 0], sizes = [48, 128], strides = [1, 1]} : vector<96x128xf32> to vector<48x128xf32>
    %46 = vector.extract_strided_slice %44 {offsets = [0, 0], sizes = [16, 128], strides = [1, 1]} : vector<48x128xf32> to vector<16x128xf32>
    %47 = vector.extract_strided_slice %45 {offsets = [0, 0], sizes = [16, 128], strides = [1, 1]} : vector<48x128xf32> to vector<16x128xf32>
    %48 = arith.addf %46, %47 : vector<16x128xf32>
    %49 = arith.negf %48 : vector<16x128xf32>
    %50 = math.exp %49 : vector<16x128xf32>
    %cst_12 = arith.constant 1.000000e+00 : f32
    %51 = vector.broadcast %cst_12 : f32 to vector<16x128xf32>
    %52 = arith.addf %51, %50 : vector<16x128xf32>
    %53 = arith.divf %51, %52 : vector<16x128xf32>
    %54 = vector.extract_strided_slice %44 {offsets = [16, 0], sizes = [16, 128], strides = [1, 1]} : vector<48x128xf32> to vector<16x128xf32>
    %55 = vector.extract_strided_slice %45 {offsets = [16, 0], sizes = [16, 128], strides = [1, 1]} : vector<48x128xf32> to vector<16x128xf32>
    %56 = arith.addf %54, %55 : vector<16x128xf32>
    %57 = arith.negf %56 : vector<16x128xf32>
    %58 = math.exp %57 : vector<16x128xf32>
    %cst_13 = arith.constant 1.000000e+00 : f32
    %59 = vector.broadcast %cst_13 : f32 to vector<16x128xf32>
    %60 = arith.addf %59, %58 : vector<16x128xf32>
    %61 = arith.divf %59, %60 : vector<16x128xf32>
    %62 = vector.extract_strided_slice %44 {offsets = [32, 0], sizes = [16, 128], strides = [1, 1]} : vector<48x128xf32> to vector<16x128xf32>
    %63 = vector.extract_strided_slice %45 {offsets = [32, 0], sizes = [16, 128], strides = [1, 1]} : vector<48x128xf32> to vector<16x128xf32>
    %64 = arith.addf %63, %6 : vector<16x128xf32>
    %65 = arith.mulf %53, %64 : vector<16x128xf32>
    %66 = arith.addf %62, %65 : vector<16x128xf32>
    %67 = math.tanh %66 : vector<16x128xf32>
    %cst_14 = arith.constant 1.000000e+00 : f32
    %68 = vector.broadcast %cst_14 : f32 to vector<16x128xf32>
    %69 = arith.subf %68, %61 : vector<16x128xf32>
    %70 = arith.mulf %69, %67 : vector<16x128xf32>
    %71 = arith.mulf %61, %7 : vector<16x128xf32>
    %72 = arith.addf %70, %71 : vector<16x128xf32>
    %73 = arith.index_cast %c0_i32 : i32 to index
    %c0_15 = arith.constant 0 : index
    %c0_16 = arith.constant 0 : index
    %74 = vector.load %arg14[%73, %c0_15, %c0_16] : memref<8x32x128xf32, #tpu.memory_space<vmem>>, vector<1x16x128xf32>
    %75 = vector.shape_cast %74 : vector<1x16x128xf32> to vector<16x128xf32>
    %76 = vector.shape_cast %41 : vector<16x128xf32> to vector<1x16x128xf32>
    tpu.vector_store %arg14[%73, %c0_15, %c0_16], %76 {strides = array<i32>} : memref<8x32x128xf32, #tpu.memory_space<vmem>>, vector<1x16x128xf32>,
    %77 = arith.index_cast %8 : i32 to index
    %c16_17 = arith.constant 16 : index
    %c0_18 = arith.constant 0 : index
    %78 = vector.load %arg14[%77, %c16_17, %c0_18] : memref<8x32x128xf32, #tpu.memory_space<vmem>>, vector<1x16x128xf32>
    %79 = vector.shape_cast %78 : vector<1x16x128xf32> to vector<16x128xf32>
    %80 = vector.shape_cast %72 : vector<16x128xf32> to vector<1x16x128xf32>
    tpu.vector_store %arg14[%77, %c16_17, %c0_18], %80 {strides = array<i32>} : memref<8x32x128xf32, #tpu.memory_space<vmem>>, vector<1x16x128xf32>,
    %c1_i32 = arith.constant 1 : i32
    %c7_i32_19 = arith.constant 7 : i32
    %81 = arith.subi %c7_i32_19, %c1_i32 : i32
    %82 = tpu.concatenate %41, %72 in 0 : vector<16x128xf32>, vector<16x128xf32> -> vector<32x128xf32>
    %cst_20 = arith.constant dense<0.000000e+00> : vector<96x128xf32>
    %83 = tpu.matmul %0, %82, %cst_20 {dimension_numbers = #tpu.dot_dimension_numbers<[1], [0], [0], [1], [0, 0, 1, 1], [], []>} : vector<96x32xf32>, vector<32x128xf32>, vector<96x128xf32> -> vector<96x128xf32>
    %84 = arith.index_cast %c1_i32 : i32 to index
    %c0_21 = arith.constant 0 : index
    %c0_22 = arith.constant 0 : index
    %85 = vector.load %arg1[%84, %c0_21, %c0_22] : memref<8x48x128xf32, #tpu.memory_space<vmem>>, vector<1x48x128xf32>
    %86 = vector.shape_cast %85 : vector<1x48x128xf32> to vector<48x128xf32>
    %87 = vector.extract_strided_slice %83 {offsets = [0, 0], sizes = [48, 128], strides = [1, 1]} : vector<96x128xf32> to vector<48x128xf32>
    %88 = vector.extract_strided_slice %86 {offsets = [0, 0], sizes = [16, 128], strides = [1, 1]} : vector<48x128xf32> to vector<16x128xf32>
    %89 = vector.extract_strided_slice %87 {offsets = [0, 0], sizes = [16, 128], strides = [1, 1]} : vector<48x128xf32> to vector<16x128xf32>
    %90 = arith.addf %88, %89 : vector<16x128xf32>
    %91 = arith.negf %90 : vector<16x128xf32>
    %92 = math.exp %91 : vector<16x128xf32>
    %cst_23 = arith.constant 1.000000e+00 : f32
    %93 = vector.broadcast %cst_23 : f32 to vector<16x128xf32>
    %94 = arith.addf %93, %92 : vector<16x128xf32>
    %95 = arith.divf %93, %94 : vector<16x128xf32>
    %96 = vector.extract_strided_slice %86 {offsets = [16, 0], sizes = [16, 128], strides = [1, 1]} : vector<48x128xf32> to vector<16x128xf32>
    %97 = vector.extract_strided_slice %87 {offsets = [16, 0], sizes = [16, 128], strides = [1, 1]} : vector<48x128xf32> to vector<16x128xf32>
    %98 = arith.addf %96, %97 : vector<16x128xf32>
    %99 = arith.negf %98 : vector<16x128xf32>
    %100 = math.exp %99 : vector<16x128xf32>
    %cst_24 = arith.constant 1.000000e+00 : f32
    %101 = vector.broadcast %cst_24 : f32 to vector<16x128xf32>
    %102 = arith.addf %101, %100 : vector<16x128xf32>
    %103 = arith.divf %101, %102 : vector<16x128xf32>
    %104 = vector.extract_strided_slice %86 {offsets = [32, 0], sizes = [16, 128], strides = [1, 1]} : vector<48x128xf32> to vector<16x128xf32>
    %105 = vector.extract_strided_slice %87 {offsets = [32, 0], sizes = [16, 128], strides = [1, 1]} : vector<48x128xf32> to vector<16x128xf32>
    %106 = arith.addf %105, %3 : vector<16x128xf32>
    %107 = arith.mulf %95, %106 : vector<16x128xf32>
    %108 = arith.addf %104, %107 : vector<16x128xf32>
    %109 = math.tanh %108 : vector<16x128xf32>
    %cst_25 = arith.constant 1.000000e+00 : f32
    %110 = vector.broadcast %cst_25 : f32 to vector<16x128xf32>
    %111 = arith.subf %110, %103 : vector<16x128xf32>
    %112 = arith.mulf %111, %109 : vector<16x128xf32>
    %113 = arith.mulf %103, %41 : vector<16x128xf32>
    %114 = arith.addf %112, %113 : vector<16x128xf32>
    %115 = arith.index_cast %81 : i32 to index
    %c0_26 = arith.constant 0 : index
    %c0_27 = arith.constant 0 : index
    %116 = vector.load %arg2[%115, %c0_26, %c0_27] : memref<8x48x128xf32, #tpu.memory_space<vmem>>, vector<1x48x128xf32>
    %117 = vector.shape_cast %116 : vector<1x48x128xf32> to vector<48x128xf32>
    %118 = vector.extract_strided_slice %83 {offsets = [48, 0], sizes = [48, 128], strides = [1, 1]} : vector<96x128xf32> to vector<48x128xf32>
    %119 = vector.extract_strided_slice %117 {offsets = [0, 0], sizes = [16, 128], strides = [1, 1]} : vector<48x128xf32> to vector<16x128xf32>
    %120 = vector.extract_strided_slice %118 {offsets = [0, 0], sizes = [16, 128], strides = [1, 1]} : vector<48x128xf32> to vector<16x128xf32>
    %121 = arith.addf %119, %120 : vector<16x128xf32>
    %122 = arith.negf %121 : vector<16x128xf32>
    %123 = math.exp %122 : vector<16x128xf32>
    %cst_28 = arith.constant 1.000000e+00 : f32
    %124 = vector.broadcast %cst_28 : f32 to vector<16x128xf32>
    %125 = arith.addf %124, %123 : vector<16x128xf32>
    %126 = arith.divf %124, %125 : vector<16x128xf32>
    %127 = vector.extract_strided_slice %117 {offsets = [16, 0], sizes = [16, 128], strides = [1, 1]} : vector<48x128xf32> to vector<16x128xf32>
    %128 = vector.extract_strided_slice %118 {offsets = [16, 0], sizes = [16, 128], strides = [1, 1]} : vector<48x128xf32> to vector<16x128xf32>
    %129 = arith.addf %127, %128 : vector<16x128xf32>
    %130 = arith.negf %129 : vector<16x128xf32>
    %131 = math.exp %130 : vector<16x128xf32>
    %cst_29 = arith.constant 1.000000e+00 : f32
    %132 = vector.broadcast %cst_29 : f32 to vector<16x128xf32>
    %133 = arith.addf %132, %131 : vector<16x128xf32>
    %134 = arith.divf %132, %133 : vector<16x128xf32>
    %135 = vector.extract_strided_slice %117 {offsets = [32, 0], sizes = [16, 128], strides = [1, 1]} : vector<48x128xf32> to vector<16x128xf32>
    %136 = vector.extract_strided_slice %118 {offsets = [32, 0], sizes = [16, 128], strides = [1, 1]} : vector<48x128xf32> to vector<16x128xf32>
    %137 = arith.addf %136, %6 : vector<16x128xf32>
    %138 = arith.mulf %126, %137 : vector<16x128xf32>
    %139 = arith.addf %135, %138 : vector<16x128xf32>
    %140 = math.tanh %139 : vector<16x128xf32>
    %cst_30 = arith.constant 1.000000e+00 : f32
    %141 = vector.broadcast %cst_30 : f32 to vector<16x128xf32>
    %142 = arith.subf %141, %134 : vector<16x128xf32>
    %143 = arith.mulf %142, %140 : vector<16x128xf32>
    %144 = arith.mulf %134, %72 : vector<16x128xf32>
    %145 = arith.addf %143, %144 : vector<16x128xf32>
    %146 = arith.index_cast %c1_i32 : i32 to index
    %c0_31 = arith.constant 0 : index
    %c0_32 = arith.constant 0 : index
    %147 = vector.load %arg14[%146, %c0_31, %c0_32] : memref<8x32x128xf32, #tpu.memory_space<vmem>>, vector<1x16x128xf32>
    %148 = vector.shape_cast %147 : vector<1x16x128xf32> to vector<16x128xf32>
    %149 = vector.shape_cast %114 : vector<16x128xf32> to vector<1x16x128xf32>
    tpu.vector_store %arg14[%146, %c0_31, %c0_32], %149 {strides = array<i32>} : memref<8x32x128xf32, #tpu.memory_space<vmem>>, vector<1x16x128xf32>,
    %150 = arith.index_cast %81 : i32 to index
    %c16_33 = arith.constant 16 : index
    %c0_34 = arith.constant 0 : index
    %151 = vector.load %arg14[%150, %c16_33, %c0_34] : memref<8x32x128xf32, #tpu.memory_space<vmem>>, vector<1x16x128xf32>
    %152 = vector.shape_cast %151 : vector<1x16x128xf32> to vector<16x128xf32>
    %153 = vector.shape_cast %145 : vector<16x128xf32> to vector<1x16x128xf32>
    tpu.vector_store %arg14[%150, %c16_33, %c0_34], %153 {strides = array<i32>} : memref<8x32x128xf32, #tpu.memory_space<vmem>>, vector<1x16x128xf32>,
    %c2_i32 = arith.constant 2 : i32
    %c7_i32_35 = arith.constant 7 : i32
    %154 = arith.subi %c7_i32_35, %c2_i32 : i32
    %155 = tpu.concatenate %114, %145 in 0 : vector<16x128xf32>, vector<16x128xf32> -> vector<32x128xf32>
    %cst_36 = arith.constant dense<0.000000e+00> : vector<96x128xf32>
    %156 = tpu.matmul %0, %155, %cst_36 {dimension_numbers = #tpu.dot_dimension_numbers<[1], [0], [0], [1], [0, 0, 1, 1], [], []>} : vector<96x32xf32>, vector<32x128xf32>, vector<96x128xf32> -> vector<96x128xf32>
    %157 = arith.index_cast %c2_i32 : i32 to index
    %c0_37 = arith.constant 0 : index
    %c0_38 = arith.constant 0 : index
    %158 = vector.load %arg1[%157, %c0_37, %c0_38] : memref<8x48x128xf32, #tpu.memory_space<vmem>>, vector<1x48x128xf32>
    %159 = vector.shape_cast %158 : vector<1x48x128xf32> to vector<48x128xf32>
    %160 = vector.extract_strided_slice %156 {offsets = [0, 0], sizes = [48, 128], strides = [1, 1]} : vector<96x128xf32> to vector<48x128xf32>
    %161 = vector.extract_strided_slice %159 {offsets = [0, 0], sizes = [16, 128], strides = [1, 1]} : vector<48x128xf32> to vector<16x128xf32>
    %162 = vector.extract_strided_slice %160 {offsets = [0, 0], sizes = [16, 128], strides = [1, 1]} : vector<48x128xf32> to vector<16x128xf32>
    %163 = arith.addf %161, %162 : vector<16x128xf32>
    %164 = arith.negf %163 : vector<16x128xf32>
    %165 = math.exp %164 : vector<16x128xf32>
    %cst_39 = arith.constant 1.000000e+00 : f32
    %166 = vector.broadcast %cst_39 : f32 to vector<16x128xf32>
    %167 = arith.addf %166, %165 : vector<16x128xf32>
    %168 = arith.divf %166, %167 : vector<16x128xf32>
    %169 = vector.extract_strided_slice %159 {offsets = [16, 0], sizes = [16, 128], strides = [1, 1]} : vector<48x128xf32> to vector<16x128xf32>
    %170 = vector.extract_strided_slice %160 {offsets = [16, 0], sizes = [16, 128], strides = [1, 1]} : vector<48x128xf32> to vector<16x128xf32>
    %171 = arith.addf %169, %170 : vector<16x128xf32>
    %172 = arith.negf %171 : vector<16x128xf32>
    %173 = math.exp %172 : vector<16x128xf32>
    %cst_40 = arith.constant 1.000000e+00 : f32
    %174 = vector.broadcast %cst_40 : f32 to vector<16x128xf32>
    %175 = arith.addf %174, %173 : vector<16x128xf32>
    %176 = arith.divf %174, %175 : vector<16x128xf32>
    %177 = vector.extract_strided_slice %159 {offsets = [32, 0], sizes = [16, 128], strides = [1, 1]} : vector<48x128xf32> to vector<16x128xf32>
    %178 = vector.extract_strided_slice %160 {offsets = [32, 0], sizes = [16, 128], strides = [1, 1]} : vector<48x128xf32> to vector<16x128xf32>
    %179 = arith.addf %178, %3 : vector<16x128xf32>
    %180 = arith.mulf %168, %179 : vector<16x128xf32>
    %181 = arith.addf %177, %180 : vector<16x128xf32>
    %182 = math.tanh %181 : vector<16x128xf32>
    %cst_41 = arith.constant 1.000000e+00 : f32
    %183 = vector.broadcast %cst_41 : f32 to vector<16x128xf32>
    %184 = arith.subf %183, %176 : vector<16x128xf32>
    %185 = arith.mulf %184, %182 : vector<16x128xf32>
    %186 = arith.mulf %176, %114 : vector<16x128xf32>
    %187 = arith.addf %185, %186 : vector<16x128xf32>
    %188 = arith.index_cast %154 : i32 to index
    %c0_42 = arith.constant 0 : index
    %c0_43 = arith.constant 0 : index
    %189 = vector.load %arg2[%188, %c0_42, %c0_43] : memref<8x48x128xf32, #tpu.memory_space<vmem>>, vector<1x48x128xf32>
    %190 = vector.shape_cast %189 : vector<1x48x128xf32> to vector<48x128xf32>
    %191 = vector.extract_strided_slice %156 {offsets = [48, 0], sizes = [48, 128], strides = [1, 1]} : vector<96x128xf32> to vector<48x128xf32>
    %192 = vector.extract_strided_slice %190 {offsets = [0, 0], sizes = [16, 128], strides = [1, 1]} : vector<48x128xf32> to vector<16x128xf32>
    %193 = vector.extract_strided_slice %191 {offsets = [0, 0], sizes = [16, 128], strides = [1, 1]} : vector<48x128xf32> to vector<16x128xf32>
    %194 = arith.addf %192, %193 : vector<16x128xf32>
    %195 = arith.negf %194 : vector<16x128xf32>
    %196 = math.exp %195 : vector<16x128xf32>
    %cst_44 = arith.constant 1.000000e+00 : f32
    %197 = vector.broadcast %cst_44 : f32 to vector<16x128xf32>
    %198 = arith.addf %197, %196 : vector<16x128xf32>
    %199 = arith.divf %197, %198 : vector<16x128xf32>
    %200 = vector.extract_strided_slice %190 {offsets = [16, 0], sizes = [16, 128], strides = [1, 1]} : vector<48x128xf32> to vector<16x128xf32>
    %201 = vector.extract_strided_slice %191 {offsets = [16, 0], sizes = [16, 128], strides = [1, 1]} : vector<48x128xf32> to vector<16x128xf32>
    %202 = arith.addf %200, %201 : vector<16x128xf32>
    %203 = arith.negf %202 : vector<16x128xf32>
    %204 = math.exp %203 : vector<16x128xf32>
    %cst_45 = arith.constant 1.000000e+00 : f32
    %205 = vector.broadcast %cst_45 : f32 to vector<16x128xf32>
    %206 = arith.addf %205, %204 : vector<16x128xf32>
    %207 = arith.divf %205, %206 : vector<16x128xf32>
    %208 = vector.extract_strided_slice %190 {offsets = [32, 0], sizes = [16, 128], strides = [1, 1]} : vector<48x128xf32> to vector<16x128xf32>
    %209 = vector.extract_strided_slice %191 {offsets = [32, 0], sizes = [16, 128], strides = [1, 1]} : vector<48x128xf32> to vector<16x128xf32>
    %210 = arith.addf %209, %6 : vector<16x128xf32>
    %211 = arith.mulf %199, %210 : vector<16x128xf32>
    %212 = arith.addf %208, %211 : vector<16x128xf32>
    %213 = math.tanh %212 : vector<16x128xf32>
    %cst_46 = arith.constant 1.000000e+00 : f32
    %214 = vector.broadcast %cst_46 : f32 to vector<16x128xf32>
    %215 = arith.subf %214, %207 : vector<16x128xf32>
    %216 = arith.mulf %215, %213 : vector<16x128xf32>
    %217 = arith.mulf %207, %145 : vector<16x128xf32>
    %218 = arith.addf %216, %217 : vector<16x128xf32>
    %219 = arith.index_cast %c2_i32 : i32 to index
    %c0_47 = arith.constant 0 : index
    %c0_48 = arith.constant 0 : index
    %220 = vector.load %arg14[%219, %c0_47, %c0_48] : memref<8x32x128xf32, #tpu.memory_space<vmem>>, vector<1x16x128xf32>
    %221 = vector.shape_cast %220 : vector<1x16x128xf32> to vector<16x128xf32>
    %222 = vector.shape_cast %187 : vector<16x128xf32> to vector<1x16x128xf32>
    tpu.vector_store %arg14[%219, %c0_47, %c0_48], %222 {strides = array<i32>} : memref<8x32x128xf32, #tpu.memory_space<vmem>>, vector<1x16x128xf32>,
    %223 = arith.index_cast %154 : i32 to index
    %c16_49 = arith.constant 16 : index
    %c0_50 = arith.constant 0 : index
    %224 = vector.load %arg14[%223, %c16_49, %c0_50] : memref<8x32x128xf32, #tpu.memory_space<vmem>>, vector<1x16x128xf32>
    %225 = vector.shape_cast %224 : vector<1x16x128xf32> to vector<16x128xf32>
    %226 = vector.shape_cast %218 : vector<16x128xf32> to vector<1x16x128xf32>
    tpu.vector_store %arg14[%223, %c16_49, %c0_50], %226 {strides = array<i32>} : memref<8x32x128xf32, #tpu.memory_space<vmem>>, vector<1x16x128xf32>,
    %c3_i32 = arith.constant 3 : i32
    %c7_i32_51 = arith.constant 7 : i32
    %227 = arith.subi %c7_i32_51, %c3_i32 : i32
    %228 = tpu.concatenate %187, %218 in 0 : vector<16x128xf32>, vector<16x128xf32> -> vector<32x128xf32>
    %cst_52 = arith.constant dense<0.000000e+00> : vector<96x128xf32>
    %229 = tpu.matmul %0, %228, %cst_52 {dimension_numbers = #tpu.dot_dimension_numbers<[1], [0], [0], [1], [0, 0, 1, 1], [], []>} : vector<96x32xf32>, vector<32x128xf32>, vector<96x128xf32> -> vector<96x128xf32>
    %230 = arith.index_cast %c3_i32 : i32 to index
    %c0_53 = arith.constant 0 : index
    %c0_54 = arith.constant 0 : index
    %231 = vector.load %arg1[%230, %c0_53, %c0_54] : memref<8x48x128xf32, #tpu.memory_space<vmem>>, vector<1x48x128xf32>
    %232 = vector.shape_cast %231 : vector<1x48x128xf32> to vector<48x128xf32>
    %233 = vector.extract_strided_slice %229 {offsets = [0, 0], sizes = [48, 128], strides = [1, 1]} : vector<96x128xf32> to vector<48x128xf32>
    %234 = vector.extract_strided_slice %232 {offsets = [0, 0], sizes = [16, 128], strides = [1, 1]} : vector<48x128xf32> to vector<16x128xf32>
    %235 = vector.extract_strided_slice %233 {offsets = [0, 0], sizes = [16, 128], strides = [1, 1]} : vector<48x128xf32> to vector<16x128xf32>
    %236 = arith.addf %234, %235 : vector<16x128xf32>
    %237 = arith.negf %236 : vector<16x128xf32>
    %238 = math.exp %237 : vector<16x128xf32>
    %cst_55 = arith.constant 1.000000e+00 : f32
    %239 = vector.broadcast %cst_55 : f32 to vector<16x128xf32>
    %240 = arith.addf %239, %238 : vector<16x128xf32>
    %241 = arith.divf %239, %240 : vector<16x128xf32>
    %242 = vector.extract_strided_slice %232 {offsets = [16, 0], sizes = [16, 128], strides = [1, 1]} : vector<48x128xf32> to vector<16x128xf32>
    %243 = vector.extract_strided_slice %233 {offsets = [16, 0], sizes = [16, 128], strides = [1, 1]} : vector<48x128xf32> to vector<16x128xf32>
    %244 = arith.addf %242, %243 : vector<16x128xf32>
    %245 = arith.negf %244 : vector<16x128xf32>
    %246 = math.exp %245 : vector<16x128xf32>
    %cst_56 = arith.constant 1.000000e+00 : f32
    %247 = vector.broadcast %cst_56 : f32 to vector<16x128xf32>
    %248 = arith.addf %247, %246 : vector<16x128xf32>
    %249 = arith.divf %247, %248 : vector<16x128xf32>
    %250 = vector.extract_strided_slice %232 {offsets = [32, 0], sizes = [16, 128], strides = [1, 1]} : vector<48x128xf32> to vector<16x128xf32>
    %251 = vector.extract_strided_slice %233 {offsets = [32, 0], sizes = [16, 128], strides = [1, 1]} : vector<48x128xf32> to vector<16x128xf32>
    %252 = arith.addf %251, %3 : vector<16x128xf32>
    %253 = arith.mulf %241, %252 : vector<16x128xf32>
    %254 = arith.addf %250, %253 : vector<16x128xf32>
    %255 = math.tanh %254 : vector<16x128xf32>
    %cst_57 = arith.constant 1.000000e+00 : f32
    %256 = vector.broadcast %cst_57 : f32 to vector<16x128xf32>
    %257 = arith.subf %256, %249 : vector<16x128xf32>
    %258 = arith.mulf %257, %255 : vector<16x128xf32>
    %259 = arith.mulf %249, %187 : vector<16x128xf32>
    %260 = arith.addf %258, %259 : vector<16x128xf32>
    %261 = arith.index_cast %227 : i32 to index
    %c0_58 = arith.constant 0 : index
    %c0_59 = arith.constant 0 : index
    %262 = vector.load %arg2[%261, %c0_58, %c0_59] : memref<8x48x128xf32, #tpu.memory_space<vmem>>, vector<1x48x128xf32>
    %263 = vector.shape_cast %262 : vector<1x48x128xf32> to vector<48x128xf32>
    %264 = vector.extract_strided_slice %229 {offsets = [48, 0], sizes = [48, 128], strides = [1, 1]} : vector<96x128xf32> to vector<48x128xf32>
    %265 = vector.extract_strided_slice %263 {offsets = [0, 0], sizes = [16, 128], strides = [1, 1]} : vector<48x128xf32> to vector<16x128xf32>
    %266 = vector.extract_strided_slice %264 {offsets = [0, 0], sizes = [16, 128], strides = [1, 1]} : vector<48x128xf32> to vector<16x128xf32>
    %267 = arith.addf %265, %266 : vector<16x128xf32>
    %268 = arith.negf %267 : vector<16x128xf32>
    %269 = math.exp %268 : vector<16x128xf32>
    %cst_60 = arith.constant 1.000000e+00 : f32
    %270 = vector.broadcast %cst_60 : f32 to vector<16x128xf32>
    %271 = arith.addf %270, %269 : vector<16x128xf32>
    %272 = arith.divf %270, %271 : vector<16x128xf32>
    %273 = vector.extract_strided_slice %263 {offsets = [16, 0], sizes = [16, 128], strides = [1, 1]} : vector<48x128xf32> to vector<16x128xf32>
    %274 = vector.extract_strided_slice %264 {offsets = [16, 0], sizes = [16, 128], strides = [1, 1]} : vector<48x128xf32> to vector<16x128xf32>
    %275 = arith.addf %273, %274 : vector<16x128xf32>
    %276 = arith.negf %275 : vector<16x128xf32>
    %277 = math.exp %276 : vector<16x128xf32>
    %cst_61 = arith.constant 1.000000e+00 : f32
    %278 = vector.broadcast %cst_61 : f32 to vector<16x128xf32>
    %279 = arith.addf %278, %277 : vector<16x128xf32>
    %280 = arith.divf %278, %279 : vector<16x128xf32>
    %281 = vector.extract_strided_slice %263 {offsets = [32, 0], sizes = [16, 128], strides = [1, 1]} : vector<48x128xf32> to vector<16x128xf32>
    %282 = vector.extract_strided_slice %264 {offsets = [32, 0], sizes = [16, 128], strides = [1, 1]} : vector<48x128xf32> to vector<16x128xf32>
    %283 = arith.addf %282, %6 : vector<16x128xf32>
    %284 = arith.mulf %272, %283 : vector<16x128xf32>
    %285 = arith.addf %281, %284 : vector<16x128xf32>
    %286 = math.tanh %285 : vector<16x128xf32>
    %cst_62 = arith.constant 1.000000e+00 : f32
    %287 = vector.broadcast %cst_62 : f32 to vector<16x128xf32>
    %288 = arith.subf %287, %280 : vector<16x128xf32>
    %289 = arith.mulf %288, %286 : vector<16x128xf32>
    %290 = arith.mulf %280, %218 : vector<16x128xf32>
    %291 = arith.addf %289, %290 : vector<16x128xf32>
    %292 = arith.index_cast %c3_i32 : i32 to index
    %c0_63 = arith.constant 0 : index
    %c0_64 = arith.constant 0 : index
    %293 = vector.load %arg14[%292, %c0_63, %c0_64] : memref<8x32x128xf32, #tpu.memory_space<vmem>>, vector<1x16x128xf32>
    %294 = vector.shape_cast %293 : vector<1x16x128xf32> to vector<16x128xf32>
    %295 = vector.shape_cast %260 : vector<16x128xf32> to vector<1x16x128xf32>
    tpu.vector_store %arg14[%292, %c0_63, %c0_64], %295 {strides = array<i32>} : memref<8x32x128xf32, #tpu.memory_space<vmem>>, vector<1x16x128xf32>,
    %296 = arith.index_cast %227 : i32 to index
    %c16_65 = arith.constant 16 : index
    %c0_66 = arith.constant 0 : index
    %297 = vector.load %arg14[%296, %c16_65, %c0_66] : memref<8x32x128xf32, #tpu.memory_space<vmem>>, vector<1x16x128xf32>
    %298 = vector.shape_cast %297 : vector<1x16x128xf32> to vector<16x128xf32>
    %299 = vector.shape_cast %291 : vector<16x128xf32> to vector<1x16x128xf32>
    tpu.vector_store %arg14[%296, %c16_65, %c0_66], %299 {strides = array<i32>} : memref<8x32x128xf32, #tpu.memory_space<vmem>>, vector<1x16x128xf32>,
    %c4_i32 = arith.constant 4 : i32
    %c7_i32_67 = arith.constant 7 : i32
    %300 = arith.subi %c7_i32_67, %c4_i32 : i32
    %301 = tpu.concatenate %260, %291 in 0 : vector<16x128xf32>, vector<16x128xf32> -> vector<32x128xf32>
    %cst_68 = arith.constant dense<0.000000e+00> : vector<96x128xf32>
    %302 = tpu.matmul %0, %301, %cst_68 {dimension_numbers = #tpu.dot_dimension_numbers<[1], [0], [0], [1], [0, 0, 1, 1], [], []>} : vector<96x32xf32>, vector<32x128xf32>, vector<96x128xf32> -> vector<96x128xf32>
    %303 = arith.index_cast %c4_i32 : i32 to index
    %c0_69 = arith.constant 0 : index
    %c0_70 = arith.constant 0 : index
    %304 = vector.load %arg1[%303, %c0_69, %c0_70] : memref<8x48x128xf32, #tpu.memory_space<vmem>>, vector<1x48x128xf32>
    %305 = vector.shape_cast %304 : vector<1x48x128xf32> to vector<48x128xf32>
    %306 = vector.extract_strided_slice %302 {offsets = [0, 0], sizes = [48, 128], strides = [1, 1]} : vector<96x128xf32> to vector<48x128xf32>
    %307 = vector.extract_strided_slice %305 {offsets = [0, 0], sizes = [16, 128], strides = [1, 1]} : vector<48x128xf32> to vector<16x128xf32>
    %308 = vector.extract_strided_slice %306 {offsets = [0, 0], sizes = [16, 128], strides = [1, 1]} : vector<48x128xf32> to vector<16x128xf32>
    %309 = arith.addf %307, %308 : vector<16x128xf32>
    %310 = arith.negf %309 : vector<16x128xf32>
    %311 = math.exp %310 : vector<16x128xf32>
    %cst_71 = arith.constant 1.000000e+00 : f32
    %312 = vector.broadcast %cst_71 : f32 to vector<16x128xf32>
    %313 = arith.addf %312, %311 : vector<16x128xf32>
    %314 = arith.divf %312, %313 : vector<16x128xf32>
    %315 = vector.extract_strided_slice %305 {offsets = [16, 0], sizes = [16, 128], strides = [1, 1]} : vector<48x128xf32> to vector<16x128xf32>
    %316 = vector.extract_strided_slice %306 {offsets = [16, 0], sizes = [16, 128], strides = [1, 1]} : vector<48x128xf32> to vector<16x128xf32>
    %317 = arith.addf %315, %316 : vector<16x128xf32>
    %318 = arith.negf %317 : vector<16x128xf32>
    %319 = math.exp %318 : vector<16x128xf32>
    %cst_72 = arith.constant 1.000000e+00 : f32
    %320 = vector.broadcast %cst_72 : f32 to vector<16x128xf32>
    %321 = arith.addf %320, %319 : vector<16x128xf32>
    %322 = arith.divf %320, %321 : vector<16x128xf32>
    %323 = vector.extract_strided_slice %305 {offsets = [32, 0], sizes = [16, 128], strides = [1, 1]} : vector<48x128xf32> to vector<16x128xf32>
    %324 = vector.extract_strided_slice %306 {offsets = [32, 0], sizes = [16, 128], strides = [1, 1]} : vector<48x128xf32> to vector<16x128xf32>
    %325 = arith.addf %324, %3 : vector<16x128xf32>
    %326 = arith.mulf %314, %325 : vector<16x128xf32>
    %327 = arith.addf %323, %326 : vector<16x128xf32>
    %328 = math.tanh %327 : vector<16x128xf32>
    %cst_73 = arith.constant 1.000000e+00 : f32
    %329 = vector.broadcast %cst_73 : f32 to vector<16x128xf32>
    %330 = arith.subf %329, %322 : vector<16x128xf32>
    %331 = arith.mulf %330, %328 : vector<16x128xf32>
    %332 = arith.mulf %322, %260 : vector<16x128xf32>
    %333 = arith.addf %331, %332 : vector<16x128xf32>
    %334 = arith.index_cast %300 : i32 to index
    %c0_74 = arith.constant 0 : index
    %c0_75 = arith.constant 0 : index
    %335 = vector.load %arg2[%334, %c0_74, %c0_75] : memref<8x48x128xf32, #tpu.memory_space<vmem>>, vector<1x48x128xf32>
    %336 = vector.shape_cast %335 : vector<1x48x128xf32> to vector<48x128xf32>
    %337 = vector.extract_strided_slice %302 {offsets = [48, 0], sizes = [48, 128], strides = [1, 1]} : vector<96x128xf32> to vector<48x128xf32>
    %338 = vector.extract_strided_slice %336 {offsets = [0, 0], sizes = [16, 128], strides = [1, 1]} : vector<48x128xf32> to vector<16x128xf32>
    %339 = vector.extract_strided_slice %337 {offsets = [0, 0], sizes = [16, 128], strides = [1, 1]} : vector<48x128xf32> to vector<16x128xf32>
    %340 = arith.addf %338, %339 : vector<16x128xf32>
    %341 = arith.negf %340 : vector<16x128xf32>
    %342 = math.exp %341 : vector<16x128xf32>
    %cst_76 = arith.constant 1.000000e+00 : f32
    %343 = vector.broadcast %cst_76 : f32 to vector<16x128xf32>
    %344 = arith.addf %343, %342 : vector<16x128xf32>
    %345 = arith.divf %343, %344 : vector<16x128xf32>
    %346 = vector.extract_strided_slice %336 {offsets = [16, 0], sizes = [16, 128], strides = [1, 1]} : vector<48x128xf32> to vector<16x128xf32>
    %347 = vector.extract_strided_slice %337 {offsets = [16, 0], sizes = [16, 128], strides = [1, 1]} : vector<48x128xf32> to vector<16x128xf32>
    %348 = arith.addf %346, %347 : vector<16x128xf32>
    %349 = arith.negf %348 : vector<16x128xf32>
    %350 = math.exp %349 : vector<16x128xf32>
    %cst_77 = arith.constant 1.000000e+00 : f32
    %351 = vector.broadcast %cst_77 : f32 to vector<16x128xf32>
    %352 = arith.addf %351, %350 : vector<16x128xf32>
    %353 = arith.divf %351, %352 : vector<16x128xf32>
    %354 = vector.extract_strided_slice %336 {offsets = [32, 0], sizes = [16, 128], strides = [1, 1]} : vector<48x128xf32> to vector<16x128xf32>
    %355 = vector.extract_strided_slice %337 {offsets = [32, 0], sizes = [16, 128], strides = [1, 1]} : vector<48x128xf32> to vector<16x128xf32>
    %356 = arith.addf %355, %6 : vector<16x128xf32>
    %357 = arith.mulf %345, %356 : vector<16x128xf32>
    %358 = arith.addf %354, %357 : vector<16x128xf32>
    %359 = math.tanh %358 : vector<16x128xf32>
    %cst_78 = arith.constant 1.000000e+00 : f32
    %360 = vector.broadcast %cst_78 : f32 to vector<16x128xf32>
    %361 = arith.subf %360, %353 : vector<16x128xf32>
    %362 = arith.mulf %361, %359 : vector<16x128xf32>
    %363 = arith.mulf %353, %291 : vector<16x128xf32>
    %364 = arith.addf %362, %363 : vector<16x128xf32>
    %365 = arith.index_cast %c4_i32 : i32 to index
    %c0_79 = arith.constant 0 : index
    %c0_80 = arith.constant 0 : index
    %366 = vector.load %arg14[%365, %c0_79, %c0_80] : memref<8x32x128xf32, #tpu.memory_space<vmem>>, vector<1x16x128xf32>
    %367 = vector.shape_cast %366 : vector<1x16x128xf32> to vector<16x128xf32>
    %368 = vector.shape_cast %333 : vector<16x128xf32> to vector<1x16x128xf32>
    tpu.vector_store %arg14[%365, %c0_79, %c0_80], %368 {strides = array<i32>} : memref<8x32x128xf32, #tpu.memory_space<vmem>>, vector<1x16x128xf32>,
    %369 = arith.index_cast %300 : i32 to index
    %c16_81 = arith.constant 16 : index
    %c0_82 = arith.constant 0 : index
    %370 = vector.load %arg14[%369, %c16_81, %c0_82] : memref<8x32x128xf32, #tpu.memory_space<vmem>>, vector<1x16x128xf32>
    %371 = vector.shape_cast %370 : vector<1x16x128xf32> to vector<16x128xf32>
    %372 = vector.shape_cast %364 : vector<16x128xf32> to vector<1x16x128xf32>
    tpu.vector_store %arg14[%369, %c16_81, %c0_82], %372 {strides = array<i32>} : memref<8x32x128xf32, #tpu.memory_space<vmem>>, vector<1x16x128xf32>,
    %c5_i32 = arith.constant 5 : i32
    %c7_i32_83 = arith.constant 7 : i32
    %373 = arith.subi %c7_i32_83, %c5_i32 : i32
    %374 = tpu.concatenate %333, %364 in 0 : vector<16x128xf32>, vector<16x128xf32> -> vector<32x128xf32>
    %cst_84 = arith.constant dense<0.000000e+00> : vector<96x128xf32>
    %375 = tpu.matmul %0, %374, %cst_84 {dimension_numbers = #tpu.dot_dimension_numbers<[1], [0], [0], [1], [0, 0, 1, 1], [], []>} : vector<96x32xf32>, vector<32x128xf32>, vector<96x128xf32> -> vector<96x128xf32>
    %376 = arith.index_cast %c5_i32 : i32 to index
    %c0_85 = arith.constant 0 : index
    %c0_86 = arith.constant 0 : index
    %377 = vector.load %arg1[%376, %c0_85, %c0_86] : memref<8x48x128xf32, #tpu.memory_space<vmem>>, vector<1x48x128xf32>
    %378 = vector.shape_cast %377 : vector<1x48x128xf32> to vector<48x128xf32>
    %379 = vector.extract_strided_slice %375 {offsets = [0, 0], sizes = [48, 128], strides = [1, 1]} : vector<96x128xf32> to vector<48x128xf32>
    %380 = vector.extract_strided_slice %378 {offsets = [0, 0], sizes = [16, 128], strides = [1, 1]} : vector<48x128xf32> to vector<16x128xf32>
    %381 = vector.extract_strided_slice %379 {offsets = [0, 0], sizes = [16, 128], strides = [1, 1]} : vector<48x128xf32> to vector<16x128xf32>
    %382 = arith.addf %380, %381 : vector<16x128xf32>
    %383 = arith.negf %382 : vector<16x128xf32>
    %384 = math.exp %383 : vector<16x128xf32>
    %cst_87 = arith.constant 1.000000e+00 : f32
    %385 = vector.broadcast %cst_87 : f32 to vector<16x128xf32>
    %386 = arith.addf %385, %384 : vector<16x128xf32>
    %387 = arith.divf %385, %386 : vector<16x128xf32>
    %388 = vector.extract_strided_slice %378 {offsets = [16, 0], sizes = [16, 128], strides = [1, 1]} : vector<48x128xf32> to vector<16x128xf32>
    %389 = vector.extract_strided_slice %379 {offsets = [16, 0], sizes = [16, 128], strides = [1, 1]} : vector<48x128xf32> to vector<16x128xf32>
    %390 = arith.addf %388, %389 : vector<16x128xf32>
    %391 = arith.negf %390 : vector<16x128xf32>
    %392 = math.exp %391 : vector<16x128xf32>
    %cst_88 = arith.constant 1.000000e+00 : f32
    %393 = vector.broadcast %cst_88 : f32 to vector<16x128xf32>
    %394 = arith.addf %393, %392 : vector<16x128xf32>
    %395 = arith.divf %393, %394 : vector<16x128xf32>
    %396 = vector.extract_strided_slice %378 {offsets = [32, 0], sizes = [16, 128], strides = [1, 1]} : vector<48x128xf32> to vector<16x128xf32>
    %397 = vector.extract_strided_slice %379 {offsets = [32, 0], sizes = [16, 128], strides = [1, 1]} : vector<48x128xf32> to vector<16x128xf32>
    %398 = arith.addf %397, %3 : vector<16x128xf32>
    %399 = arith.mulf %387, %398 : vector<16x128xf32>
    %400 = arith.addf %396, %399 : vector<16x128xf32>
    %401 = math.tanh %400 : vector<16x128xf32>
    %cst_89 = arith.constant 1.000000e+00 : f32
    %402 = vector.broadcast %cst_89 : f32 to vector<16x128xf32>
    %403 = arith.subf %402, %395 : vector<16x128xf32>
    %404 = arith.mulf %403, %401 : vector<16x128xf32>
    %405 = arith.mulf %395, %333 : vector<16x128xf32>
    %406 = arith.addf %404, %405 : vector<16x128xf32>
    %407 = arith.index_cast %373 : i32 to index
    %c0_90 = arith.constant 0 : index
    %c0_91 = arith.constant 0 : index
    %408 = vector.load %arg2[%407, %c0_90, %c0_91] : memref<8x48x128xf32, #tpu.memory_space<vmem>>, vector<1x48x128xf32>
    %409 = vector.shape_cast %408 : vector<1x48x128xf32> to vector<48x128xf32>
    %410 = vector.extract_strided_slice %375 {offsets = [48, 0], sizes = [48, 128], strides = [1, 1]} : vector<96x128xf32> to vector<48x128xf32>
    %411 = vector.extract_strided_slice %409 {offsets = [0, 0], sizes = [16, 128], strides = [1, 1]} : vector<48x128xf32> to vector<16x128xf32>
    %412 = vector.extract_strided_slice %410 {offsets = [0, 0], sizes = [16, 128], strides = [1, 1]} : vector<48x128xf32> to vector<16x128xf32>
    %413 = arith.addf %411, %412 : vector<16x128xf32>
    %414 = arith.negf %413 : vector<16x128xf32>
    %415 = math.exp %414 : vector<16x128xf32>
    %cst_92 = arith.constant 1.000000e+00 : f32
    %416 = vector.broadcast %cst_92 : f32 to vector<16x128xf32>
    %417 = arith.addf %416, %415 : vector<16x128xf32>
    %418 = arith.divf %416, %417 : vector<16x128xf32>
    %419 = vector.extract_strided_slice %409 {offsets = [16, 0], sizes = [16, 128], strides = [1, 1]} : vector<48x128xf32> to vector<16x128xf32>
    %420 = vector.extract_strided_slice %410 {offsets = [16, 0], sizes = [16, 128], strides = [1, 1]} : vector<48x128xf32> to vector<16x128xf32>
    %421 = arith.addf %419, %420 : vector<16x128xf32>
    %422 = arith.negf %421 : vector<16x128xf32>
    %423 = math.exp %422 : vector<16x128xf32>
    %cst_93 = arith.constant 1.000000e+00 : f32
    %424 = vector.broadcast %cst_93 : f32 to vector<16x128xf32>
    %425 = arith.addf %424, %423 : vector<16x128xf32>
    %426 = arith.divf %424, %425 : vector<16x128xf32>
    %427 = vector.extract_strided_slice %409 {offsets = [32, 0], sizes = [16, 128], strides = [1, 1]} : vector<48x128xf32> to vector<16x128xf32>
    %428 = vector.extract_strided_slice %410 {offsets = [32, 0], sizes = [16, 128], strides = [1, 1]} : vector<48x128xf32> to vector<16x128xf32>
    %429 = arith.addf %428, %6 : vector<16x128xf32>
    %430 = arith.mulf %418, %429 : vector<16x128xf32>
    %431 = arith.addf %427, %430 : vector<16x128xf32>
    %432 = math.tanh %431 : vector<16x128xf32>
    %cst_94 = arith.constant 1.000000e+00 : f32
    %433 = vector.broadcast %cst_94 : f32 to vector<16x128xf32>
    %434 = arith.subf %433, %426 : vector<16x128xf32>
    %435 = arith.mulf %434, %432 : vector<16x128xf32>
    %436 = arith.mulf %426, %364 : vector<16x128xf32>
    %437 = arith.addf %435, %436 : vector<16x128xf32>
    %438 = arith.index_cast %c5_i32 : i32 to index
    %c0_95 = arith.constant 0 : index
    %c0_96 = arith.constant 0 : index
    %439 = vector.load %arg14[%438, %c0_95, %c0_96] : memref<8x32x128xf32, #tpu.memory_space<vmem>>, vector<1x16x128xf32>
    %440 = vector.shape_cast %439 : vector<1x16x128xf32> to vector<16x128xf32>
    %441 = vector.shape_cast %406 : vector<16x128xf32> to vector<1x16x128xf32>
    tpu.vector_store %arg14[%438, %c0_95, %c0_96], %441 {strides = array<i32>} : memref<8x32x128xf32, #tpu.memory_space<vmem>>, vector<1x16x128xf32>,
    %442 = arith.index_cast %373 : i32 to index
    %c16_97 = arith.constant 16 : index
    %c0_98 = arith.constant 0 : index
    %443 = vector.load %arg14[%442, %c16_97, %c0_98] : memref<8x32x128xf32, #tpu.memory_space<vmem>>, vector<1x16x128xf32>
    %444 = vector.shape_cast %443 : vector<1x16x128xf32> to vector<16x128xf32>
    %445 = vector.shape_cast %437 : vector<16x128xf32> to vector<1x16x128xf32>
    tpu.vector_store %arg14[%442, %c16_97, %c0_98], %445 {strides = array<i32>} : memref<8x32x128xf32, #tpu.memory_space<vmem>>, vector<1x16x128xf32>,
    %c6_i32 = arith.constant 6 : i32
    %c7_i32_99 = arith.constant 7 : i32
    %446 = arith.subi %c7_i32_99, %c6_i32 : i32
    %447 = tpu.concatenate %406, %437 in 0 : vector<16x128xf32>, vector<16x128xf32> -> vector<32x128xf32>
    %cst_100 = arith.constant dense<0.000000e+00> : vector<96x128xf32>
    %448 = tpu.matmul %0, %447, %cst_100 {dimension_numbers = #tpu.dot_dimension_numbers<[1], [0], [0], [1], [0, 0, 1, 1], [], []>} : vector<96x32xf32>, vector<32x128xf32>, vector<96x128xf32> -> vector<96x128xf32>
    %449 = arith.index_cast %c6_i32 : i32 to index
    %c0_101 = arith.constant 0 : index
    %c0_102 = arith.constant 0 : index
    %450 = vector.load %arg1[%449, %c0_101, %c0_102] : memref<8x48x128xf32, #tpu.memory_space<vmem>>, vector<1x48x128xf32>
    %451 = vector.shape_cast %450 : vector<1x48x128xf32> to vector<48x128xf32>
    %452 = vector.extract_strided_slice %448 {offsets = [0, 0], sizes = [48, 128], strides = [1, 1]} : vector<96x128xf32> to vector<48x128xf32>
    %453 = vector.extract_strided_slice %451 {offsets = [0, 0], sizes = [16, 128], strides = [1, 1]} : vector<48x128xf32> to vector<16x128xf32>
    %454 = vector.extract_strided_slice %452 {offsets = [0, 0], sizes = [16, 128], strides = [1, 1]} : vector<48x128xf32> to vector<16x128xf32>
    %455 = arith.addf %453, %454 : vector<16x128xf32>
    %456 = arith.negf %455 : vector<16x128xf32>
    %457 = math.exp %456 : vector<16x128xf32>
    %cst_103 = arith.constant 1.000000e+00 : f32
    %458 = vector.broadcast %cst_103 : f32 to vector<16x128xf32>
    %459 = arith.addf %458, %457 : vector<16x128xf32>
    %460 = arith.divf %458, %459 : vector<16x128xf32>
    %461 = vector.extract_strided_slice %451 {offsets = [16, 0], sizes = [16, 128], strides = [1, 1]} : vector<48x128xf32> to vector<16x128xf32>
    %462 = vector.extract_strided_slice %452 {offsets = [16, 0], sizes = [16, 128], strides = [1, 1]} : vector<48x128xf32> to vector<16x128xf32>
    %463 = arith.addf %461, %462 : vector<16x128xf32>
    %464 = arith.negf %463 : vector<16x128xf32>
    %465 = math.exp %464 : vector<16x128xf32>
    %cst_104 = arith.constant 1.000000e+00 : f32
    %466 = vector.broadcast %cst_104 : f32 to vector<16x128xf32>
    %467 = arith.addf %466, %465 : vector<16x128xf32>
    %468 = arith.divf %466, %467 : vector<16x128xf32>
    %469 = vector.extract_strided_slice %451 {offsets = [32, 0], sizes = [16, 128], strides = [1, 1]} : vector<48x128xf32> to vector<16x128xf32>
    %470 = vector.extract_strided_slice %452 {offsets = [32, 0], sizes = [16, 128], strides = [1, 1]} : vector<48x128xf32> to vector<16x128xf32>
    %471 = arith.addf %470, %3 : vector<16x128xf32>
    %472 = arith.mulf %460, %471 : vector<16x128xf32>
    %473 = arith.addf %469, %472 : vector<16x128xf32>
    %474 = math.tanh %473 : vector<16x128xf32>
    %cst_105 = arith.constant 1.000000e+00 : f32
    %475 = vector.broadcast %cst_105 : f32 to vector<16x128xf32>
    %476 = arith.subf %475, %468 : vector<16x128xf32>
    %477 = arith.mulf %476, %474 : vector<16x128xf32>
    %478 = arith.mulf %468, %406 : vector<16x128xf32>
    %479 = arith.addf %477, %478 : vector<16x128xf32>
    %480 = arith.index_cast %446 : i32 to index
    %c0_106 = arith.constant 0 : index
    %c0_107 = arith.constant 0 : index
    %481 = vector.load %arg2[%480, %c0_106, %c0_107] : memref<8x48x128xf32, #tpu.memory_space<vmem>>, vector<1x48x128xf32>
    %482 = vector.shape_cast %481 : vector<1x48x128xf32> to vector<48x128xf32>
    %483 = vector.extract_strided_slice %448 {offsets = [48, 0], sizes = [48, 128], strides = [1, 1]} : vector<96x128xf32> to vector<48x128xf32>
    %484 = vector.extract_strided_slice %482 {offsets = [0, 0], sizes = [16, 128], strides = [1, 1]} : vector<48x128xf32> to vector<16x128xf32>
    %485 = vector.extract_strided_slice %483 {offsets = [0, 0], sizes = [16, 128], strides = [1, 1]} : vector<48x128xf32> to vector<16x128xf32>
    %486 = arith.addf %484, %485 : vector<16x128xf32>
    %487 = arith.negf %486 : vector<16x128xf32>
    %488 = math.exp %487 : vector<16x128xf32>
    %cst_108 = arith.constant 1.000000e+00 : f32
    %489 = vector.broadcast %cst_108 : f32 to vector<16x128xf32>
    %490 = arith.addf %489, %488 : vector<16x128xf32>
    %491 = arith.divf %489, %490 : vector<16x128xf32>
    %492 = vector.extract_strided_slice %482 {offsets = [16, 0], sizes = [16, 128], strides = [1, 1]} : vector<48x128xf32> to vector<16x128xf32>
    %493 = vector.extract_strided_slice %483 {offsets = [16, 0], sizes = [16, 128], strides = [1, 1]} : vector<48x128xf32> to vector<16x128xf32>
    %494 = arith.addf %492, %493 : vector<16x128xf32>
    %495 = arith.negf %494 : vector<16x128xf32>
    %496 = math.exp %495 : vector<16x128xf32>
    %cst_109 = arith.constant 1.000000e+00 : f32
    %497 = vector.broadcast %cst_109 : f32 to vector<16x128xf32>
    %498 = arith.addf %497, %496 : vector<16x128xf32>
    %499 = arith.divf %497, %498 : vector<16x128xf32>
    %500 = vector.extract_strided_slice %482 {offsets = [32, 0], sizes = [16, 128], strides = [1, 1]} : vector<48x128xf32> to vector<16x128xf32>
    %501 = vector.extract_strided_slice %483 {offsets = [32, 0], sizes = [16, 128], strides = [1, 1]} : vector<48x128xf32> to vector<16x128xf32>
    %502 = arith.addf %501, %6 : vector<16x128xf32>
    %503 = arith.mulf %491, %502 : vector<16x128xf32>
    %504 = arith.addf %500, %503 : vector<16x128xf32>
    %505 = math.tanh %504 : vector<16x128xf32>
    %cst_110 = arith.constant 1.000000e+00 : f32
    %506 = vector.broadcast %cst_110 : f32 to vector<16x128xf32>
    %507 = arith.subf %506, %499 : vector<16x128xf32>
    %508 = arith.mulf %507, %505 : vector<16x128xf32>
    %509 = arith.mulf %499, %437 : vector<16x128xf32>
    %510 = arith.addf %508, %509 : vector<16x128xf32>
    %511 = arith.index_cast %c6_i32 : i32 to index
    %c0_111 = arith.constant 0 : index
    %c0_112 = arith.constant 0 : index
    %512 = vector.load %arg14[%511, %c0_111, %c0_112] : memref<8x32x128xf32, #tpu.memory_space<vmem>>, vector<1x16x128xf32>
    %513 = vector.shape_cast %512 : vector<1x16x128xf32> to vector<16x128xf32>
    %514 = vector.shape_cast %479 : vector<16x128xf32> to vector<1x16x128xf32>
    tpu.vector_store %arg14[%511, %c0_111, %c0_112], %514 {strides = array<i32>} : memref<8x32x128xf32, #tpu.memory_space<vmem>>, vector<1x16x128xf32>,
    %515 = arith.index_cast %446 : i32 to index
    %c16_113 = arith.constant 16 : index
    %c0_114 = arith.constant 0 : index
    %516 = vector.load %arg14[%515, %c16_113, %c0_114] : memref<8x32x128xf32, #tpu.memory_space<vmem>>, vector<1x16x128xf32>
    %517 = vector.shape_cast %516 : vector<1x16x128xf32> to vector<16x128xf32>
    %518 = vector.shape_cast %510 : vector<16x128xf32> to vector<1x16x128xf32>
    tpu.vector_store %arg14[%515, %c16_113, %c0_114], %518 {strides = array<i32>} : memref<8x32x128xf32, #tpu.memory_space<vmem>>, vector<1x16x128xf32>,
    %c7_i32_115 = arith.constant 7 : i32
    %c7_i32_116 = arith.constant 7 : i32
    %519 = arith.subi %c7_i32_116, %c7_i32_115 : i32
    %520 = tpu.concatenate %479, %510 in 0 : vector<16x128xf32>, vector<16x128xf32> -> vector<32x128xf32>
    %cst_117 = arith.constant dense<0.000000e+00> : vector<96x128xf32>
    %521 = tpu.matmul %0, %520, %cst_117 {dimension_numbers = #tpu.dot_dimension_numbers<[1], [0], [0], [1], [0, 0, 1, 1], [], []>} : vector<96x32xf32>, vector<32x128xf32>, vector<96x128xf32> -> vector<96x128xf32>
    %522 = arith.index_cast %c7_i32_115 : i32 to index
    %c0_118 = arith.constant 0 : index
    %c0_119 = arith.constant 0 : index
    %523 = vector.load %arg1[%522, %c0_118, %c0_119] : memref<8x48x128xf32, #tpu.memory_space<vmem>>, vector<1x48x128xf32>
    %524 = vector.shape_cast %523 : vector<1x48x128xf32> to vector<48x128xf32>
    %525 = vector.extract_strided_slice %521 {offsets = [0, 0], sizes = [48, 128], strides = [1, 1]} : vector<96x128xf32> to vector<48x128xf32>
    %526 = vector.extract_strided_slice %524 {offsets = [0, 0], sizes = [16, 128], strides = [1, 1]} : vector<48x128xf32> to vector<16x128xf32>
    %527 = vector.extract_strided_slice %525 {offsets = [0, 0], sizes = [16, 128], strides = [1, 1]} : vector<48x128xf32> to vector<16x128xf32>
    %528 = arith.addf %526, %527 : vector<16x128xf32>
    %529 = arith.negf %528 : vector<16x128xf32>
    %530 = math.exp %529 : vector<16x128xf32>
    %cst_120 = arith.constant 1.000000e+00 : f32
    %531 = vector.broadcast %cst_120 : f32 to vector<16x128xf32>
    %532 = arith.addf %531, %530 : vector<16x128xf32>
    %533 = arith.divf %531, %532 : vector<16x128xf32>
    %534 = vector.extract_strided_slice %524 {offsets = [16, 0], sizes = [16, 128], strides = [1, 1]} : vector<48x128xf32> to vector<16x128xf32>
    %535 = vector.extract_strided_slice %525 {offsets = [16, 0], sizes = [16, 128], strides = [1, 1]} : vector<48x128xf32> to vector<16x128xf32>
    %536 = arith.addf %534, %535 : vector<16x128xf32>
    %537 = arith.negf %536 : vector<16x128xf32>
    %538 = math.exp %537 : vector<16x128xf32>
    %cst_121 = arith.constant 1.000000e+00 : f32
    %539 = vector.broadcast %cst_121 : f32 to vector<16x128xf32>
    %540 = arith.addf %539, %538 : vector<16x128xf32>
    %541 = arith.divf %539, %540 : vector<16x128xf32>
    %542 = vector.extract_strided_slice %524 {offsets = [32, 0], sizes = [16, 128], strides = [1, 1]} : vector<48x128xf32> to vector<16x128xf32>
    %543 = vector.extract_strided_slice %525 {offsets = [32, 0], sizes = [16, 128], strides = [1, 1]} : vector<48x128xf32> to vector<16x128xf32>
    %544 = arith.addf %543, %3 : vector<16x128xf32>
    %545 = arith.mulf %533, %544 : vector<16x128xf32>
    %546 = arith.addf %542, %545 : vector<16x128xf32>
    %547 = math.tanh %546 : vector<16x128xf32>
    %cst_122 = arith.constant 1.000000e+00 : f32
    %548 = vector.broadcast %cst_122 : f32 to vector<16x128xf32>
    %549 = arith.subf %548, %541 : vector<16x128xf32>
    %550 = arith.mulf %549, %547 : vector<16x128xf32>
    %551 = arith.mulf %541, %479 : vector<16x128xf32>
    %552 = arith.addf %550, %551 : vector<16x128xf32>
    %553 = arith.index_cast %519 : i32 to index
    %c0_123 = arith.constant 0 : index
    %c0_124 = arith.constant 0 : index
    %554 = vector.load %arg2[%553, %c0_123, %c0_124] : memref<8x48x128xf32, #tpu.memory_space<vmem>>, vector<1x48x128xf32>
    %555 = vector.shape_cast %554 : vector<1x48x128xf32> to vector<48x128xf32>
    %556 = vector.extract_strided_slice %521 {offsets = [48, 0], sizes = [48, 128], strides = [1, 1]} : vector<96x128xf32> to vector<48x128xf32>
    %557 = vector.extract_strided_slice %555 {offsets = [0, 0], sizes = [16, 128], strides = [1, 1]} : vector<48x128xf32> to vector<16x128xf32>
    %558 = vector.extract_strided_slice %556 {offsets = [0, 0], sizes = [16, 128], strides = [1, 1]} : vector<48x128xf32> to vector<16x128xf32>
    %559 = arith.addf %557, %558 : vector<16x128xf32>
    %560 = arith.negf %559 : vector<16x128xf32>
    %561 = math.exp %560 : vector<16x128xf32>
    %cst_125 = arith.constant 1.000000e+00 : f32
    %562 = vector.broadcast %cst_125 : f32 to vector<16x128xf32>
    %563 = arith.addf %562, %561 : vector<16x128xf32>
    %564 = arith.divf %562, %563 : vector<16x128xf32>
    %565 = vector.extract_strided_slice %555 {offsets = [16, 0], sizes = [16, 128], strides = [1, 1]} : vector<48x128xf32> to vector<16x128xf32>
    %566 = vector.extract_strided_slice %556 {offsets = [16, 0], sizes = [16, 128], strides = [1, 1]} : vector<48x128xf32> to vector<16x128xf32>
    %567 = arith.addf %565, %566 : vector<16x128xf32>
    %568 = arith.negf %567 : vector<16x128xf32>
    %569 = math.exp %568 : vector<16x128xf32>
    %cst_126 = arith.constant 1.000000e+00 : f32
    %570 = vector.broadcast %cst_126 : f32 to vector<16x128xf32>
    %571 = arith.addf %570, %569 : vector<16x128xf32>
    %572 = arith.divf %570, %571 : vector<16x128xf32>
    %573 = vector.extract_strided_slice %555 {offsets = [32, 0], sizes = [16, 128], strides = [1, 1]} : vector<48x128xf32> to vector<16x128xf32>
    %574 = vector.extract_strided_slice %556 {offsets = [32, 0], sizes = [16, 128], strides = [1, 1]} : vector<48x128xf32> to vector<16x128xf32>
    %575 = arith.addf %574, %6 : vector<16x128xf32>
    %576 = arith.mulf %564, %575 : vector<16x128xf32>
    %577 = arith.addf %573, %576 : vector<16x128xf32>
    %578 = math.tanh %577 : vector<16x128xf32>
    %cst_127 = arith.constant 1.000000e+00 : f32
    %579 = vector.broadcast %cst_127 : f32 to vector<16x128xf32>
    %580 = arith.subf %579, %572 : vector<16x128xf32>
    %581 = arith.mulf %580, %578 : vector<16x128xf32>
    %582 = arith.mulf %572, %510 : vector<16x128xf32>
    %583 = arith.addf %581, %582 : vector<16x128xf32>
    %584 = arith.index_cast %c7_i32_115 : i32 to index
    %c0_128 = arith.constant 0 : index
    %c0_129 = arith.constant 0 : index
    %585 = vector.load %arg14[%584, %c0_128, %c0_129] : memref<8x32x128xf32, #tpu.memory_space<vmem>>, vector<1x16x128xf32>
    %586 = vector.shape_cast %585 : vector<1x16x128xf32> to vector<16x128xf32>
    %587 = vector.shape_cast %552 : vector<16x128xf32> to vector<1x16x128xf32>
    tpu.vector_store %arg14[%584, %c0_128, %c0_129], %587 {strides = array<i32>} : memref<8x32x128xf32, #tpu.memory_space<vmem>>, vector<1x16x128xf32>,
    %588 = arith.index_cast %519 : i32 to index
    %c16_130 = arith.constant 16 : index
    %c0_131 = arith.constant 0 : index
    %589 = vector.load %arg14[%588, %c16_130, %c0_131] : memref<8x32x128xf32, #tpu.memory_space<vmem>>, vector<1x16x128xf32>
    %590 = vector.shape_cast %589 : vector<1x16x128xf32> to vector<16x128xf32>
    %591 = vector.shape_cast %583 : vector<16x128xf32> to vector<1x16x128xf32>
    tpu.vector_store %arg14[%588, %c16_130, %c0_131], %591 {strides = array<i32>} : memref<8x32x128xf32, #tpu.memory_space<vmem>>, vector<1x16x128xf32>,
    %c8_i32 = arith.constant 8 : i32
    %c0_132 = arith.constant 0 : index
    %c0_133 = arith.constant 0 : index
    %c0_134 = arith.constant 0 : index
    %592 = vector.load %arg14[%c0_132, %c0_133, %c0_134] : memref<8x32x128xf32, #tpu.memory_space<vmem>>, vector<8x32x128xf32>
    %cst_135 = arith.constant dense<0.000000e+00> : vector<8x128xf32>
    %593 = vector.multi_reduction <add>, %592, %cst_135 [1] : vector<8x32x128xf32> to vector<8x128xf32>
    %594 = vector.shape_cast %593 : vector<8x128xf32> to vector<8x1x128xf32>
    %cst_136 = arith.constant 3.200000e+01 : f32
    %595 = vector.broadcast %cst_136 : f32 to vector<8x1x128xf32>
    %596 = arith.divf %594, %595 : vector<8x1x128xf32>
    %597 = vector.broadcast %596 : vector<8x1x128xf32> to vector<8x32x128xf32>
    %598 = arith.subf %592, %597 : vector<8x32x128xf32>
    %599 = arith.mulf %598, %598 : vector<8x32x128xf32>
    %cst_137 = arith.constant dense<0.000000e+00> : vector<8x128xf32>
    %600 = vector.multi_reduction <add>, %599, %cst_137 [1] : vector<8x32x128xf32> to vector<8x128xf32>
    %601 = vector.shape_cast %600 : vector<8x128xf32> to vector<8x1x128xf32>
    %cst_138 = arith.constant 3.200000e+01 : f32
    %602 = vector.broadcast %cst_138 : f32 to vector<8x1x128xf32>
    %603 = arith.divf %601, %602 : vector<8x1x128xf32>
    %604 = vector.broadcast %596 : vector<8x1x128xf32> to vector<8x32x128xf32>
    %605 = arith.subf %592, %604 : vector<8x32x128xf32>
    %cst_139 = arith.constant 9.99999974E-6 : f32
    %606 = vector.broadcast %cst_139 : f32 to vector<8x1x128xf32>
    %607 = arith.addf %603, %606 : vector<8x1x128xf32>
    %608 = math.rsqrt %607 : vector<8x1x128xf32>
    %609 = vector.broadcast %608 : vector<8x1x128xf32> to vector<8x32x128xf32>
    %610 = arith.mulf %605, %609 : vector<8x32x128xf32>
    %c0_140 = arith.constant 0 : index
    %c0_141 = arith.constant 0 : index
    %611 = vector.load %arg5[%c0_140, %c0_141] : memref<32x1xf32, #tpu.memory_space<vmem>>, vector<32x1xf32>
    %612 = vector.shape_cast %611 : vector<32x1xf32> to vector<1x32x1xf32>
    %613 = vector.broadcast %612 : vector<1x32x1xf32> to vector<8x32x128xf32>
    %614 = arith.mulf %610, %613 : vector<8x32x128xf32>
    %c0_142 = arith.constant 0 : index
    %c0_143 = arith.constant 0 : index
    %615 = vector.load %arg6[%c0_142, %c0_143] : memref<32x1xf32, #tpu.memory_space<vmem>>, vector<32x1xf32>
    %616 = vector.shape_cast %615 : vector<32x1xf32> to vector<1x32x1xf32>
    %617 = vector.broadcast %616 : vector<1x32x1xf32> to vector<8x32x128xf32>
    %618 = arith.addf %614, %617 : vector<8x32x128xf32>
    %c0_144 = arith.constant 0 : index
    %c0_145 = arith.constant 0 : index
    %619 = vector.load %arg7[%c0_144, %c0_145] : memref<16x32xf32, #tpu.memory_space<vmem>>, vector<16x32xf32>
    %620 = vector.shape_cast %619 : vector<16x32xf32> to vector<1x16x32xf32>
    %621 = vector.shape_cast %620 : vector<1x16x32xf32> to vector<1x16x32xf32>
    %622 = vector.broadcast %621 : vector<1x16x32xf32> to vector<8x16x32xf32>
    "tpu.trace_start"() <{level = 10 : i32, message = "tah,thn->tan"}> : () -> ()
    %cst_146 = arith.constant dense<0.000000e+00> : vector<8x16x128xf32>
    %623 = tpu.matmul %622, %618, %cst_146 {dimension_numbers = #tpu.dot_dimension_numbers<[2], [1], [1], [2], [0, 0, 0, 1, 1, 2], [0], [0]>} : vector<8x16x32xf32>, vector<8x32x128xf32>, vector<8x16x128xf32> -> vector<8x16x128xf32>
    "tpu.trace_stop"() : () -> ()
    %c0_147 = arith.constant 0 : index
    %c0_148 = arith.constant 0 : index
    %624 = vector.load %arg8[%c0_147, %c0_148] : memref<16x1xf32, #tpu.memory_space<vmem>>, vector<16x1xf32>
    %625 = vector.shape_cast %624 : vector<16x1xf32> to vector<1x16x1xf32>
    %626 = vector.broadcast %625 : vector<1x16x1xf32> to vector<8x16x128xf32>
    %627 = arith.addf %623, %626 : vector<8x16x128xf32>
    %628 = math.tanh %627 : vector<8x16x128xf32>
    %c0_149 = arith.constant 0 : index
    %c0_150 = arith.constant 0 : index
    %629 = vector.load %arg9[%c0_149, %c0_150] : memref<16x1xf32, #tpu.memory_space<vmem>>, vector<16x1xf32>
    %630 = vector.shape_cast %629 : vector<16x1xf32> to vector<1x16x1xf32>
    %631 = vector.broadcast %630 : vector<1x16x1xf32> to vector<8x16x128xf32>
    %632 = arith.mulf %628, %631 : vector<8x16x128xf32>
    %cst_151 = arith.constant dense<0.000000e+00> : vector<8x128xf32>
    %633 = vector.multi_reduction <add>, %632, %cst_151 [1] : vector<8x16x128xf32> to vector<8x128xf32>
    %cst_152 = arith.constant dense<0xFF800000> : vector<128xf32>
    %634 = vector.multi_reduction <maximumf>, %633, %cst_152 [0] : vector<8x128xf32> to vector<128xf32>
    %635 = vector.shape_cast %634 : vector<128xf32> to vector<1x128xf32>
    %636 = vector.broadcast %635 : vector<1x128xf32> to vector<8x128xf32>
    %637 = arith.subf %633, %636 : vector<8x128xf32>
    %638 = math.exp %637 : vector<8x128xf32>
    %cst_153 = arith.constant dense<0.000000e+00> : vector<128xf32>
    %639 = vector.multi_reduction <add>, %638, %cst_153 [0] : vector<8x128xf32> to vector<128xf32>
    %640 = vector.shape_cast %639 : vector<128xf32> to vector<1x128xf32>
    %641 = tpu.reciprocal %640 {approx = true} : vector<1x128xf32> -> vector<1x128xf32>
    %642 = vector.broadcast %641 : vector<1x128xf32> to vector<8x128xf32>
    %643 = arith.mulf %638, %642 : vector<8x128xf32>
    %644 = vector.shape_cast %643 : vector<8x128xf32> to vector<8x1x128xf32>
    %645 = vector.broadcast %644 : vector<8x1x128xf32> to vector<8x32x128xf32>
    %646 = arith.mulf %592, %645 : vector<8x32x128xf32>
    %cst_154 = arith.constant dense<0.000000e+00> : vector<32x128xf32>
    %647 = vector.multi_reduction <add>, %646, %cst_154 [0] : vector<8x32x128xf32> to vector<32x128xf32>
    %c0_155 = arith.constant 0 : index
    %c0_156 = arith.constant 0 : index
    %648 = vector.load %arg10[%c0_155, %c0_156] : memref<32x1xf32, #tpu.memory_space<vmem>>, vector<32x1xf32>
    %649 = vector.broadcast %648 : vector<32x1xf32> to vector<32x128xf32>
    %650 = arith.mulf %647, %649 : vector<32x128xf32>
    %cst_157 = arith.constant dense<0.000000e+00> : vector<128xf32>
    %651 = vector.multi_reduction <add>, %650, %cst_157 [0] : vector<32x128xf32> to vector<128xf32>
    %652 = vector.shape_cast %651 : vector<128xf32> to vector<1x128xf32>
    %c0_158 = arith.constant 0 : index
    %c0_159 = arith.constant 0 : index
    %653 = vector.load %arg11[%c0_158, %c0_159] : memref<1x1xf32, #tpu.memory_space<vmem>>, vector<1x1xf32>
    %654 = vector.broadcast %653 : vector<1x1xf32> to vector<1x128xf32>
    %655 = arith.addf %652, %654 : vector<1x128xf32>
    %656 = arith.negf %655 : vector<1x128xf32>
    %657 = math.exp %656 : vector<1x128xf32>
    %cst_160 = arith.constant 1.000000e+00 : f32
    %658 = vector.broadcast %cst_160 : f32 to vector<1x128xf32>
    %659 = arith.addf %658, %657 : vector<1x128xf32>
    %660 = arith.divf %658, %659 : vector<1x128xf32>
    %c0_161 = arith.constant 0 : index
    %c0_162 = arith.constant 0 : index
    %661 = vector.load %arg12[%c0_161, %c0_162] : memref<1x128xf32, #tpu.memory_space<vmem>>, vector<1x128xf32>
    tpu.vector_store %arg12[%c0_161, %c0_162], %660 {strides = array<i32>} : memref<1x128xf32, #tpu.memory_space<vmem>>, vector<1x128xf32>,
    %c0_163 = arith.constant 0 : index
    %c0_164 = arith.constant 0 : index
    %662 = vector.load %arg13[%c0_163, %c0_164] : memref<8x128xf32, #tpu.memory_space<vmem>>, vector<8x128xf32>
    tpu.vector_store %arg13[%c0_163, %c0_164], %643 {strides = array<i32>} : memref<8x128xf32, #tpu.memory_space<vmem>>, vector<8x128xf32>,
    return
  }
  func.func @transform_0(%arg0: i32) -> (i32, i32, i32) {
    %c0_i32 = arith.constant 0 : i32
    %c0_i32_0 = arith.constant 0 : i32
    %c0_i32_1 = arith.constant 0 : i32
    return %c0_i32, %c0_i32_0, %arg0 : i32, i32, i32
  }
  func.func @transform_1(%arg0: i32) -> (i32, i32, i32) {
    %c0_i32 = arith.constant 0 : i32
    %c0_i32_0 = arith.constant 0 : i32
    %c0_i32_1 = arith.constant 0 : i32
    return %c0_i32, %c0_i32_0, %arg0 : i32, i32, i32
  }
  func.func @transform_2(%arg0: i32) -> (i32, i32) {
    %c0_i32 = arith.constant 0 : i32
    %c0_i32_0 = arith.constant 0 : i32
    %c0_i32_1 = arith.constant 0 : i32
    return %c0_i32, %c0_i32_0 : i32, i32
  }
  func.func @transform_3(%arg0: i32) -> (i32, i32) {
    %c0_i32 = arith.constant 0 : i32
    %c0_i32_0 = arith.constant 0 : i32
    %c0_i32_1 = arith.constant 0 : i32
    return %c0_i32, %c0_i32_0 : i32, i32
  }
  func.func @transform_4(%arg0: i32) -> (i32, i32) {
    %c0_i32 = arith.constant 0 : i32
    %c0_i32_0 = arith.constant 0 : i32
    %c0_i32_1 = arith.constant 0 : i32
    return %c0_i32, %c0_i32_0 : i32, i32
  }
  func.func @transform_5(%arg0: i32) -> (i32, i32) {
    %c0_i32 = arith.constant 0 : i32
    %c0_i32_0 = arith.constant 0 : i32
    %c0_i32_1 = arith.constant 0 : i32
    return %c0_i32, %c0_i32_0 : i32, i32
  }
  func.func @transform_6(%arg0: i32) -> (i32, i32) {
    %c0_i32 = arith.constant 0 : i32
    %c0_i32_0 = arith.constant 0 : i32
    %c0_i32_1 = arith.constant 0 : i32
    return %c0_i32, %c0_i32_0 : i32, i32
  }
  func.func @transform_7(%arg0: i32) -> (i32, i32) {
    %c0_i32 = arith.constant 0 : i32
    %c0_i32_0 = arith.constant 0 : i32
    %c0_i32_1 = arith.constant 0 : i32
    return %c0_i32, %c0_i32_0 : i32, i32
  }
  func.func @transform_8(%arg0: i32) -> (i32, i32) {
    %c0_i32 = arith.constant 0 : i32
    %c0_i32_0 = arith.constant 0 : i32
    %c0_i32_1 = arith.constant 0 : i32
    return %c0_i32, %c0_i32_0 : i32, i32
  }
  func.func @transform_9(%arg0: i32) -> (i32, i32) {
    %c0_i32 = arith.constant 0 : i32
    %c0_i32_0 = arith.constant 0 : i32
    %c0_i32_1 = arith.constant 0 : i32
    return %c0_i32, %c0_i32_0 : i32, i32
  }
  func.func @transform_10(%arg0: i32) -> (i32, i32) {
    %c0_i32 = arith.constant 0 : i32
    %c0_i32_0 = arith.constant 0 : i32
    %c0_i32_1 = arith.constant 0 : i32
    return %c0_i32, %c0_i32_0 : i32, i32
  }
  func.func @transform_11(%arg0: i32) -> (i32, i32) {
    %c0_i32 = arith.constant 0 : i32
    %c0_i32_0 = arith.constant 0 : i32
    return %c0_i32, %arg0 : i32, i32
  }
  func.func @transform_12(%arg0: i32) -> (i32, i32) {
    %c0_i32 = arith.constant 0 : i32
    %c0_i32_0 = arith.constant 0 : i32
    return %c0_i32, %arg0 : i32, i32
  }
}

</mosaic_0001>

<bundles_post_ra>
// kernel: han_forward.3
= control target key start
LH: loop header
LB: loop body
LE: loop exit
PB: predicated region body
PF: predicated region fallthrough
CT: control target
= control target key end

     0   :  { %vm78_vm0 = vcmask 261120   ;;  %v3954_v0 = vmov 0.0   ;;  %v3955_v3 = vmov 0   ;;  %s6467_s2 = inlined_call_operand.vmem [shape: f32[96,32], index: 2, kind: input, shape index: {}]   ;;  %s6468_s3 = inlined_call_operand.vmem [shape: f32[32,1], index: 3, kind: input, shape index: {}]   ;;  %s6469_s5 = inlined_call_operand.vmem [shape: f32[32,1], index: 5, kind: input, shape index: {}]   ;;  %s6470_s4 = inlined_call_operand.vmem [shape: f32[32,1], index: 4, kind: input, shape index: {}]   ;;  %s6471_s7 = inlined_call_operand.vmem [shape: f32[16,1], index: 7, kind: input, shape index: {}]   ;;  %s6472_s8 = inlined_call_operand.vmem [shape: f32[16,1], index: 8, kind: input, shape index: {}]   ;;  %s6473_s9 = inlined_call_operand.vmem [shape: f32[32,1], index: 9, kind: input, shape index: {}]   ;;  %s6474_s0 = inlined_call_operand.vmem [shape: f32[8,48,128], index: 0, kind: input, shape index: {}]   ;;  %s6475_s1 = inlined_call_operand.vmem [shape: f32[8,48,128], index: 1, kind: input, shape index: {}]   ;;  %s6476_s6 = inlined_call_operand.vmem [shape: f32[16,32], index: 6, kind: input, shape index: {}]   ;;  %s6477_s10 = inlined_call_operand.<no memory space> [shape: f32[1,1], index: 10, kind: input, shape index: {}]   ;;  %s6478_s12 = inlined_call_operand.vmem [shape: f32[8,128], index: 12, kind: output, shape index: {1}]   ;;  %s6479_s11 = inlined_call_operand.vmem [shape: f32[1,128], index: 11, kind: output, shape index: {0}]  }
   0x1   :  { %130 = vmatpush.msra.mxu0 %v3954_v0  ;;  %v4025_v1 = vld [vmem:[%s6467_s2] sm:$0xff]  ;;  %v55_v2 = vld [vmem:[%s6468_s3 + $0x8] sm:$0xff]  ;;  %3530 = vset.pattern.permute.xlu1 %v3955_v3  ;;  %v67_v6 = vld [vmem:[%s6468_s3 + $0x18] sm:$0xff] }
   0x2   :  { %3265 = vmatmul.msk.f32.vlgmr.msra.gmra.mxu0 %vm78_vm0, %v4025_v1  ;;  %3529 = vset.pattern.permute.xlu0 %v3955_v3  ;;  %v4035_v4 = vld [vmem:[%s6467_s2 + $0x8] sm:$0xff]  ;;  %v54_v5 = vld [vmem:[%s6468_s3] sm:$0xff]  ;;  %v4048_v7 = vld [vmem:[%s6467_s2 + $0x10] sm:$0xff] }
   0x3   :  { %63 = vperm.xlu1 %3530, %v55_v2   ;;  %3531 = vset.pattern.permute.xlu2 %v3955_v3  ;;  %v66_v8 = vld [vmem:[%s6468_s3 + $0x10] sm:$0xff]  ;;  %v4058_v9 = vld [vmem:[%s6467_s2 + $0x18] sm:$0xff]  ;;  %v4068_v11 = vld [vmem:[%s6467_s2 + $0x20] sm:$0xff] }
   0x4   :  { %75 = vperm.xlu0 %3529, %v67_v6   ;;  %v2666_v10 = vld [vmem:[%s6469_s5 + $0x18] sm:$0xff]  ;;  %v2608_v12 = vld [vmem:[%s6470_s4 + $0x8] sm:$0xff]  ;;  %v2607_v13 = vld [vmem:[%s6470_s4] sm:$0xff] }
   0x5   :  { %v4081_v14 = vld [vmem:[%s6467_s2 + $0x28] sm:$0xff]  ;;  %v2721_v16 = vld [vmem:[%s6471_s7] sm:$0xff]  ;;  %v4094_v17 = vld [vmem:[%s6467_s2 + $0x30] sm:$0xff] }
   0x6   :  { %v2664_v15 = vld [vmem:[%s6469_s5 + $0x8] sm:$0xff]  ;;  %v4107_v20 = vld [vmem:[%s6467_s2 + $0x38] sm:$0xff]  ;;  %v3168_v21 = vld [vmem:[%s6473_s9] sm:$0xff] }
   0x7   :  { %v2722_v18 = vld [vmem:[%s6471_s7 + $0x8] sm:$0xff]  ;;  %v3170_v22 = vld [vmem:[%s6473_s9 + $0x10] sm:$0xff]  ;;  %v4120_v23 = vld [vmem:[%s6467_s2 + $0x40] sm:$0xff] }
   0x8   :  { %v2940_v19 = vld [vmem:[%s6472_s8 + $0x8] sm:$0xff]  ;;  %v3171_v24 = vld [vmem:[%s6473_s9 + $0x18] sm:$0xff]  ;;  %v4137_v26 = vld [vmem:[%s6467_s2 + $0x50] sm:$0xff] }
   0x9   :  { %v4130_v25 = vld [vmem:[%s6467_s2 + $0x48] sm:$0xff]  ;;  %v4144_v27 = vld [vmem:[%s6467_s2 + $0x58] sm:$0xff]  ;;  %v168_v32 = vld [vmem:[%s6474_s0] sm:$0xff] }
   0xa   :  { %3266 = vmatmul.msk.f32.gmra.mxu0 %vm78_vm0, %v4035_v4  ;;  %v169_v35 = vld [vmem:[%s6474_s0 + $0x8] sm:$0xff]  ;;  %v3281_v40 = vld [vmem:[%s6475_s1 + $0x150] sm:$0xff]  ;;  %v171_v41 = vld [vmem:[%s6474_s0 + $0x18] sm:$0xff] }
   0xb   :  { %58 = vperm.xlu1 %3530, %v54_v5   ;;  %v170_v43 = vld [vmem:[%s6474_s0 + $0x10] sm:$0xff]  ;;  %v3282_v52 = vld [vmem:[%s6475_s1 + $0x158] sm:$0xff]  ;;  %v3283_v61 = vld [vmem:[%s6475_s1 + $0x160] sm:$0xff] }
   0xc   :  { %70 = vperm.xlu0 %3529, %v66_v8  }
  0x12   :  { %3267 = vmatmul.msk.f32.gmra.mxu0 %vm78_vm0, %v4048_v7 }
  0x13   :  { %2618 = vperm.xlu1 %3530, %v2608_v12  }
  0x14   :  { %2684 = vperm.xlu0 %3529, %v2666_v10  }
  0x1a   :  { %3268 = vmatmul.msk.f32.gmra.mxu0 %vm78_vm0, %v4058_v9 }
  0x1b   :  { %2674 = vperm.xlu1 %3530, %v2664_v15  }
  0x1c   :  { %2613 = vperm.xlu0 %3529, %v2607_v13  }
  0x22   :  { %3269 = vmatmul.msk.f32.gmra.mxu0 %vm78_vm0, %v4068_v11 }
  0x23   :  { %2730 = vperm.xlu1 %3530, %v2722_v18  }
  0x24   :  { %2725 = vperm.xlu0 %3529, %v2721_v16  }
  0x2a   :  { %3270 = vmatmul.msk.f32.gmra.mxu0 %vm78_vm0, %v4081_v14 }
  0x2b   :  { %3174 = vperm.xlu1 %3530, %v3168_v21  }
  0x2c   :  { %2948 = vperm.xlu0 %3529, %v2940_v19  }
  0x32   :  { %3271 = vmatmul.msk.f32.gmra.mxu0 %vm78_vm0, %v4094_v17 }
  0x33   :  { %3189 = vperm.xlu1 %3530, %v3171_v24  }
  0x34   :  { %3184 = vperm.xlu0 %3529, %v3170_v22   ;;  %v3284_v22 = vld [vmem:[%s6475_s1 + $0x168] sm:$0xff] }
  0x3a   :  { %3272 = vmatmul.msk.f32.gmra.mxu0 %vm78_vm0, %v4107_v20 }
  0x42   :  { %3273 = vmatmul.msk.f32.gmra.mxu0 %vm78_vm0, %v4120_v23 }
  0x4a   :  { %3274 = vmatmul.msk.f32.gmra.mxu0 %vm78_vm0, %v4130_v25 }
  0x52   :  { %3275 = vmatmul.msk.f32.gmra.mxu0 %vm78_vm0, %v4137_v26 }
  0x5a   :  { %3276 = vmatmul.msk.f32.gmra.mxu0 %vm78_vm0, %v4144_v27 }
  0x75   :  { %v4196_v18 = vpop.permute.xlu1 %63 }
  0x76   :  { %6513 = vst [vmem:[#allocation4_spill] sm:$0xff] %v4196_v18 }
  0x7f   :  { %v132_v28 = vpop.f32.mrf.mxu0 }
  0x80   :  { %v174_v34 = vadd.f32 %v168_v32, %v132_v28 }
  0x82   :  { %v3277_v36 = vmul.f32 -1.442695, %v174_v34 }
  0x84   :  { %3532 = vpow2.f32 %v3277_v36 }
  0x87   :  { %v135_v29 = vpop.f32.mrf.mxu0 }
  0x88   :  { %v175_v37 = vadd.f32 %v169_v35, %v135_v29 }
  0x8a   :  { %v3278_v39 = vmul.f32 -1.442695, %v175_v37  ;;  %v3533_v42 = vpop.eup %3532 }
  0x8b   :  { %v4167_v47 = vadd.f32 1.0, %v3533_v42 }
  0x8c   :  { %3534 = vpow2.f32 %v3278_v39 }
  0x8d   :  { %v193_v35 = vand.u32 2147483647, %v4167_v47  ;;  %v195_v36 = vand.u32 2147483648, %v4167_v47  ;;  %vm189_vm2 = vweird.f32 %v4167_v47 }
  0x8f   :  { %v138_v30 = vpop.f32.mrf.mxu0  ;;  %vm4237_vm4 = vcmp.eq.f32.partialorder %v193_v35, 8.507059e+37 }
  0x90   :  { %v214_v48 = vadd.f32 %v170_v43, %v138_v30 }
  0x92   :  { %v3535_v50 = vpop.eup %3534  ;;  %v3279_v53 = vmul.f32 -1.442695, %v214_v48 }
  0x93   :  { %v4173_v54 = vadd.f32 1.0, %v3535_v50  ;;  %v4231_v50 = vpop.permute.xlu1 %58 }
  0x94   :  { %6515 = vst [vmem:[#allocation6_spill] sm:$0xff] %v4231_v50 }
  0x95   :  { %v210_v37 = vand.u32 2147483648, %v4173_v54  ;;  %vm204_vm5 = vweird.f32 %v4173_v54 }
  0x97   :  { %v141_v31 = vpop.f32.mrf.mxu0 }
  0x98   :  { %v215_v46 = vadd.f32 %v171_v41, %v141_v31  ;;  %v4209_v31 = vpop.permute.xlu0 %75 }
  0x99   :  { %6514 = vst [vmem:[#allocation5_spill] sm:$0xff] %v4209_v31 }
  0x9a   :  { %v3280_v51 = vmul.f32 -1.442695, %v215_v46 }
  0x9f   :  { %v4151_v33 = vpop.f32.mrf.mxu0 }
  0xa7   :  { %v4156_v38 = vpop.f32.mrf.mxu0 }
  0xaf   :  { %v150_v44 = vpop.f32.mrf.mxu0 }
  0xb0   :  { %v277_v45 = vadd.f32 %v3281_v40, %v150_v44  ;;  %v208_v44 = vand.u32 2147483647, %v4173_v54 }
  0xb2   :  { %v3287_v49 = vmul.f32 -1.442695, %v277_v45  ;;  %vm4250_vm7 = vcmp.eq.f32.partialorder %v208_v44, 8.507059e+37 }
  0xb4   :  { %3536 = vpow2.f32 %v3287_v49 }
  0xb5   :  { %3538 = vrcp.f32 %v4167_v47 }
  0xb6   :  { %3540 = vpow2.f32 %v3280_v51 }
  0xb7   :  { %v153_v55 = vpop.f32.mrf.mxu0  ;;  %3542 = vpow2.f32 %v3279_v53  ;;  %v196_v53 = vor.u32 1.1754944e-38, %v195_v36 }
  0xb8   :  { %v278_v56 = vadd.f32 %v3282_v52, %v153_v55  ;;  %3544 = vrcp.f32 %v4173_v54  ;;  %v3285_v52 = vld [vmem:[%s6475_s1 + $0x170] sm:$0xff] }
  0xba   :  { %v3537_v57 = vpop.eup %3536  ;;  %v3288_v58 = vmul.f32 -1.442695, %v278_v56 }
  0xbb   :  { %v4176_v59 = vadd.f32 1.0, %v3537_v57  ;;  %v4178_v60 = vpop.eup %3538 }
  0xbc   :  { %3546 = vpow2.f32 %v3288_v58  ;;  %v3541_v62 = vpop.eup %3540  ;;  %v185_v63 = vmul.f32 %v4178_v60, %v4167_v47  ;;  %vm190_vm1 = vweird.f32 %v4178_v60  ;;  %v211_v47 = vor.u32 1.1754944e-38, %v210_v37 }
  0xbd   :  { %3548 = vrcp.f32 %v4176_v59  ;;  %v3543_v2 = vpop.eup %3542  ;;  %v4188_v8 = vadd.f32 1.0, %v3541_v62  ;;  %vm4233_vm3 = vmor %vm189_vm2, %vm190_vm1  ;;  %vm292_vm9 = vweird.f32 %v4176_v59 }
  0xbe   :  { %v4186_v5 = vpop.eup %3544  ;;  %v186_v13 = vsub.f32 1.0, %v185_v63  ;;  %v4194_v16 = vadd.f32 1.0, %v3543_v2 }
  0xbf   :  { %v156_v0 = vpop.f32.mrf.mxu0  ;;  %v200_v21 = vmul.f32 %v4186_v5, %v4173_v54  ;;  %vm205_vm6 = vweird.f32 %v4186_v5 }
  0xc0   :  { %v317_v3 = vadd.f32 %v3283_v61, %v156_v0  ;;  %v187_v24 = vmul.f32 %v4178_v60, %v186_v13  ;;  %v233_v56 = vand.u32 2147483647, %v4194_v16  ;;  %v235_v62 = vand.u32 2147483648, %v4194_v16  ;;  %vm4285_vm13 = vmor %vm204_vm5, %vm205_vm6 }
  0xc1   :  { %v201_v32 = vsub.f32 1.0, %v200_v21  ;;  %vm229_vm1 = vweird.f32 %v4194_v16 }
  0xc2   :  { %v3547_v6 = vpop.eup %3546  ;;  %v3289_v10 = vmul.f32 -1.442695, %v317_v3  ;;  %v188_v41 = vadd.f32 %v4178_v60, %v187_v24 }
  0xc3   :  { %v4190_v12 = vpop.eup %3548  ;;  %v4192_v15 = vadd.f32 1.0, %v3547_v6  ;;  %v202_v48 = vmul.f32 %v4186_v5, %v201_v32 }
  0xc4   :  { %3550 = vpow2.f32 %v3289_v10  ;;  %v288_v19 = vmul.f32 %v4190_v12, %v4176_v59  ;;  %v192_v58 = vsel %vm4233_vm3, %v4178_v60, %v188_v41  ;;  %vm293_vm8 = vweird.f32 %v4190_v12 }
  0xc5   :  { %3552 = vrcp.f32 %v4192_v15  ;;  %v254_v60 = vadd.f32 %v4151_v33, %v4231_v50  ;;  %v203_v6 = vadd.f32 %v4186_v5, %v202_v48  ;;  %v298_v10 = vand.u32 2147483648, %v4176_v59  ;;  %vm4275_vm11 = vmor %vm292_vm9, %vm293_vm8 }
  0xc6   :  { %3554 = vrcp.f32 %v4188_v8  ;;  %v289_v30 = vsub.f32 1.0, %v288_v19  ;;  %v296_v19 = vand.u32 2147483647, %v4176_v59  ;;  %vm307_vm12 = vweird.f32 %v4192_v15 }
  0xc7   :  { %v159_v28 = vpop.f32.mrf.mxu0  ;;  %3556 = vrcp.f32 %v4194_v16  ;;  %v313_v59 = vand.u32 2147483648, %v4192_v15  ;;  %v311_v36 = vand.u32 2147483647, %v4192_v15  ;;  %v207_v54 = vsel %vm4285_vm13, %v4186_v5, %v203_v6 }
  0xc8   :  { %v318_v29 = vadd.f32 %v3284_v22, %v159_v28  ;;  %v290_v45 = vmul.f32 %v4190_v12, %v289_v30  ;;  %v4269_v28 = vpop.permute.xlu0 %70  ;;  %vm297_vm15 = vcmp.eq.f32.partialorder %v296_v19, 8.507059e+37  ;;  %v250_v33 = vand.u32 2147483648, %v4188_v8 }
  0xc9   :  { %6522 = vst [vmem:[#allocation7_spill] sm:$0xff] %v4269_v28  ;;  %v314_v51 = vor.u32 1.1754944e-38, %v313_v59  ;;  %vm312_vm2 = vcmp.eq.f32.partialorder %v311_v36, 8.507059e+37  ;;  %v3304_v59 = vld [vmem:[%s6474_s0 + $0x38] sm:$0xff] }
  0xca   :  { %v3551_v34 = vpop.eup %3550  ;;  %v3290_v39 = vmul.f32 -1.442695, %v318_v29  ;;  %v291_v0 = vadd.f32 %v4190_v12, %v290_v45  ;;  %v197_v45 = vsel %vm4237_vm4, %v196_v53, %v192_v58 }
  0xcb   :  { %v4214_v40 = vpop.eup %3552  ;;  %v4218_v42 = vadd.f32 1.0, %v3551_v34 }
  0xcc   :  { %v4220_v43 = vpop.eup %3554  ;;  %3558 = vpow2.f32 %v3290_v39  ;;  %v303_v46 = vmul.f32 %v4214_v40, %v4192_v15  ;;  %vm308_vm10 = vweird.f32 %v4214_v40  ;;  %v295_v34 = vsel %vm4275_vm11, %v4190_v12, %v291_v0 }
  0xcd   :  { %3560 = vrcp.f32 %v4218_v42  ;;  %v4229_v49 = vpop.eup %3556  ;;  %v240_v57 = vmul.f32 %v4220_v43, %v4188_v8  ;;  %v299_v39 = vor.u32 1.1754944e-38, %v298_v10  ;;  %vm4302_vm14 = vmor %vm307_vm12, %vm308_vm10  ;;  %v255_v12 = vadd.f32 %v4156_v38, %v4196_v18 }
  0xce   :  { %v304_v55 = vsub.f32 1.0, %v303_v46  ;;  %v225_v3 = vmul.f32 %v4229_v49, %v4194_v16  ;;  %v256_v0 = vmul.f32 %v254_v60, %v197_v45  ;;  %vm245_vm4 = vweird.f32 %v4220_v43 }
  0xcf   :  { %v162_v61 = vpop.f32.mrf.mxu0  ;;  %v241_v24 = vsub.f32 1.0, %v240_v57  ;;  %v300_v46 = vsel %vm297_vm15, %v299_v39, %v295_v34  ;;  %v336_v63 = vand.u32 2147483647, %v4218_v42  ;;  %vm230_vm5 = vweird.f32 %v4229_v49  ;;  %v172_v34 = vld [vmem:[%s6474_s0 + $0x20] sm:$0xff] }
  0xd0   :  { %v305_v2 = vmul.f32 %v4214_v40, %v304_v55  ;;  %v357_v35 = vadd.f32 %v162_v61, %v4269_v28  ;;  %v226_v37 = vsub.f32 1.0, %v225_v3  ;;  %v3286_v3 = vld [vmem:[%s6475_s1 + $0x178] sm:$0xff]  ;;  %vm332_vm6 = vweird.f32 %v4218_v42  ;;  %vm4367_vm12 = vmor %vm229_vm1, %vm230_vm5 }
  0xd1   :  { %v242_v5 = vmul.f32 %v4220_v43, %v241_v24  ;;  %v248_v24 = vand.u32 2147483647, %v4188_v8  ;;  %vm337_vm10 = vcmp.eq.f32.partialorder %v336_v63, 8.507059e+37  ;;  %vm234_vm1 = vcmp.eq.f32.partialorder %v233_v56, 8.507059e+37 }
  0xd2   :  { %v3559_v13 = vpop.eup %3558  ;;  %v306_v21 = vadd.f32 %v4214_v40, %v305_v2  ;;  %v359_v57 = vmul.f32 %v357_v35, %v300_v46  ;;  %v227_v61 = vmul.f32 %v4229_v49, %v226_v37  ;;  %v236_v46 = vor.u32 1.1754944e-38, %v235_v62 }
  0xd3   :  { %v4267_v22 = vpop.eup %3560  ;;  %v4271_v29 = vadd.f32 1.0, %v3559_v13  ;;  %v243_v60 = vadd.f32 %v4220_v43, %v242_v5  ;;  %v338_v13 = vand.u32 2147483648, %v4218_v42  ;;  %vm249_vm13 = vcmp.eq.f32.partialorder %v248_v24, 8.507059e+37 }
  0xd4   :  { %v328_v32 = vmul.f32 %v4267_v22, %v4218_v42  ;;  %v310_v15 = vsel %vm4302_vm14, %v4214_v40, %v306_v21  ;;  %v212_v40 = vsel %vm4250_vm7, %v211_v47, %v207_v54  ;;  %vm333_vm3 = vweird.f32 %v4267_v22  ;;  %v173_v47 = vld [vmem:[%s6474_s0 + $0x28] sm:$0xff] }
  0xd5   :  { %3562 = vrcp.f32 %v4271_v29  ;;  %v315_v53 = vsel %vm312_vm2, %v314_v51, %v310_v15  ;;  %v257_v58 = vmul.f32 %v255_v12, %v212_v40  ;;  %v361_v21 = vadd.f32 %v3285_v52, %v359_v57  ;;  %vm4343_vm8 = vmor %vm332_vm6, %vm333_vm3 }
  0xd6   :  { %v329_v44 = vsub.f32 1.0, %v328_v32  ;;  %vm244_vm7 = vweird.f32 %v4188_v8  ;;  %v228_v32 = vadd.f32 %v4229_v49, %v227_v61  ;;  %v339_v54 = vor.u32 1.1754944e-38, %v338_v13 }
  0xd7   :  { %v165_v48 = vpop.f32.mrf.mxu0  ;;  %vm4348_vm9 = vmor %vm244_vm7, %vm245_vm4  ;;  %v259_v35 = vadd.f32 %v257_v58, %v173_v47  ;;  %v353_v39 = vand.u32 2147483648, %v4271_v29  ;;  %v351_v12 = vand.u32 2147483647, %v4271_v29  ;;  %3564 = vtanh.f32 %v361_v21  ;;  %v3303_v21 = vld [vmem:[%s6474_s0 + $0x30] sm:$0xff] }
  0xd8   :  { %v330_v55 = vmul.f32 %v4267_v22, %v329_v44  ;;  %v358_v38 = vadd.f32 %v165_v48, %v4209_v31  ;;  %v247_v37 = vsel %vm4348_vm9, %v4220_v43, %v243_v60  ;;  %v258_v15 = vadd.f32 %v256_v0, %v172_v34 }
  0xd9   :  { %v232_v5 = vsel %vm4367_vm12, %v4229_v49, %v228_v32  ;;  %vm347_vm14 = vweird.f32 %v4271_v29  ;;  %v354_v51 = vor.u32 1.1754944e-38, %v353_v39  ;;  %vm352_vm2 = vcmp.eq.f32.partialorder %v351_v12, 8.507059e+37 }
  0xda   :  { %v331_v2 = vadd.f32 %v4267_v22, %v330_v55  ;;  %v360_v6 = vmul.f32 %v358_v38, %v315_v53  ;;  %v237_v38 = vsel %vm234_vm1, %v236_v46, %v232_v5  ;;  %v3314_v5 = vld [vmem:[%s6475_s1 + $0x128] sm:$0xff] }
  0xdb   :  { %v3563_v10 = vpop.eup %3562  ;;  %v262_v52 = vsub.f32 1.0, %v237_v38  ;;  %v266_v13 = vmul.f32 0.0, %v237_v38 }
  0xdc   :  { %v343_v19 = vmul.f32 %v3563_v10, %v4271_v29  ;;  %v362_v30 = vadd.f32 %v3286_v3, %v360_v6  ;;  %v335_v8 = vsel %vm4343_vm8, %v4267_v22, %v331_v2  ;;  %vm348_vm11 = vweird.f32 %v3563_v10 }
  0xdd   :  { %v251_v22 = vor.u32 1.1754944e-38, %v250_v33  ;;  %v340_v43 = vsel %vm337_vm10, %v339_v54, %v335_v8  ;;  %vm349_vm15 = vmor %vm347_vm14, %vm348_vm11  ;;  %v3565_v61 = vpop.eup %3564 }
  0xde   :  { %v344_v36 = vsub.f32 1.0, %v343_v19  ;;  %3566 = vtanh.f32 %v362_v30  ;;  %v365_v55 = vsub.f32 1.0, %v340_v43  ;;  %v369_v16 = vmul.f32 0.0, %v340_v43 }
  0xdf   :  { %v252_v48 = vsel %vm249_vm13, %v251_v22, %v247_v37  ;;  %3568 = vtanh.f32 %v259_v35  ;;  %v3313_v35 = vld [vmem:[%s6475_s1 + $0x120] sm:$0xff] }
  0xe0   :  { %v345_v41 = vmul.f32 %v3563_v10, %v344_v36  ;;  %3570 = vtanh.f32 %v258_v15  ;;  %v263_v0 = vsub.f32 1.0, %v252_v48  ;;  %v367_v62 = vmul.f32 %v3565_v61, %v365_v55  ;;  %v3306_v36 = vld [vmem:[%s6474_s0 + $0x48] sm:$0xff]  ;;  %v3305_v37 = vld [vmem:[%s6474_s0 + $0x40] sm:$0xff]  ;;  %v3315_v61 = vld [vmem:[%s6475_s1 + $0x130] sm:$0xff] }
  0xe1   :  { %v267_v47 = vmul.f32 0.0, %v252_v48 }
  0xe2   :  { %v346_v45 = vadd.f32 %v3563_v10, %v345_v41 }
  0xe4   :  { %v350_v57 = vsel %vm349_vm15, %v3563_v10, %v346_v45  ;;  %v3567_v40 = vpop.eup %3566  ;;  %v4383_v10 = vadd.f32 %v369_v16, %v367_v62 }
  0xe5   :  { %v355_v49 = vsel %vm352_vm2, %v354_v51, %v350_v57  ;;  %v3569_v2 = vpop.eup %3568 }
  0xe6   :  { %v366_v29 = vsub.f32 1.0, %v355_v49  ;;  %v370_v58 = vmul.f32 0.0, %v355_v49  ;;  %v265_v3 = vmul.f32 %v3569_v2, %v263_v0  ;;  %v3571_v56 = vpop.eup %3570  ;;  %6536 = vst [vmem:[#allocation9_spill] sm:$0xff] %v4383_v10 }
  0xe7   :  { %v264_v60 = vmul.f32 %v3571_v56, %v262_v52 }
  0xe8   :  { %v368_v53 = vmul.f32 %v3567_v40, %v366_v29  ;;  %v4386_v63 = vadd.f32 %v267_v47, %v265_v3 }
  0xe9   :  { %v4389_v19 = vadd.f32 %v266_v13, %v264_v60 }
  0xea   :  { %v4380_v6 = vadd.f32 %v370_v58, %v368_v53  ;;  %6537 = vst [vmem:[#allocation10_spill] sm:$0xff] %v4386_v63 }
  0xeb   :  { %6538 = vst [vmem:[#allocation11_spill] sm:$0xff] %v4389_v19 }
  0xec   :  { %6535 = vst [vmem:[#allocation8_spill] sm:$0xff] %v4380_v6  ;;  %390 = vmatpush.msra.mxu1 %v4380_v6 }
  0xee   :  { %391 = vmatpush.msra.mxu1 %v4383_v10 }
  0xf0   :  { %392 = vmatpush.msra.mxu1 %v4386_v63 }
  0xf2   :  { %393 = vmatpush.msra.mxu1 %v4389_v19 }
  0xf3   :  { %3291 = vmatmul.msk.f32.vlgmr.msra.gmra.mxu1 %vm78_vm0, %v4025_v1 }
  0xfb   :  { %3292 = vmatmul.msk.f32.gmra.mxu1 %vm78_vm0, %v4035_v4 }
 0x103   :  { %3293 = vmatmul.msk.f32.gmra.mxu1 %vm78_vm0, %v4048_v7 }
 0x10b   :  { %3294 = vmatmul.msk.f32.gmra.mxu1 %vm78_vm0, %v4058_v9 }
 0x113   :  { %3295 = vmatmul.msk.f32.gmra.mxu1 %vm78_vm0, %v4068_v11 }
 0x11b   :  { %3296 = vmatmul.msk.f32.gmra.mxu1 %vm78_vm0, %v4081_v14 }
 0x123   :  { %3297 = vmatmul.msk.f32.gmra.mxu1 %vm78_vm0, %v4094_v17 }
 0x12b   :  { %3298 = vmatmul.msk.f32.gmra.mxu1 %vm78_vm0, %v4107_v20 }
 0x133   :  { %3299 = vmatmul.msk.f32.gmra.mxu1 %vm78_vm0, %v4120_v23 }
 0x13b   :  { %3300 = vmatmul.msk.f32.gmra.mxu1 %vm78_vm0, %v4130_v25 }
 0x143   :  { %3301 = vmatmul.msk.f32.gmra.mxu1 %vm78_vm0, %v4137_v26 }
 0x14b   :  { %3302 = vmatmul.msk.f32.gmra.mxu1 %vm78_vm0, %v4144_v27 }
 0x170   :  { %v395_v1 = vpop.f32.mrf.mxu1 }
 0x171   :  { %v438_v33 = vadd.f32 %v3303_v21, %v395_v1 }
 0x173   :  { %v3309_v30 = vmul.f32 -1.442695, %v438_v33 }
 0x175   :  { %3572 = vpow2.f32 %v3309_v30 }
 0x178   :  { %v398_v4 = vpop.f32.mrf.mxu1 }
 0x179   :  { %v439_v32 = vadd.f32 %v3304_v59, %v398_v4  ;;  %v3316_v4 = vld [vmem:[%s6475_s1 + $0x138] sm:$0xff] }
 0x17b   :  { %v3310_v34 = vmul.f32 -1.442695, %v439_v32  ;;  %v3573_v8 = vpop.eup %3572 }
 0x17c   :  { %v4435_v12 = vadd.f32 1.0, %v3573_v8 }
 0x17d   :  { %3574 = vpow2.f32 %v3310_v34 }
 0x17e   :  { %v457_v32 = vand.u32 2147483647, %v4435_v12  ;;  %v459_v34 = vand.u32 2147483648, %v4435_v12  ;;  %vm453_vm4 = vweird.f32 %v4435_v12 }
 0x180   :  { %v401_v7 = vpop.f32.mrf.mxu1  ;;  %vm4499_vm6 = vcmp.eq.f32.partialorder %v457_v32, 8.507059e+37 }
 0x181   :  { %v478_v44 = vadd.f32 %v3305_v37, %v401_v7 }
 0x183   :  { %v3575_v15 = vpop.eup %3574  ;;  %v3311_v45 = vmul.f32 -1.442695, %v478_v44 }
 0x184   :  { %v4441_v46 = vadd.f32 1.0, %v3575_v15 }
 0x186   :  { %vm468_vm7 = vweird.f32 %v4441_v46 }
 0x188   :  { %v404_v9 = vpop.f32.mrf.mxu1 }
 0x189   :  { %v479_v41 = vadd.f32 %v3306_v36, %v404_v9 }
 0x18b   :  { %v3312_v43 = vmul.f32 -1.442695, %v479_v41  ;;  %v472_v41 = vand.u32 2147483647, %v4441_v46 }
 0x18d   :  { %vm4512_vm9 = vcmp.eq.f32.partialorder %v472_v41, 8.507059e+37 }
 0x190   :  { %v4419_v24 = vpop.f32.mrf.mxu1 }
 0x198   :  { %v4424_v42 = vpop.f32.mrf.mxu1 }
 0x1a0   :  { %v413_v54 = vpop.f32.mrf.mxu1 }
 0x1a1   :  { %v541_v39 = vadd.f32 %v3313_v35, %v413_v54  ;;  %v474_v35 = vand.u32 2147483648, %v4441_v46 }
 0x1a3   :  { %v3319_v22 = vmul.f32 -1.442695, %v541_v39 }
 0x1a5   :  { %3576 = vpow2.f32 %v3319_v22 }
 0x1a6   :  { %3578 = vrcp.f32 %v4435_v12 }
 0x1a7   :  { %3580 = vpow2.f32 %v3312_v43 }
 0x1a8   :  { %v416_v48 = vpop.f32.mrf.mxu1  ;;  %3582 = vpow2.f32 %v3311_v45  ;;  %v3317_v45 = vld [vmem:[%s6475_s1 + $0x140] sm:$0xff] }
 0x1a9   :  { %v542_v51 = vadd.f32 %v3314_v5, %v416_v48  ;;  %3584 = vrcp.f32 %v4441_v46  ;;  %v460_v48 = vor.u32 1.1754944e-38, %v459_v34 }
 0x1ab   :  { %v3577_v55 = vpop.eup %3576  ;;  %v3320_v57 = vmul.f32 -1.442695, %v542_v51  ;;  %v475_v51 = vor.u32 1.1754944e-38, %v474_v35 }
 0x1ac   :  { %v4444_v38 = vadd.f32 1.0, %v3577_v55  ;;  %v4446_v49 = vpop.eup %3578 }
 0x1ad   :  { %3586 = vpow2.f32 %v3320_v57  ;;  %v3581_v0 = vpop.eup %3580  ;;  %v449_v29 = vmul.f32 %v4446_v49, %v4435_v12  ;;  %vm454_vm3 = vweird.f32 %v4446_v49 }
 0x1ae   :  { %3588 = vrcp.f32 %v4444_v38  ;;  %v3583_v52 = vpop.eup %3582  ;;  %v4456_v2 = vadd.f32 1.0, %v3581_v0  ;;  %vm4495_vm5 = vmor %vm453_vm4, %vm454_vm3  ;;  %vm556_vm11 = vweird.f32 %v4444_v38 }
 0x1af   :  { %v4454_v53 = vpop.eup %3584  ;;  %v450_v56 = vsub.f32 1.0, %v449_v29  ;;  %v4462_v47 = vadd.f32 1.0, %v3583_v52 }
 0x1b0   :  { %v419_v40 = vpop.f32.mrf.mxu1  ;;  %v464_v1 = vmul.f32 %v4454_v53, %v4441_v46  ;;  %vm469_vm8 = vweird.f32 %v4454_v53 }
 0x1b1   :  { %v581_v62 = vadd.f32 %v3315_v61, %v419_v40  ;;  %v451_v7 = vmul.f32 %v4446_v49, %v450_v56  ;;  %v497_v12 = vand.u32 2147483647, %v4462_v47  ;;  %v499_v29 = vand.u32 2147483648, %v4462_v47  ;;  %vm4543_vm15 = vmor %vm468_vm7, %vm469_vm8 }
 0x1b2   :  { %v465_v59 = vsub.f32 1.0, %v464_v1  ;;  %v562_v56 = vand.u32 2147483648, %v4444_v38  ;;  %v560_v1 = vand.u32 2147483647, %v4444_v38  ;;  %vm493_vm3 = vweird.f32 %v4462_v47 }
 0x1b3   :  { %v3587_v58 = vpop.eup %3586  ;;  %v3321_v3 = vmul.f32 -1.442695, %v581_v62  ;;  %v452_v37 = vadd.f32 %v4446_v49, %v451_v7 }
 0x1b4   :  { %v4458_v16 = vpop.eup %3588  ;;  %v4460_v60 = vadd.f32 1.0, %v3587_v58  ;;  %v466_v15 = vmul.f32 %v4454_v53, %v465_v59  ;;  %vm561_vm2 = vcmp.eq.f32.partialorder %v560_v1, 8.507059e+37 }
 0x1b5   :  { %3590 = vpow2.f32 %v3321_v3  ;;  %v552_v13 = vmul.f32 %v4458_v16, %v4444_v38  ;;  %v456_v61 = vsel %vm4495_vm5, %v4446_v49, %v452_v37  ;;  %vm557_vm10 = vweird.f32 %v4458_v16 }
 0x1b6   :  { %3592 = vrcp.f32 %v4460_v60  ;;  %v518_v49 = vadd.f32 %v4419_v24, %v4231_v50  ;;  %v467_v3 = vadd.f32 %v4454_v53, %v466_v15  ;;  %vm4533_vm13 = vmor %vm556_vm11, %vm557_vm10  ;;  %vm571_vm14 = vweird.f32 %v4460_v60 }
 0x1b7   :  { %3594 = vrcp.f32 %v4456_v2  ;;  %v553_v33 = vsub.f32 1.0, %v552_v13  ;;  %v575_v34 = vand.u32 2147483647, %v4460_v60  ;;  %v514_v24 = vand.u32 2147483648, %v4456_v2 }
 0x1b8   :  { %v422_v9 = vpop.f32.mrf.mxu1  ;;  %3596 = vrcp.f32 %v4462_v47  ;;  %v471_v46 = vsel %vm4543_vm15, %v4454_v53, %v467_v3 }
 0x1b9   :  { %v582_v21 = vadd.f32 %v3316_v4, %v422_v9  ;;  %v554_v44 = vmul.f32 %v4458_v16, %v553_v33  ;;  %v577_v33 = vand.u32 2147483648, %v4460_v60  ;;  %vm576_vm4 = vcmp.eq.f32.partialorder %v575_v34, 8.507059e+37 }
 0x1bb   :  { %v3591_v30 = vpop.eup %3590  ;;  %v3322_v36 = vmul.f32 -1.442695, %v582_v21  ;;  %v555_v52 = vadd.f32 %v4458_v16, %v554_v44  ;;  %v461_v44 = vsel %vm4499_vm6, %v460_v48, %v456_v61  ;;  %v578_v5 = vor.u32 1.1754944e-38, %v577_v33  ;;  %v4678_v33 = vld [vmem:[%s6467_s2 + $0x18] sm:$0xff] }
 0x1bc   :  { %v4478_v8 = vpop.eup %3592  ;;  %v4482_v54 = vadd.f32 1.0, %v3591_v30 }
 0x1bd   :  { %v4484_v39 = vpop.eup %3594  ;;  %3598 = vpow2.f32 %v3322_v36  ;;  %v567_v22 = vmul.f32 %v4478_v8, %v4460_v60  ;;  %vm572_vm12 = vweird.f32 %v4478_v8  ;;  %v559_v30 = vsel %vm4533_vm13, %v4458_v16, %v555_v52 }
 0x1be   :  { %3600 = vrcp.f32 %v4482_v54  ;;  %v4493_v43 = vpop.eup %3596  ;;  %v504_v57 = vmul.f32 %v4484_v39, %v4456_v2  ;;  %v563_v36 = vor.u32 1.1754944e-38, %v562_v56  ;;  %vm4560_vm1 = vmor %vm571_vm14, %vm572_vm12  ;;  %v519_v16 = vadd.f32 %v4424_v42, %v4196_v18 }
 0x1bf   :  { %v568_v55 = vsub.f32 1.0, %v567_v22  ;;  %v489_v58 = vmul.f32 %v4493_v43, %v4462_v47  ;;  %v520_v52 = vmul.f32 %v518_v49, %v461_v44  ;;  %vm509_vm6 = vweird.f32 %v4484_v39 }
 0x1c0   :  { %v425_v0 = vpop.f32.mrf.mxu1  ;;  %v505_v9 = vsub.f32 1.0, %v504_v57  ;;  %v564_v22 = vsel %vm561_vm2, %v563_v36, %v559_v30  ;;  %v600_v40 = vand.u32 2147483647, %v4482_v54  ;;  %vm494_vm7 = vweird.f32 %v4493_v43  ;;  %v3307_v30 = vld [vmem:[%s6474_s0 + $0x50] sm:$0xff] }
 0x1c1   :  { %v569_v62 = vmul.f32 %v4478_v8, %v568_v55  ;;  %v621_v32 = vadd.f32 %v425_v0, %v4269_v28  ;;  %v490_v35 = vsub.f32 1.0, %v489_v58  ;;  %v3318_v58 = vld [vmem:[%s6475_s1 + $0x148] sm:$0xff]  ;;  %vm596_vm8 = vweird.f32 %v4482_v54  ;;  %vm4625_vm14 = vmor %vm493_vm3, %vm494_vm7 }
 0x1c2   :  { %v506_v53 = vmul.f32 %v4484_v39, %v505_v9  ;;  %v512_v9 = vand.u32 2147483647, %v4456_v2  ;;  %vm601_vm12 = vcmp.eq.f32.partialorder %v600_v40, 8.507059e+37  ;;  %vm498_vm3 = vcmp.eq.f32.partialorder %v497_v12, 8.507059e+37 }
 0x1c3   :  { %v3599_v13 = vpop.eup %3598  ;;  %v570_v4 = vadd.f32 %v4478_v8, %v569_v62  ;;  %v623_v57 = vmul.f32 %v621_v32, %v564_v22  ;;  %v491_v0 = vmul.f32 %v4493_v43, %v490_v35  ;;  %v500_v22 = vor.u32 1.1754944e-38, %v499_v29 }
 0x1c4   :  { %v4529_v7 = vpop.eup %3600  ;;  %v4531_v21 = vadd.f32 1.0, %v3599_v13  ;;  %v507_v49 = vadd.f32 %v4484_v39, %v506_v53  ;;  %v602_v13 = vand.u32 2147483648, %v4482_v54  ;;  %vm513_vm15 = vcmp.eq.f32.partialorder %v512_v9, 8.507059e+37  ;;  %v4664_v9 = vld [vmem:[%s6467_s2 + $0x8] sm:$0xff] }
 0x1c5   :  { %v592_v59 = vmul.f32 %v4529_v7, %v4482_v54  ;;  %v574_v60 = vsel %vm4560_vm1, %v4478_v8, %v570_v4  ;;  %v476_v8 = vsel %vm4512_vm9, %v475_v51, %v471_v46  ;;  %vm597_vm5 = vweird.f32 %v4529_v7  ;;  %v3308_v51 = vld [vmem:[%s6474_s0 + $0x58] sm:$0xff] }
 0x1c6   :  { %3602 = vrcp.f32 %v4531_v21  ;;  %v579_v48 = vsel %vm576_vm4, %v578_v5, %v574_v60  ;;  %v521_v61 = vmul.f32 %v519_v16, %v476_v8  ;;  %v625_v4 = vadd.f32 %v3317_v45, %v623_v57  ;;  %vm4601_vm10 = vmor %vm596_vm8, %vm597_vm5 }
 0x1c7   :  { %v593_v41 = vsub.f32 1.0, %v592_v59  ;;  %vm508_vm9 = vweird.f32 %v4456_v2  ;;  %v492_v59 = vadd.f32 %v4493_v43, %v491_v0  ;;  %v603_v46 = vor.u32 1.1754944e-38, %v602_v13 }
 0x1c8   :  { %v428_v15 = vpop.f32.mrf.mxu1  ;;  %vm4606_vm11 = vmor %vm508_vm9, %vm509_vm6  ;;  %v523_v32 = vadd.f32 %v3308_v51, %v521_v61  ;;  %v617_v36 = vand.u32 2147483648, %v4531_v21  ;;  %v615_v16 = vand.u32 2147483647, %v4531_v21  ;;  %3604 = vtanh.f32 %v625_v4  ;;  %v4657_v4 = vld [vmem:[%s6467_s2] sm:$0xff] }
 0x1c9   :  { %v594_v55 = vmul.f32 %v4529_v7, %v593_v41  ;;  %v622_v42 = vadd.f32 %v428_v15, %v4209_v31  ;;  %v511_v35 = vsel %vm4606_vm11, %v4484_v39, %v507_v49  ;;  %v522_v60 = vadd.f32 %v3307_v30, %v520_v52 }
 0x1ca   :  { %v496_v53 = vsel %vm4625_vm14, %v4493_v43, %v492_v59  ;;  %vm611_vm1 = vweird.f32 %v4531_v21  ;;  %v618_v5 = vor.u32 1.1754944e-38, %v617_v36  ;;  %vm616_vm4 = vcmp.eq.f32.partialorder %v615_v16, 8.507059e+37 }
 0x1cb   :  { %v595_v62 = vadd.f32 %v4529_v7, %v594_v55  ;;  %v624_v3 = vmul.f32 %v622_v42, %v579_v48  ;;  %v501_v42 = vsel %vm498_vm3, %v500_v22, %v496_v53  ;;  %v3346_v53 = vld [vmem:[%s6475_s1 + $0xf8] sm:$0xff] }
 0x1cc   :  { %v3603_v56 = vpop.eup %3602  ;;  %v526_v45 = vsub.f32 1.0, %v501_v42  ;;  %v530_v13 = vmul.f32 %v501_v42, %v4389_v19 }
 0x1cd   :  { %v607_v1 = vmul.f32 %v3603_v56, %v4531_v21  ;;  %v626_v38 = vadd.f32 %v3318_v58, %v624_v3  ;;  %v599_v2 = vsel %vm4601_vm10, %v4529_v7, %v595_v62  ;;  %vm612_vm13 = vweird.f32 %v3603_v56 }
 0x1ce   :  { %v515_v7 = vor.u32 1.1754944e-38, %v514_v24  ;;  %v604_v39 = vsel %vm601_vm12, %v603_v46, %v599_v2  ;;  %vm613_vm2 = vmor %vm611_vm1, %vm612_vm13  ;;  %v3605_v0 = vpop.eup %3604  ;;  %v4671_v24 = vld [vmem:[%s6467_s2 + $0x10] sm:$0xff] }
 0x1cf   :  { %v608_v34 = vsub.f32 1.0, %v607_v1  ;;  %3606 = vtanh.f32 %v626_v38  ;;  %v629_v55 = vsub.f32 1.0, %v604_v39  ;;  %v633_v47 = vmul.f32 %v604_v39, %v4383_v10 }
 0x1d0   :  { %v516_v15 = vsel %vm513_vm15, %v515_v7, %v511_v35  ;;  %3608 = vtanh.f32 %v523_v32  ;;  %v3345_v32 = vld [vmem:[%s6475_s1 + $0xf0] sm:$0xff] }
 0x1d1   :  { %v609_v37 = vmul.f32 %v3603_v56, %v608_v34  ;;  %3610 = vtanh.f32 %v522_v60  ;;  %v527_v52 = vsub.f32 1.0, %v516_v15  ;;  %v631_v29 = vmul.f32 %v3605_v0, %v629_v55  ;;  %v3338_v34 = vld [vmem:[%s6474_s0 + $0x78] sm:$0xff]  ;;  %v3337_v35 = vld [vmem:[%s6474_s0 + $0x70] sm:$0xff]  ;;  %v3347_v0 = vld [vmem:[%s6475_s1 + $0x100] sm:$0xff] }
 0x1d2   :  { %v531_v51 = vmul.f32 %v516_v15, %v4386_v63 }
 0x1d3   :  { %v610_v44 = vadd.f32 %v3603_v56, %v609_v37  ;;  %v4643_v49 = vadd.f32 %v633_v47, %v631_v29 }
 0x1d5   :  { %v614_v57 = vsel %vm613_vm2, %v3603_v56, %v610_v44  ;;  %v3607_v8 = vpop.eup %3606  ;;  %6558 = vst [vmem:[#allocation13_spill] sm:$0xff] %v4643_v49 }
 0x1d6   :  { %v619_v43 = vsel %vm616_vm4, %v618_v5, %v614_v57  ;;  %v3609_v62 = vpop.eup %3608 }
 0x1d7   :  { %v630_v21 = vsub.f32 1.0, %v619_v43  ;;  %v634_v61 = vmul.f32 %v619_v43, %v4380_v6  ;;  %v529_v58 = vmul.f32 %v3609_v62, %v527_v52  ;;  %v3611_v12 = vpop.eup %3610 }
 0x1d8   :  { %v528_v56 = vmul.f32 %v3611_v12, %v526_v45 }
 0x1d9   :  { %v632_v48 = vmul.f32 %v3607_v8, %v630_v21  ;;  %v4647_v40 = vadd.f32 %v531_v51, %v529_v58 }
 0x1da   :  { %v4651_v1 = vadd.f32 %v530_v13, %v528_v56 }
 0x1db   :  { %v4639_v3 = vadd.f32 %v634_v61, %v632_v48 }
 0x1dd   :  { %6557 = vst [vmem:[#allocation12_spill] sm:$0xff] %v4639_v3  ;;  %655 = vmatpush.msra.mxu2 %v4639_v3 }
 0x1df   :  { %656 = vmatpush.msra.mxu2 %v4643_v49 }
 0x1e1   :  { %657 = vmatpush.msra.mxu2 %v4647_v40 }
 0x1e3   :  { %658 = vmatpush.msra.mxu2 %v4651_v1 }
 0x1e4   :  { %3323 = vmatmul.msk.f32.vlgmr.msra.gmra.mxu2 %vm78_vm0, %v4657_v4 }
 0x1ec   :  { %3324 = vmatmul.msk.f32.gmra.mxu2 %vm78_vm0, %v4664_v9 }
 0x1f4   :  { %3325 = vmatmul.msk.f32.gmra.mxu2 %vm78_vm0, %v4671_v24 }
 0x1fc   :  { %3326 = vmatmul.msk.f32.gmra.mxu2 %vm78_vm0, %v4678_v33 }
 0x204   :  { %3327 = vmatmul.msk.f32.gmra.mxu2 %vm78_vm0, %v4068_v11 }
 0x20c   :  { %3328 = vmatmul.msk.f32.gmra.mxu2 %vm78_vm0, %v4081_v14 }
 0x214   :  { %3329 = vmatmul.msk.f32.gmra.mxu2 %vm78_vm0, %v4094_v17  ;;  %v3335_v17 = vld [vmem:[%s6474_s0 + $0x60] sm:$0xff] }
 0x21c   :  { %3330 = vmatmul.msk.f32.gmra.mxu2 %vm78_vm0, %v4107_v20 }
 0x224   :  { %3331 = vmatmul.msk.f32.gmra.mxu2 %vm78_vm0, %v4120_v23 }
 0x22c   :  { %3332 = vmatmul.msk.f32.gmra.mxu2 %vm78_vm0, %v4130_v25  ;;  %v3336_v25 = vld [vmem:[%s6474_s0 + $0x68] sm:$0xff] }
 0x234   :  { %3333 = vmatmul.msk.f32.gmra.mxu2 %vm78_vm0, %v4137_v26 }
 0x23c   :  { %3334 = vmatmul.msk.f32.gmra.mxu2 %vm78_vm0, %v4144_v27 }
 0x267   :  { %v660_v11 = vpop.f32.mrf.mxu2 }
 0x268   :  { %v703_v23 = vadd.f32 %v3335_v17, %v660_v11 }
 0x26a   :  { %v3341_v54 = vmul.f32 -1.442695, %v703_v23 }
 0x26c   :  { %3612 = vpow2.f32 %v3341_v54 }
 0x26f   :  { %v663_v14 = vpop.f32.mrf.mxu2 }
 0x270   :  { %v704_v26 = vadd.f32 %v3336_v25, %v663_v14  ;;  %v3348_v14 = vld [vmem:[%s6475_s1 + $0x108] sm:$0xff] }
 0x272   :  { %v3342_v27 = vmul.f32 -1.442695, %v704_v26  ;;  %v3613_v2 = vpop.eup %3612 }
 0x273   :  { %v4717_v16 = vadd.f32 1.0, %v3613_v2 }
 0x274   :  { %3614 = vpow2.f32 %v3342_v27 }
 0x275   :  { %v722_v26 = vand.u32 2147483647, %v4717_v16  ;;  %v724_v27 = vand.u32 2147483648, %v4717_v16  ;;  %vm718_vm6 = vweird.f32 %v4717_v16 }
 0x277   :  { %v666_v38 = vpop.f32.mrf.mxu2  ;;  %vm4781_vm8 = vcmp.eq.f32.partialorder %v722_v26, 8.507059e+37 }
 0x278   :  { %v743_v41 = vadd.f32 %v3337_v35, %v666_v38 }
 0x27a   :  { %v3615_v60 = vpop.eup %3614  ;;  %v3343_v44 = vmul.f32 -1.442695, %v743_v41 }
 0x27b   :  { %v4723_v22 = vadd.f32 1.0, %v3615_v60 }
 0x27d   :  { %vm733_vm9 = vweird.f32 %v4723_v22 }
 0x27f   :  { %v669_v59 = vpop.f32.mrf.mxu2 }
 0x280   :  { %v744_v37 = vadd.f32 %v3338_v34, %v669_v59 }
 0x282   :  { %v3344_v39 = vmul.f32 -1.442695, %v744_v37  ;;  %v737_v37 = vand.u32 2147483647, %v4723_v22 }
 0x284   :  { %vm4794_vm11 = vcmp.eq.f32.partialorder %v737_v37, 8.507059e+37 }
 0x287   :  { %v4701_v20 = vpop.f32.mrf.mxu2 }
 0x28f   :  { %v4706_v30 = vpop.f32.mrf.mxu2 }
 0x297   :  { %v678_v46 = vpop.f32.mrf.mxu2 }
 0x298   :  { %v806_v36 = vadd.f32 %v3345_v32, %v678_v46  ;;  %v739_v32 = vand.u32 2147483648, %v4723_v22 }
 0x29a   :  { %v3351_v7 = vmul.f32 -1.442695, %v806_v36 }
 0x29c   :  { %3616 = vpow2.f32 %v3351_v7 }
 0x29d   :  { %3618 = vrcp.f32 %v4717_v16 }
 0x29e   :  { %3620 = vpow2.f32 %v3344_v39 }
 0x29f   :  { %v681_v15 = vpop.f32.mrf.mxu2  ;;  %3622 = vpow2.f32 %v3343_v44  ;;  %v3349_v44 = vld [vmem:[%s6475_s1 + $0x110] sm:$0xff] }
 0x2a0   :  { %v807_v5 = vadd.f32 %v3346_v53, %v681_v15  ;;  %3624 = vrcp.f32 %v4723_v22  ;;  %v725_v15 = vor.u32 1.1754944e-38, %v724_v27 }
 0x2a2   :  { %v3617_v55 = vpop.eup %3616  ;;  %v3352_v57 = vmul.f32 -1.442695, %v807_v5  ;;  %v740_v5 = vor.u32 1.1754944e-38, %v739_v32 }
 0x2a3   :  { %v4726_v42 = vadd.f32 1.0, %v3617_v55  ;;  %v4728_v43 = vpop.eup %3618 }
 0x2a4   :  { %3626 = vpow2.f32 %v3352_v57  ;;  %v3621_v52 = vpop.eup %3620  ;;  %v714_v21 = vmul.f32 %v4728_v43, %v4717_v16  ;;  %vm719_vm5 = vweird.f32 %v4728_v43 }
 0x2a5   :  { %3628 = vrcp.f32 %v4726_v42  ;;  %v3623_v45 = vpop.eup %3622  ;;  %v4738_v62 = vadd.f32 1.0, %v3621_v52  ;;  %vm4777_vm7 = vmor %vm718_vm6, %vm719_vm5  ;;  %vm821_vm13 = vweird.f32 %v4726_v42 }
 0x2a6   :  { %v4736_v48 = vpop.eup %3624  ;;  %v715_v12 = vsub.f32 1.0, %v714_v21  ;;  %v4744_v51 = vadd.f32 1.0, %v3623_v45 }
 0x2a7   :  { %v684_v8 = vpop.f32.mrf.mxu2  ;;  %v729_v11 = vmul.f32 %v4736_v48, %v4723_v22  ;;  %vm734_vm10 = vweird.f32 %v4736_v48 }
 0x2a8   :  { %v846_v29 = vadd.f32 %v3347_v0, %v684_v8  ;;  %v716_v38 = vmul.f32 %v4728_v43, %v715_v12  ;;  %v762_v16 = vand.u32 2147483647, %v4744_v51  ;;  %v764_v21 = vand.u32 2147483648, %v4744_v51  ;;  %vm4825_vm2 = vmor %vm733_vm9, %vm734_vm10 }
 0x2a9   :  { %v730_v25 = vsub.f32 1.0, %v729_v11  ;;  %v827_v12 = vand.u32 2147483648, %v4726_v42  ;;  %v825_v11 = vand.u32 2147483647, %v4726_v42  ;;  %vm758_vm5 = vweird.f32 %v4744_v51 }
 0x2aa   :  { %v3627_v61 = vpop.eup %3626  ;;  %v3353_v58 = vmul.f32 -1.442695, %v846_v29  ;;  %v717_v35 = vadd.f32 %v4728_v43, %v716_v38 }
 0x2ab   :  { %v4740_v47 = vpop.eup %3628  ;;  %v4742_v56 = vadd.f32 1.0, %v3627_v61  ;;  %v731_v60 = vmul.f32 %v4736_v48, %v730_v25  ;;  %vm826_vm4 = vcmp.eq.f32.partialorder %v825_v11, 8.507059e+37 }
 0x2ac   :  { %3630 = vpow2.f32 %v3353_v58  ;;  %v817_v13 = vmul.f32 %v4740_v47, %v4726_v42  ;;  %v721_v0 = vsel %vm4777_vm7, %v4728_v43, %v717_v35  ;;  %vm822_vm12 = vweird.f32 %v4740_v47 }
 0x2ad   :  { %3632 = vrcp.f32 %v4742_v56  ;;  %v783_v43 = vadd.f32 %v4701_v20, %v4231_v50  ;;  %v732_v58 = vadd.f32 %v4736_v48, %v731_v60  ;;  %vm4815_vm15 = vmor %vm821_vm13, %vm822_vm12  ;;  %vm836_vm1 = vweird.f32 %v4742_v56 }
 0x2ae   :  { %3634 = vrcp.f32 %v4738_v62  ;;  %v818_v23 = vsub.f32 1.0, %v817_v13  ;;  %v840_v27 = vand.u32 2147483647, %v4742_v56  ;;  %v779_v20 = vand.u32 2147483648, %v4738_v62 }
 0x2af   :  { %v687_v59 = vpop.f32.mrf.mxu2  ;;  %3636 = vrcp.f32 %v4744_v51  ;;  %v736_v22 = vsel %vm4825_vm2, %v4736_v48, %v732_v58 }
 0x2b0   :  { %v847_v17 = vadd.f32 %v3348_v14, %v687_v59  ;;  %v819_v41 = vmul.f32 %v4740_v47, %v818_v23  ;;  %v842_v23 = vand.u32 2147483648, %v4742_v56  ;;  %vm841_vm6 = vcmp.eq.f32.partialorder %v840_v27, 8.507059e+37 }
 0x2b2   :  { %v3631_v54 = vpop.eup %3630  ;;  %v3354_v34 = vmul.f32 -1.442695, %v847_v17  ;;  %v820_v45 = vadd.f32 %v4740_v47, %v819_v41  ;;  %v726_v41 = vsel %vm4781_vm8, %v725_v15, %v721_v0  ;;  %v843_v53 = vor.u32 1.1754944e-38, %v842_v23  ;;  %v4968_v23 = vld [vmem:[%s6467_s2 + $0x38] sm:$0xff] }
 0x2b3   :  { %v4760_v2 = vpop.eup %3632  ;;  %v4764_v46 = vadd.f32 1.0, %v3631_v54 }
 0x2b4   :  { %v4766_v36 = vpop.eup %3634  ;;  %3638 = vpow2.f32 %v3354_v34  ;;  %v832_v7 = vmul.f32 %v4760_v2, %v4742_v56  ;;  %vm837_vm14 = vweird.f32 %v4760_v2  ;;  %v824_v54 = vsel %vm4815_vm15, %v4740_v47, %v820_v45 }
 0x2b5   :  { %3640 = vrcp.f32 %v4764_v46  ;;  %v4775_v39 = vpop.eup %3636  ;;  %v769_v57 = vmul.f32 %v4766_v36, %v4738_v62  ;;  %v828_v34 = vor.u32 1.1754944e-38, %v827_v12  ;;  %vm4842_vm3 = vmor %vm836_vm1, %vm837_vm14  ;;  %v784_v47 = vadd.f32 %v4706_v30, %v4196_v18 }
 0x2b6   :  { %v833_v55 = vsub.f32 1.0, %v832_v7  ;;  %v754_v61 = vmul.f32 %v4775_v39, %v4744_v51  ;;  %v785_v45 = vmul.f32 %v783_v43, %v726_v41  ;;  %vm774_vm8 = vweird.f32 %v4766_v36 }
 0x2b7   :  { %v690_v52 = vpop.f32.mrf.mxu2  ;;  %v770_v59 = vsub.f32 1.0, %v769_v57  ;;  %v829_v7 = vsel %vm826_vm4, %v828_v34, %v824_v54  ;;  %v865_v8 = vand.u32 2147483647, %v4764_v46  ;;  %vm759_vm9 = vweird.f32 %v4775_v39  ;;  %v3339_v54 = vld [vmem:[%s6474_s0 + $0x80] sm:$0xff] }
 0x2b8   :  { %v834_v29 = vmul.f32 %v4760_v2, %v833_v55  ;;  %v886_v26 = vadd.f32 %v690_v52, %v4269_v28  ;;  %v755_v32 = vsub.f32 1.0, %v754_v61  ;;  %v3350_v61 = vld [vmem:[%s6475_s1 + $0x118] sm:$0xff]  ;;  %vm861_vm10 = vweird.f32 %v4764_v46  ;;  %vm4907_vm1 = vmor %vm758_vm5, %vm759_vm9 }
 0x2b9   :  { %v771_v48 = vmul.f32 %v4766_v36, %v770_v59  ;;  %v777_v59 = vand.u32 2147483647, %v4738_v62  ;;  %vm866_vm14 = vcmp.eq.f32.partialorder %v865_v8, 8.507059e+37  ;;  %vm763_vm5 = vcmp.eq.f32.partialorder %v762_v16, 8.507059e+37 }
 0x2ba   :  { %v3639_v13 = vpop.eup %3638  ;;  %v835_v14 = vadd.f32 %v4760_v2, %v834_v29  ;;  %v888_v57 = vmul.f32 %v886_v26, %v829_v7  ;;  %v756_v52 = vmul.f32 %v4775_v39, %v755_v32  ;;  %v765_v7 = vor.u32 1.1754944e-38, %v764_v21 }
 0x2bb   :  { %v4811_v38 = vpop.eup %3640  ;;  %v4813_v17 = vadd.f32 1.0, %v3639_v13  ;;  %v772_v43 = vadd.f32 %v4766_v36, %v771_v48  ;;  %v867_v13 = vand.u32 2147483648, %v4764_v46  ;;  %vm778_vm2 = vcmp.eq.f32.partialorder %v777_v59, 8.507059e+37  ;;  %v4954_v59 = vld [vmem:[%s6467_s2 + $0x28] sm:$0xff] }
 0x2bc   :  { %v857_v25 = vmul.f32 %v4811_v38, %v4764_v46  ;;  %v839_v56 = vsel %vm4842_vm3, %v4760_v2, %v835_v14  ;;  %v741_v2 = vsel %vm4794_vm11, %v740_v5, %v736_v22  ;;  %vm862_vm7 = vweird.f32 %v4811_v38  ;;  %v3340_v5 = vld [vmem:[%s6474_s0 + $0x88] sm:$0xff]  ;;  %v4989_v46 = vld [vmem:[%s6467_s2 + $0x50] sm:$0xff] }
 0x2bd   :  { %3642 = vrcp.f32 %v4813_v17  ;;  %v844_v15 = vsel %vm841_vm6, %v843_v53, %v839_v56  ;;  %v786_v0 = vmul.f32 %v784_v47, %v741_v2  ;;  %v890_v14 = vadd.f32 %v3349_v44, %v888_v57  ;;  %vm4883_vm12 = vmor %vm861_vm10, %vm862_vm7 }
 0x2be   :  { %v858_v37 = vsub.f32 1.0, %v857_v25  ;;  %vm773_vm11 = vweird.f32 %v4738_v62  ;;  %v757_v25 = vadd.f32 %v4775_v39, %v756_v52  ;;  %v868_v22 = vor.u32 1.1754944e-38, %v867_v13 }
 0x2bf   :  { %v693_v60 = vpop.f32.mrf.mxu2  ;;  %vm4888_vm13 = vmor %vm773_vm11, %vm774_vm8  ;;  %v788_v26 = vadd.f32 %v3340_v5, %v786_v0  ;;  %v882_v34 = vand.u32 2147483648, %v4813_v17  ;;  %v880_v47 = vand.u32 2147483647, %v4813_v17  ;;  %3644 = vtanh.f32 %v890_v14  ;;  %v4947_v14 = vld [vmem:[%s6467_s2 + $0x20] sm:$0xff] }
 0x2c0   :  { %v859_v55 = vmul.f32 %v4811_v38, %v858_v37  ;;  %v887_v30 = vadd.f32 %v693_v60, %v4209_v31  ;;  %v776_v32 = vsel %vm4888_vm13, %v4766_v36, %v772_v43  ;;  %v787_v56 = vadd.f32 %v3339_v54, %v785_v45  ;;  %v4996_v54 = vld [vmem:[%s6467_s2 + $0x58] sm:$0xff] }
 0x2c1   :  { %v761_v48 = vsel %vm4907_vm1, %v4775_v39, %v757_v25  ;;  %vm876_vm3 = vweird.f32 %v4813_v17  ;;  %v883_v53 = vor.u32 1.1754944e-38, %v882_v34  ;;  %vm881_vm6 = vcmp.eq.f32.partialorder %v880_v47, 8.507059e+37  ;;  %v4982_v25 = vld [vmem:[%s6467_s2 + $0x48] sm:$0xff]  ;;  %v3368_v47 = vld [vmem:[%s6474_s0 + $0x98] sm:$0xff] }
 0x2c2   :  { %v860_v29 = vadd.f32 %v4811_v38, %v859_v55  ;;  %v889_v58 = vmul.f32 %v887_v30, %v844_v15  ;;  %v766_v30 = vsel %vm763_vm5, %v765_v7, %v761_v48  ;;  %v3377_v48 = vld [vmem:[%s6475_s1 + $0xc0] sm:$0xff] }
 0x2c3   :  { %v3643_v12 = vpop.eup %3642  ;;  %v791_v44 = vsub.f32 1.0, %v766_v30  ;;  %v795_v13 = vmul.f32 %v766_v30, %v4651_v1 }
 0x2c4   :  { %v872_v11 = vmul.f32 %v3643_v12, %v4813_v17  ;;  %v891_v42 = vadd.f32 %v3350_v61, %v889_v58  ;;  %v864_v62 = vsel %vm4883_vm12, %v4811_v38, %v860_v29  ;;  %vm877_vm15 = vweird.f32 %v3643_v12 }
 0x2c5   :  { %v780_v38 = vor.u32 1.1754944e-38, %v779_v20  ;;  %v869_v36 = vsel %vm866_vm14, %v868_v22, %v864_v62  ;;  %vm878_vm4 = vmor %vm876_vm3, %vm877_vm15  ;;  %v3645_v52 = vpop.eup %3644  ;;  %v4961_v20 = vld [vmem:[%s6467_s2 + $0x30] sm:$0xff] }
 0x2c6   :  { %v873_v27 = vsub.f32 1.0, %v872_v11  ;;  %3646 = vtanh.f32 %v891_v42  ;;  %v894_v55 = vsub.f32 1.0, %v869_v36  ;;  %v898_v51 = vmul.f32 %v869_v36, %v4643_v49  ;;  %v4975_v42 = vld [vmem:[%s6467_s2 + $0x40] sm:$0xff]  ;;  %v3367_v22 = vld [vmem:[%s6474_s0 + $0x90] sm:$0xff] }
 0x2c7   :  { %v781_v60 = vsel %vm778_vm2, %v780_v38, %v776_v32  ;;  %3648 = vtanh.f32 %v788_v26 }
 0x2c8   :  { %v874_v35 = vmul.f32 %v3643_v12, %v873_v27  ;;  %3650 = vtanh.f32 %v787_v56  ;;  %v792_v45 = vsub.f32 1.0, %v781_v60  ;;  %v896_v21 = vmul.f32 %v3645_v52, %v894_v55 }
 0x2c9   :  { %v796_v5 = vmul.f32 %v781_v60, %v4647_v40  ;;  %v3369_v60 = vld [vmem:[%s6474_s0 + $0xa0] sm:$0xff] }
 0x2ca   :  { %v875_v41 = vadd.f32 %v3643_v12, %v874_v35  ;;  %v4925_v43 = vadd.f32 %v898_v51, %v896_v21 }
 0x2cc   :  { %v879_v57 = vsel %vm878_vm4, %v3643_v12, %v875_v41  ;;  %v3647_v2 = vpop.eup %3646  ;;  %v3370_v41 = vld [vmem:[%s6474_s0 + $0xa8] sm:$0xff] }
 0x2cd   :  { %v884_v39 = vsel %vm881_vm6, %v883_v53, %v879_v57  ;;  %v3649_v29 = vpop.eup %3648 }
 0x2ce   :  { %v895_v17 = vsub.f32 1.0, %v884_v39  ;;  %v899_v0 = vmul.f32 %v884_v39, %v4639_v3  ;;  %v794_v61 = vmul.f32 %v3649_v29, %v792_v45  ;;  %v3651_v16 = vpop.eup %3650 }
 0x2cf   :  { %v793_v12 = vmul.f32 %v3651_v16, %v791_v44 }
 0x2d0   :  { %v897_v15 = vmul.f32 %v3647_v2, %v895_v17  ;;  %v4929_v8 = vadd.f32 %v796_v5, %v794_v61  ;;  %v3378_v2 = vld [vmem:[%s6475_s1 + $0xc8] sm:$0xff] }
 0x2d1   :  { %v4933_v11 = vadd.f32 %v795_v13, %v793_v12  ;;  %v3379_v12 = vld [vmem:[%s6475_s1 + $0xd0] sm:$0xff] }
 0x2d2   :  { %v4921_v58 = vadd.f32 %v899_v0, %v897_v15  ;;  %6577 = vst [vmem:[#allocation14_spill] sm:$0xff] %v4929_v8 }
 0x2d3   :  { %6578 = vst [vmem:[#allocation15_spill] sm:$0xff] %v4933_v11 }
 0x2d4   :  { %920 = vmatpush.msra.mxu3 %v4921_v58 }
 0x2d6   :  { %921 = vmatpush.msra.mxu3 %v4925_v43 }
 0x2d8   :  { %922 = vmatpush.msra.mxu3 %v4929_v8 }
 0x2da   :  { %923 = vmatpush.msra.mxu3 %v4933_v11 }
 0x2db   :  { %3355 = vmatmul.msk.f32.vlgmr.msra.gmra.mxu3 %vm78_vm0, %v4657_v4 }
 0x2e3   :  { %3356 = vmatmul.msk.f32.gmra.mxu3 %vm78_vm0, %v4664_v9 }
 0x2eb   :  { %3357 = vmatmul.msk.f32.gmra.mxu3 %vm78_vm0, %v4671_v24 }
 0x2f3   :  { %3358 = vmatmul.msk.f32.gmra.mxu3 %vm78_vm0, %v4678_v33 }
 0x2fb   :  { %3359 = vmatmul.msk.f32.gmra.mxu3 %vm78_vm0, %v4947_v14 }
 0x303   :  { %3360 = vmatmul.msk.f32.gmra.mxu3 %vm78_vm0, %v4954_v59 }
 0x30b   :  { %3361 = vmatmul.msk.f32.gmra.mxu3 %vm78_vm0, %v4961_v20 }
 0x313   :  { %3362 = vmatmul.msk.f32.gmra.mxu3 %vm78_vm0, %v4968_v23 }
 0x31b   :  { %3363 = vmatmul.msk.f32.gmra.mxu3 %vm78_vm0, %v4975_v42 }
 0x323   :  { %3364 = vmatmul.msk.f32.gmra.mxu3 %vm78_vm0, %v4982_v25 }
 0x32b   :  { %3365 = vmatmul.msk.f32.gmra.mxu3 %vm78_vm0, %v4989_v46 }
 0x333   :  { %3366 = vmatmul.msk.f32.gmra.mxu3 %vm78_vm0, %v4996_v54 }
 0x35e   :  { %v925_v26 = vpop.f32.mrf.mxu3 }
 0x35f   :  { %v968_v35 = vadd.f32 %v3367_v22, %v925_v26 }
 0x361   :  { %v3373_v37 = vmul.f32 -1.442695, %v968_v35 }
 0x363   :  { %3652 = vpow2.f32 %v3373_v37 }
 0x366   :  { %v928_v27 = vpop.f32.mrf.mxu3 }
 0x367   :  { %v969_v38 = vadd.f32 %v3368_v47, %v928_v27 }
 0x369   :  { %v3374_v36 = vmul.f32 -1.442695, %v969_v38  ;;  %v3653_v7 = vpop.eup %3652 }
 0x36a   :  { %v5019_v30 = vadd.f32 1.0, %v3653_v7 }
 0x36b   :  { %3654 = vpow2.f32 %v3374_v36 }
 0x36c   :  { %vm983_vm8 = vweird.f32 %v5019_v30 }
 0x36e   :  { %v931_v62 = vpop.f32.mrf.mxu3 }
 0x36f   :  { %v1008_v39 = vadd.f32 %v3369_v60, %v931_v62  ;;  %v3380_v60 = vld [vmem:[%s6475_s1 + $0xd8] sm:$0xff] }
 0x371   :  { %v3655_v45 = vpop.eup %3654  ;;  %v3375_v44 = vmul.f32 -1.442695, %v1008_v39 }
 0x372   :  { %v5025_v21 = vadd.f32 1.0, %v3655_v45 }
 0x374   :  { %vm998_vm11 = vweird.f32 %v5025_v21 }
 0x376   :  { %v934_v32 = vpop.f32.mrf.mxu3 }
 0x377   :  { %v1009_v57 = vadd.f32 %v3370_v41, %v934_v32 }
 0x379   :  { %v3376_v17 = vmul.f32 -1.442695, %v1009_v57 }
 0x37e   :  { %v5003_v34 = vpop.f32.mrf.mxu3 }
 0x386   :  { %v5008_v56 = vpop.f32.mrf.mxu3 }
 0x38e   :  { %v943_v53 = vpop.f32.mrf.mxu3 }
 0x38f   :  { %v1071_v55 = vadd.f32 %v3377_v48, %v943_v53 }
 0x391   :  { %v3383_v52 = vmul.f32 -1.442695, %v1071_v55 }
 0x393   :  { %3656 = vpow2.f32 %v3383_v52 }
 0x394   :  { %3658 = vrcp.f32 %v5019_v30 }
 0x395   :  { %3660 = vpow2.f32 %v3376_v17  ;;  %v987_v17 = vand.u32 2147483647, %v5019_v30 }
 0x396   :  { %v946_v15 = vpop.f32.mrf.mxu3  ;;  %3662 = vpow2.f32 %v3375_v44  ;;  %v1004_v44 = vand.u32 2147483648, %v5025_v21 }
 0x397   :  { %v1072_v0 = vadd.f32 %v3378_v2, %v946_v15  ;;  %3664 = vrcp.f32 %v5025_v21  ;;  %v989_v2 = vand.u32 2147483648, %v5019_v30  ;;  %vm5083_vm10 = vcmp.eq.f32.partialorder %v987_v17, 8.507059e+37 }
 0x399   :  { %v3657_v29 = vpop.eup %3656  ;;  %v3384_v61 = vmul.f32 -1.442695, %v1072_v0 }
 0x39a   :  { %v5028_v51 = vadd.f32 1.0, %v3657_v29  ;;  %v5030_v16 = vpop.eup %3658 }
 0x39b   :  { %3666 = vpow2.f32 %v3384_v61  ;;  %v3661_v5 = vpop.eup %3660  ;;  %v979_v13 = vmul.f32 %v5030_v16, %v5019_v30  ;;  %vm984_vm7 = vweird.f32 %v5030_v16 }
 0x39c   :  { %3668 = vrcp.f32 %v5028_v51  ;;  %v3663_v27 = vpop.eup %3662  ;;  %v5040_v35 = vadd.f32 1.0, %v3661_v5  ;;  %v1002_v5 = vand.u32 2147483647, %v5025_v21  ;;  %vm5079_vm9 = vmor %vm983_vm8, %vm984_vm7  ;;  %vm1086_vm15 = vweird.f32 %v5028_v51 }
 0x39d   :  { %v5038_v32 = vpop.eup %3664  ;;  %v980_v38 = vsub.f32 1.0, %v979_v13  ;;  %v5046_v48 = vadd.f32 1.0, %v3663_v27 }
 0x39e   :  { %v949_v26 = vpop.f32.mrf.mxu3  ;;  %v994_v7 = vmul.f32 %v5038_v32, %v5025_v21  ;;  %vm999_vm12 = vweird.f32 %v5038_v32  ;;  %vm5096_vm13 = vcmp.eq.f32.partialorder %v1002_v5, 8.507059e+37 }
 0x39f   :  { %v1111_v62 = vadd.f32 %v3379_v12, %v949_v26  ;;  %v981_v53 = vmul.f32 %v5030_v16, %v980_v38  ;;  %v990_v38 = vor.u32 1.1754944e-38, %v989_v2  ;;  %vm5127_vm4 = vmor %vm998_vm11, %vm999_vm12  ;;  %vm1023_vm7 = vweird.f32 %v5046_v48 }
 0x3a0   :  { %v995_v52 = vsub.f32 1.0, %v994_v7 }
 0x3a1   :  { %v3667_v22 = vpop.eup %3666  ;;  %v3385_v47 = vmul.f32 -1.442695, %v1111_v62  ;;  %v982_v29 = vadd.f32 %v5030_v16, %v981_v53 }
 0x3a2   :  { %v5042_v37 = vpop.eup %3668  ;;  %v5044_v36 = vadd.f32 1.0, %v3667_v22  ;;  %v996_v27 = vmul.f32 %v5038_v32, %v995_v52 }
 0x3a3   :  { %3670 = vpow2.f32 %v3385_v47  ;;  %v1082_v41 = vmul.f32 %v5042_v37, %v5028_v51  ;;  %v986_v53 = vsel %vm5079_vm9, %v5030_v16, %v982_v29  ;;  %vm1087_vm14 = vweird.f32 %v5042_v37  ;;  %v3381_v47 = vld [vmem:[%s6475_s1 + $0xe0] sm:$0xff] }
 0x3a4   :  { %3672 = vrcp.f32 %v5044_v36  ;;  %v1048_v16 = vadd.f32 %v5003_v34, %v4231_v50  ;;  %v997_v2 = vadd.f32 %v5038_v32, %v996_v27  ;;  %v1090_v29 = vand.u32 2147483647, %v5028_v51  ;;  %vm5117_vm2 = vmor %vm1086_vm15, %vm1087_vm14 }
 0x3a5   :  { %3674 = vrcp.f32 %v5040_v35  ;;  %v1083_v39 = vsub.f32 1.0, %v1082_v41  ;;  %v1005_v41 = vor.u32 1.1754944e-38, %v1004_v44  ;;  %v1092_v44 = vand.u32 2147483648, %v5028_v51 }
 0x3a6   :  { %v952_v55 = vpop.f32.mrf.mxu3  ;;  %3676 = vrcp.f32 %v5046_v48  ;;  %vm1101_vm3 = vweird.f32 %v5044_v36  ;;  %v1107_v27 = vand.u32 2147483648, %v5044_v36  ;;  %v1001_v21 = vsel %vm5127_vm4, %v5038_v32, %v997_v2 }
 0x3a7   :  { %v1112_v57 = vadd.f32 %v3380_v60, %v952_v55  ;;  %v1084_v13 = vmul.f32 %v5042_v37, %v1083_v39  ;;  %vm1091_vm6 = vcmp.eq.f32.partialorder %v1090_v29, 8.507059e+37 }
 0x3a9   :  { %v3671_v45 = vpop.eup %3670  ;;  %v3386_v15 = vmul.f32 -1.442695, %v1112_v57  ;;  %v1085_v52 = vadd.f32 %v5042_v37, %v1084_v13  ;;  %v1093_v57 = vor.u32 1.1754944e-38, %v1092_v44  ;;  %v1108_v44 = vor.u32 1.1754944e-38, %v1107_v27 }
 0x3aa   :  { %v5062_v0 = vpop.eup %3672  ;;  %v5066_v61 = vadd.f32 1.0, %v3671_v45 }
 0x3ab   :  { %v5068_v12 = vpop.eup %3674  ;;  %3678 = vpow2.f32 %v3386_v15  ;;  %v1097_v26 = vmul.f32 %v5062_v0, %v5044_v36  ;;  %vm1102_vm1 = vweird.f32 %v5062_v0 }
 0x3ac   :  { %3680 = vrcp.f32 %v5066_v61  ;;  %v5077_v62 = vpop.eup %3676  ;;  %v1034_v60 = vmul.f32 %v5068_v12, %v5040_v35  ;;  %vm5144_vm5 = vmor %vm1101_vm3, %vm1102_vm1  ;;  %v1130_v39 = vand.u32 2147483647, %v5066_v61  ;;  %v1132_v27 = vand.u32 2147483648, %v5066_v61 }
 0x3ad   :  { %v1098_v7 = vsub.f32 1.0, %v1097_v26  ;;  %v1019_v17 = vmul.f32 %v5077_v62, %v5046_v48  ;;  %vm1024_vm11 = vweird.f32 %v5077_v62  ;;  %vm1126_vm12 = vweird.f32 %v5066_v61 }
 0x3ae   :  { %v955_v55 = vpop.f32.mrf.mxu3  ;;  %v1035_v26 = vsub.f32 1.0, %v1034_v60  ;;  %v1089_v60 = vsel %vm5117_vm2, %v5042_v37, %v1085_v52  ;;  %v1049_v37 = vadd.f32 %v5008_v56, %v4196_v18  ;;  %v991_v52 = vsel %vm5083_vm10, %v990_v38, %v986_v53  ;;  %vm5209_vm3 = vmor %vm1023_vm7, %vm1024_vm11 }
 0x3af   :  { %v1099_v45 = vmul.f32 %v5062_v0, %v1098_v7  ;;  %v1020_v30 = vsub.f32 1.0, %v1019_v17  ;;  %v1094_v17 = vsel %vm1091_vm6, %v1093_v57, %v1089_v60  ;;  %v1050_v63 = vmul.f32 %v1048_v16, %v991_v52 }
 0x3b0   :  { %v1036_v32 = vmul.f32 %v5068_v12, %v1035_v26  ;;  %vm1039_vm10 = vweird.f32 %v5068_v12  ;;  %vm1131_vm1 = vcmp.eq.f32.partialorder %v1130_v39, 8.507059e+37 }
 0x3b1   :  { %v3679_v15 = vpop.eup %3678  ;;  %v1100_v5 = vadd.f32 %v5062_v0, %v1099_v45  ;;  %v1151_v45 = vadd.f32 %v955_v55, %v4269_v28  ;;  %v1021_v29 = vmul.f32 %v5077_v62, %v1020_v30 }
 0x3b2   :  { %v5113_v13 = vpop.eup %3680  ;;  %v5115_v22 = vadd.f32 1.0, %v3679_v15  ;;  %v1105_v15 = vand.u32 2147483647, %v5044_v36  ;;  %v1037_v16 = vadd.f32 %v5068_v12, %v1036_v32 }
 0x3b3   :  { %v1122_v7 = vmul.f32 %v5113_v13, %v5066_v61  ;;  %v1104_v36 = vsel %vm5144_vm5, %v5062_v0, %v1100_v5  ;;  %v1153_v51 = vmul.f32 %v1151_v45, %v1094_v17  ;;  %v1006_v0 = vsel %vm5096_vm13, %v1005_v41, %v1001_v21  ;;  %v3382_v5 = vld [vmem:[%s6475_s1 + $0xe8] sm:$0xff]  ;;  %v3372_v41 = vld [vmem:[%s6474_s0 + $0xb8] sm:$0xff] }
 0x3b4   :  { %3682 = vrcp.f32 %v5115_v22  ;;  %vm1106_vm8 = vcmp.eq.f32.partialorder %v1105_v15, 8.507059e+37  ;;  %v1051_v53 = vmul.f32 %v1049_v37, %v1006_v0  ;;  %vm1127_vm9 = vweird.f32 %v5113_v13 }
 0x3b5   :  { %v1123_v55 = vsub.f32 1.0, %v1122_v7  ;;  %v1109_v38 = vsel %vm1106_vm8, %v1108_v44, %v1104_v36  ;;  %v1155_v60 = vadd.f32 %v3381_v47, %v1153_v51  ;;  %vm1038_vm13 = vweird.f32 %v5040_v35  ;;  %vm5185_vm14 = vmor %vm1126_vm12, %vm1127_vm9  ;;  %v3371_v36 = vld [vmem:[%s6474_s0 + $0xb0] sm:$0xff] }
 0x3b6   :  { %v958_v2 = vpop.f32.mrf.mxu3  ;;  %v1042_v45 = vand.u32 2147483647, %v5040_v35  ;;  %v1044_v15 = vand.u32 2147483648, %v5040_v35  ;;  %vm5190_vm15 = vmor %vm1038_vm13, %vm1039_vm10  ;;  %v1053_v32 = vadd.f32 %v3372_v41, %v1051_v53  ;;  %v1147_v44 = vand.u32 2147483648, %v5115_v22 }
 0x3b7   :  { %v1124_v34 = vmul.f32 %v5113_v13, %v1123_v55  ;;  %v1152_v56 = vadd.f32 %v958_v2, %v4209_v31  ;;  %v1022_v55 = vadd.f32 %v5077_v62, %v1021_v29  ;;  %v1041_v17 = vsel %vm5190_vm15, %v5068_v12, %v1037_v16 }
 0x3b8   :  { %v1133_v2 = vor.u32 1.1754944e-38, %v1132_v27  ;;  %v1145_v51 = vand.u32 2147483647, %v5115_v22  ;;  %3684 = vtanh.f32 %v1155_v60  ;;  %v1052_v29 = vadd.f32 %v3371_v36, %v1050_v63 }
 0x3b9   :  { %v1125_v57 = vadd.f32 %v5113_v13, %v1124_v34  ;;  %v1154_v26 = vmul.f32 %v1152_v56, %v1109_v38  ;;  %v1026_v0 = vsel %vm5209_vm3, %v5077_v62, %v1022_v55  ;;  %vm1043_vm4 = vcmp.eq.f32.partialorder %v1042_v45, 8.507059e+37  ;;  %v2663_v56 = vld [vmem:[%s6469_s5] sm:$0xff] }
 0x3ba   :  { %v3683_v30 = vpop.eup %3682  ;;  %vm1141_vm5 = vweird.f32 %v5115_v22  ;;  %v6597_v38 = vand.u32 2147483648, %v5046_v48  ;;  %v6598_v63 = vand.u32 2147483647, %v5046_v48  ;;  %vm1146_vm8 = vcmp.eq.f32.partialorder %v1145_v51, 8.507059e+37 }
 0x3bb   :  { %v1137_v7 = vmul.f32 %v3683_v30, %v5115_v22  ;;  %v1156_v37 = vadd.f32 %v3382_v5, %v1154_v26  ;;  %v1129_v35 = vsel %vm5185_vm14, %v5113_v13, %v1125_v57  ;;  %vm1142_vm2 = vweird.f32 %v3683_v30 }
 0x3bc   :  { %v1045_v13 = vor.u32 1.1754944e-38, %v1044_v15  ;;  %v1134_v12 = vsel %vm1131_vm1, %v1133_v2, %v1129_v35  ;;  %v1030_v53 = vor.u32 1.1754944e-38, %v6597_v38  ;;  %vm1143_vm6 = vmor %vm1141_vm5, %vm1142_vm2  ;;  %v1148_v5 = vor.u32 1.1754944e-38, %v1147_v44 }
 0x3bd   :  { %v1138_v52 = vsub.f32 1.0, %v1137_v7  ;;  %3686 = vtanh.f32 %v1156_v37  ;;  %vm1028_vm7 = vcmp.eq.f32.partialorder %v6598_v63, 8.507059e+37  ;;  %v1159_v26 = vsub.f32 1.0, %v1134_v12 }
 0x3be   :  { %v1046_v57 = vsel %vm1043_vm4, %v1045_v13, %v1041_v17  ;;  %3688 = vtanh.f32 %v1053_v32  ;;  %v1031_v41 = vsel %vm1028_vm7, %v1030_v53, %v1026_v0  ;;  %v3685_v39 = vpop.eup %3684  ;;  %v1163_v48 = vmul.f32 %v1134_v12, %v4925_v43 }
 0x3bf   :  { %v1139_v34 = vmul.f32 %v3683_v30, %v1138_v52  ;;  %3690 = vtanh.f32 %v1052_v29  ;;  %v1057_v27 = vsub.f32 1.0, %v1046_v57  ;;  %v1056_v60 = vsub.f32 1.0, %v1031_v41 }
 0x3c0   :  { %v1161_v45 = vmul.f32 %v3685_v39, %v1159_v26  ;;  %v1061_v52 = vmul.f32 %v1046_v57, %v4929_v8  ;;  %v1060_v17 = vmul.f32 %v1031_v41, %v4933_v11 }
 0x3c1   :  { %v1140_v47 = vadd.f32 %v3683_v30, %v1139_v34 }
 0x3c2   :  { %v5227_v32 = vadd.f32 %v1163_v48, %v1161_v45  ;;  %v3401_v48 = vld [vmem:[%s6474_s0 + $0xd0] sm:$0xff] }
 0x3c3   :  { %v1144_v16 = vsel %vm1143_vm6, %v3683_v30, %v1140_v47  ;;  %v3687_v7 = vpop.eup %3686 }
 0x3c4   :  { %v1149_v62 = vsel %vm1146_vm8, %v1148_v5, %v1144_v16  ;;  %v3689_v37 = vpop.eup %3688  ;;  %6600 = vst [vmem:[#allocation17_spill] sm:$0xff] %v5227_v32 }
 0x3c5   :  { %v1160_v22 = vsub.f32 1.0, %v1149_v62  ;;  %v1164_v21 = vmul.f32 %v1149_v62, %v4921_v58  ;;  %v1059_v55 = vmul.f32 %v3689_v37, %v1057_v27  ;;  %v3691_v36 = vpop.eup %3690  ;;  %v3409_v37 = vld [vmem:[%s6475_s1 + $0x90] sm:$0xff] }
 0x3c6   :  { %v1058_v30 = vmul.f32 %v3691_v36, %v1056_v60  ;;  %v3400_v60 = vld [vmem:[%s6474_s0 + $0xc8] sm:$0xff] }
 0x3c7   :  { %v1162_v15 = vmul.f32 %v3687_v7, %v1160_v22  ;;  %v5231_v35 = vadd.f32 %v1061_v52, %v1059_v55  ;;  %v3402_v55 = vld [vmem:[%s6474_s0 + $0xd8] sm:$0xff] }
 0x3c8   :  { %v5235_v2 = vadd.f32 %v1060_v17, %v1058_v30 }
 0x3c9   :  { %v5223_v61 = vadd.f32 %v1164_v21, %v1162_v15  ;;  %6601 = vst [vmem:[#allocation18_spill] sm:$0xff] %v5231_v35 }
 0x3ca   :  { %6602 = vst [vmem:[#allocation19_spill] sm:$0xff] %v5235_v2 }
 0x3cb   :  { %6599 = vst [vmem:[#allocation16_spill] sm:$0xff] %v5223_v61  ;;  %1185 = vmatpush.msrb.mxu0 %v5223_v61 }
 0x3cd   :  { %1186 = vmatpush.msrb.mxu0 %v5227_v32 }
 0x3cf   :  { %1187 = vmatpush.msrb.mxu0 %v5231_v35 }
 0x3d1   :  { %1188 = vmatpush.msrb.mxu0 %v5235_v2 }
 0x3d2   :  { %3387 = vmatmul.msk.f32.vlgmr.msrb.gmra.mxu0 %vm78_vm0, %v4657_v4  ;;  %v2610_v4 = vld [vmem:[%s6470_s4 + $0x18] sm:$0xff] }
 0x3d3   :  { %2628 = vperm.xlu2 %3531, %v2610_v4  }
 0x3da   :  { %3388 = vmatmul.msk.f32.gmra.mxu0 %vm78_vm0, %v4664_v9  ;;  %v2609_v9 = vld [vmem:[%s6470_s4 + $0x10] sm:$0xff] }
 0x3db   :  { %2623 = vperm.xlu2 %3531, %v2609_v9  }
 0x3e2   :  { %3389 = vmatmul.msk.f32.gmra.mxu0 %vm78_vm0, %v4671_v24  ;;  %v3399_v24 = vld [vmem:[%s6474_s0 + $0xc0] sm:$0xff] }
 0x3ea   :  { %3390 = vmatmul.msk.f32.gmra.mxu0 %vm78_vm0, %v4678_v33  ;;  %v2665_v33 = vld [vmem:[%s6469_s5 + $0x10] sm:$0xff] }
 0x3eb   :  { %2679 = vperm.xlu2 %3531, %v2665_v33   ;;  %v3410_v33 = vld [vmem:[%s6475_s1 + $0x98] sm:$0xff] }
 0x3f2   :  { %3391 = vmatmul.msk.f32.gmra.mxu0 %vm78_vm0, %v4947_v14 }
 0x3f3   :  { %2669 = vperm.xlu2 %3531, %v2663_v56  }
 0x3fa   :  { %3392 = vmatmul.msk.f32.gmra.mxu0 %vm78_vm0, %v4954_v59 }
 0x402   :  { %3393 = vmatmul.msk.f32.gmra.mxu0 %vm78_vm0, %v4961_v20 }
 0x40a   :  { %3394 = vmatmul.msk.f32.gmra.mxu0 %vm78_vm0, %v4968_v23 }
 0x412   :  { %3395 = vmatmul.msk.f32.gmra.mxu0 %vm78_vm0, %v4975_v42 }
 0x41a   :  { %3396 = vmatmul.msk.f32.gmra.mxu0 %vm78_vm0, %v4982_v25 }
 0x422   :  { %3397 = vmatmul.msk.f32.gmra.mxu0 %vm78_vm0, %v4989_v46 }
 0x42a   :  { %3398 = vmatmul.msk.f32.gmra.mxu0 %vm78_vm0, %v4996_v54 }
 0x44f   :  { %v1190_v44 = vpop.f32.mrf.mxu0 }
 0x450   :  { %v1233_v34 = vadd.f32 %v3399_v24, %v1190_v44 }
 0x452   :  { %v3405_v51 = vmul.f32 -1.442695, %v1233_v34 }
 0x454   :  { %3692 = vpow2.f32 %v3405_v51 }
 0x457   :  { %v1193_v13 = vpop.f32.mrf.mxu0 }
 0x458   :  { %v1234_v45 = vadd.f32 %v3400_v60, %v1193_v13  ;;  %v3412_v60 = vld [vmem:[%s6475_s1 + $0xa8] sm:$0xff] }
 0x45a   :  { %v3693_v29 = vpop.eup %3692  ;;  %v3406_v21 = vmul.f32 -1.442695, %v1234_v45 }
 0x45b   :  { %v1241_v12 = vadd.f32 1.0, %v3693_v29 }
 0x45d   :  { %3694 = vrcp.f32 %v1241_v12  ;;  %v1254_v26 = vand.u32 2147483648, %v1241_v12  ;;  %vm1248_vm10 = vweird.f32 %v1241_v12  ;;  %v1252_v16 = vand.u32 2147483647, %v1241_v12 }
 0x45e   :  { %3696 = vpow2.f32 %v3406_v21 }
 0x45f   :  { %v1196_v0 = vpop.f32.mrf.mxu0  ;;  %v1255_v39 = vor.u32 1.1754944e-38, %v1254_v26  ;;  %vm1253_vm12 = vcmp.eq.f32.partialorder %v1252_v16, 8.507059e+37 }
 0x460   :  { %v1273_v17 = vadd.f32 %v3401_v48, %v1196_v0  ;;  %v3411_v0 = vld [vmem:[%s6475_s1 + $0xa0] sm:$0xff] }
 0x462   :  { %v3407_v44 = vmul.f32 -1.442695, %v1273_v17 }
 0x463   :  { %v3695_v47 = vpop.eup %3694 }
 0x464   :  { %v1244_v38 = vmul.f32 %v3695_v47, %v1241_v12  ;;  %vm1249_vm9 = vweird.f32 %v3695_v47  ;;  %v3697_v9 = vpop.eup %3696 }
 0x465   :  { %vm1250_vm11 = vmor %vm1248_vm10, %vm1249_vm9  ;;  %v5297_v34 = vadd.f32 1.0, %v3697_v9 }
 0x466   :  { %v1245_v53 = vsub.f32 1.0, %v1244_v38 }
 0x467   :  { %v1199_v57 = vpop.f32.mrf.mxu0  ;;  %v1269_v9 = vand.u32 2147483648, %v5297_v34  ;;  %vm1263_vm13 = vweird.f32 %v5297_v34 }
 0x468   :  { %v1246_v5 = vmul.f32 %v3695_v47, %v1245_v53  ;;  %v1274_v52 = vadd.f32 %v3402_v55, %v1199_v57 }
 0x46a   :  { %v1247_v63 = vadd.f32 %v3695_v47, %v1246_v5  ;;  %v3408_v24 = vmul.f32 -1.442695, %v1274_v52  ;;  %v1267_v52 = vand.u32 2147483647, %v5297_v34 }
 0x46c   :  { %v1251_v41 = vsel %vm1250_vm11, %v3695_v47, %v1247_v63  ;;  %vm5344_vm14 = vcmp.eq.f32.partialorder %v1267_v52, 8.507059e+37 }
 0x46d   :  { %v1256_v22 = vsel %vm1253_vm12, %v1255_v39, %v1251_v41 }
 0x46f   :  { %v1202_v62 = vpop.f32.mrf.mxu0 }
 0x470   :  { %v1313_v27 = vadd.f32 %v1202_v62, %v4231_v50 }
 0x472   :  { %v5278_v7 = vmul.f32 %v1313_v27, %v1256_v22 }
 0x477   :  { %v5283_v15 = vpop.f32.mrf.mxu0 }
 0x47f   :  { %v1208_v36 = vpop.f32.mrf.mxu0 }
 0x480   :  { %v1336_v30 = vadd.f32 %v3409_v37, %v1208_v36 }
 0x482   :  { %v3415_v4 = vmul.f32 -1.442695, %v1336_v30 }
 0x484   :  { %3698 = vpow2.f32 %v3415_v4 }
 0x485   :  { %3700 = vpow2.f32 %v3408_v24 }
 0x486   :  { %3702 = vpow2.f32 %v3407_v44 }
 0x487   :  { %v1211_v51 = vpop.f32.mrf.mxu0  ;;  %3704 = vrcp.f32 %v5297_v34 }
 0x488   :  { %v1337_v56 = vadd.f32 %v3410_v33, %v1211_v51 }
 0x48a   :  { %v3699_v13 = vpop.eup %3698  ;;  %v3416_v29 = vmul.f32 -1.442695, %v1337_v56 }
 0x48b   :  { %v5300_v12 = vadd.f32 1.0, %v3699_v13  ;;  %v3701_v47 = vpop.eup %3700 }
 0x48c   :  { %3706 = vpow2.f32 %v3416_v29  ;;  %v3703_v53 = vpop.eup %3702  ;;  %v5308_v26 = vadd.f32 1.0, %v3701_v47  ;;  %v1270_v47 = vor.u32 1.1754944e-38, %v1269_v9 }
 0x48d   :  { %3708 = vrcp.f32 %v5300_v12  ;;  %v5306_v5 = vpop.eup %3704  ;;  %v5314_v39 = vadd.f32 1.0, %v3703_v53  ;;  %vm1351_vm2 = vweird.f32 %v5300_v12 }
 0x48e   :  { %v1259_v22 = vmul.f32 %v5306_v5, %v5297_v34  ;;  %vm1264_vm1 = vweird.f32 %v5306_v5 }
 0x48f   :  { %v1214_v38 = vpop.f32.mrf.mxu0  ;;  %vm5372_vm6 = vmor %vm1263_vm13, %vm1264_vm1  ;;  %vm1288_vm9 = vweird.f32 %v5314_v39 }
 0x490   :  { %v1376_v57 = vadd.f32 %v3411_v0, %v1214_v38  ;;  %v1260_v55 = vsub.f32 1.0, %v1259_v22  ;;  %v1355_v22 = vand.u32 2147483647, %v5300_v12  ;;  %v3404_v0 = vld [vmem:[%s6474_s0 + $0xe8] sm:$0xff] }
 0x492   :  { %v3707_v63 = vpop.eup %3706  ;;  %v3417_v16 = vmul.f32 -1.442695, %v1376_v57  ;;  %v1261_v44 = vmul.f32 %v5306_v5, %v1260_v55  ;;  %vm1356_vm8 = vcmp.eq.f32.partialorder %v1355_v22, 8.507059e+37  ;;  %v1294_v22 = vand.u32 2147483648, %v5314_v39 }
 0x493   :  { %v5310_v41 = vpop.eup %3708  ;;  %v5312_v62 = vadd.f32 1.0, %v3707_v63 }
 0x494   :  { %3710 = vpow2.f32 %v3417_v16  ;;  %v1347_v27 = vmul.f32 %v5310_v41, %v5300_v12  ;;  %vm1352_vm15 = vweird.f32 %v5310_v41  ;;  %v1262_v63 = vadd.f32 %v5306_v5, %v1261_v44 }
 0x495   :  { %3712 = vrcp.f32 %v5312_v62  ;;  %v1357_v16 = vand.u32 2147483648, %v5300_v12  ;;  %vm5364_vm4 = vmor %vm1351_vm2, %vm1352_vm15  ;;  %vm1366_vm5 = vweird.f32 %v5312_v62  ;;  %v3414_v12 = vld [vmem:[%s6475_s1 + $0xb8] sm:$0xff]  ;;  %vm1303_vm15 = vweird.f32 %v5308_v26 }
 0x496   :  { %3714 = vrcp.f32 %v5308_v26  ;;  %v1348_v37 = vsub.f32 1.0, %v1347_v27  ;;  %v1266_v34 = vsel %vm5372_vm6, %v5306_v5, %v1262_v63  ;;  %v1292_v5 = vand.u32 2147483647, %v5314_v39 }
 0x497   :  { %v1217_v45 = vpop.f32.mrf.mxu0  ;;  %3716 = vrcp.f32 %v5314_v39  ;;  %v1358_v44 = vor.u32 1.1754944e-38, %v1357_v16 }
 0x498   :  { %v1377_v21 = vadd.f32 %v3412_v60, %v1217_v45  ;;  %v1349_v24 = vmul.f32 %v5310_v41, %v1348_v37 }
 0x49a   :  { %v3711_v48 = vpop.eup %3710  ;;  %v3418_v36 = vmul.f32 -1.442695, %v1377_v21  ;;  %v1350_v38 = vadd.f32 %v5310_v41, %v1349_v24  ;;  %v1370_v24 = vand.u32 2147483647, %v5312_v62 }
 0x49b   :  { %v5326_v30 = vpop.eup %3712  ;;  %v5329_v17 = vadd.f32 1.0, %v3711_v48  ;;  %v1372_v48 = vand.u32 2147483648, %v5312_v62 }
 0x49c   :  { %v5331_v4 = vpop.eup %3714  ;;  %3718 = vpow2.f32 %v3418_v36  ;;  %v1362_v33 = vmul.f32 %v5326_v30, %v5312_v62  ;;  %vm1367_vm3 = vweird.f32 %v5326_v30  ;;  %v1354_v52 = vsel %vm5364_vm4, %v5310_v41, %v1350_v38 }
 0x49d   :  { %3720 = vrcp.f32 %v5329_v17  ;;  %v5339_v51 = vpop.eup %3716  ;;  %v1299_v13 = vmul.f32 %v5331_v4, %v5308_v26  ;;  %vm5389_vm7 = vmor %vm1366_vm5, %vm1367_vm3  ;;  %v1314_v41 = vadd.f32 %v5283_v15, %v4196_v18  ;;  %v1359_v38 = vsel %vm1356_vm8, %v1358_v44, %v1354_v52 }
 0x49e   :  { %v1363_v56 = vsub.f32 1.0, %v1362_v33  ;;  %v1284_v57 = vmul.f32 %v5339_v51, %v5314_v39  ;;  %vm1371_vm10 = vcmp.eq.f32.partialorder %v1370_v24, 8.507059e+37  ;;  %vm1304_vm12 = vweird.f32 %v5331_v4 }
 0x49f   :  { %v1220_v29 = vpop.f32.mrf.mxu0  ;;  %v1300_v21 = vsub.f32 1.0, %v1299_v13  ;;  %v1397_v24 = vand.u32 2147483648, %v5329_v17  ;;  %vm1289_vm13 = vweird.f32 %v5339_v51  ;;  %v1307_v44 = vand.u32 2147483647, %v5308_v26  ;;  %vm5435_vm2 = vmor %vm1303_vm15, %vm1304_vm12 }
 0x4a0   :  { %v1364_v53 = vmul.f32 %v5326_v30, %v1363_v56  ;;  %v1416_v9 = vadd.f32 %v1220_v29, %v4269_v28  ;;  %v1285_v33 = vsub.f32 1.0, %v1284_v57  ;;  %v1373_v57 = vor.u32 1.1754944e-38, %v1372_v48  ;;  %vm5454_vm5 = vmor %vm1288_vm9, %vm1289_vm13 }
 0x4a1   :  { %v1301_v29 = vmul.f32 %v5331_v4, %v1300_v21  ;;  %v1309_v56 = vand.u32 2147483648, %v5308_v26  ;;  %vm1308_vm6 = vcmp.eq.f32.partialorder %v1307_v44, 8.507059e+37  ;;  %vm1293_vm9 = vcmp.eq.f32.partialorder %v1292_v5, 8.507059e+37 }
 0x4a2   :  { %v3719_v27 = vpop.eup %3718  ;;  %v1365_v60 = vadd.f32 %v5326_v30, %v1364_v53  ;;  %v1418_v16 = vmul.f32 %v1416_v9, %v1359_v38 }
 0x4a3   :  { %v5360_v45 = vpop.eup %3720  ;;  %v5362_v37 = vadd.f32 1.0, %v3719_v27  ;;  %v1286_v27 = vmul.f32 %v5339_v51, %v1285_v33  ;;  %v1302_v9 = vadd.f32 %v5331_v4, %v1301_v29  ;;  %v3403_v29 = vld [vmem:[%s6474_s0 + $0xe0] sm:$0xff] }
 0x4a4   :  { %v1387_v36 = vmul.f32 %v5360_v45, %v5329_v17  ;;  %v1369_v62 = vsel %vm5389_vm7, %v5326_v30, %v1365_v60  ;;  %v1271_v30 = vsel %vm5344_vm14, %v1270_v47, %v1266_v34  ;;  %v3413_v60 = vld [vmem:[%s6475_s1 + $0xb0] sm:$0xff]  ;;  %vm1392_vm11 = vweird.f32 %v5360_v45 }
 0x4a5   :  { %3722 = vrcp.f32 %v5362_v37  ;;  %v1374_v21 = vsel %vm1371_vm10, %v1373_v57, %v1369_v62  ;;  %v1316_v55 = vmul.f32 %v1314_v41, %v1271_v30  ;;  %v1395_v47 = vand.u32 2147483647, %v5329_v17 }
 0x4a6   :  { %v1388_v13 = vsub.f32 1.0, %v1387_v36  ;;  %vm1391_vm14 = vweird.f32 %v5329_v17  ;;  %v1420_v34 = vadd.f32 %v3413_v60, %v1418_v16  ;;  %v1287_v62 = vadd.f32 %v5339_v51, %v1286_v27 }
 0x4a7   :  { %v1223_v53 = vpop.f32.mrf.mxu0  ;;  %vm5430_vm1 = vmor %vm1391_vm14, %vm1392_vm11  ;;  %v1318_v38 = vadd.f32 %v3404_v0, %v1316_v55  ;;  %v1306_v57 = vsel %vm5435_vm2, %v5331_v4, %v1302_v9  ;;  %vm1396_vm3 = vcmp.eq.f32.partialorder %v1395_v47, 8.507059e+37  ;;  %v1412_v16 = vand.u32 2147483648, %v5362_v37 }
 0x4a8   :  { %v1389_v63 = vmul.f32 %v5360_v45, %v1388_v13  ;;  %v1417_v15 = vadd.f32 %v1223_v53, %v4209_v31  ;;  %v1410_v27 = vand.u32 2147483647, %v5362_v37  ;;  %3724 = vtanh.f32 %v1420_v34 }
 0x4a9   :  { %v1317_v4 = vadd.f32 %v3403_v29, %v5278_v7  ;;  %vm1406_vm7 = vweird.f32 %v5362_v37  ;;  %v1413_v39 = vor.u32 1.1754944e-38, %v1412_v16  ;;  %v5497_v16 = vld [vmem:[%s6467_s2 + $0x10] sm:$0xff] }
 0x4aa   :  { %v1390_v48 = vadd.f32 %v5360_v45, %v1389_v63  ;;  %v1419_v36 = vmul.f32 %v1417_v15, %v1374_v21  ;;  %v1398_v63 = vor.u32 1.1754944e-38, %v1397_v24  ;;  %v1291_v21 = vsel %vm5454_vm5, %v5339_v51, %v1287_v62 }
 0x4ab   :  { %v3723_v52 = vpop.eup %3722  ;;  %vm1411_vm10 = vcmp.eq.f32.partialorder %v1410_v27, 8.507059e+37 }
 0x4ac   :  { %v1402_v33 = vmul.f32 %v3723_v52, %v5362_v37  ;;  %v1421_v13 = vadd.f32 %v3414_v12, %v1419_v36  ;;  %v1394_v26 = vsel %vm5430_vm1, %v5360_v45, %v1390_v48  ;;  %vm1407_vm4 = vweird.f32 %v3723_v52 }
 0x4ad   :  { %v1310_v45 = vor.u32 1.1754944e-38, %v1309_v56  ;;  %v1399_v60 = vsel %vm1396_vm3, %v1398_v63, %v1394_v26  ;;  %v1295_v48 = vor.u32 1.1754944e-38, %v1294_v22  ;;  %vm1408_vm8 = vmor %vm1406_vm7, %vm1407_vm4  ;;  %v5490_v63 = vld [vmem:[%s6467_s2 + $0x8] sm:$0xff] }
 0x4ae   :  { %v1403_v53 = vsub.f32 1.0, %v1402_v33  ;;  %3726 = vtanh.f32 %v1421_v13  ;;  %v1424_v36 = vsub.f32 1.0, %v1399_v60  ;;  %v3725_v47 = vpop.eup %3724  ;;  %v1428_v5 = vmul.f32 %v1399_v60, %v5227_v32 }
 0x4af   :  { %v1311_v12 = vsel %vm1308_vm6, %v1310_v45, %v1306_v57  ;;  %3728 = vtanh.f32 %v1318_v38  ;;  %v1296_v9 = vsel %vm1293_vm9, %v1295_v48, %v1291_v21  ;;  %v5483_v57 = vld [vmem:[%s6467_s2] sm:$0xff] }
 0x4b0   :  { %v1404_v15 = vmul.f32 %v3723_v52, %v1403_v53  ;;  %3730 = vtanh.f32 %v1317_v4  ;;  %v1322_v24 = vsub.f32 1.0, %v1311_v12  ;;  %v1321_v34 = vsub.f32 1.0, %v1296_v9 }
 0x4b1   :  { %v1426_v44 = vmul.f32 %v3725_v47, %v1424_v36  ;;  %v1326_v29 = vmul.f32 %v1311_v12, %v5231_v35  ;;  %v1325_v53 = vmul.f32 %v1296_v9, %v5235_v2  ;;  %v3432_v47 = vld [vmem:[%s6474_s0 + $0xf8] sm:$0xff] }
 0x4b2   :  { %v1405_v55 = vadd.f32 %v3723_v52, %v1404_v15  ;;  %v5504_v15 = vld [vmem:[%s6467_s2 + $0x18] sm:$0xff] }
 0x4b3   :  { %v5469_v17 = vadd.f32 %v1428_v5, %v1426_v44  ;;  %v3441_v44 = vld [vmem:[%s6475_s1 + $0x60] sm:$0xff] }
 0x4b4   :  { %v1409_v7 = vsel %vm1408_vm8, %v3723_v52, %v1405_v55  ;;  %v3727_v51 = vpop.eup %3726 }
 0x4b5   :  { %v1414_v0 = vsel %vm1411_vm10, %v1413_v39, %v1409_v7  ;;  %v3729_v56 = vpop.eup %3728  ;;  %6618 = vst [vmem:[#allocation21_spill] sm:$0xff] %v5469_v17 }
 0x4b6   :  { %v1425_v33 = vsub.f32 1.0, %v1414_v0  ;;  %v1429_v22 = vmul.f32 %v1414_v0, %v5223_v61  ;;  %v1324_v41 = vmul.f32 %v3729_v56, %v1322_v24  ;;  %v3731_v62 = vpop.eup %3730 }
 0x4b7   :  { %v1323_v52 = vmul.f32 %v3731_v62, %v1321_v34  ;;  %v3434_v34 = vld [vmem:[%s6474_s0 + $0x108] sm:$0xff] }
 0x4b8   :  { %v1427_v37 = vmul.f32 %v3727_v51, %v1425_v33  ;;  %v5473_v38 = vadd.f32 %v1326_v29, %v1324_v41 }
 0x4b9   :  { %v5477_v26 = vadd.f32 %v1325_v53, %v1323_v52  ;;  %v3442_v53 = vld [vmem:[%s6475_s1 + $0x68] sm:$0xff] }
 0x4ba   :  { %v5465_v13 = vadd.f32 %v1429_v22, %v1427_v37  ;;  %6619 = vst [vmem:[#allocation22_spill] sm:$0xff] %v5473_v38  ;;  %v3433_v22 = vld [vmem:[%s6474_s0 + $0x100] sm:$0xff] }
 0x4bb   :  { %6620 = vst [vmem:[#allocation23_spill] sm:$0xff] %v5477_v26 }
 0x4bc   :  { %6617 = vst [vmem:[#allocation20_spill] sm:$0xff] %v5465_v13  ;;  %1448 = vmatpush.msrb.mxu1 %v5465_v13 }
 0x4be   :  { %1449 = vmatpush.msrb.mxu1 %v5469_v17 }
 0x4c0   :  { %1450 = vmatpush.msrb.mxu1 %v5473_v38 }
 0x4c2   :  { %1451 = vmatpush.msrb.mxu1 %v5477_v26 }
 0x4c3   :  { %3419 = vmatmul.msk.f32.vlgmr.msrb.gmra.mxu1 %vm78_vm0, %v5483_v57 }
 0x4cb   :  { %3420 = vmatmul.msk.f32.gmra.mxu1 %vm78_vm0, %v5490_v63 }
 0x4d3   :  { %3421 = vmatmul.msk.f32.gmra.mxu1 %vm78_vm0, %v5497_v16 }
 0x4db   :  { %3422 = vmatmul.msk.f32.gmra.mxu1 %vm78_vm0, %v5504_v15 }
 0x4e3   :  { %3423 = vmatmul.msk.f32.gmra.mxu1 %vm78_vm0, %v4947_v14  ;;  %v3431_v14 = vld [vmem:[%s6474_s0 + $0xf0] sm:$0xff] }
 0x4eb   :  { %3424 = vmatmul.msk.f32.gmra.mxu1 %vm78_vm0, %v4954_v59 }
 0x4f3   :  { %3425 = vmatmul.msk.f32.gmra.mxu1 %vm78_vm0, %v4961_v20 }
 0x4fb   :  { %3426 = vmatmul.msk.f32.gmra.mxu1 %vm78_vm0, %v4968_v23 }
 0x503   :  { %3427 = vmatmul.msk.f32.gmra.mxu1 %vm78_vm0, %v4975_v42 }
 0x50b   :  { %3428 = vmatmul.msk.f32.gmra.mxu1 %vm78_vm0, %v4982_v25 }
 0x513   :  { %3429 = vmatmul.msk.f32.gmra.mxu1 %vm78_vm0, %v4989_v46 }
 0x51b   :  { %3430 = vmatmul.msk.f32.gmra.mxu1 %vm78_vm0, %v4996_v54 }
 0x540   :  { %v1453_v59 = vpop.f32.mrf.mxu1 }
 0x541   :  { %v1496_v20 = vadd.f32 %v3431_v14, %v1453_v59 }
 0x543   :  { %v3437_v27 = vmul.f32 -1.442695, %v1496_v20 }
 0x545   :  { %3732 = vpow2.f32 %v3437_v27 }
 0x548   :  { %v1456_v23 = vpop.f32.mrf.mxu1 }
 0x549   :  { %v1497_v24 = vadd.f32 %v3432_v47, %v1456_v23  ;;  %v3444_v47 = vld [vmem:[%s6475_s1 + $0x78] sm:$0xff] }
 0x54b   :  { %v3733_v30 = vpop.eup %3732  ;;  %v3438_v51 = vmul.f32 -1.442695, %v1497_v24 }
 0x54c   :  { %v1504_v42 = vadd.f32 1.0, %v3733_v30 }
 0x54e   :  { %3734 = vrcp.f32 %v1504_v42  ;;  %v1517_v54 = vand.u32 2147483648, %v1504_v42  ;;  %vm1511_vm12 = vweird.f32 %v1504_v42  ;;  %v1515_v48 = vand.u32 2147483647, %v1504_v42 }
 0x54f   :  { %3736 = vpow2.f32 %v3438_v51 }
 0x550   :  { %v1459_v45 = vpop.f32.mrf.mxu1  ;;  %v1518_v36 = vor.u32 1.1754944e-38, %v1517_v54  ;;  %vm1516_vm14 = vcmp.eq.f32.partialorder %v1515_v48, 8.507059e+37 }
 0x551   :  { %v1536_v5 = vadd.f32 %v3433_v22, %v1459_v45 }
 0x553   :  { %v3439_v14 = vmul.f32 -1.442695, %v1536_v5 }
 0x554   :  { %v3735_v25 = vpop.eup %3734 }
 0x555   :  { %v1507_v4 = vmul.f32 %v3735_v25, %v1504_v42  ;;  %vm1512_vm11 = vweird.f32 %v3735_v25  ;;  %v3737_v29 = vpop.eup %3736 }
 0x556   :  { %vm1513_vm13 = vmor %vm1511_vm12, %vm1512_vm11  ;;  %v5547_v59 = vadd.f32 1.0, %v3737_v29 }
 0x557   :  { %v1508_v60 = vsub.f32 1.0, %v1507_v4 }
 0x558   :  { %v1462_v46 = vpop.f32.mrf.mxu1  ;;  %vm1526_vm3 = vweird.f32 %v5547_v59 }
 0x559   :  { %v1509_v21 = vmul.f32 %v3735_v25, %v1508_v60  ;;  %v1537_v37 = vadd.f32 %v3434_v34, %v1462_v46 }
 0x55b   :  { %v1510_v55 = vadd.f32 %v3735_v25, %v1509_v21  ;;  %v3440_v62 = vmul.f32 -1.442695, %v1537_v37 }
 0x55d   :  { %v1514_v12 = vsel %vm1513_vm13, %v3735_v25, %v1510_v55  ;;  %v3443_v25 = vld [vmem:[%s6475_s1 + $0x70] sm:$0xff] }
 0x55e   :  { %v1519_v9 = vsel %vm1516_vm14, %v1518_v36, %v1514_v12 }
 0x560   :  { %v1465_v39 = vpop.f32.mrf.mxu1 }
 0x561   :  { %v1576_v7 = vadd.f32 %v1465_v39, %v4231_v50 }
 0x563   :  { %v5528_v0 = vmul.f32 %v1576_v7, %v1519_v9 }
 0x568   :  { %v5533_v33 = vpop.f32.mrf.mxu1 }
 0x570   :  { %v1471_v56 = vpop.f32.mrf.mxu1 }
 0x571   :  { %v1599_v41 = vadd.f32 %v3441_v44, %v1471_v56 }
 0x573   :  { %v3447_v52 = vmul.f32 -1.442695, %v1599_v41 }
 0x575   :  { %3738 = vpow2.f32 %v3447_v52 }
 0x576   :  { %3740 = vpow2.f32 %v3440_v62 }
 0x577   :  { %3742 = vpow2.f32 %v3439_v14 }
 0x578   :  { %v1474_v20 = vpop.f32.mrf.mxu1  ;;  %3744 = vrcp.f32 %v5547_v59 }
 0x579   :  { %v1600_v27 = vadd.f32 %v3442_v53, %v1474_v20 }
 0x57b   :  { %v3739_v23 = vpop.eup %3738  ;;  %v3448_v30 = vmul.f32 -1.442695, %v1600_v27 }
 0x57c   :  { %v1607_v42 = vadd.f32 1.0, %v3739_v23  ;;  %v3741_v45 = vpop.eup %3740 }
 0x57d   :  { %3746 = vpow2.f32 %v3448_v30  ;;  %v5553_v4 = vadd.f32 1.0, %v3741_v45  ;;  %v3743_v46 = vpop.eup %3742 }
 0x57e   :  { %3748 = vrcp.f32 %v1607_v42  ;;  %v5555_v55 = vpop.eup %3744  ;;  %v5560_v36 = vadd.f32 1.0, %v3743_v46  ;;  %v1620_v29 = vand.u32 2147483648, %v1607_v42  ;;  %vm1614_vm1 = vweird.f32 %v1607_v42 }
 0x57f   :  { %3750 = vrcp.f32 %v5553_v4  ;;  %v1522_v9 = vmul.f32 %v5555_v55, %v5547_v59  ;;  %v1618_v20 = vand.u32 2147483647, %v1607_v42  ;;  %vm1527_vm4 = vweird.f32 %v5555_v55 }
 0x580   :  { %v1477_v60 = vpop.f32.mrf.mxu1  ;;  %vm5606_vm7 = vmor %vm1526_vm3, %vm1527_vm4  ;;  %vm1551_vm13 = vweird.f32 %v5560_v36  ;;  %vm1566_vm4 = vweird.f32 %v5553_v4 }
 0x581   :  { %v1639_v21 = vadd.f32 %v3443_v25, %v1477_v60  ;;  %v1523_v22 = vsub.f32 1.0, %v1522_v9  ;;  %v1530_v25 = vand.u32 2147483647, %v5547_v59  ;;  %vm1619_vm5 = vcmp.eq.f32.partialorder %v1618_v20, 8.507059e+37 }
 0x582   :  { %v3956_v20 = vmov 32.0  }
 0x583   :  { %v3747_v54 = vpop.eup %3746  ;;  %v3449_v48 = vmul.f32 -1.442695, %v1639_v21  ;;  %v1524_v14 = vmul.f32 %v5555_v55, %v1523_v22  ;;  %v1621_v21 = vor.u32 1.1754944e-38, %v1620_v29  ;;  %vm5610_vm8 = vcmp.eq.f32.partialorder %v1530_v25, 8.507059e+37 }
 0x584   :  { %v3749_v12 = vpop.eup %3748  ;;  %v5558_v39 = vadd.f32 1.0, %v3747_v54 }
 0x585   :  { %3752 = vpow2.f32 %v3449_v48  ;;  %v1610_v7 = vmul.f32 %v3749_v12, %v1607_v42  ;;  %v5569_v37 = vpop.eup %3750  ;;  %vm1615_vm15 = vweird.f32 %v3749_v12  ;;  %v1532_v42 = vand.u32 2147483648, %v5547_v59 }
 0x586   :  { %3754 = vrcp.f32 %v5558_v39  ;;  %v1562_v23 = vmul.f32 %v5569_v37, %v5553_v4  ;;  %vm5583_vm2 = vmor %vm1614_vm1, %vm1615_vm15  ;;  %v1525_v9 = vadd.f32 %v5555_v55, %v1524_v14  ;;  %v3445_v14 = vld [vmem:[%s6475_s1 + $0x80] sm:$0xff]  ;;  %vm1629_vm9 = vweird.f32 %v5558_v39 }
 0x587   :  { %v1611_v24 = vsub.f32 1.0, %v1610_v7  ;;  %3756 = vrcp.f32 %v5560_v36  ;;  %v1533_v30 = vor.u32 1.1754944e-38, %v1532_v42  ;;  %vm1567_vm1 = vweird.f32 %v5569_v37 }
 0x588   :  { %v1480_v51 = vpop.f32.mrf.mxu1  ;;  %v1529_v59 = vsel %vm5606_vm7, %v5555_v55, %v1525_v9 }
 0x589   :  { %v1640_v34 = vadd.f32 %v3444_v47, %v1480_v51  ;;  %v1612_v44 = vmul.f32 %v3749_v12, %v1611_v24  ;;  %v1563_v24 = vsub.f32 1.0, %v1562_v23 }
 0x58b   :  { %v3753_v56 = vpop.eup %3752  ;;  %v3450_v41 = vmul.f32 -1.442695, %v1640_v34  ;;  %v1613_v52 = vadd.f32 %v3749_v12, %v1612_v44  ;;  %v1564_v25 = vmul.f32 %v5569_v37, %v1563_v24 }
 0x58c   :  { %v5571_v5 = vpop.eup %3754  ;;  %v5573_v62 = vadd.f32 1.0, %v3753_v56  ;;  %v1633_v56 = vand.u32 2147483647, %v5558_v39 }
 0x58d   :  { %3758 = vpow2.f32 %v3450_v41  ;;  %v1625_v53 = vmul.f32 %v5571_v5, %v5558_v39  ;;  %v5579_v27 = vpop.eup %3756  ;;  %v1617_v46 = vsel %vm5583_vm2, %v3749_v12, %v1613_v52  ;;  %vm1630_vm6 = vweird.f32 %v5571_v5 }
 0x58e   :  { %3760 = vrcp.f32 %v5573_v62  ;;  %v1547_v7 = vmul.f32 %v5579_v27, %v5560_v36  ;;  %v1622_v51 = vsel %vm1619_vm5, %v1621_v21, %v1617_v46  ;;  %v1635_v41 = vand.u32 2147483648, %v5558_v39  ;;  %vm5625_vm10 = vmor %vm1629_vm9, %vm1630_vm6 }
 0x58f   :  { %v1626_v45 = vsub.f32 1.0, %v1625_v53  ;;  %3762 = vrcp.f32 %v3956_v20  ;;  %v1577_v39 = vadd.f32 %v5533_v33, %v4196_v18  ;;  %v1660_v55 = vand.u32 2147483648, %v5573_v62  ;;  %vm5667_vm5 = vmor %vm1566_vm4, %vm1567_vm1 }
 0x590   :  { %v1483_v60 = vpop.f32.mrf.mxu1  ;;  %v1548_v23 = vsub.f32 1.0, %v1547_v7  ;;  %vm1634_vm11 = vcmp.eq.f32.partialorder %v1633_v56, 8.507059e+37  ;;  %v1658_v7 = vand.u32 2147483647, %v5573_v62  ;;  %vm1552_vm14 = vweird.f32 %v5579_v27 }
 0x591   :  { %v1679_v54 = vadd.f32 %v1483_v60, %v4269_v28  ;;  %v1627_v48 = vmul.f32 %v5571_v5, %v1626_v45  ;;  %v1534_v33 = vsel %vm5610_vm8, %v1533_v30, %v1529_v59  ;;  %vm1654_vm15 = vweird.f32 %v5573_v62  ;;  %vm5680_vm7 = vmor %vm1551_vm13, %vm1552_vm14 }
 0x592   :  { %v1549_v24 = vmul.f32 %v5579_v27, %v1548_v23  ;;  %v1661_v52 = vor.u32 1.1754944e-38, %v1660_v55  ;;  %v1565_v29 = vadd.f32 %v5569_v37, %v1564_v25  ;;  %vm1659_vm3 = vcmp.eq.f32.partialorder %v1658_v7, 8.507059e+37  ;;  %v3435_v25 = vld [vmem:[%s6474_s0 + $0x110] sm:$0xff] }
 0x593   :  { %v3759_v47 = vpop.eup %3758  ;;  %v1628_v12 = vadd.f32 %v5571_v5, %v1627_v48  ;;  %v1681_v22 = vmul.f32 %v1679_v54, %v1622_v51  ;;  %v1636_v54 = vor.u32 1.1754944e-38, %v1635_v41  ;;  %v1579_v41 = vmul.f32 %v1577_v39, %v1534_v33 }
 0x594   :  { %v3761_v34 = vpop.eup %3760  ;;  %v5600_v44 = vadd.f32 1.0, %v3759_v47  ;;  %v1570_v20 = vand.u32 2147483647, %v5553_v4  ;;  %v1572_v23 = vand.u32 2147483648, %v5553_v4  ;;  %v1550_v45 = vadd.f32 %v5579_v27, %v1549_v24 }
 0x595   :  { %v1650_v53 = vmul.f32 %v3761_v34, %v5573_v62  ;;  %v1632_v46 = vsel %vm5625_vm10, %v5571_v5, %v1628_v12  ;;  %v1683_v42 = vadd.f32 %v3445_v14, %v1681_v22  ;;  %vm1655_vm12 = vweird.f32 %v3761_v34  ;;  %v5642_v47 = vpop.eup %3762  ;;  %v3446_v12 = vld [vmem:[%s6475_s1 + $0x88] sm:$0xff] }
 0x596   :  { %3764 = vrcp.f32 %v5600_v44  ;;  %v1637_v5 = vsel %vm1634_vm11, %v1636_v54, %v1632_v46  ;;  %vm1656_vm2 = vmor %vm1654_vm15, %vm1655_vm12  ;;  %v1555_v46 = vand.u32 2147483647, %v5560_v36  ;;  %v1569_v4 = vsel %vm5667_vm5, %v5569_v37, %v1565_v29 }
 0x597   :  { %v1651_v60 = vsub.f32 1.0, %v1650_v53  ;;  %3766 = vtanh.f32 %v1683_v42  ;;  %v3436_v53 = vld [vmem:[%s6474_s0 + $0x118] sm:$0xff]  ;;  %vm1571_vm8 = vcmp.eq.f32.partialorder %v1570_v20, 8.507059e+37  ;;  %v1573_v33 = vor.u32 1.1754944e-38, %v1572_v23 }
 0x598   :  { %v1486_v21 = vpop.f32.mrf.mxu1  ;;  %v1581_v42 = vadd.f32 %v3436_v53, %v1579_v41  ;;  %v1554_v37 = vsel %vm5680_vm7, %v5579_v27, %v1550_v45  ;;  %vm1669_vm9 = vweird.f32 %v5600_v44  ;;  %vm1556_vm11 = vcmp.eq.f32.partialorder %v1555_v46, 8.507059e+37 }
 0x599   :  { %v1652_v48 = vmul.f32 %v3761_v34, %v1651_v60  ;;  %v1680_v9 = vadd.f32 %v1486_v21, %v4209_v31  ;;  %v1675_v21 = vand.u32 2147483648, %v5600_v44  ;;  %vm2333_vm13 = vweird.f32 %v5642_v47 }
 0x59b   :  { %v1653_v51 = vadd.f32 %v3761_v34, %v1652_v48  ;;  %v1682_v22 = vmul.f32 %v1680_v9, %v1637_v5  ;;  %v1673_v48 = vand.u32 2147483647, %v5600_v44  ;;  %v1580_v5 = vadd.f32 %v3435_v25, %v5528_v0 }
 0x59c   :  { %v3765_v56 = vpop.eup %3764 }
 0x59d   :  { %v1665_v62 = vmul.f32 %v3765_v56, %v5600_v44  ;;  %v1657_v14 = vsel %vm1656_vm2, %v3761_v34, %v1653_v51  ;;  %v1684_v30 = vadd.f32 %v3446_v12, %v1682_v22  ;;  %v1557_v34 = vand.u32 2147483648, %v5560_v36  ;;  %v3767_v7 = vpop.eup %3766 }
 0x59e   :  { %v1662_v59 = vsel %vm1659_vm3, %v1661_v52, %v1657_v14  ;;  %vm1670_vm6 = vweird.f32 %v3765_v56  ;;  %v1574_v22 = vsel %vm1571_vm8, %v1573_v33, %v1569_v4  ;;  %v1676_v36 = vor.u32 1.1754944e-38, %v1675_v21 }
 0x59f   :  { %v1666_v39 = vsub.f32 1.0, %v1665_v62  ;;  %v1687_v60 = vsub.f32 1.0, %v1662_v59  ;;  %3768 = vtanh.f32 %v1684_v30  ;;  %v1558_v12 = vor.u32 1.1754944e-38, %v1557_v34  ;;  %vm1671_vm10 = vmor %vm1669_vm9, %vm1670_vm6 }
 0x5a0   :  { %3770 = vtanh.f32 %v1581_v42  ;;  %vm1674_vm12 = vcmp.eq.f32.partialorder %v1673_v48, 8.507059e+37  ;;  %v1691_v0 = vmul.f32 %v1662_v59, %v5469_v17  ;;  %v1585_v53 = vsub.f32 1.0, %v1574_v22 }
 0x5a1   :  { %v1667_v54 = vmul.f32 %v3765_v56, %v1666_v39  ;;  %v1689_v51 = vmul.f32 %v3767_v7, %v1687_v60  ;;  %v1559_v52 = vsel %vm1556_vm11, %v1558_v12, %v1554_v37  ;;  %3772 = vtanh.f32 %v1580_v5 }
 0x5a2   :  { %v2274_v14 = vadd.f32 %v4929_v8, %v4933_v11  ;;  %v1584_v20 = vsub.f32 1.0, %v1559_v52  ;;  %v1589_v55 = vmul.f32 %v1574_v22, %v5473_v38 }
 0x5a3   :  { %v1668_v24 = vadd.f32 %v3765_v56, %v1667_v54  ;;  %v5691_v62 = vadd.f32 %v1691_v0, %v1689_v51  ;;  %v1588_v54 = vmul.f32 %v1559_v52, %v5477_v26 }
 0x5a5   :  { %v1672_v41 = vsel %vm1671_vm10, %v3765_v56, %v1668_v24  ;;  %v3769_v44 = vpop.eup %3768  ;;  %v2329_v56 = vmul.f32 32.0, %v5642_v47  ;;  %v2275_v39 = vadd.f32 %v2274_v14, %v5691_v62 }
 0x5a6   :  { %v1677_v29 = vsel %vm1674_vm12, %v1676_v36, %v1672_v41  ;;  %v3771_v45 = vpop.eup %3770 }
 0x5a7   :  { %v1688_v27 = vsub.f32 1.0, %v1677_v29  ;;  %v1692_v30 = vmul.f32 %v1677_v29, %v5465_v13  ;;  %v1587_v25 = vmul.f32 %v3771_v45, %v1585_v53  ;;  %v3773_v60 = vpop.eup %3772  ;;  %v2330_v42 = vsub.f32 1.0, %v2329_v56 }
 0x5a8   :  { %v1586_v46 = vmul.f32 %v3773_v60, %v1584_v20  ;;  %v5736_v60 = vld [vmem:[%s6467_s2 + $0x20] sm:$0xff] }
 0x5a9   :  { %v1690_v23 = vmul.f32 %v3769_v44, %v1688_v27  ;;  %v5704_v4 = vadd.f32 %v1589_v55, %v1587_v25  ;;  %v2331_v9 = vmul.f32 %v5642_v47, %v2330_v42 }
 0x5aa   :  { %v5708_v48 = vadd.f32 %v1588_v54, %v1586_v46  ;;  %v5749_v54 = vpop.permute.xlu0 %2684 }
 0x5ab   :  { %v5697_v59 = vadd.f32 %v1692_v30, %v1690_v23  ;;  %6633 = vst [vmem:[#allocation24_spill] sm:$0xff] %v5704_v4  ;;  %v2332_v37 = vadd.f32 %v5642_v47, %v2331_v9 }
 0x5ac   :  { %6634 = vst [vmem:[#allocation25_spill] sm:$0xff] %v5708_v48 }
 0x5ad   :  { %1711 = vmatpush.msrb.mxu2 %v5697_v59  ;;  %v2276_v34 = vadd.f32 %v2275_v39, %v5697_v59  ;;  %v5717_v12 = vsel %vm2333_vm13, %v5642_v47, %v2332_v37  ;;  %v5731_v39 = vpop.permute.xlu2 %2628 }
 0x5af   :  { %1712 = vmatpush.msrb.mxu2 %v5691_v62  ;;  %v2277_v21 = vrot.slane %v2276_v34, 4 }
 0x5b1   :  { %1713 = vmatpush.msrb.mxu2 %v5704_v4  ;;  %v2278_v7 = vadd.f32 %v2277_v21, %v2276_v34 }
 0x5b3   :  { %1714 = vmatpush.msrb.mxu2 %v5708_v48  ;;  %v2279_v33 = vrot.slane %v2278_v7, 2 }
 0x5b4   :  { %3451 = vmatmul.msk.f32.vlgmr.msrb.gmra.mxu2 %vm78_vm0, %v5483_v57 }
 0x5b5   :  { %v2280_v5 = vadd.f32 %v2279_v33, %v2278_v7  ;;  %v5747_v34 = vpop.permute.xlu2 %2623  ;;  %v5754_v7 = vld [vmem:[%s6467_s2 + $0x30] sm:$0xff]  ;;  %v5758_v33 = vpop.permute.xlu1 %2618 }
 0x5b7   :  { %v2281_v24 = vrot.slane %v2280_v5, 1 }
 0x5b9   :  { %v2282_v51 = vadd.f32 %v2281_v24, %v2280_v5 }
 0x5bb   :  { %v2337_v22 = vmul.f32 %v5717_v12, %v2282_v51 }
 0x5bc   :  { %3452 = vmatmul.msk.f32.gmra.mxu2 %vm78_vm0, %v5490_v63 }
 0x5bd   :  { %v2351_v36 = vsub.f32 %v4933_v11, %v2337_v22  ;;  %v2352_v41 = vsub.f32 %v4929_v8, %v2337_v22  ;;  %v2353_v57 = vsub.f32 %v5691_v62, %v2337_v22  ;;  %v2354_v0 = vsub.f32 %v5697_v59, %v2337_v22  ;;  %v5760_v37 = vpop.permute.xlu2 %2679 }
 0x5bf   :  { %v2383_v52 = vmul.f32 %v2351_v36, %v2351_v36  ;;  %v2384_v29 = vmul.f32 %v2352_v41, %v2352_v41  ;;  %v2385_v53 = vmul.f32 %v2353_v57, %v2353_v57  ;;  %v2386_v44 = vmul.f32 %v2354_v0, %v2354_v0 }
 0x5c1   :  { %v2425_v27 = vadd.f32 %v2384_v29, %v2383_v52 }
 0x5c3   :  { %v2426_v47 = vadd.f32 %v2425_v27, %v2385_v53 }
 0x5c4   :  { %3453 = vmatmul.msk.f32.gmra.mxu2 %vm78_vm0, %v5497_v16 }
 0x5c5   :  { %v2427_v14 = vadd.f32 %v2426_v47, %v2386_v44  ;;  %v5767_v44 = vld [vmem:[%s6467_s2 + $0x38] sm:$0xff] }
 0x5c7   :  { %v2428_v20 = vrot.slane %v2427_v14, 4 }
 0x5c9   :  { %v2429_v63 = vadd.f32 %v2428_v20, %v2427_v14 }
 0x5cb   :  { %v2430_v23 = vrot.slane %v2429_v63, 2 }
 0x5cc   :  { %3454 = vmatmul.msk.f32.gmra.mxu2 %vm78_vm0, %v5504_v15  ;;  %v5743_v15 = vld [vmem:[%s6467_s2 + $0x28] sm:$0xff] }
 0x5cd   :  { %v2431_v30 = vadd.f32 %v2430_v23, %v2429_v63  ;;  %v5780_v63 = vpop.permute.xlu2 %2669 }
 0x5cf   :  { %v2432_v45 = vrot.slane %v2431_v30, 1 }
 0x5d1   :  { %v2433_v56 = vadd.f32 %v2432_v45, %v2431_v30  ;;  %v5786_v30 = vld [vmem:[%s6467_s2 + $0x40] sm:$0xff]  ;;  %v5793_v45 = vld [vmem:[%s6467_s2 + $0x48] sm:$0xff] }
 0x5d2   :  { %6635 = vst [vmem:[#allocation26_spill] sm:$0xff] %v5793_v45 }
 0x5d3   :  { %v2481_v25 = vmul.f32 %v2433_v56, %v5717_v12  ;;  %v5800_v56 = vld [vmem:[%s6467_s2 + $0x50] sm:$0xff] }
 0x5d4   :  { %3455 = vmatmul.msk.f32.gmra.mxu2 %vm78_vm0, %v5736_v60  ;;  %6636 = vst [vmem:[#allocation27_spill] sm:$0xff] %v5800_v56 }
 0x5d5   :  { %v2489_v16 = vadd.f32 1e-05, %v2481_v25  ;;  %v5807_v25 = vld [vmem:[%s6467_s2 + $0x58] sm:$0xff] }
 0x5d6   :  { %6637 = vst [vmem:[#allocation28_spill] sm:$0xff] %v5807_v25 }
 0x5d7   :  { %3774 = vrsqrt.f32 %v2489_v16  ;;  %vm2521_vm15 = vweird.f32 %v2489_v16 }
 0x5dc   :  { %3456 = vmatmul.msk.f32.gmra.mxu2 %vm78_vm0, %v5743_v15 }
 0x5dd   :  { %v3775_v46 = vpop.eup %3774 }
 0x5de   :  { %v2516_v55 = vmul.f32 %v3775_v46, %v2489_v16  ;;  %vm2522_vm14 = vweird.f32 %v3775_v46  ;;  %v5814_v16 = vld [vmem:[%s6476_s6] sm:$0xff] }
 0x5df   :  { %vm2523_vm1 = vmor %vm2521_vm15, %vm2522_vm14 }
 0x5e0   :  { %v2517_v42 = vmul.f32 %v3775_v46, %v2516_v55  ;;  %v2283_v55 = vadd.f32 %v5231_v35, %v5235_v2 }
 0x5e2   :  { %v2518_v21 = vmul.f32 0.5, %v2517_v42  ;;  %v2284_v42 = vadd.f32 %v2283_v55, %v5469_v17 }
 0x5e4   :  { %3457 = vmatmul.msk.f32.gmra.mxu2 %vm78_vm0, %v5754_v7  ;;  %v2519_v9 = vsub.f32 1.5, %v2518_v21  ;;  %v2285_v21 = vadd.f32 %v2284_v42, %v5465_v13 }
 0x5e6   :  { %v2520_v5 = vmul.f32 %v3775_v46, %v2519_v9  ;;  %v2939_v9 = vld [vmem:[%s6472_s8] sm:$0xff] }
 0x5e7   :  { %2943 = vperm.xlu2 %3531, %v2939_v9   ;;  %v3465_v9 = vld [vmem:[%s6474_s0 + $0x130] sm:$0xff] }
 0x5e8   :  { %v2524_v24 = vsel %vm2523_vm1, %v3775_v46, %v2520_v5  ;;  %v5821_v46 = vld [vmem:[%s6476_s6 + $0x8] sm:$0xff]  ;;  %v2286_v5 = vrot.slane %v2285_v21, 4 }
 0x5e9   :  { %v2586_v51 = vmul.f32 %v2524_v24, %v2354_v0  ;;  %v2585_v22 = vmul.f32 %v2524_v24, %v2353_v57  ;;  %v2584_v52 = vmul.f32 %v2524_v24, %v2352_v41  ;;  %v2583_v27 = vmul.f32 %v2524_v24, %v2351_v36  ;;  %v5773_v0 = vpop.permute.xlu0 %2613  ;;  %v5777_v36 = vpop.permute.xlu1 %2674 }
 0x5ea   :  { %v2287_v24 = vadd.f32 %v2286_v5, %v2285_v21 }
 0x5eb   :  { %v2642_v29 = vmul.f32 %v5731_v39, %v2586_v51  ;;  %v2641_v53 = vmul.f32 %v5747_v34, %v2585_v22  ;;  %v2640_v14 = vmul.f32 %v5758_v33, %v2584_v52  ;;  %v2639_v57 = vmul.f32 %v5773_v0, %v2583_v27  ;;  %v3463_v22 = vld [vmem:[%s6474_s0 + $0x120] sm:$0xff] }
 0x5ec   :  { %3458 = vmatmul.msk.f32.gmra.mxu2 %vm78_vm0, %v5767_v44  ;;  %v2288_v51 = vrot.slane %v2287_v24, 2 }
 0x5ed   :  { %v2698_v47 = vadd.f32 %v5749_v54, %v2642_v29  ;;  %v2697_v41 = vadd.f32 %v5760_v37, %v2641_v53  ;;  %v2696_v20 = vadd.f32 %v5777_v36, %v2640_v14  ;;  %v2695_v23 = vadd.f32 %v5780_v63, %v2639_v57  ;;  %v3464_v14 = vld [vmem:[%s6474_s0 + $0x128] sm:$0xff] }
 0x5ee   :  { %v2289_v52 = vadd.f32 %v2288_v51, %v2287_v24 }
 0x5ef   :  { %2797 = vmatpush.msra.mxu2 %v2698_v47 }
 0x5f0   :  { %v2290_v27 = vrot.slane %v2289_v52, 1 }
 0x5f1   :  { %2798 = vmatpush.msra.mxu2 %v2697_v41 }
 0x5f2   :  { %v2291_v41 = vadd.f32 %v2290_v27, %v2289_v52 }
 0x5f3   :  { %2799 = vmatpush.msra.mxu2 %v2696_v20 }
 0x5f4   :  { %3459 = vmatmul.msk.f32.gmra.mxu2 %vm78_vm0, %v5786_v30 }
 0x5f5   :  { %2800 = vmatpush.msra.mxu2 %v2695_v23  ;;  %v2338_v23 = vmul.f32 %v5717_v12, %v2291_v41 }
 0x5f7   :  { %v5843_v5 = vsub.f32 %v5235_v2, %v2338_v23  ;;  %v5846_v24 = vsub.f32 %v5231_v35, %v2338_v23  ;;  %v5853_v41 = vsub.f32 %v5469_v17, %v2338_v23 }
 0x5f9   :  { %v2387_v52 = vmul.f32 %v5843_v5, %v5843_v5 }
 0x5fc   :  { %3460 = vmatmul.msk.f32.gmra.mxu2 %vm78_vm0, %v5793_v45 }
 0x604   :  { %3461 = vmatmul.msk.f32.gmra.mxu2 %vm78_vm0, %v5800_v56 }
 0x60c   :  { %3462 = vmatmul.msk.f32.gmra.mxu2 %vm78_vm0, %v5807_v25 }
 0x614   :  { %3513 = vmatmul.msk.f32.vlgmr.msra.gmra.mxu2 %vm78_vm0, %v5814_v16 }
 0x61c   :  { %3514 = vmatmul.msk.f32.gmra.mxu2 %vm78_vm0, %v5821_v46 }
 0x637   :  { %v1716_v29 = vpop.f32.mrf.mxu2 }
 0x638   :  { %v1759_v53 = vadd.f32 %v3463_v22, %v1716_v29  ;;  %v2388_v29 = vmul.f32 %v5846_v24, %v5846_v24 }
 0x63a   :  { %v3469_v47 = vmul.f32 -1.442695, %v1759_v53 }
 0x63c   :  { %3776 = vpow2.f32 %v3469_v47 }
 0x63f   :  { %v1719_v57 = vpop.f32.mrf.mxu2 }
 0x640   :  { %v1760_v20 = vadd.f32 %v3464_v14, %v1719_v57 }
 0x642   :  { %v3777_v55 = vpop.eup %3776  ;;  %v3470_v42 = vmul.f32 -1.442695, %v1760_v20  ;;  %v3466_v20 = vld [vmem:[%s6474_s0 + $0x138] sm:$0xff] }
 0x643   :  { %v1767_v21 = vadd.f32 1.0, %v3777_v55  ;;  %v2434_v55 = vadd.f32 %v2388_v29, %v2387_v52 }
 0x644   :  { %3778 = vpow2.f32 %v3470_v42 }
 0x645   :  { %3780 = vrcp.f32 %v1767_v21  ;;  %v1780_v6 = vand.u32 2147483648, %v1767_v21  ;;  %vm1774_vm3 = vweird.f32 %v1767_v21 }
 0x647   :  { %v1722_v51 = vpop.f32.mrf.mxu2 }
 0x648   :  { %v1799_v22 = vadd.f32 %v3465_v9, %v1722_v51  ;;  %v5859_v51 = vsub.f32 %v5465_v13, %v2338_v23 }
 0x64a   :  { %v3779_v53 = vpop.eup %3778  ;;  %v3471_v27 = vmul.f32 -1.442695, %v1799_v22  ;;  %v2389_v22 = vmul.f32 %v5853_v41, %v5853_v41  ;;  %v2390_v19 = vmul.f32 %v5859_v51, %v5859_v51 }
 0x64b   :  { %v3781_v47 = vpop.eup %3780  ;;  %v1768_v14 = vadd.f32 1.0, %v3779_v53 }
 0x64c   :  { %3782 = vpow2.f32 %v3471_v27  ;;  %v1770_v57 = vmul.f32 %v3781_v47, %v1767_v21  ;;  %v2435_v35 = vadd.f32 %v2434_v55, %v2389_v22  ;;  %vm1775_vm2 = vweird.f32 %v3781_v47 }
 0x64d   :  { %3784 = vrcp.f32 %v1768_v14  ;;  %vm5865_vm4 = vmor %vm1774_vm3, %vm1775_vm2  ;;  %vm1789_vm6 = vweird.f32 %v1768_v14 }
 0x64e   :  { %v1771_v9 = vsub.f32 1.0, %v1770_v57  ;;  %v2436_v29 = vadd.f32 %v2435_v35, %v2390_v19  ;;  %v1795_v35 = vand.u32 2147483648, %v1768_v14 }
 0x64f   :  { %v1725_v42 = vpop.f32.mrf.mxu2 }
 0x650   :  { %v1800_v53 = vadd.f32 %v3466_v20, %v1725_v42  ;;  %v1772_v11 = vmul.f32 %v3781_v47, %v1771_v9  ;;  %v1778_v20 = vand.u32 2147483647, %v1767_v21  ;;  %v2437_v55 = vrot.slane %v2436_v29, 4 }
 0x651   :  { %v1793_v21 = vand.u32 2147483647, %v1768_v14 }
 0x652   :  { %v3783_v17 = vpop.eup %3782  ;;  %v3472_v2 = vmul.f32 -1.442695, %v1800_v53  ;;  %v1773_v13 = vadd.f32 %v3781_v47, %v1772_v11  ;;  %vm1779_vm7 = vcmp.eq.f32.partialorder %v1778_v20, 8.507059e+37 }
 0x653   :  { %v3785_v27 = vpop.eup %3784  ;;  %v1807_v8 = vadd.f32 1.0, %v3783_v17  ;;  %vm1794_vm10 = vcmp.eq.f32.partialorder %v1793_v21, 8.507059e+37 }
 0x654   :  { %3786 = vpow2.f32 %v3472_v2  ;;  %v1785_v52 = vmul.f32 %v3785_v27, %v1768_v14  ;;  %vm1790_vm5 = vweird.f32 %v3785_v27  ;;  %v1777_v19 = vsel %vm5865_vm4, %v3781_v47, %v1773_v13  ;;  %v3467_v13 = vld [vmem:[%s6474_s0 + $0x140] sm:$0xff] }
 0x655   :  { %3788 = vrcp.f32 %v1807_v8  ;;  %vm1791_vm8 = vmor %vm1789_vm6, %vm1790_vm5  ;;  %v1820_v47 = vand.u32 2147483648, %v1807_v8  ;;  %vm1814_vm11 = vweird.f32 %v1807_v8 }
 0x656   :  { %v1786_v57 = vsub.f32 1.0, %v1785_v52  ;;  %v1781_v52 = vor.u32 1.1754944e-38, %v1780_v6 }
 0x657   :  { %v1728_v23 = vpop.f32.mrf.mxu2 }
 0x658   :  { %v1787_v10 = vmul.f32 %v3785_v27, %v1786_v57  ;;  %v1839_v11 = vadd.f32 %v1728_v23, %v4231_v50  ;;  %v2438_v57 = vadd.f32 %v2437_v55, %v2436_v29  ;;  %v1782_v32 = vsel %vm1779_vm7, %v1781_v52, %v1777_v19 }
 0x659   :  { %v1818_v29 = vand.u32 2147483647, %v1807_v8  ;;  %v2301_v55 = vadd.f32 %v5704_v4, %v5708_v48 }
 0x65a   :  { %v3787_v42 = vpop.eup %3786  ;;  %v1788_v9 = vadd.f32 %v3785_v27, %v1787_v10  ;;  %v1841_v38 = vmul.f32 %v1839_v11, %v1782_v32  ;;  %v2439_v23 = vrot.slane %v2438_v57, 2  ;;  %v3468_v32 = vld [vmem:[%s6474_s0 + $0x148] sm:$0xff] }
 0x65b   :  { %v3789_v2 = vpop.eup %3788  ;;  %v1808_v22 = vadd.f32 1.0, %v3787_v42  ;;  %v1796_v42 = vor.u32 1.1754944e-38, %v1795_v35  ;;  %vm1819_vm13 = vcmp.eq.f32.partialorder %v1818_v29, 8.507059e+37 }
 0x65c   :  { %v1810_v53 = vmul.f32 %v3789_v2, %v1807_v8  ;;  %v1792_v10 = vsel %vm1791_vm8, %v3785_v27, %v1788_v9  ;;  %vm1815_vm9 = vweird.f32 %v3789_v2  ;;  %v1843_v17 = vadd.f32 %v3467_v13, %v1841_v38 }
 0x65d   :  { %3790 = vrcp.f32 %v1808_v22  ;;  %v1797_v14 = vsel %vm1794_vm10, %v1796_v42, %v1792_v10  ;;  %vm1816_vm12 = vmor %vm1814_vm11, %vm1815_vm9  ;;  %v2440_v8 = vadd.f32 %v2439_v23, %v2438_v57  ;;  %v1835_v52 = vand.u32 2147483648, %v1808_v22 }
 0x65e   :  { %v1811_v61 = vsub.f32 1.0, %v1810_v53  ;;  %v2302_v53 = vadd.f32 %v2301_v55, %v4925_v43  ;;  %3792 = vtanh.f32 %v1843_v17  ;;  %v1833_v38 = vand.u32 2147483647, %v1808_v22 }
 0x65f   :  { %v1731_v26 = vpop.f32.mrf.mxu2  ;;  %vm1829_vm15 = vweird.f32 %v1808_v22  ;;  %v1836_v23 = vor.u32 1.1754944e-38, %v1835_v52 }
 0x660   :  { %v1812_v25 = vmul.f32 %v3789_v2, %v1811_v61  ;;  %v1840_v6 = vadd.f32 %v1731_v26, %v4196_v18  ;;  %v1821_v26 = vor.u32 1.1754944e-38, %v1820_v47  ;;  %v2303_v57 = vadd.f32 %v2302_v53, %v4921_v58 }
 0x661   :  { %vm1834_vm2 = vcmp.eq.f32.partialorder %v1833_v38, 8.507059e+37 }
 0x662   :  { %v1813_v20 = vadd.f32 %v3789_v2, %v1812_v25  ;;  %v1842_v27 = vmul.f32 %v1840_v6, %v1797_v14  ;;  %v3473_v25 = vld [vmem:[%s6475_s1 + $0x30] sm:$0xff] }
 0x663   :  { %v3791_v61 = vpop.eup %3790 }
 0x664   :  { %v1825_v9 = vmul.f32 %v3791_v61, %v1808_v22  ;;  %v1817_v19 = vsel %vm1816_vm12, %v3789_v2, %v1813_v20  ;;  %v1844_v11 = vadd.f32 %v3468_v32, %v1842_v27  ;;  %vm1830_vm14 = vweird.f32 %v3791_v61  ;;  %v3793_v29 = vpop.eup %3792  ;;  %v3474_v27 = vld [vmem:[%s6475_s1 + $0x38] sm:$0xff] }
 0x665   :  { %v1822_v21 = vsel %vm1819_vm13, %v1821_v26, %v1817_v19  ;;  %v2441_v2 = vrot.slane %v2440_v8, 1  ;;  %vm1831_vm1 = vmor %vm1829_vm15, %vm1830_vm14  ;;  %v2304_v26 = vrot.slane %v2303_v57, 4 }
 0x666   :  { %v1826_v35 = vsub.f32 1.0, %v1825_v9  ;;  %3794 = vtanh.f32 %v1844_v11  ;;  %v1847_v47 = vsub.f32 1.0, %v1822_v21  ;;  %v1851_v53 = vmul.f32 %v1822_v21, %v5708_v48 }
 0x667   :  { %v1734_v10 = vpop.f32.mrf.mxu2  ;;  %v2442_v55 = vadd.f32 %v2441_v2, %v2440_v8 }
 0x668   :  { %v1827_v42 = vmul.f32 %v3791_v61, %v1826_v35  ;;  %v1862_v13 = vadd.f32 %v3473_v25, %v1734_v10  ;;  %v1849_v17 = vmul.f32 %v3793_v29, %v1847_v47 }
 0x66a   :  { %v1828_v6 = vadd.f32 %v3791_v61, %v1827_v42  ;;  %v3479_v14 = vmul.f32 -1.442695, %v1862_v13  ;;  %v5894_v38 = vadd.f32 %v1851_v53, %v1849_v17  ;;  %v2305_v13 = vadd.f32 %v2304_v26, %v2303_v57  ;;  %v3476_v26 = vld [vmem:[%s6475_s1 + $0x48] sm:$0xff] }
 0x66c   :  { %v1832_v20 = vsel %vm1831_vm1, %v3791_v61, %v1828_v6  ;;  %3796 = vpow2.f32 %v3479_v14  ;;  %v3795_v19 = vpop.eup %3794  ;;  %v2482_v61 = vmul.f32 %v2442_v55, %v5717_v12  ;;  %v3475_v6 = vld [vmem:[%s6475_s1 + $0x40] sm:$0xff] }
 0x66d   :  { %v1837_v32 = vsel %vm1834_vm2, %v1836_v23, %v1832_v20  ;;  %v2306_v23 = vrot.slane %v2305_v13, 2 }
 0x66e   :  { %v1848_v9 = vsub.f32 1.0, %v1837_v32  ;;  %v1852_v35 = vmul.f32 %v1837_v32, %v5704_v4  ;;  %v5901_v21 = vadd.f32 1e-05, %v2482_v61 }
 0x66f   :  { %v1737_v22 = vpop.f32.mrf.mxu2 }
 0x670   :  { %v1850_v11 = vmul.f32 %v3795_v19, %v1848_v9  ;;  %v1863_v25 = vadd.f32 %v3474_v27, %v1737_v22  ;;  %v2307_v9 = vadd.f32 %v2306_v23, %v2305_v13 }
 0x672   :  { %v3797_v52 = vpop.eup %3796  ;;  %v3480_v10 = vmul.f32 -1.442695, %v1863_v25  ;;  %v5892_v42 = vadd.f32 %v1852_v35, %v1850_v11  ;;  %v2308_v61 = vrot.slane %v2307_v9, 1 }
 0x673   :  { %v1870_v8 = vadd.f32 1.0, %v3797_v52 }
 0x674   :  { %3798 = vpow2.f32 %v3480_v10  ;;  %v2310_v2 = vadd.f32 %v5892_v42, %v5894_v38 }
 0x675   :  { %3800 = vrcp.f32 %v1870_v8  ;;  %vm1877_vm4 = vweird.f32 %v1870_v8 }
 0x676   :  { %v2311_v47 = vadd.f32 %v2310_v2, %v4643_v49  ;;  %3802 = vrsqrt.f32 %v5901_v21 }
 0x677   :  { %v1740_v14 = vpop.f32.mrf.mxu2 }
 0x678   :  { %v1902_v20 = vadd.f32 %v3475_v6, %v1740_v14  ;;  %v2312_v29 = vadd.f32 %v2311_v47, %v4639_v3 }
 0x67a   :  { %v3799_v57 = vpop.eup %3798  ;;  %v3481_v32 = vmul.f32 -1.442695, %v1902_v20  ;;  %v2313_v27 = vrot.slane %v2312_v29, 4 }
 0x67b   :  { %v3801_v55 = vpop.eup %3800  ;;  %v5906_v17 = vadd.f32 1.0, %v3799_v57  ;;  %v2309_v57 = vadd.f32 %v2308_v61, %v2307_v9 }
 0x67c   :  { %3804 = vpow2.f32 %v3481_v32  ;;  %v1873_v19 = vmul.f32 %v3801_v55, %v1870_v8  ;;  %v2314_v22 = vadd.f32 %v2313_v27, %v2312_v29  ;;  %v5912_v35 = vpop.eup %3802  ;;  %vm1878_vm3 = vweird.f32 %v3801_v55 }
 0x67d   :  { %3806 = vrcp.f32 %v5906_v17  ;;  %v2526_v47 = vmul.f32 %v5912_v35, %v5901_v21  ;;  %v1883_v32 = vand.u32 2147483648, %v1870_v8  ;;  %vm5920_vm5 = vmor %vm1877_vm4, %vm1878_vm3  ;;  %v5928_v61 = vmul.f32 %v5717_v12, %v2309_v57 }
 0x67e   :  { %v1874_v11 = vsub.f32 1.0, %v1873_v19  ;;  %v2315_v25 = vrot.slane %v2314_v22, 2  ;;  %v1881_v19 = vand.u32 2147483647, %v1870_v8  ;;  %vm1892_vm8 = vweird.f32 %v5906_v17 }
 0x67f   :  { %v1743_v53 = vpop.f32.mrf.mxu2  ;;  %v2527_v9 = vmul.f32 %v5912_v35, %v2526_v47  ;;  %vm2532_vm2 = vweird.f32 %v5912_v35 }
 0x680   :  { %v1903_v52 = vadd.f32 %v3476_v26, %v1743_v53  ;;  %v1875_v10 = vmul.f32 %v3801_v55, %v1874_v11  ;;  %v2316_v2 = vadd.f32 %v2315_v25, %v2314_v22  ;;  %vm1882_vm6 = vcmp.eq.f32.partialorder %v1881_v19, 8.507059e+37 }
 0x682   :  { %v3805_v6 = vpop.eup %3804  ;;  %v3482_v13 = vmul.f32 -1.442695, %v1903_v52  ;;  %v2317_v14 = vrot.slane %v2316_v2, 1  ;;  %v1876_v29 = vadd.f32 %v3801_v55, %v1875_v10  ;;  %v1884_v52 = vor.u32 1.1754944e-38, %v1883_v32 }
 0x683   :  { %v3807_v23 = vpop.eup %3806  ;;  %v5916_v20 = vadd.f32 1.0, %v3805_v6 }
 0x684   :  { %3808 = vpow2.f32 %v3482_v13  ;;  %v1888_v27 = vmul.f32 %v3807_v23, %v5906_v17  ;;  %v2318_v11 = vadd.f32 %v2317_v14, %v2316_v2  ;;  %v1880_v53 = vsel %vm5920_vm5, %v3801_v55, %v1876_v29 }
 0x685   :  { %3810 = vrcp.f32 %v5916_v20  ;;  %v1896_v13 = vand.u32 2147483647, %v5906_v17  ;;  %v1898_v2 = vand.u32 2147483648, %v5906_v17  ;;  %vm1893_vm7 = vweird.f32 %v3807_v23 }
 0x686   :  { %v1889_v26 = vsub.f32 1.0, %v1888_v27  ;;  %v2341_v8 = vmul.f32 %v5717_v12, %v2318_v11  ;;  %v1885_v27 = vsel %vm1882_vm6, %v1884_v52, %v1880_v53  ;;  %v5947_v11 = vmul.f32 0.5, %v2527_v9  ;;  %vm5954_vm9 = vmor %vm1892_vm8, %vm1893_vm7  ;;  %v3478_v53 = vld [vmem:[%s6475_s1 + $0x58] sm:$0xff] }
 0x687   :  { %v1746_v25 = vpop.f32.mrf.mxu2  ;;  %vm5958_vm10 = vcmp.eq.f32.partialorder %v1896_v13, 8.507059e+37  ;;  %v5967_v17 = vsub.f32 %v5704_v4, %v5928_v61  ;;  %v1923_v13 = vand.u32 2147483648, %v5916_v20  ;;  %vm1917_vm12 = vweird.f32 %v5916_v20 }
 0x688   :  { %v1942_v10 = vadd.f32 %v1746_v25, %v4269_v28  ;;  %v1890_v6 = vmul.f32 %v3807_v23, %v1889_v26  ;;  %v5935_v55 = vsub.f32 %v5894_v38, %v2341_v8  ;;  %v5940_v32 = vsub.f32 %v5892_v42, %v2341_v8  ;;  %v3477_v26 = vld [vmem:[%s6475_s1 + $0x50] sm:$0xff] }
 0x689   :  { %v5951_v25 = vsub.f32 %v5708_v48, %v5928_v61  ;;  %v5975_v18 = vsub.f32 %v4639_v3, %v2341_v8  ;;  %vm2531_vm5 = vweird.f32 %v5901_v21 }
 0x68a   :  { %v3809_v14 = vpop.eup %3808  ;;  %v1891_v22 = vadd.f32 %v3807_v23, %v1890_v6  ;;  %v1944_v57 = vmul.f32 %v1942_v10, %v1885_v27  ;;  %v5963_v10 = vsub.f32 %v4643_v49, %v2341_v8  ;;  %v2399_v27 = vmul.f32 %v5935_v55, %v5935_v55  ;;  %vm2533_vm6 = vmor %vm2531_vm5, %vm2532_vm2 }
 0x68b   :  { %v3811_v47 = vpop.eup %3810  ;;  %v5937_v29 = vadd.f32 1.0, %v3809_v14  ;;  %v1899_v14 = vor.u32 1.1754944e-38, %v1898_v2  ;;  %v2400_v49 = vmul.f32 %v5940_v32, %v5940_v32  ;;  %v2395_v8 = vmul.f32 %v5951_v25, %v5951_v25 }
 0x68c   :  { %v1913_v19 = vmul.f32 %v3811_v47, %v5916_v20  ;;  %v1895_v6 = vsel %vm5954_vm9, %v3807_v23, %v1891_v22  ;;  %v1946_v48 = vadd.f32 %v3477_v26, %v1944_v57  ;;  %vm1918_vm11 = vweird.f32 %v3811_v47 }
 0x68d   :  { %3812 = vrcp.f32 %v5937_v29  ;;  %v1900_v2 = vsel %vm5958_vm10, %v1899_v14, %v1895_v6  ;;  %v2401_v22 = vmul.f32 %v5963_v10, %v5963_v10  ;;  %v2461_v57 = vadd.f32 %v2400_v49, %v2399_v27  ;;  %vm1919_vm13 = vmor %vm1917_vm12, %vm1918_vm11 }
 0x68e   :  { %v1914_v9 = vsub.f32 1.0, %v1913_v19  ;;  %v1921_v19 = vand.u32 2147483647, %v5916_v20  ;;  %v1924_v6 = vor.u32 1.1754944e-38, %v1923_v13  ;;  %3814 = vtanh.f32 %v1946_v48 }
 0x68f   :  { %v1749_v28 = vpop.f32.mrf.mxu2  ;;  %v2402_v49 = vmul.f32 %v5975_v18, %v5975_v18  ;;  %v2462_v14 = vadd.f32 %v2461_v57, %v2401_v22  ;;  %v1938_v13 = vand.u32 2147483648, %v5937_v29  ;;  %v2529_v48 = vsub.f32 1.5, %v5947_v11 }
 0x690   :  { %v1915_v4 = vmul.f32 %v3811_v47, %v1914_v9  ;;  %v1943_v23 = vadd.f32 %v1749_v28, %v4209_v31  ;;  %v2396_v28 = vmul.f32 %v5967_v17, %v5967_v17  ;;  %vm1922_vm14 = vcmp.eq.f32.partialorder %v1921_v19, 8.507059e+37 }
 0x691   :  { %v2463_v31 = vadd.f32 %v2462_v14, %v2402_v49  ;;  %v1936_v19 = vand.u32 2147483647, %v5937_v29  ;;  %vm1932_vm1 = vweird.f32 %v5937_v29 }
 0x692   :  { %v1916_v26 = vadd.f32 %v3811_v47, %v1915_v4  ;;  %v1945_v9 = vmul.f32 %v1943_v23, %v1900_v2  ;;  %v5998_v23 = vsub.f32 %v4925_v43, %v5928_v61  ;;  %v2452_v45 = vadd.f32 %v2396_v28, %v2395_v8 }
 0x693   :  { %v3813_v52 = vpop.eup %3812  ;;  %v2464_v56 = vrot.slane %v2463_v31, 4  ;;  %v1939_v8 = vor.u32 1.1754944e-38, %v1938_v13  ;;  %v2530_v28 = vmul.f32 %v5912_v35, %v2529_v48  ;;  %vm1937_vm4 = vcmp.eq.f32.partialorder %v1936_v19, 8.507059e+37 }
 0x694   :  { %v1928_v4 = vmul.f32 %v3813_v52, %v5937_v29  ;;  %v1920_v20 = vsel %vm1919_vm13, %v3811_v47, %v1916_v26  ;;  %v1947_v3 = vadd.f32 %v3478_v53, %v1945_v9  ;;  %vm1933_vm15 = vweird.f32 %v3813_v52  ;;  %v3815_v47 = vpop.eup %3814 }
 0x695   :  { %v1925_v27 = vsel %vm1922_vm14, %v1924_v6, %v1920_v20  ;;  %v2465_v57 = vadd.f32 %v2464_v56, %v2463_v31  ;;  %v6005_v26 = vsub.f32 %v4921_v58, %v5928_v61  ;;  %v2397_v53 = vmul.f32 %v5998_v23, %v5998_v23  ;;  %vm1934_vm3 = vmor %vm1932_vm1, %vm1933_vm15 }
 0x696   :  { %v1929_v2 = vsub.f32 1.0, %v1928_v4  ;;  %v1950_v50 = vsub.f32 1.0, %v1925_v27  ;;  %3816 = vtanh.f32 %v1947_v3  ;;  %v1954_v56 = vmul.f32 %v1925_v27, %v5691_v62 }
 0x697   :  { %v2466_v6 = vrot.slane %v2465_v57, 2  ;;  %v2453_v3 = vadd.f32 %v2452_v45, %v2397_v53  ;;  %v2398_v29 = vmul.f32 %v6005_v26, %v6005_v26  ;;  %v2534_v45 = vsel %vm2533_vm6, %v5912_v35, %v2530_v28 }
 0x698   :  { %v1930_v22 = vmul.f32 %v3813_v52, %v1929_v2  ;;  %v1952_v11 = vmul.f32 %v3815_v47, %v1950_v50  ;;  %v2265_v27 = vadd.f32 %v4647_v40, %v4651_v1  ;;  %v2590_v19 = vmul.f32 %v2534_v45, %v5859_v51 }
 0x699   :  { %v2467_v49 = vadd.f32 %v2466_v6, %v2465_v57  ;;  %v2589_v53 = vmul.f32 %v2534_v45, %v5853_v41  ;;  %v2588_v28 = vmul.f32 %v2534_v45, %v5846_v24  ;;  %v3948_v24 = vld [vmem:[%s6467_s2] sm:$0xff] }
 0x69a   :  { %v1931_v9 = vadd.f32 %v3813_v52, %v1930_v22  ;;  %v6016_v14 = vadd.f32 %v1954_v56, %v1952_v11 }
 0x69b   :  { %v2468_v20 = vrot.slane %v2467_v49, 1  ;;  %v2645_v51 = vmul.f32 %v5747_v34, %v2589_v53  ;;  %v2644_v56 = vmul.f32 %v5758_v33, %v2588_v28 }
 0x69c   :  { %v1935_v31 = vsel %vm1934_vm3, %v3813_v52, %v1931_v9  ;;  %v3817_v4 = vpop.eup %3816  ;;  %v2454_v52 = vadd.f32 %v2453_v3, %v2398_v29  ;;  %v2266_v22 = vadd.f32 %v2265_v27, %v6016_v14  ;;  %v2587_v3 = vmul.f32 %v2534_v45, %v5843_v5 }
 0x69d   :  { %v1940_v61 = vsel %vm1937_vm4, %v1939_v8, %v1935_v31  ;;  %v2469_v13 = vadd.f32 %v2468_v20, %v2467_v49  ;;  %v2646_v8 = vmul.f32 %v5731_v39, %v2590_v19  ;;  %v2701_v29 = vadd.f32 %v5760_v37, %v2645_v51 }
 0x69e   :  { %v1951_v50 = vsub.f32 1.0, %v1940_v61  ;;  %v1955_v21 = vmul.f32 %v1940_v61, %v5697_v59  ;;  %v2455_v57 = vrot.slane %v2454_v52, 4  ;;  %v2643_v5 = vmul.f32 %v5773_v0, %v2587_v3 }
 0x69f   :  { %v2485_v47 = vmul.f32 %v2469_v13, %v5717_v12  ;;  %v2702_v41 = vadd.f32 %v5749_v54, %v2646_v8  ;;  %v2700_v45 = vadd.f32 %v5777_v36, %v2644_v56 }
 0x6a0   :  { %v1953_v2 = vmul.f32 %v3817_v4, %v1951_v50  ;;  %v2456_v6 = vadd.f32 %v2455_v57, %v2454_v52 }
 0x6a1   :  { %v2493_v9 = vadd.f32 1e-05, %v2485_v47  ;;  %v3949_v47 = vld [vmem:[%s6467_s2 + $0x8] sm:$0xff] }
 0x6a2   :  { %v6024_v48 = vadd.f32 %v1955_v21, %v1953_v2  ;;  %v2457_v49 = vrot.slane %v2456_v6, 2  ;;  %v2699_v2 = vadd.f32 %v5780_v63, %v2643_v5 }
 0x6a3   :  { %3818 = vrsqrt.f32 %v2493_v9  ;;  %vm2561_vm8 = vweird.f32 %v2493_v9 }
 0x6a4   :  { %1974 = vmatpush.msrb.mxu3 %v6024_v48  ;;  %v2267_v35 = vadd.f32 %v2266_v22, %v6024_v48  ;;  %v2458_v27 = vadd.f32 %v2457_v49, %v2456_v6 }
 0x6a6   :  { %1975 = vmatpush.msrb.mxu3 %v6016_v14  ;;  %v2268_v11 = vrot.slane %v2267_v35, 4  ;;  %v2459_v57 = vrot.slane %v2458_v27, 1 }
 0x6a8   :  { %1976 = vmatpush.msrb.mxu3 %v5892_v42  ;;  %v2269_v31 = vadd.f32 %v2268_v11, %v2267_v35 }
 0x6a9   :  { %v3819_v4 = vpop.eup %3818 }
 0x6aa   :  { %1977 = vmatpush.msrb.mxu3 %v5894_v38  ;;  %v2270_v61 = vrot.slane %v2269_v31, 2  ;;  %v2556_v20 = vmul.f32 %v3819_v4, %v2493_v9  ;;  %vm2562_vm7 = vweird.f32 %v3819_v4 }
 0x6ab   :  { %3483 = vmatmul.msk.f32.vlgmr.msrb.gmra.mxu3 %vm78_vm0, %v3948_v24  ;;  %vm2563_vm9 = vmor %vm2561_vm8, %vm2562_vm7 }
 0x6ac   :  { %2820 = vmatpush.msra.mxu3 %v2702_v41  ;;  %v2271_v50 = vadd.f32 %v2270_v61, %v2269_v31  ;;  %v2557_v21 = vmul.f32 %v3819_v4, %v2556_v20  ;;  %v2460_v61 = vadd.f32 %v2459_v57, %v2458_v27  ;;  %v3951_v57 = vld [vmem:[%s6467_s2 + $0x18] sm:$0xff] }
 0x6ae   :  { %2821 = vmatpush.msra.mxu3 %v2701_v29  ;;  %v2272_v52 = vrot.slane %v2271_v50, 1  ;;  %v2558_v22 = vmul.f32 0.5, %v2557_v21 }
 0x6b0   :  { %2822 = vmatpush.msra.mxu3 %v2700_v45  ;;  %v2273_v13 = vadd.f32 %v2272_v52, %v2271_v50  ;;  %v2559_v35 = vsub.f32 1.5, %v2558_v22 }
 0x6b2   :  { %2823 = vmatpush.msra.mxu3 %v2699_v2  ;;  %v2336_v19 = vmul.f32 %v5717_v12, %v2273_v13  ;;  %v2560_v28 = vmul.f32 %v3819_v4, %v2559_v35 }
 0x6b3   :  { %3484 = vmatmul.msk.f32.gmra.mxu3 %vm78_vm0, %v3949_v47 }
 0x6b4   :  { %v6055_v53 = vsub.f32 %v4651_v1, %v2336_v19  ;;  %v6058_v11 = vsub.f32 %v4647_v40, %v2336_v19  ;;  %v6061_v8 = vsub.f32 %v6016_v14, %v2336_v19  ;;  %v6064_v6 = vsub.f32 %v6024_v48, %v2336_v19 }
 0x6b5   :  { %v2564_v31 = vsel %vm2563_vm9, %v3819_v4, %v2560_v28  ;;  %v3950_v4 = vld [vmem:[%s6467_s2 + $0x10] sm:$0xff] }
 0x6b6   :  { %v2379_v51 = vmul.f32 %v6055_v53, %v6055_v53  ;;  %v2380_v3 = vmul.f32 %v6058_v11, %v6058_v11  ;;  %v2381_v41 = vmul.f32 %v6061_v8, %v6061_v8  ;;  %v2602_v24 = vmul.f32 %v2564_v31, %v5975_v18 }
 0x6b7   :  { %v2601_v9 = vmul.f32 %v2564_v31, %v5963_v10  ;;  %v2600_v49 = vmul.f32 %v2564_v31, %v5940_v32  ;;  %v2382_v29 = vmul.f32 %v6064_v6, %v6064_v6  ;;  %v2599_v18 = vmul.f32 %v2564_v31, %v5935_v55 }
 0x6b8   :  { %v2416_v56 = vadd.f32 %v2380_v3, %v2379_v51  ;;  %v2658_v50 = vmul.f32 %v5731_v39, %v2602_v24  ;;  %v2484_v10 = vmul.f32 %v2460_v61, %v5717_v12 }
 0x6b9   :  { %v2657_v45 = vmul.f32 %v5747_v34, %v2601_v9  ;;  %v2656_v52 = vmul.f32 %v5758_v33, %v2600_v49  ;;  %v2655_v21 = vmul.f32 %v5773_v0, %v2599_v18 }
 0x6ba   :  { %v2417_v5 = vadd.f32 %v2416_v56, %v2381_v41  ;;  %v2714_v32 = vadd.f32 %v5749_v54, %v2658_v50  ;;  %v2492_v22 = vadd.f32 1e-05, %v2484_v10 }
 0x6bb   :  { %3485 = vmatmul.msk.f32.gmra.mxu3 %vm78_vm0, %v3950_v4  ;;  %v2713_v2 = vadd.f32 %v5760_v37, %v2657_v45  ;;  %v2712_v19 = vadd.f32 %v5777_v36, %v2656_v52  ;;  %v2711_v55 = vadd.f32 %v5780_v63, %v2655_v21 }
 0x6bc   :  { %v2418_v20 = vadd.f32 %v2417_v5, %v2382_v29  ;;  %2889 = vmatpush.msrb.mxu2 %v2714_v32  ;;  %3820 = vrsqrt.f32 %v2492_v22  ;;  %vm2551_vm14 = vweird.f32 %v2492_v22 }
 0x6be   :  { %v2419_v27 = vrot.slane %v2418_v20, 4  ;;  %2890 = vmatpush.msrb.mxu2 %v2713_v2 }
 0x6c0   :  { %v2420_v13 = vadd.f32 %v2419_v27, %v2418_v20  ;;  %2891 = vmatpush.msrb.mxu2 %v2712_v19 }
 0x6c2   :  { %v2421_v47 = vrot.slane %v2420_v13, 2  ;;  %2892 = vmatpush.msrb.mxu2 %v2711_v55  ;;  %v3821_v3 = vpop.eup %3820 }
 0x6c3   :  { %3486 = vmatmul.msk.f32.gmra.mxu3 %vm78_vm0, %v3951_v57  ;;  %3521 = vmatmul.msk.f32.vlgmr.msrb.gmra.mxu2 %vm78_vm0, %v5814_v16  ;;  %v2546_v56 = vmul.f32 %v3821_v3, %v2492_v22  ;;  %vm2552_vm12 = vweird.f32 %v3821_v3 }
 0x6c4   :  { %v2422_v35 = vadd.f32 %v2421_v47, %v2420_v13  ;;  %vm2553_vm15 = vmor %vm2551_vm14, %vm2552_vm12 }
 0x6c5   :  { %v2547_v61 = vmul.f32 %v3821_v3, %v2546_v56 }
 0x6c6   :  { %v2423_v28 = vrot.slane %v2422_v35, 1 }
 0x6c7   :  { %v2548_v49 = vmul.f32 0.5, %v2547_v61  ;;  %v3496_v61 = vld [vmem:[%s6474_s0 + $0x158] sm:$0xff] }
 0x6c8   :  { %v2424_v51 = vadd.f32 %v2423_v28, %v2422_v35  ;;  %v6647_v28 = vld [vmem:[#allocation27_spill] sm:$0xff] }
 0x6c9   :  { %v2549_v50 = vsub.f32 1.5, %v2548_v49 }
 0x6ca   :  { %v2480_v31 = vmul.f32 %v2424_v51, %v5717_v12  ;;  %v6648_v51 = vld [vmem:[#allocation28_spill] sm:$0xff] }
 0x6cb   :  { %3487 = vmatmul.msk.f32.gmra.mxu3 %vm78_vm0, %v5736_v60  ;;  %3522 = vmatmul.msk.f32.gmra.mxu2 %vm78_vm0, %v5821_v46  ;;  %v2550_v45 = vmul.f32 %v3821_v3, %v2549_v50 }
 0x6cc   :  { %v2488_v41 = vadd.f32 1e-05, %v2480_v31 }
 0x6cd   :  { %v2554_v32 = vsel %vm2553_vm15, %v3821_v3, %v2550_v45  ;;  %v3495_v3 = vld [vmem:[%s6474_s0 + $0x150] sm:$0xff] }
 0x6ce   :  { %3822 = vrsqrt.f32 %v2488_v41  ;;  %vm2511_vm11 = vweird.f32 %v2488_v41  ;;  %v2597_v13 = vmul.f32 %v2554_v32, %v5998_v23 }
 0x6d0   :  { %v2653_v47 = vmul.f32 %v5747_v34, %v2597_v13 }
 0x6d3   :  { %3488 = vmatmul.msk.f32.gmra.mxu3 %vm78_vm0, %v5743_v15 }
 0x6d4   :  { %v3823_v24 = vpop.eup %3822 }
 0x6d5   :  { %v2506_v9 = vmul.f32 %v3823_v24, %v2488_v41  ;;  %vm2512_vm10 = vweird.f32 %v3823_v24 }
 0x6d6   :  { %vm2513_vm13 = vmor %vm2511_vm11, %vm2512_vm10 }
 0x6d7   :  { %v2507_v29 = vmul.f32 %v3823_v24, %v2506_v9 }
 0x6d9   :  { %v2508_v5 = vmul.f32 0.5, %v2507_v29 }
 0x6db   :  { %3489 = vmatmul.msk.f32.gmra.mxu3 %vm78_vm0, %v5754_v7  ;;  %v2509_v60 = vsub.f32 1.5, %v2508_v5 }
 0x6dd   :  { %v2510_v4 = vmul.f32 %v3823_v24, %v2509_v60 }
 0x6df   :  { %v2514_v18 = vsel %vm2513_vm13, %v3823_v24, %v2510_v4 }
 0x6e0   :  { %v2582_v15 = vmul.f32 %v2514_v18, %v6064_v6  ;;  %v2581_v20 = vmul.f32 %v2514_v18, %v6061_v8  ;;  %v2580_v10 = vmul.f32 %v2514_v18, %v6058_v11  ;;  %v2579_v27 = vmul.f32 %v2514_v18, %v6055_v53 }
 0x6e1   :  { %v2598_v6 = vmul.f32 %v2554_v32, %v6005_v26  ;;  %v2595_v26 = vmul.f32 %v2554_v32, %v5951_v25 }
 0x6e2   :  { %v2638_v52 = vmul.f32 %v5731_v39, %v2582_v15  ;;  %v2637_v7 = vmul.f32 %v5747_v34, %v2581_v20  ;;  %v2636_v21 = vmul.f32 %v5758_v33, %v2580_v10  ;;  %v2635_v8 = vmul.f32 %v5773_v0, %v2579_v27  ;;  %v3498_v20 = vld [vmem:[%s6474_s0 + $0x168] sm:$0xff] }
 0x6e3   :  { %3490 = vmatmul.msk.f32.gmra.mxu3 %vm78_vm0, %v5767_v44  ;;  %v2654_v53 = vmul.f32 %v5731_v39, %v2598_v6  ;;  %v2596_v44 = vmul.f32 %v2554_v32, %v5967_v17  ;;  %v2709_v17 = vadd.f32 %v5760_v37, %v2653_v47  ;;  %v2651_v57 = vmul.f32 %v5773_v0, %v2595_v26 }
 0x6e4   :  { %v2694_v2 = vadd.f32 %v5749_v54, %v2638_v52  ;;  %v2693_v11 = vadd.f32 %v5760_v37, %v2637_v7  ;;  %v2692_v22 = vadd.f32 %v5777_v36, %v2636_v21  ;;  %v2691_v19 = vadd.f32 %v5780_v63, %v2635_v8  ;;  %v3169_v52 = vld [vmem:[%s6473_s9 + $0x8] sm:$0xff] }
 0x6e5   :  { %v2710_v23 = vadd.f32 %v5749_v54, %v2654_v53  ;;  %v2652_v55 = vmul.f32 %v5758_v33, %v2596_v44  ;;  %v2707_v25 = vadd.f32 %v5780_v63, %v2651_v57  ;;  %v18_v7 = vstv %s6477_s10  ;;  %3179 = vperm.xlu2 %3531, %v3169_v52   ;;  %v3500_v52 = vld [vmem:[%s6474_s0 + $0x178] sm:$0xff] }
 0x6e6   :  { %2774 = vmatpush.msra.mxu1 %v2694_v2  ;;  %19 = vst [vmem:[#allocation3] sm:$0x1] %v18_v7 }
 0x6e7   :  { %v2708_v35 = vadd.f32 %v5777_v36, %v2652_v55 }
 0x6e8   :  { %2775 = vmatpush.msra.mxu1 %v2693_v11 }
 0x6ea   :  { %2776 = vmatpush.msra.mxu1 %v2692_v22 }
 0x6eb   :  { %3491 = vmatmul.msk.f32.gmra.mxu3 %vm78_vm0, %v5786_v30  ;;  %v6646_v30 = vld [vmem:[#allocation26_spill] sm:$0xff] }
 0x6ec   :  { %2777 = vmatpush.msra.mxu1 %v2691_v19 }
 0x6ed   :  { %3511 = vmatmul.msk.f32.vlgmr.msra.gmra.mxu1 %vm78_vm0, %v5814_v16  ;;  %v3205_v19 = vld [vmem:[#allocation3] sm:$0x1] }
 0x6ee   :  { %2866 = vmatpush.msrb.mxu1 %v2710_v23  ;;  %3208 = vperm.xlu2 %3531, %v3205_v19  }
 0x6f0   :  { %2867 = vmatpush.msrb.mxu1 %v2709_v17 }
 0x6f2   :  { %2868 = vmatpush.msrb.mxu1 %v2708_v35 }
 0x6f3   :  { %3492 = vmatmul.msk.f32.gmra.mxu3 %vm78_vm0, %v6646_v30 }
 0x6f4   :  { %2869 = vmatpush.msrb.mxu1 %v2707_v25 }
 0x6f5   :  { %3512 = vmatmul.msk.f32.gmra.mxu1 %vm78_vm0, %v5821_v46 }
 0x6fb   :  { %3493 = vmatmul.msk.f32.gmra.mxu3 %vm78_vm0, %v6647_v28  ;;  %v6651_v28 = vld [vmem:[#allocation6_spill] sm:$0xff] }
 0x6fd   :  { %3519 = vmatmul.msk.f32.vlgmr.msrb.gmra.mxu1 %vm78_vm0, %v5814_v16 }
 0x703   :  { %3494 = vmatmul.msk.f32.gmra.mxu3 %vm78_vm0, %v6648_v51 }
 0x705   :  { %3520 = vmatmul.msk.f32.gmra.mxu1 %vm78_vm0, %v5821_v46 }
 0x70b   :  { %3515 = vmatmul.msk.f32.vlgmr.msra.gmra.mxu3 %vm78_vm0, %v5814_v16 }
 0x713   :  { %3516 = vmatmul.msk.f32.gmra.mxu3 %vm78_vm0, %v5821_v46  ;;  %v3497_v46 = vld [vmem:[%s6474_s0 + $0x160] sm:$0xff] }
 0x72e   :  { %v1979_v31 = vpop.f32.mrf.mxu3 }
 0x72f   :  { %v2022_v41 = vadd.f32 %v3495_v3, %v1979_v31 }
 0x731   :  { %v3501_v56 = vmul.f32 -1.442695, %v2022_v41 }
 0x733   :  { %3824 = vpow2.f32 %v3501_v56 }
 0x736   :  { %v1982_v24 = vpop.f32.mrf.mxu3 }
 0x737   :  { %v2023_v9 = vadd.f32 %v3496_v61, %v1982_v24 }
 0x739   :  { %v3825_v49 = vpop.eup %3824  ;;  %v3502_v29 = vmul.f32 -1.442695, %v2023_v9 }
 0x73a   :  { %v2030_v16 = vadd.f32 1.0, %v3825_v49 }
 0x73b   :  { %3826 = vpow2.f32 %v3502_v29 }
 0x73c   :  { %3828 = vrcp.f32 %v2030_v16  ;;  %v2043_v47 = vand.u32 2147483648, %v2030_v16  ;;  %vm2037_vm2 = vweird.f32 %v2030_v16  ;;  %v2041_v23 = vand.u32 2147483647, %v2030_v16 }
 0x73e   :  { %v1985_v5 = vpop.f32.mrf.mxu3  ;;  %v2044_v41 = vor.u32 1.1754944e-38, %v2043_v47  ;;  %vm2042_vm6 = vcmp.eq.f32.partialorder %v2041_v23, 8.507059e+37 }
 0x73f   :  { %v2062_v50 = vadd.f32 %v3497_v46, %v1985_v5  ;;  %v3499_v5 = vld [vmem:[%s6474_s0 + $0x170] sm:$0xff] }
 0x741   :  { %v3827_v60 = vpop.eup %3826  ;;  %v3503_v4 = vmul.f32 -1.442695, %v2062_v50  ;;  %v6652_v50 = vld [vmem:[#allocation4_spill] sm:$0xff] }
 0x742   :  { %v3829_v45 = vpop.eup %3828  ;;  %v2031_v18 = vadd.f32 1.0, %v3827_v60 }
 0x743   :  { %3830 = vpow2.f32 %v3503_v4  ;;  %v2033_v15 = vmul.f32 %v3829_v45, %v2030_v16  ;;  %vm2038_vm1 = vweird.f32 %v3829_v45  ;;  %v6653_v4 = vld [vmem:[#allocation23_spill] sm:$0xff] }
 0x744   :  { %3832 = vrcp.f32 %v2031_v18  ;;  %vm6170_vm3 = vmor %vm2037_vm2, %vm2038_vm1  ;;  %v2058_v3 = vand.u32 2147483648, %v2031_v18  ;;  %vm2052_vm5 = vweird.f32 %v2031_v18  ;;  %v2056_v56 = vand.u32 2147483647, %v2031_v18 }
 0x745   :  { %v2034_v32 = vsub.f32 1.0, %v2033_v15 }
 0x746   :  { %v1988_v10 = vpop.f32.mrf.mxu3  ;;  %v2059_v16 = vor.u32 1.1754944e-38, %v2058_v3  ;;  %vm2057_vm9 = vcmp.eq.f32.partialorder %v2056_v56, 8.507059e+37 }
 0x747   :  { %v2063_v27 = vadd.f32 %v3498_v20, %v1988_v10  ;;  %v2035_v8 = vmul.f32 %v3829_v45, %v2034_v32 }
 0x749   :  { %v3831_v2 = vpop.eup %3830  ;;  %v3504_v21 = vmul.f32 -1.442695, %v2063_v27  ;;  %v2036_v44 = vadd.f32 %v3829_v45, %v2035_v8  ;;  %v6655_v8 = vld [vmem:[#allocation17_spill] sm:$0xff] }
 0x74a   :  { %v3833_v6 = vpop.eup %3832  ;;  %v2070_v11 = vadd.f32 1.0, %v3831_v2 }
 0x74b   :  { %3834 = vpow2.f32 %v3504_v21  ;;  %v2048_v13 = vmul.f32 %v3833_v6, %v2031_v18  ;;  %vm2053_vm4 = vweird.f32 %v3833_v6  ;;  %v2040_v30 = vsel %vm6170_vm3, %v3829_v45, %v2036_v44  ;;  %v6654_v45 = vld [vmem:[#allocation22_spill] sm:$0xff]  ;;  %v2118_v44 = vld [vmem:[%s6475_s1] sm:$0xff] }
 0x74c   :  { %3836 = vrcp.f32 %v2070_v11  ;;  %vm2054_vm7 = vmor %vm2052_vm5, %vm2053_vm4  ;;  %v2045_v24 = vsel %vm2042_vm6, %v2044_v41, %v2040_v30  ;;  %v2292_v18 = vadd.f32 %v6654_v45, %v6653_v4  ;;  %v2083_v15 = vand.u32 2147483648, %v2070_v11 }
 0x74d   :  { %v2049_v22 = vsub.f32 1.0, %v2048_v13  ;;  %vm2077_vm10 = vweird.f32 %v2070_v11  ;;  %v2081_v32 = vand.u32 2147483647, %v2070_v11 }
 0x74e   :  { %v1991_v53 = vpop.f32.mrf.mxu3  ;;  %v2293_v13 = vadd.f32 %v2292_v18, %v6655_v8 }
 0x74f   :  { %v2050_v26 = vmul.f32 %v3833_v6, %v2049_v22  ;;  %v2102_v51 = vadd.f32 %v1991_v53, %v6651_v28  ;;  %v2084_v22 = vor.u32 1.1754944e-38, %v2083_v15  ;;  %vm2082_vm12 = vcmp.eq.f32.partialorder %v2081_v32, 8.507059e+37 }
 0x751   :  { %v3835_v55 = vpop.eup %3834  ;;  %v2051_v57 = vadd.f32 %v3833_v6, %v2050_v26  ;;  %v2104_v49 = vmul.f32 %v2102_v51, %v2045_v24 }
 0x752   :  { %v3837_v35 = vpop.eup %3836  ;;  %v2071_v25 = vadd.f32 1.0, %v3835_v55 }
 0x753   :  { %v2073_v31 = vmul.f32 %v3837_v35, %v2070_v11  ;;  %v2055_v9 = vsel %vm2054_vm7, %v3833_v6, %v2051_v57  ;;  %vm2078_vm8 = vweird.f32 %v3837_v35  ;;  %v2106_v2 = vadd.f32 %v3499_v5, %v2104_v49  ;;  %v6656_v57 = vld [vmem:[#allocation16_spill] sm:$0xff] }
 0x754   :  { %3838 = vrcp.f32 %v2071_v25  ;;  %v2060_v20 = vsel %vm2057_vm9, %v2059_v16, %v2055_v9  ;;  %vm2079_vm11 = vmor %vm2077_vm10, %vm2078_vm8  ;;  %v2098_v19 = vand.u32 2147483648, %v2071_v25  ;;  %v2096_v55 = vand.u32 2147483647, %v2071_v25 }
 0x755   :  { %v2074_v61 = vsub.f32 1.0, %v2073_v31  ;;  %3840 = vtanh.f32 %v2106_v2  ;;  %vm2092_vm14 = vweird.f32 %v2071_v25 }
 0x756   :  { %v1994_v29 = vpop.f32.mrf.mxu3  ;;  %v2099_v3 = vor.u32 1.1754944e-38, %v2098_v19  ;;  %vm2097_vm1 = vcmp.eq.f32.partialorder %v2096_v55, 8.507059e+37 }
 0x757   :  { %v2075_v46 = vmul.f32 %v3837_v35, %v2074_v61  ;;  %v2103_v60 = vadd.f32 %v1994_v29, %v6652_v50  ;;  %v2119_v61 = vld [vmem:[%s6475_s1 + $0x8] sm:$0xff] }
 0x759   :  { %v2076_v10 = vadd.f32 %v3837_v35, %v2075_v46  ;;  %v2105_v7 = vmul.f32 %v2103_v60, %v2060_v20 }
 0x75a   :  { %v3839_v27 = vpop.eup %3838 }
 0x75b   :  { %v2088_v21 = vmul.f32 %v3839_v27, %v2071_v25  ;;  %v2080_v6 = vsel %vm2079_vm11, %v3837_v35, %v2076_v10  ;;  %v2107_v53 = vadd.f32 %v3500_v52, %v2105_v7  ;;  %vm2093_vm13 = vweird.f32 %v3839_v27  ;;  %v3841_v41 = vpop.eup %3840  ;;  %v2120_v7 = vld [vmem:[%s6475_s1 + $0x10] sm:$0xff] }
 0x75c   :  { %v2085_v47 = vsel %vm2082_vm12, %v2084_v22, %v2080_v6  ;;  %v2294_v35 = vadd.f32 %v2293_v13, %v6656_v57  ;;  %vm2094_vm15 = vmor %vm2092_vm14, %vm2093_vm13  ;;  %v6658_v13 = vld [vmem:[#allocation8_spill] sm:$0xff] }
 0x75d   :  { %v2089_v11 = vsub.f32 1.0, %v2088_v21  ;;  %3842 = vtanh.f32 %v2107_v53  ;;  %v2110_v28 = vsub.f32 1.0, %v2085_v47  ;;  %v2114_v25 = vmul.f32 %v2085_v47, %v5894_v38 }
 0x75e   :  { %v1997_v26 = vpop.f32.mrf.mxu3  ;;  %v2295_v49 = vrot.slane %v2294_v35, 4 }
 0x75f   :  { %v2090_v23 = vmul.f32 %v3839_v27, %v2089_v11  ;;  %v2124_v17 = vadd.f32 %v2118_v44, %v1997_v26  ;;  %v2112_v24 = vmul.f32 %v3841_v41, %v2110_v28 }
 0x760   :  { %v2296_v10 = vadd.f32 %v2295_v49, %v2294_v35  ;;  %v2121_v35 = vld [vmem:[%s6475_s1 + $0x18] sm:$0xff] }
 0x761   :  { %v2091_v30 = vadd.f32 %v3839_v27, %v2090_v23  ;;  %v3505_v51 = vmul.f32 -1.442695, %v2124_v17  ;;  %v6196_v18 = vadd.f32 %v2114_v25, %v2112_v24 }
 0x762   :  { %v2297_v21 = vrot.slane %v2296_v10, 2 }
 0x763   :  { %v2095_v31 = vsel %vm2094_vm15, %v3839_v27, %v2091_v30  ;;  %3844 = vpow2.f32 %v3505_v51  ;;  %v3843_v29 = vpop.eup %3842  ;;  %v6657_v27 = vld [vmem:[#allocation9_spill] sm:$0xff] }
 0x764   :  { %v2100_v56 = vsel %vm2097_vm1, %v2099_v3, %v2095_v31  ;;  %v2298_v47 = vadd.f32 %v2297_v21, %v2296_v10 }
 0x765   :  { %v2111_v9 = vsub.f32 1.0, %v2100_v56  ;;  %v2115_v5 = vmul.f32 %v2100_v56, %v5892_v42 }
 0x766   :  { %v2000_v16 = vpop.f32.mrf.mxu3  ;;  %v2299_v51 = vrot.slane %v2298_v47, 1 }
 0x767   :  { %v2113_v46 = vmul.f32 %v3843_v29, %v2111_v9  ;;  %v2125_v50 = vadd.f32 %v2119_v61, %v2000_v16 }
 0x768   :  { %v2300_v49 = vadd.f32 %v2299_v51, %v2298_v47 }
 0x769   :  { %v3845_v60 = vpop.eup %3844  ;;  %v6198_v15 = vadd.f32 %v2115_v5, %v2113_v46  ;;  %v3506_v20 = vmul.f32 -1.442695, %v2125_v50 }
 0x76a   :  { %v2132_v32 = vadd.f32 1.0, %v3845_v60 }
 0x76b   :  { %v2319_v52 = vadd.f32 %v6198_v15, %v6196_v18  ;;  %3846 = vpow2.f32 %v3506_v20  ;;  %v6218_v20 = vmul.f32 %v5717_v12, %v2300_v49 }
 0x76c   :  { %3848 = vrcp.f32 %v2132_v32  ;;  %v2145_v5 = vand.u32 2147483648, %v2132_v32  ;;  %vm2139_vm3 = vweird.f32 %v2132_v32  ;;  %v2143_v50 = vand.u32 2147483647, %v2132_v32 }
 0x76d   :  { %v2320_v2 = vadd.f32 %v2319_v52, %v6657_v27  ;;  %v6231_v47 = vsub.f32 %v6653_v4, %v6218_v20 }
 0x76e   :  { %v2003_v6 = vpop.f32.mrf.mxu3  ;;  %v2146_v21 = vor.u32 1.1754944e-38, %v2145_v5  ;;  %vm2144_vm5 = vcmp.eq.f32.partialorder %v2143_v50, 8.507059e+37 }
 0x76f   :  { %v2321_v22 = vadd.f32 %v2320_v2, %v6658_v13  ;;  %v2164_v53 = vadd.f32 %v2120_v7, %v2003_v6  ;;  %v6659_v6 = vld [vmem:[#allocation7_spill] sm:$0xff] }
 0x771   :  { %v3847_v44 = vpop.eup %3846  ;;  %v2322_v11 = vrot.slane %v2321_v22, 4  ;;  %v3507_v19 = vmul.f32 -1.442695, %v2164_v53 }
 0x772   :  { %v3849_v26 = vpop.eup %3848  ;;  %v6207_v23 = vadd.f32 1.0, %v3847_v44 }
 0x773   :  { %v2323_v55 = vadd.f32 %v2322_v11, %v2321_v22  ;;  %3850 = vpow2.f32 %v3507_v19  ;;  %v2135_v17 = vmul.f32 %v3849_v26, %v2132_v32  ;;  %vm2140_vm2 = vweird.f32 %v3849_v26 }
 0x774   :  { %3852 = vrcp.f32 %v6207_v23  ;;  %vm2141_vm4 = vmor %vm2139_vm3, %vm2140_vm2  ;;  %v2160_v19 = vand.u32 2147483648, %v6207_v23  ;;  %vm2154_vm6 = vweird.f32 %v6207_v23 }
 0x775   :  { %v2324_v30 = vrot.slane %v2323_v55, 2  ;;  %v2136_v28 = vsub.f32 1.0, %v2135_v17 }
 0x776   :  { %v2006_v3 = vpop.f32.mrf.mxu3  ;;  %v2161_v49 = vor.u32 1.1754944e-38, %v2160_v19 }
 0x777   :  { %v2325_v31 = vadd.f32 %v2324_v30, %v2323_v55  ;;  %v2165_v41 = vadd.f32 %v2121_v35, %v2006_v3  ;;  %v2137_v56 = vmul.f32 %v3849_v26, %v2136_v28  ;;  %v2122_v3 = vld [vmem:[%s6475_s1 + $0x20] sm:$0xff] }
 0x779   :  { %v3851_v61 = vpop.eup %3850  ;;  %v2326_v24 = vrot.slane %v2325_v31, 1  ;;  %v3508_v9 = vmul.f32 -1.442695, %v2165_v41  ;;  %v2138_v16 = vadd.f32 %v3849_v26, %v2137_v56  ;;  %v6248_v41 = vsub.f32 %v6654_v45, %v6218_v20 }
 0x77a   :  { %v6213_v29 = vadd.f32 1.0, %v3851_v61  ;;  %v3853_v25 = vpop.eup %3852  ;;  %v2158_v56 = vand.u32 2147483647, %v6207_v23 }
 0x77b   :  { %v2327_v46 = vadd.f32 %v2326_v24, %v2325_v31  ;;  %3854 = vpow2.f32 %v3508_v9  ;;  %v2142_v52 = vsel %vm2141_vm4, %v3849_v26, %v2138_v16  ;;  %v2150_v7 = vmul.f32 %v3853_v25, %v6207_v23 }
 0x77c   :  { %3856 = vrcp.f32 %v6213_v29  ;;  %v2147_v11 = vsel %vm2144_vm5, %v2146_v21, %v2142_v52  ;;  %vm2155_vm7 = vweird.f32 %v3853_v25  ;;  %v2183_v24 = vand.u32 2147483647, %v6213_v29 }
 0x77d   :  { %v2342_v60 = vmul.f32 %v5717_v12, %v2327_v46  ;;  %v2151_v32 = vsub.f32 1.0, %v2150_v7  ;;  %v2185_v9 = vand.u32 2147483648, %v6213_v29  ;;  %vm2156_vm9 = vmor %vm2154_vm6, %vm2155_vm7  ;;  %v6660_v7 = vld [vmem:[#allocation5_spill] sm:$0xff]  ;;  %vm2159_vm10 = vcmp.eq.f32.partialorder %v2158_v56, 8.507059e+37 }
 0x77e   :  { %v2009_v10 = vpop.f32.mrf.mxu3  ;;  %vm2179_vm11 = vweird.f32 %v6213_v29  ;;  %vm2184_vm13 = vcmp.eq.f32.partialorder %v2183_v24, 8.507059e+37 }
 0x77f   :  { %v6222_v2 = vsub.f32 %v6198_v15, %v2342_v60  ;;  %v2204_v22 = vadd.f32 %v2009_v10, %v6659_v6  ;;  %v6226_v53 = vsub.f32 %v6196_v18, %v2342_v60  ;;  %v2152_v35 = vmul.f32 %v3853_v25, %v2151_v32 }
 0x780   :  { %v6236_v30 = vsub.f32 %v6657_v27, %v2342_v60  ;;  %v6256_v50 = vsub.f32 %v6658_v13, %v2342_v60  ;;  %v2392_v32 = vmul.f32 %v6248_v41, %v6248_v41  ;;  %v2123_v60 = vld [vmem:[%s6475_s1 + $0x28] sm:$0xff] }
 0x781   :  { %v3855_v44 = vpop.eup %3854  ;;  %v2206_v17 = vmul.f32 %v2204_v22, %v2147_v11  ;;  %v2404_v28 = vmul.f32 %v6222_v2, %v6222_v2  ;;  %v2403_v31 = vmul.f32 %v6226_v53, %v6226_v53  ;;  %v2153_v5 = vadd.f32 %v3853_v25, %v2152_v35 }
 0x782   :  { %v3857_v26 = vpop.eup %3856  ;;  %v6233_v55 = vadd.f32 1.0, %v3855_v44  ;;  %v2405_v10 = vmul.f32 %v6236_v30, %v6236_v30  ;;  %v2391_v22 = vmul.f32 %v6231_v47, %v6231_v47  ;;  %v2186_v35 = vor.u32 1.1754944e-38, %v2185_v9 }
 0x783   :  { %v2175_v51 = vmul.f32 %v3857_v26, %v6213_v29  ;;  %v2208_v16 = vadd.f32 %v2206_v17, %v2122_v3  ;;  %vm2180_vm8 = vweird.f32 %v3857_v26  ;;  %v2470_v21 = vadd.f32 %v2404_v28, %v2403_v31 }
 0x784   :  { %3858 = vrcp.f32 %v6233_v55  ;;  %v2157_v6 = vsel %vm2156_vm9, %v3853_v25, %v2153_v5  ;;  %vm2181_vm12 = vmor %vm2179_vm11, %vm2180_vm8  ;;  %v2406_v28 = vmul.f32 %v6256_v50, %v6256_v50  ;;  %v2200_v9 = vand.u32 2147483648, %v6233_v55 }
 0x785   :  { %v2176_v61 = vsub.f32 1.0, %v2175_v51  ;;  %v2162_v11 = vsel %vm2159_vm10, %v2161_v49, %v2157_v6  ;;  %v2471_v19 = vadd.f32 %v2470_v21, %v2405_v10  ;;  %3860 = vtanh.f32 %v2208_v16 }
 0x786   :  { %v2012_v46 = vpop.f32.mrf.mxu3  ;;  %v2443_v5 = vadd.f32 %v2392_v32, %v2391_v22  ;;  %v2198_v24 = vand.u32 2147483647, %v6233_v55  ;;  %vm2194_vm15 = vweird.f32 %v6233_v55  ;;  %v2201_v22 = vor.u32 1.1754944e-38, %v2200_v9 }
 0x787   :  { %v2177_v52 = vmul.f32 %v3857_v26, %v2176_v61  ;;  %v2205_v23 = vadd.f32 %v2012_v46, %v6660_v7  ;;  %v2472_v56 = vadd.f32 %v2471_v19, %v2406_v28  ;;  %v6274_v61 = vsub.f32 %v6655_v8, %v6218_v20 }
 0x788   :  { %v6280_v7 = vsub.f32 %v6656_v57, %v6218_v20  ;;  %vm2199_vm2 = vcmp.eq.f32.partialorder %v2198_v24, 8.507059e+37 }
 0x789   :  { %v2178_v44 = vadd.f32 %v3857_v26, %v2177_v52  ;;  %v2207_v25 = vmul.f32 %v2205_v23, %v2162_v11  ;;  %v2473_v16 = vrot.slane %v2472_v56, 4  ;;  %v2393_v23 = vmul.f32 %v6274_v61, %v6274_v61 }
 0x78a   :  { %v3859_v17 = vpop.eup %3858  ;;  %v2394_v20 = vmul.f32 %v6280_v7, %v6280_v7 }
 0x78b   :  { %v2190_v51 = vmul.f32 %v3859_v17, %v6233_v55  ;;  %v2182_v3 = vsel %vm2181_vm12, %v3857_v26, %v2178_v44  ;;  %v2209_v29 = vadd.f32 %v2207_v25, %v2123_v60  ;;  %vm2195_vm14 = vweird.f32 %v3859_v17  ;;  %v3861_v52 = vpop.eup %3860 }
 0x78c   :  { %v2187_v31 = vsel %vm2184_vm13, %v2186_v35, %v2182_v3  ;;  %v2474_v26 = vadd.f32 %v2473_v16, %v2472_v56  ;;  %vm2196_vm1 = vmor %vm2194_vm15, %vm2195_vm14  ;;  %v2444_v44 = vadd.f32 %v2443_v5, %v2393_v23  ;;  %v6662_v56 = vld [vmem:[#allocation10_spill] sm:$0xff]  ;;  %vm3066_vm12 = vcmask 1042434  }
 0x78d   :  { %v2191_v49 = vsub.f32 1.0, %v2190_v51  ;;  %v2212_v46 = vsub.f32 1.0, %v2187_v31  ;;  %3862 = vtanh.f32 %v2209_v29  ;;  %v2216_v60 = vmul.f32 %v2187_v31, %v6016_v14  ;;  %v6661_v29 = vld [vmem:[#allocation11_spill] sm:$0xff] }
 0x78e   :  { %v2475_v32 = vrot.slane %v2474_v26, 2  ;;  %v2445_v55 = vadd.f32 %v2444_v44, %v2394_v20  ;;  %vm3069_vm13 = vcmask 1043459   ;;  %vm3072_vm14 = vcmask 1044484  }
 0x78f   :  { %v2192_v10 = vmul.f32 %v3859_v17, %v2191_v49  ;;  %v2214_v6 = vmul.f32 %v3861_v52, %v2212_v46  ;;  %v2256_v49 = vadd.f32 %v6662_v56, %v6661_v29  ;;  %vm3075_vm15 = vcmask 1045509  }
 0x790   :  { %v2476_v35 = vadd.f32 %v2475_v32, %v2474_v26 }
 0x791   :  { %v2193_v21 = vadd.f32 %v3859_v17, %v2192_v10  ;;  %v6288_v25 = vadd.f32 %v2216_v60, %v2214_v6  ;;  %v2446_v10 = vrot.slane %v2445_v55, 4 }
 0x792   :  { %v2477_v3 = vrot.slane %v2476_v35, 1 }
 0x793   :  { %v2197_v11 = vsel %vm2196_vm1, %v3859_v17, %v2193_v21  ;;  %v3863_v51 = vpop.eup %3862  ;;  %v2257_v17 = vadd.f32 %v2256_v49, %v6288_v25  ;;  %v2447_v23 = vadd.f32 %v2446_v10, %v2445_v55  ;;  %vm3078_vm1 = vcmask 1046534  }
 0x794   :  { %v2202_v19 = vsel %vm2199_vm2, %v2201_v22, %v2197_v11  ;;  %v2478_v16 = vadd.f32 %v2477_v3, %v2476_v35  ;;  %vm3081_vm2 = vcmask 1047559  }
 0x795   :  { %v2213_v28 = vsub.f32 1.0, %v2202_v19  ;;  %v2217_v9 = vmul.f32 %v2202_v19, %v6024_v48  ;;  %v2448_v22 = vrot.slane %v2447_v23, 2 }
 0x796   :  { %v2486_v5 = vmul.f32 %v2478_v16, %v5717_v12 }
 0x797   :  { %v2215_v46 = vmul.f32 %v3863_v51, %v2213_v28  ;;  %v2449_v19 = vadd.f32 %v2448_v22, %v2447_v23 }
 0x798   :  { %v2494_v52 = vadd.f32 1e-05, %v2486_v5 }
 0x799   :  { %v6294_v31 = vadd.f32 %v2217_v9, %v2215_v46  ;;  %v2450_v3 = vrot.slane %v2449_v19, 1 }
 0x79a   :  { %3864 = vrsqrt.f32 %v2494_v52  ;;  %vm2571_vm4 = vweird.f32 %v2494_v52 }
 0x79b   :  { %v2258_v24 = vadd.f32 %v2257_v17, %v6294_v31 }
 0x79d   :  { %v2259_v26 = vrot.slane %v2258_v24, 4 }
 0x79f   :  { %v2260_v21 = vadd.f32 %v2259_v26, %v2258_v24 }
 0x7a0   :  { %v3865_v44 = vpop.eup %3864 }
 0x7a1   :  { %v2261_v6 = vrot.slane %v2260_v21, 2  ;;  %v2566_v11 = vmul.f32 %v3865_v44, %v2494_v52  ;;  %vm2572_vm3 = vweird.f32 %v3865_v44 }
 0x7a2   :  { %vm2573_vm5 = vmor %vm2571_vm4, %vm2572_vm3 }
 0x7a3   :  { %v2262_v32 = vadd.f32 %v2261_v6, %v2260_v21  ;;  %v2567_v35 = vmul.f32 %v3865_v44, %v2566_v11  ;;  %v2451_v21 = vadd.f32 %v2450_v3, %v2449_v19 }
 0x7a5   :  { %v2263_v60 = vrot.slane %v2262_v32, 1  ;;  %v2568_v28 = vmul.f32 0.5, %v2567_v35 }
 0x7a7   :  { %v2264_v20 = vadd.f32 %v2263_v60, %v2262_v32  ;;  %v2569_v49 = vsub.f32 1.5, %v2568_v28  ;;  %v2483_v28 = vmul.f32 %v2451_v21, %v5717_v12 }
 0x7a9   :  { %v2335_v51 = vmul.f32 %v5717_v12, %v2264_v20  ;;  %v2570_v16 = vmul.f32 %v3865_v44, %v2569_v49  ;;  %v2491_v49 = vadd.f32 1e-05, %v2483_v28 }
 0x7ab   :  { %v6300_v46 = vsub.f32 %v6661_v29, %v2335_v51  ;;  %v6303_v55 = vsub.f32 %v6662_v56, %v2335_v51  ;;  %v6306_v9 = vsub.f32 %v6288_v25, %v2335_v51  ;;  %v2346_v17 = vsub.f32 %v6294_v31, %v2335_v51 }
 0x7ac   :  { %v2574_v24 = vsel %vm2573_vm5, %v3865_v44, %v2570_v16  ;;  %3866 = vrsqrt.f32 %v2491_v49  ;;  %vm2541_vm10 = vweird.f32 %v2491_v49 }
 0x7ad   :  { %v2375_v5 = vmul.f32 %v6300_v46, %v6300_v46  ;;  %v2376_v10 = vmul.f32 %v6303_v55, %v6303_v55  ;;  %v2377_v26 = vmul.f32 %v6306_v9, %v6306_v9  ;;  %v2606_v6 = vmul.f32 %v2574_v24, %v6256_v50 }
 0x7ae   :  { %v2605_v52 = vmul.f32 %v2574_v24, %v6236_v30  ;;  %v2604_v22 = vmul.f32 %v2574_v24, %v6222_v2  ;;  %v2378_v32 = vmul.f32 %v2346_v17, %v2346_v17  ;;  %v2603_v20 = vmul.f32 %v2574_v24, %v6226_v53  ;;  %v6331_v24 = vld [vmem:[%s6476_s6] sm:$0xff] }
 0x7af   :  { %v2407_v23 = vadd.f32 %v2376_v10, %v2375_v5  ;;  %v2662_v11 = vmul.f32 %v5731_v39, %v2606_v6 }
 0x7b0   :  { %v2661_v35 = vmul.f32 %v5747_v34, %v2605_v52  ;;  %v2660_v19 = vmul.f32 %v5758_v33, %v2604_v22  ;;  %v2659_v2 = vmul.f32 %v5773_v0, %v2603_v20 }
 0x7b1   :  { %v2408_v60 = vadd.f32 %v2407_v23, %v2377_v26  ;;  %v2718_v51 = vadd.f32 %v5749_v54, %v2662_v11 }
 0x7b2   :  { %v2717_v30 = vadd.f32 %v5760_v37, %v2661_v35  ;;  %v2716_v16 = vadd.f32 %v5777_v36, %v2660_v19  ;;  %v2715_v53 = vadd.f32 %v5780_v63, %v2659_v2  ;;  %v3867_v21 = vpop.eup %3866 }
 0x7b3   :  { %v2409_v44 = vadd.f32 %v2408_v60, %v2378_v32  ;;  %2912 = vmatpush.msrb.mxu3 %v2718_v51  ;;  %v2536_v22 = vmul.f32 %v3867_v21, %v2491_v49  ;;  %v3953_v32 = vld [vmem:[%s6476_s6 + $0x8] sm:$0xff]  ;;  %vm2542_vm8 = vweird.f32 %v3867_v21 }
 0x7b4   :  { %vm2543_vm11 = vmor %vm2541_vm10, %vm2542_vm8 }
 0x7b5   :  { %v2410_v50 = vrot.slane %v2409_v44, 4  ;;  %2913 = vmatpush.msrb.mxu3 %v2717_v30  ;;  %v2537_v60 = vmul.f32 %v3867_v21, %v2536_v22 }
 0x7b7   :  { %v2411_v3 = vadd.f32 %v2410_v50, %v2409_v44  ;;  %2914 = vmatpush.msrb.mxu3 %v2716_v16  ;;  %v2538_v20 = vmul.f32 0.5, %v2537_v60 }
 0x7b9   :  { %v2412_v5 = vrot.slane %v2411_v3, 2  ;;  %2915 = vmatpush.msrb.mxu3 %v2715_v53  ;;  %v2539_v51 = vsub.f32 1.5, %v2538_v20 }
 0x7ba   :  { %3523 = vmatmul.msk.f32.vlgmr.msrb.gmra.mxu3 %vm78_vm0, %v6331_v24 }
 0x7bb   :  { %v2413_v10 = vadd.f32 %v2412_v5, %v2411_v3 }
 0x7bd   :  { %v2414_v26 = vrot.slane %v2413_v10, 1 }
 0x7bf   :  { %v2415_v23 = vadd.f32 %v2414_v26, %v2413_v10 }
 0x7c1   :  { %v2479_v6 = vmul.f32 %v2415_v23, %v5717_v12  ;;  %v2540_v12 = vmul.f32 %v3867_v21, %v2539_v51  ;;  %v6369_v51 = vpop.permute.xlu0 %2725 }
 0x7c2   :  { %3524 = vmatmul.msk.f32.gmra.mxu3 %vm78_vm0, %v3953_v32 }
 0x7c3   :  { %v2487_v52 = vadd.f32 1e-05, %v2479_v6  ;;  %v2544_v5 = vsel %vm2543_vm11, %v3867_v21, %v2540_v12 }
 0x7c5   :  { %3868 = vrsqrt.f32 %v2487_v52  ;;  %vm2501_vm7 = vweird.f32 %v2487_v52 }
 0x7cb   :  { %v3869_v11 = vpop.eup %3868 }
 0x7cc   :  { %v2496_v35 = vmul.f32 %v3869_v11, %v2487_v52  ;;  %vm2502_vm6 = vweird.f32 %v3869_v11  ;;  %v2594_v52 = vmul.f32 %v2544_v5, %v6280_v7  ;;  %v2591_v7 = vmul.f32 %v2544_v5, %v6231_v47  ;;  %v2825_v47 = vpop.f32.mrf.mxu3 }
 0x7cd   :  { %vm2503_vm9 = vmor %vm2501_vm7, %vm2502_vm6 }
 0x7ce   :  { %v2497_v44 = vmul.f32 %v3869_v11, %v2496_v35  ;;  %v2650_v21 = vmul.f32 %v5731_v39, %v2594_v52  ;;  %v2826_v52 = vadd.f32 %v2825_v47, %v6369_v51 }
 0x7d0   :  { %v2498_v28 = vmul.f32 0.5, %v2497_v44 }
 0x7d2   :  { %v2499_v19 = vsub.f32 1.5, %v2498_v28 }
 0x7d4   :  { %v2500_v50 = vmul.f32 %v3869_v11, %v2499_v19 }
 0x7d6   :  { %v2504_v30 = vsel %vm2503_vm9, %v3869_v11, %v2500_v50  ;;  %v2706_v11 = vadd.f32 %v5749_v54, %v2650_v21 }
 0x7d7   :  { %v2578_v2 = vmul.f32 %v2504_v30, %v2346_v17  ;;  %v2577_v3 = vmul.f32 %v2504_v30, %v6306_v9  ;;  %v2576_v16 = vmul.f32 %v2504_v30, %v6303_v55  ;;  %v2575_v26 = vmul.f32 %v2504_v30, %v6300_v46 }
 0x7d8   :  { %v2593_v55 = vmul.f32 %v2544_v5, %v6274_v61  ;;  %v2592_v46 = vmul.f32 %v2544_v5, %v6248_v41  ;;  %v2647_v41 = vmul.f32 %v5773_v0, %v2591_v7 }
 0x7d9   :  { %v2634_v53 = vmul.f32 %v5731_v39, %v2578_v2  ;;  %v2633_v10 = vmul.f32 %v5747_v34, %v2577_v3  ;;  %v2632_v6 = vmul.f32 %v5758_v33, %v2576_v16  ;;  %v2631_v9 = vmul.f32 %v5773_v0, %v2575_v26  ;;  %v2828_v0 = vpop.f32.mrf.mxu3 }
 0x7da   :  { %v2649_v60 = vmul.f32 %v5747_v34, %v2593_v55  ;;  %v2648_v35 = vmul.f32 %v5758_v33, %v2592_v46  ;;  %v2703_v34 = vadd.f32 %v5780_v63, %v2647_v41  ;;  %v2779_v33 = vpop.f32.mrf.mxu1 }
 0x7db   :  { %v2690_v23 = vadd.f32 %v5749_v54, %v2634_v53  ;;  %v2689_v17 = vadd.f32 %v5760_v37, %v2633_v10  ;;  %v2688_v49 = vadd.f32 %v5777_v36, %v2632_v6  ;;  %v2687_v22 = vadd.f32 %v5780_v63, %v2631_v9  ;;  %v2802_v54 = vpop.f32.mrf.mxu2  ;;  %v6371_v63 = vpop.permute.xlu1 %2730 }
 0x7dc   :  { %v2705_v39 = vadd.f32 %v5760_v37, %v2649_v60  ;;  %v2704_v61 = vadd.f32 %v5777_v36, %v2648_v35  ;;  %v2803_v19 = vadd.f32 %v2802_v54, %v6369_v51  ;;  %v2829_v26 = vadd.f32 %v2828_v0, %v6371_v63 }
 0x7dd   :  { %2751 = vmatpush.msra.mxu0 %v2690_v23  ;;  %v2780_v55 = vadd.f32 %v2779_v33, %v6369_v51 }
 0x7de   :  { %3870 = vtanh.f32 %v2803_v19 }
 0x7df   :  { %2752 = vmatpush.msra.mxu0 %v2689_v17 }
 0x7e1   :  { %2753 = vmatpush.msra.mxu0 %v2688_v49 }
 0x7e2   :  { %v2782_v20 = vpop.f32.mrf.mxu1 }
 0x7e3   :  { %2754 = vmatpush.msra.mxu0 %v2687_v22  ;;  %v2805_v37 = vpop.f32.mrf.mxu2  ;;  %v2783_v2 = vadd.f32 %v2782_v20, %v6371_v63 }
 0x7e4   :  { %3509 = vmatmul.msk.f32.vlgmr.msra.gmra.mxu0 %vm78_vm0, %v6331_v24  ;;  %v3871_v6 = vpop.eup %3870 }
 0x7e5   :  { %2843 = vmatpush.msrb.mxu0 %v2706_v11 }
 0x7e7   :  { %2844 = vmatpush.msrb.mxu0 %v2705_v39 }
 0x7e9   :  { %2845 = vmatpush.msrb.mxu0 %v2704_v61  ;;  %v2949_v61 = vpop.permute.xlu0 %2948 }
 0x7ea   :  { %v2871_v28 = vpop.f32.mrf.mxu1 }
 0x7eb   :  { %2846 = vmatpush.msrb.mxu0 %v2703_v34  ;;  %v2894_v44 = vpop.f32.mrf.mxu2  ;;  %v2872_v5 = vadd.f32 %v2871_v28, %v6369_v51 }
 0x7ec   :  { %3510 = vmatmul.msk.f32.gmra.mxu0 %vm78_vm0, %v3953_v32 }
 0x7f2   :  { %v2874_v30 = vpop.f32.mrf.mxu1 }
 0x7f3   :  { %v2897_v50 = vpop.f32.mrf.mxu2  ;;  %v2875_v53 = vadd.f32 %v2874_v30, %v6371_v63 }
 0x7f4   :  { %3517 = vmatmul.msk.f32.vlgmr.msrb.gmra.mxu0 %vm78_vm0, %v6331_v24  ;;  %v2806_v24 = vadd.f32 %v2805_v37, %v6371_v63  ;;  %v2898_v12 = vadd.f32 %v2897_v50, %v6371_v63  ;;  %v2944_v37 = vpop.permute.xlu2 %2943 }
 0x7f6   :  { %3872 = vtanh.f32 %v2806_v24 }
 0x7fc   :  { %3518 = vmatmul.msk.f32.gmra.mxu0 %vm78_vm0, %v3953_v32  ;;  %v2895_v32 = vadd.f32 %v2894_v44, %v6369_v51  ;;  %v3873_v17 = vpop.eup %3872  ;;  %vm3063_vm0 = vcmask 1041409  }
 0x7fd   :  { %v2956_v50 = vmul.f32 %v3873_v17, %v2949_v61 }
 0x7fe   :  { %3874 = vtanh.f32 %v2895_v32 }
 0x7ff   :  { %3876 = vtanh.f32 %v2898_v12 }
 0x800   :  { %3878 = vtanh.f32 %v2783_v2 }
 0x801   :  { %3880 = vtanh.f32 %v2872_v5 }
 0x802   :  { %3882 = vtanh.f32 %v2875_v53 }
 0x804   :  { %v3875_v9 = vpop.eup %3874 }
 0x805   :  { %v3877_v21 = vpop.eup %3876  ;;  %v2963_v24 = vmul.f32 %v3875_v9, %v2944_v37 }
 0x806   :  { %v3879_v60 = vpop.eup %3878  ;;  %v2964_v20 = vmul.f32 %v3877_v21, %v2949_v61 }
 0x807   :  { %v3881_v7 = vpop.eup %3880  ;;  %v2954_v32 = vmul.f32 %v3879_v60, %v2949_v61 }
 0x808   :  { %v3883_v11 = vpop.eup %3882  ;;  %v2961_v12 = vmul.f32 %v3881_v7, %v2944_v37  ;;  %v3009_v5 = vadd.f32 %v2964_v20, %v2963_v24 }
 0x809   :  { %v2962_v44 = vmul.f32 %v3883_v11, %v2949_v61 }
 0x80a   :  { %v3010_v17 = vrot.slane %v3009_v5, 4 }
 0x83d   :  { %v2917_v36 = vpop.f32.mrf.mxu3 }
 0x83e   :  { %v2918_v23 = vadd.f32 %v2917_v36, %v6369_v51 }
 0x845   :  { %v2920_v3 = vpop.f32.mrf.mxu3 }
 0x846   :  { %v2921_v10 = vadd.f32 %v2920_v3, %v6371_v63 }
 0x848   :  { %3884 = vtanh.f32 %v2921_v10 }
 0x849   :  { %3886 = vtanh.f32 %v2829_v26  ;;  %v3002_v26 = vadd.f32 %v2962_v44, %v2961_v12 }
 0x84a   :  { %3888 = vtanh.f32 %v2918_v23 }
 0x84b   :  { %3890 = vtanh.f32 %v2826_v52  ;;  %v3003_v60 = vrot.slane %v3002_v26, 4 }
 0x84e   :  { %v3885_v35 = vpop.eup %3884 }
 0x84f   :  { %v3887_v39 = vpop.eup %3886  ;;  %v2966_v54 = vmul.f32 %v3885_v35, %v2949_v61 }
 0x850   :  { %v3889_v41 = vpop.eup %3888  ;;  %v2958_v28 = vmul.f32 %v3887_v39, %v2949_v61  ;;  %v3011_v39 = vadd.f32 %v3010_v17, %v3009_v5 }
 0x851   :  { %v3891_v34 = vpop.eup %3890  ;;  %v2965_v36 = vmul.f32 %v3889_v41, %v2944_v37  ;;  %v3004_v41 = vadd.f32 %v3003_v60, %v3002_v26 }
 0x852   :  { %v2957_v30 = vmul.f32 %v3891_v34, %v2944_v37 }
 0x853   :  { %v3016_v2 = vadd.f32 %v2966_v54, %v2965_v36  ;;  %v3005_v36 = vrot.slane %v3004_v41, 2 }
 0x854   :  { %v2988_v23 = vadd.f32 %v2958_v28, %v2957_v30  ;;  %v3012_v28 = vrot.slane %v3011_v39, 2 }
 0x855   :  { %v3017_v21 = vrot.slane %v3016_v2, 4 }
 0x856   :  { %v2989_v7 = vrot.slane %v2988_v23, 4 }
 0x857   :  { %v3018_v35 = vadd.f32 %v3017_v21, %v3016_v2 }
 0x858   :  { %v2990_v34 = vadd.f32 %v2989_v7, %v2988_v23 }
 0x859   :  { %v3019_v20 = vrot.slane %v3018_v35, 2 }
 0x85b   :  { %v3020_v12 = vadd.f32 %v3019_v20, %v3018_v35 }
 0x85d   :  { %v3021_v23 = vrot.slane %v3020_v12, 1 }
 0x85f   :  { %v3022_v17 = vadd.f32 %v3021_v23, %v3020_v12 }
 0x861   :  { %v2756_v16 = vpop.f32.mrf.mxu0 }
 0x862   :  { %v2757_v46 = vadd.f32 %v2756_v16, %v6369_v51  ;;  %v2955_v16 = vmul.f32 %v3871_v6, %v2944_v37 }
 0x869   :  { %v2759_v49 = vpop.f32.mrf.mxu0 }
 0x86a   :  { %v2760_v22 = vadd.f32 %v2759_v49, %v6371_v63 }
 0x86c   :  { %3892 = vtanh.f32 %v2760_v22 }
 0x86d   :  { %3894 = vtanh.f32 %v2780_v55  ;;  %v2981_v55 = vadd.f32 %v2956_v50, %v2955_v16  ;;  %v3006_v16 = vadd.f32 %v3005_v36, %v3004_v41 }
 0x86e   :  { %3896 = vtanh.f32 %v2757_v46 }
 0x86f   :  { %v2982_v11 = vrot.slane %v2981_v55, 4  ;;  %v3007_v21 = vrot.slane %v3006_v16, 1 }
 0x871   :  { %v2848_v33 = vpop.f32.mrf.mxu0 }
 0x872   :  { %v3893_v47 = vpop.eup %3892  ;;  %v2849_v53 = vadd.f32 %v2848_v33, %v6369_v51  ;;  %v2983_v33 = vadd.f32 %v2982_v11, %v2981_v55  ;;  %v3008_v11 = vadd.f32 %v3007_v21, %v3006_v16 }
 0x873   :  { %v3895_v0 = vpop.eup %3894  ;;  %v2952_v3 = vmul.f32 %v3893_v47, %v2949_v61 }
 0x874   :  { %v3897_v19 = vpop.eup %3896  ;;  %v2953_v10 = vmul.f32 %v3895_v0, %v2944_v37  ;;  %3898 = vtanh.f32 %v2849_v53  ;;  %v2984_v24 = vrot.slane %v2983_v33, 2 }
 0x875   :  { %v2951_v52 = vmul.f32 %v3897_v19, %v2944_v37  ;;  %v2991_v19 = vrot.slane %v2990_v34, 2 }
 0x876   :  { %v2974_v49 = vadd.f32 %v2954_v32, %v2953_v10  ;;  %v2985_v10 = vadd.f32 %v2984_v24, %v2983_v33 }
 0x877   :  { %v2967_v46 = vadd.f32 %v2952_v3, %v2951_v52  ;;  %v3013_v3 = vadd.f32 %v3012_v28, %v3011_v39  ;;  %v2992_v5 = vadd.f32 %v2991_v19, %v2990_v34 }
 0x878   :  { %v2975_v6 = vrot.slane %v2974_v49, 4 }
 0x879   :  { %v2851_v22 = vpop.f32.mrf.mxu0  ;;  %v2968_v51 = vrot.slane %v2967_v46, 4 }
 0x87a   :  { %v2852_v9 = vadd.f32 %v2851_v22, %v6371_v63  ;;  %v3899_v54 = vpop.eup %3898  ;;  %v2976_v47 = vadd.f32 %v2975_v6, %v2974_v49  ;;  %v3014_v49 = vrot.slane %v3013_v3, 1 }
 0x87b   :  { %v2969_v0 = vadd.f32 %v2968_v51, %v2967_v46  ;;  %v2959_v63 = vmul.f32 %v3899_v54, %v2944_v37  ;;  %v2993_v46 = vrot.slane %v2992_v5, 1  ;;  %v2986_v37 = vrot.slane %v2985_v10, 1 }
 0x87c   :  { %3900 = vtanh.f32 %v2852_v9  ;;  %v2977_v32 = vrot.slane %v2976_v47, 2  ;;  %v3015_v7 = vadd.f32 %v3014_v49, %v3013_v3 }
 0x87d   :  { %v2970_v30 = vrot.slane %v2969_v0, 2  ;;  %v2994_v6 = vadd.f32 %v2993_v46, %v2992_v5  ;;  %v2987_v51 = vadd.f32 %v2986_v37, %v2985_v10 }
 0x87e   :  { %v2978_v26 = vadd.f32 %v2977_v32, %v2976_v47 }
 0x87f   :  { %v2971_v52 = vadd.f32 %v2970_v30, %v2969_v0  ;;  %v3026_v41 = vmax.f32 %v2994_v6, %v3022_v17  ;;  %v3025_v33 = vmax.f32 %v2987_v51, %v3015_v7 }
 0x881   :  { %v2972_v9 = vrot.slane %v2971_v52, 1  ;;  %v3028_v0 = vmax.f32 %v3025_v33, %v3026_v41 }
 0x882   :  { %v3901_v44 = vpop.eup %3900 }
 0x883   :  { %v2960_v50 = vmul.f32 %v3901_v44, %v2949_v61  ;;  %v2979_v61 = vrot.slane %v2978_v26, 1  ;;  %v2973_v34 = vadd.f32 %v2972_v9, %v2971_v52 }
 0x885   :  { %v2995_v2 = vadd.f32 %v2960_v50, %v2959_v63  ;;  %v2980_v39 = vadd.f32 %v2979_v61, %v2978_v26 }
 0x887   :  { %v2996_v53 = vrot.slane %v2995_v2, 4  ;;  %v3024_v47 = vmax.f32 %v2980_v39, %v3008_v11 }
 0x889   :  { %v2997_v55 = vadd.f32 %v2996_v53, %v2995_v2 }
 0x88b   :  { %v2998_v22 = vrot.slane %v2997_v55, 2 }
 0x88d   :  { %v2999_v60 = vadd.f32 %v2998_v22, %v2997_v55 }
 0x88f   :  { %v3000_v35 = vrot.slane %v2999_v60, 1 }
 0x891   :  { %v3001_v54 = vadd.f32 %v3000_v35, %v2999_v60 }
 0x893   :  { %v3023_v20 = vmax.f32 %v2973_v34, %v3001_v54 }
 0x895   :  { %v3027_v44 = vmax.f32 %v3023_v20, %v3024_v47 }
 0x897   :  { %v3029_v28 = vmax.f32 %v3027_v44, %v3028_v0 }
 0x899   :  { %v3030_v36 = vsub.f32 %v2973_v34, %v3029_v28  ;;  %v3031_v19 = vsub.f32 %v2980_v39, %v3029_v28  ;;  %v3032_v63 = vsub.f32 %v2987_v51, %v3029_v28  ;;  %v3033_v50 = vsub.f32 %v2994_v6, %v3029_v28 }
 0x89a   :  { %v3034_v24 = vsub.f32 %v3001_v54, %v3029_v28  ;;  %v3035_v32 = vsub.f32 %v3008_v11, %v3029_v28  ;;  %v3036_v12 = vsub.f32 %v3015_v7, %v3029_v28  ;;  %v3037_v16 = vsub.f32 %v3022_v17, %v3029_v28 }
 0x89b   :  { %v3038_v30 = vmul.f32 1.442695, %v3030_v36  ;;  %v3040_v2 = vmul.f32 1.442695, %v3031_v19  ;;  %v3042_v3 = vmul.f32 1.442695, %v3032_v63 }
 0x89c   :  { %v3044_v5 = vmul.f32 1.442695, %v3033_v50  ;;  %v3046_v53 = vmul.f32 1.442695, %v3034_v24  ;;  %v3048_v10 = vmul.f32 1.442695, %v3035_v32 }
 0x89d   :  { %3902 = vpow2.f32 %v3038_v30  ;;  %v3050_v26 = vmul.f32 1.442695, %v3036_v12  ;;  %v3052_v23 = vmul.f32 1.442695, %v3037_v16 }
 0x89e   :  { %3904 = vpow2.f32 %v3040_v2 }
 0x89f   :  { %3906 = vpow2.f32 %v3042_v3 }
 0x8a0   :  { %3908 = vpow2.f32 %v3044_v5 }
 0x8a1   :  { %3910 = vpow2.f32 %v3046_v53 }
 0x8a2   :  { %3912 = vpow2.f32 %v3048_v10 }
 0x8a3   :  { %v3903_v52 = vpop.eup %3902  ;;  %3914 = vpow2.f32 %v3050_v26 }
 0x8a4   :  { %v3905_v55 = vpop.eup %3904  ;;  %3916 = vpow2.f32 %v3052_v23 }
 0x8a5   :  { %v3907_v49 = vpop.eup %3906  ;;  %v3062_v21 = vrot.slane %v3905_v55, 7 }
 0x8a6   :  { %v3909_v46 = vpop.eup %3908  ;;  %v3065_v22 = vrot.slane %v3907_v49, 6 }
 0x8a7   :  { %v3911_v37 = vpop.eup %3910  ;;  %v3064_v61 = vsel %vm3063_vm0, %v3062_v21, %v3903_v52  ;;  %v3068_v17 = vrot.slane %v3909_v46, 5 }
 0x8a8   :  { %v3913_v9 = vpop.eup %3912  ;;  %v3067_v60 = vsel %vm3066_vm12, %v3065_v22, %v3064_v61  ;;  %v3071_v7 = vrot.slane %v3911_v37, 4 }
 0x8a9   :  { %v3915_v11 = vpop.eup %3914  ;;  %v3070_v6 = vsel %vm3069_vm13, %v3068_v17, %v3067_v60  ;;  %v3074_v35 = vrot.slane %v3913_v9, 3 }
 0x8aa   :  { %v3917_v51 = vpop.eup %3916  ;;  %v3073_v39 = vsel %vm3072_vm14, %v3071_v7, %v3070_v6  ;;  %v3077_v41 = vrot.slane %v3915_v11, 2 }
 0x8ab   :  { %v3076_v34 = vsel %vm3075_vm15, %v3074_v35, %v3073_v39  ;;  %v3080_v54 = vrot.slane %v3917_v51, 1  ;;  %v6664_v35 = vld [vmem:[#allocation14_spill] sm:$0xff]  ;;  %v6665_v39 = vld [vmem:[#allocation19_spill] sm:$0xff] }
 0x8ac   :  { %v3079_v33 = vsel %vm3078_vm1, %v3077_v41, %v3076_v34  ;;  %v6666_v41 = vld [vmem:[#allocation18_spill] sm:$0xff]  ;;  %v6667_v34 = vld [vmem:[#allocation21_spill] sm:$0xff] }
 0x8ad   :  { %v3082_v47 = vsel %vm3081_vm2, %v3080_v54, %v3079_v33  ;;  %v6668_v54 = vld [vmem:[#allocation20_spill] sm:$0xff] }
 0x8ae   :  { %v3084_v20 = vrot.slane %v3082_v47, 4 }
 0x8b0   :  { %v3085_v0 = vadd.f32 %v3084_v20, %v3082_v47 }
 0x8b2   :  { %v3086_v44 = vrot.slane %v3085_v0, 2 }
 0x8b4   :  { %v3087_v28 = vadd.f32 %v3086_v44, %v3085_v0  ;;  %v6669_v44 = vld [vmem:[#allocation25_spill] sm:$0xff] }
 0x8b6   :  { %v3088_v36 = vrot.slane %v3087_v28, 1 }
 0x8b8   :  { %v3089_v19 = vadd.f32 %v3088_v36, %v3087_v28  ;;  %v6670_v36 = vld [vmem:[#allocation24_spill] sm:$0xff] }
 0x8ba   :  { %3918 = vrcp.f32 %v3089_v19 }
 0x8c0   :  { %v3919_v63 = vpop.eup %3918 }
 0x8c1   :  { %v3091_v50 = vperm.slane %v3919_v63, 0 }
 0x8c3   :  { %v3092_v24 = vmul.f32 %v3903_v52, %v3091_v50  ;;  %v3093_v32 = vmul.f32 %v3905_v55, %v3091_v50  ;;  %v3094_v12 = vmul.f32 %v3907_v49, %v3091_v50  ;;  %v6396_v30 = vmul.f32 %v3909_v46, %v3091_v50 }
 0x8c4   :  { %v6398_v2 = vmul.f32 %v3911_v37, %v3091_v50  ;;  %v6400_v3 = vmul.f32 %v3913_v9, %v3091_v50  ;;  %v6402_v16 = vmul.f32 %v3915_v11, %v3091_v50  ;;  %v6404_v5 = vmul.f32 %v3917_v51, %v3091_v50  ;;  %v6663_v11 = vld [vmem:[#allocation15_spill] sm:$0xff] }
 0x8c5   :  { %v3100_v53 = vperm.slane %v3092_v24, 0  ;;  %v3101_v10 = vperm.slane %v3093_v32, 0  ;;  %v3102_v26 = vperm.slane %v3094_v12, 0  ;;  %v3103_v23 = vperm.slane %v6396_v30, 0 }
 0x8c6   :  { %v3104_v21 = vperm.slane %v6398_v2, 0  ;;  %v3105_v52 = vperm.slane %v6400_v3, 0  ;;  %v3106_v55 = vperm.slane %v6402_v16, 0  ;;  %v6411_v49 = vperm.slane %v6404_v5, 0 }
 0x8c7   :  { %v3108_v46 = vmul.f32 %v3100_v53, %v6661_v29  ;;  %v3109_v22 = vmul.f32 %v3100_v53, %v6662_v56  ;;  %v3110_v37 = vmul.f32 %v3100_v53, %v6288_v25  ;;  %v3111_v61 = vmul.f32 %v3100_v53, %v6294_v31 }
 0x8c8   :  { %v3112_v17 = vmul.f32 %v3101_v10, %v4651_v1  ;;  %v3113_v9 = vmul.f32 %v3101_v10, %v4647_v40  ;;  %v3114_v60 = vmul.f32 %v3101_v10, %v6016_v14  ;;  %v3115_v7 = vmul.f32 %v3101_v10, %v6024_v48 }
 0x8c9   :  { %v3116_v6 = vmul.f32 %v3102_v26, %v6663_v11  ;;  %v3117_v51 = vmul.f32 %v3102_v26, %v6664_v35  ;;  %v3118_v29 = vmul.f32 %v3102_v26, %v5691_v62  ;;  %v3119_v56 = vmul.f32 %v3102_v26, %v5697_v59 }
 0x8ca   :  { %v3120_v25 = vmul.f32 %v3103_v23, %v6665_v39  ;;  %v3121_v31 = vmul.f32 %v3103_v23, %v6666_v41  ;;  %v3122_v1 = vmul.f32 %v3103_v23, %v6667_v34  ;;  %v3123_v40 = vmul.f32 %v3103_v23, %v6668_v54 }
 0x8cb   :  { %v3124_v14 = vmul.f32 %v3104_v21, %v6653_v4  ;;  %v3125_v48 = vmul.f32 %v3104_v21, %v6654_v45  ;;  %v3126_v33 = vmul.f32 %v3104_v21, %v6655_v8  ;;  %v3127_v47 = vmul.f32 %v3104_v21, %v6656_v57 }
 0x8cc   :  { %v3140_v20 = vadd.f32 %v3112_v17, %v3108_v46  ;;  %v3147_v62 = vadd.f32 %v3113_v9, %v3109_v22  ;;  %v3154_v0 = vadd.f32 %v3114_v60, %v3110_v37  ;;  %v3161_v59 = vadd.f32 %v3115_v7, %v3111_v61 }
 0x8cd   :  { %v3128_v28 = vmul.f32 %v3105_v52, %v6669_v44  ;;  %v3129_v19 = vmul.f32 %v3105_v52, %v6670_v36  ;;  %v3241_v63 = vrot.slane %v3093_v32, 7  ;;  %v3243_v50 = vrot.slane %v3094_v12, 6  ;;  %v6671_v32 = vld [vmem:[#allocation13_spill] sm:$0xff] }
 0x8ce   :  { %v3141_v53 = vadd.f32 %v3140_v20, %v3116_v6  ;;  %v3148_v10 = vadd.f32 %v3147_v62, %v3117_v51  ;;  %v3155_v26 = vadd.f32 %v3154_v0, %v3118_v29  ;;  %v3162_v4 = vadd.f32 %v3161_v59, %v3119_v56  ;;  %v3185_v62 = vpop.permute.xlu0 %3184 }
 0x8cf   :  { %v3130_v45 = vmul.f32 %v3105_v52, %v4925_v43  ;;  %v3131_v8 = vmul.f32 %v3105_v52, %v4921_v58  ;;  %v3132_v57 = vmul.f32 %v3106_v55, %v5894_v38  ;;  %v3242_v23 = vsel %vm3063_vm0, %v3241_v63, %v3092_v24  ;;  %v3175_v52 = vpop.permute.xlu1 %3174  ;;  %v6672_v38 = vld [vmem:[#allocation12_spill] sm:$0xff] }
 0x8d0   :  { %v3142_v21 = vadd.f32 %v3141_v53, %v3120_v25  ;;  %v3149_v46 = vadd.f32 %v3148_v10, %v3121_v31  ;;  %v3156_v22 = vadd.f32 %v3155_v26, %v3122_v1  ;;  %v3163_v37 = vadd.f32 %v3162_v4, %v3123_v40 }
 0x8d1   :  { %v3133_v61 = vmul.f32 %v3106_v55, %v5892_v42  ;;  %v3134_v12 = vmul.f32 %v3106_v55, %v6671_v32  ;;  %v3244_v17 = vsel %vm3066_vm12, %v3243_v50, %v3242_v23  ;;  %v3245_v9 = vrot.slane %v6396_v30, 5 }
 0x8d2   :  { %v3143_v60 = vadd.f32 %v3142_v21, %v3124_v14  ;;  %v3150_v43 = vadd.f32 %v3149_v46, %v3125_v48  ;;  %v3157_v7 = vadd.f32 %v3156_v22, %v3126_v33  ;;  %v3164_v58 = vadd.f32 %v3163_v37, %v3127_v47  ;;  %v3180_v48 = vpop.permute.xlu2 %3179 }
 0x8d3   :  { %v3135_v11 = vmul.f32 %v3106_v55, %v6672_v38  ;;  %v3136_v24 = vmul.f32 %v6411_v49, %v6196_v18  ;;  %v3246_v6 = vsel %vm3069_vm13, %v3245_v9, %v3244_v17  ;;  %v3247_v42 = vrot.slane %v6398_v2, 4 }
 0x8d4   :  { %v3144_v35 = vadd.f32 %v3143_v60, %v3128_v28  ;;  %v3151_v51 = vadd.f32 %v3150_v43, %v3129_v19  ;;  %v3158_v29 = vadd.f32 %v3157_v7, %v3130_v45  ;;  %v3165_v56 = vadd.f32 %v3164_v58, %v3131_v8 }
 0x8d5   :  { %v3137_v30 = vmul.f32 %v6411_v49, %v6198_v15  ;;  %v3138_v39 = vmul.f32 %v6411_v49, %v6657_v27  ;;  %v3248_v25 = vsel %vm3072_vm14, %v3247_v42, %v3246_v6  ;;  %v3249_v55 = vrot.slane %v6400_v3, 3 }
 0x8d6   :  { %v3145_v41 = vadd.f32 %v3144_v35, %v3132_v57  ;;  %v3152_v18 = vadd.f32 %v3151_v51, %v3133_v61  ;;  %v3159_v31 = vadd.f32 %v3158_v29, %v3134_v12  ;;  %v3166_v34 = vadd.f32 %v3165_v56, %v3135_v11 }
 0x8d7   :  { %v3250_v2 = vsel %vm3075_vm15, %v3249_v55, %v3248_v25  ;;  %v3251_v1 = vrot.slane %v6402_v16, 2  ;;  %v3139_v54 = vmul.f32 %v6411_v49, %v6658_v13  ;;  %v3253_v33 = vrot.slane %v6404_v5, 1  ;;  %v3190_v13 = vpop.permute.xlu1 %3189 }
 0x8d8   :  { %v3146_v40 = vadd.f32 %v3145_v41, %v3136_v24  ;;  %v3153_v15 = vadd.f32 %v3152_v18, %v3137_v30  ;;  %v3160_v14 = vadd.f32 %v3159_v31, %v3138_v39 }
 0x8d9   :  { %v3252_v27 = vsel %vm3078_vm1, %v3251_v1, %v3250_v2  ;;  %v3167_v3 = vadd.f32 %v3166_v34, %v3139_v54 }
 0x8da   :  { %v3192_v47 = vmul.f32 %v3175_v52, %v3146_v40  ;;  %v3193_v20 = vmul.f32 %v3180_v48, %v3153_v15  ;;  %v3254_v0 = vsel %vm3081_vm2, %v3253_v33, %v3252_v27  ;;  %v3194_v59 = vmul.f32 %v3185_v62, %v3160_v14  ;;  %v3209_v50 = vpop.permute.xlu2 %3208 }
 0x8db   :  { %3256 = vst [vmem:[%s6478_s12] sm:$0xff] %v3254_v0  ;;  %v3195_v16 = vmul.f32 %v3190_v13, %v3167_v3  ;;  %v3211_v10 = vperm.slane %v3209_v50, 0 }
 0x8dc   :  { %v3196_v44 = vadd.f32 %v3193_v20, %v3192_v47 }
 0x8de   :  { %v3197_v49 = vadd.f32 %v3196_v44, %v3194_v59 }
 0x8e0   :  { %v3198_v28 = vadd.f32 %v3197_v49, %v3195_v16 }
 0x8e2   :  { %v3199_v36 = vrot.slane %v3198_v28, 4 }
 0x8e4   :  { %v3200_v19 = vadd.f32 %v3199_v36, %v3198_v28 }
 0x8e6   :  { %v3201_v63 = vrot.slane %v3200_v19, 2 }
 0x8e8   :  { %v3202_v5 = vadd.f32 %v3201_v63, %v3200_v19 }
 0x8ea   :  { %v3203_v53 = vrot.slane %v3202_v5, 1 }
 0x8ec   :  { %v3204_v26 = vadd.f32 %v3203_v53, %v3202_v5 }
 0x8ee   :  { %v3212_v4 = vadd.f32 %v3211_v10, %v3204_v26 }
 0x8f0   :  { %v3525_v45 = vmul.f32 -1.442695, %v3212_v4 }
 0x8f2   :  { %3920 = vpow2.f32 %v3525_v45 }
 0x8f8   :  { %v3921_v8 = vpop.eup %3920 }
 0x8f9   :  { %v3216_v57 = vadd.f32 1.0, %v3921_v8 }
 0x8fb   :  { %3922 = vrcp.f32 %v3216_v57  ;;  %v3228_v22 = vand.u32 2147483648, %v3216_v57  ;;  %v3226_v61 = vand.u32 2147483647, %v3216_v57  ;;  %vm3222_vm4 = vweird.f32 %v3216_v57 }
 0x8fd   :  { %v3229_v12 = vor.u32 1.1754944e-38, %v3228_v22  ;;  %vm3227_vm6 = vcmp.eq.f32.partialorder %v3226_v61, 8.507059e+37 }
 0x901   :  { %v3923_v23 = vpop.eup %3922 }
 0x902   :  { %v3218_v21 = vmul.f32 %v3923_v23, %v3216_v57  ;;  %vm3223_vm3 = vweird.f32 %v3923_v23 }
 0x903   :  { %vm3224_vm5 = vmor %vm3222_vm4, %vm3223_vm3 }
 0x904   :  { %v3219_v46 = vsub.f32 1.0, %v3218_v21 }
 0x906   :  { %v3220_v37 = vmul.f32 %v3923_v23, %v3219_v46 }
 0x908   :  { %v3221_v32 = vadd.f32 %v3923_v23, %v3220_v37 }
 0x90a   :  { %v3225_v17 = vsel %vm3224_vm5, %v3923_v23, %v3221_v32 }
 0x90b   :  { %v3230_v9 = vsel %vm3227_vm6, %v3229_v12, %v3225_v17 }
 0x90c   :  { %3232 = vst [vmem:[%s6479_s11] sm:$0x1] %v3230_v9 }

// kernel: han_forward.2
= control target key start
LH: loop header
LB: loop body
LE: loop exit
PB: predicated region body
PF: predicated region fallthrough
CT: control target
= control target key end

     0   :  { %vm70_vm0 = vcmask 261120   ;;  %v3878_v0 = vmov 0.0   ;;  %v3879_v3 = vmov 0   ;;  %s6371_s2 = inlined_call_operand.vmem [shape: f32[96,32], index: 2, kind: input, shape index: {}]   ;;  %s6372_s3 = inlined_call_operand.vmem [shape: f32[32,1], index: 3, kind: input, shape index: {}]   ;;  %s6373_s5 = inlined_call_operand.vmem [shape: f32[32,1], index: 5, kind: input, shape index: {}]   ;;  %s6374_s4 = inlined_call_operand.vmem [shape: f32[32,1], index: 4, kind: input, shape index: {}]   ;;  %s6375_s7 = inlined_call_operand.vmem [shape: f32[16,1], index: 7, kind: input, shape index: {}]   ;;  %s6376_s8 = inlined_call_operand.vmem [shape: f32[16,1], index: 8, kind: input, shape index: {}]   ;;  %s6377_s0 = inlined_call_operand.vmem [shape: f32[8,48,128], index: 0, kind: input, shape index: {}]   ;;  %s6378_s1 = inlined_call_operand.vmem [shape: f32[8,48,128], index: 1, kind: input, shape index: {}]   ;;  %s6379_s6 = inlined_call_operand.vmem [shape: f32[16,32], index: 6, kind: input, shape index: {}]   ;;  %s6380_s9 = inlined_call_operand.vmem [shape: f32[32,128], index: 9, kind: output, shape index: {0}]   ;;  %s6381_s10 = inlined_call_operand.vmem [shape: f32[8,128], index: 10, kind: output, shape index: {1}]  }
   0x1   :  { %122 = vmatpush.msra.mxu0 %v3878_v0  ;;  %v3939_v1 = vld [vmem:[%s6371_s2] sm:$0xff]  ;;  %v47_v2 = vld [vmem:[%s6372_s3 + $0x8] sm:$0xff]  ;;  %3460 = vset.pattern.permute.xlu1 %v3879_v3  ;;  %v3959_v6 = vld [vmem:[%s6371_s2 + $0x10] sm:$0xff] }
   0x2   :  { %3196 = vmatmul.msk.f32.vlgmr.msra.gmra.mxu0 %vm70_vm0, %v3939_v1  ;;  %3459 = vset.pattern.permute.xlu0 %v3879_v3  ;;  %v3949_v4 = vld [vmem:[%s6371_s2 + $0x8] sm:$0xff]  ;;  %v46_v5 = vld [vmem:[%s6372_s3] sm:$0xff]  ;;  %v59_v7 = vld [vmem:[%s6372_s3 + $0x18] sm:$0xff] }
   0x3   :  { %55 = vperm.xlu1 %3460, %v47_v2   ;;  %3461 = vset.pattern.permute.xlu2 %v3879_v3  ;;  %v3969_v8 = vld [vmem:[%s6371_s2 + $0x18] sm:$0xff]  ;;  %v58_v9 = vld [vmem:[%s6372_s3 + $0x10] sm:$0xff]  ;;  %v3979_v10 = vld [vmem:[%s6371_s2 + $0x20] sm:$0xff] }
   0x4   :  { %67 = vperm.xlu0 %3459, %v59_v7   ;;  %v2658_v11 = vld [vmem:[%s6373_s5 + $0x18] sm:$0xff]  ;;  %v3989_v12 = vld [vmem:[%s6371_s2 + $0x28] sm:$0xff]  ;;  %v2599_v13 = vld [vmem:[%s6374_s4] sm:$0xff] }
   0x5   :  { %v3999_v14 = vld [vmem:[%s6371_s2 + $0x30] sm:$0xff]  ;;  %v2600_v15 = vld [vmem:[%s6374_s4 + $0x8] sm:$0xff]  ;;  %v2713_v16 = vld [vmem:[%s6375_s7] sm:$0xff] }
   0x6   :  { %v4012_v17 = vld [vmem:[%s6371_s2 + $0x38] sm:$0xff]  ;;  %v2656_v18 = vld [vmem:[%s6373_s5 + $0x8] sm:$0xff]  ;;  %v4025_v20 = vld [vmem:[%s6371_s2 + $0x40] sm:$0xff] }
   0x7   :  { %v2932_v19 = vld [vmem:[%s6376_s8 + $0x8] sm:$0xff]  ;;  %v4042_v23 = vld [vmem:[%s6371_s2 + $0x50] sm:$0xff]  ;;  %v4049_v24 = vld [vmem:[%s6371_s2 + $0x58] sm:$0xff] }
   0x8   :  { %v2714_v21 = vld [vmem:[%s6375_s7 + $0x8] sm:$0xff]  ;;  %v160_v29 = vld [vmem:[%s6377_s0] sm:$0xff]  ;;  %v3212_v37 = vld [vmem:[%s6378_s1 + $0x150] sm:$0xff] }
   0x9   :  { %v4035_v22 = vld [vmem:[%s6371_s2 + $0x48] sm:$0xff]  ;;  %v163_v38 = vld [vmem:[%s6377_s0 + $0x18] sm:$0xff]  ;;  %v162_v40 = vld [vmem:[%s6377_s0 + $0x10] sm:$0xff] }
   0xa   :  { %3197 = vmatmul.msk.f32.gmra.mxu0 %vm70_vm0, %v3949_v4  ;;  %v161_v32 = vld [vmem:[%s6377_s0 + $0x8] sm:$0xff]  ;;  %v3213_v49 = vld [vmem:[%s6378_s1 + $0x158] sm:$0xff]  ;;  %v3214_v58 = vld [vmem:[%s6378_s1 + $0x160] sm:$0xff] }
   0xb   :  { %50 = vperm.xlu1 %3460, %v46_v5  }
   0xc   :  { %62 = vperm.xlu0 %3459, %v58_v9  }
  0x12   :  { %3198 = vmatmul.msk.f32.gmra.mxu0 %vm70_vm0, %v3959_v6 }
  0x13   :  { %2610 = vperm.xlu1 %3460, %v2600_v15  }
  0x14   :  { %2676 = vperm.xlu0 %3459, %v2658_v11  }
  0x1a   :  { %3199 = vmatmul.msk.f32.gmra.mxu0 %vm70_vm0, %v3969_v8 }
  0x1b   :  { %2666 = vperm.xlu1 %3460, %v2656_v18  }
  0x1c   :  { %2605 = vperm.xlu0 %3459, %v2599_v13  }
  0x22   :  { %3200 = vmatmul.msk.f32.gmra.mxu0 %vm70_vm0, %v3979_v10 }
  0x23   :  { %2722 = vperm.xlu1 %3460, %v2714_v21  }
  0x24   :  { %2717 = vperm.xlu0 %3459, %v2713_v16  }
  0x2a   :  { %3201 = vmatmul.msk.f32.gmra.mxu0 %vm70_vm0, %v3989_v12 }
  0x2c   :  { %2940 = vperm.xlu0 %3459, %v2932_v19   ;;  %v3215_v19 = vld [vmem:[%s6378_s1 + $0x168] sm:$0xff] }
  0x32   :  { %3202 = vmatmul.msk.f32.gmra.mxu0 %vm70_vm0, %v3999_v14 }
  0x3a   :  { %3203 = vmatmul.msk.f32.gmra.mxu0 %vm70_vm0, %v4012_v17 }
  0x42   :  { %3204 = vmatmul.msk.f32.gmra.mxu0 %vm70_vm0, %v4025_v20 }
  0x4a   :  { %3205 = vmatmul.msk.f32.gmra.mxu0 %vm70_vm0, %v4035_v22 }
  0x52   :  { %3206 = vmatmul.msk.f32.gmra.mxu0 %vm70_vm0, %v4042_v23 }
  0x5a   :  { %3207 = vmatmul.msk.f32.gmra.mxu0 %vm70_vm0, %v4049_v24 }
  0x75   :  { %v4101_v15 = vpop.permute.xlu1 %55 }
  0x76   :  { %6417 = vst [vmem:[#allocation3_spill] sm:$0xff] %v4101_v15 }
  0x7f   :  { %v124_v25 = vpop.f32.mrf.mxu0 }
  0x80   :  { %v166_v31 = vadd.f32 %v160_v29, %v124_v25  ;;  %v4114_v29 = vpop.permute.xlu0 %67 }
  0x81   :  { %6418 = vst [vmem:[#allocation4_spill] sm:$0xff] %v4114_v29 }
  0x82   :  { %v3208_v33 = vmul.f32 -1.442695, %v166_v31 }
  0x84   :  { %3462 = vpow2.f32 %v3208_v33 }
  0x87   :  { %v127_v26 = vpop.f32.mrf.mxu0 }
  0x88   :  { %v167_v34 = vadd.f32 %v161_v32, %v127_v26 }
  0x8a   :  { %v3209_v36 = vmul.f32 -1.442695, %v167_v34  ;;  %v3463_v39 = vpop.eup %3462 }
  0x8b   :  { %v4072_v44 = vadd.f32 1.0, %v3463_v39 }
  0x8c   :  { %3464 = vpow2.f32 %v3209_v36 }
  0x8d   :  { %v185_v32 = vand.u32 2147483647, %v4072_v44  ;;  %v187_v33 = vand.u32 2147483648, %v4072_v44  ;;  %vm181_vm2 = vweird.f32 %v4072_v44 }
  0x8f   :  { %v130_v27 = vpop.f32.mrf.mxu0  ;;  %vm4142_vm4 = vcmp.eq.f32.partialorder %v185_v32, 8.507059e+37 }
  0x90   :  { %v206_v45 = vadd.f32 %v162_v40, %v130_v27 }
  0x92   :  { %v3465_v47 = vpop.eup %3464  ;;  %v3210_v50 = vmul.f32 -1.442695, %v206_v45 }
  0x93   :  { %v4078_v51 = vadd.f32 1.0, %v3465_v47  ;;  %v4136_v47 = vpop.permute.xlu1 %50 }
  0x94   :  { %6419 = vst [vmem:[#allocation5_spill] sm:$0xff] %v4136_v47 }
  0x95   :  { %v202_v34 = vand.u32 2147483648, %v4078_v51  ;;  %vm196_vm5 = vweird.f32 %v4078_v51 }
  0x97   :  { %v133_v28 = vpop.f32.mrf.mxu0 }
  0x98   :  { %v207_v43 = vadd.f32 %v163_v38, %v133_v28 }
  0x9a   :  { %v3211_v48 = vmul.f32 -1.442695, %v207_v43 }
  0x9f   :  { %v4056_v30 = vpop.f32.mrf.mxu0 }
  0xa7   :  { %v4061_v35 = vpop.f32.mrf.mxu0 }
  0xaf   :  { %v142_v41 = vpop.f32.mrf.mxu0 }
  0xb0   :  { %v269_v42 = vadd.f32 %v3212_v37, %v142_v41  ;;  %v200_v41 = vand.u32 2147483647, %v4078_v51 }
  0xb2   :  { %v3218_v46 = vmul.f32 -1.442695, %v269_v42  ;;  %vm4155_vm7 = vcmp.eq.f32.partialorder %v200_v41, 8.507059e+37 }
  0xb4   :  { %3466 = vpow2.f32 %v3218_v46 }
  0xb5   :  { %3468 = vrcp.f32 %v4072_v44 }
  0xb6   :  { %3470 = vpow2.f32 %v3211_v48 }
  0xb7   :  { %v145_v52 = vpop.f32.mrf.mxu0  ;;  %3472 = vpow2.f32 %v3210_v50  ;;  %v188_v50 = vor.u32 1.1754944e-38, %v187_v33 }
  0xb8   :  { %v270_v53 = vadd.f32 %v3213_v49, %v145_v52  ;;  %3474 = vrcp.f32 %v4078_v51  ;;  %v3216_v49 = vld [vmem:[%s6378_s1 + $0x170] sm:$0xff] }
  0xba   :  { %v3467_v54 = vpop.eup %3466  ;;  %v3219_v55 = vmul.f32 -1.442695, %v270_v53 }
  0xbb   :  { %v4081_v56 = vadd.f32 1.0, %v3467_v54  ;;  %v4083_v57 = vpop.eup %3468 }
  0xbc   :  { %3476 = vpow2.f32 %v3219_v55  ;;  %v3471_v59 = vpop.eup %3470  ;;  %v177_v60 = vmul.f32 %v4083_v57, %v4072_v44  ;;  %vm182_vm1 = vweird.f32 %v4083_v57  ;;  %v203_v44 = vor.u32 1.1754944e-38, %v202_v34 }
  0xbd   :  { %3478 = vrcp.f32 %v4081_v56  ;;  %v3473_v62 = vpop.eup %3472  ;;  %v4093_v3 = vadd.f32 1.0, %v3471_v59  ;;  %vm4138_vm3 = vmor %vm181_vm2, %vm182_vm1  ;;  %vm284_vm9 = vweird.f32 %v4081_v56 }
  0xbe   :  { %v4091_v0 = vpop.eup %3474  ;;  %v178_v9 = vsub.f32 1.0, %v177_v60  ;;  %v4099_v13 = vadd.f32 1.0, %v3473_v62 }
  0xbf   :  { %v148_v61 = vpop.f32.mrf.mxu0  ;;  %v192_v18 = vmul.f32 %v4091_v0, %v4078_v51  ;;  %vm197_vm6 = vweird.f32 %v4091_v0 }
  0xc0   :  { %v309_v63 = vadd.f32 %v3214_v58, %v148_v61  ;;  %v179_v21 = vmul.f32 %v4083_v57, %v178_v9  ;;  %v225_v53 = vand.u32 2147483647, %v4099_v13  ;;  %v227_v59 = vand.u32 2147483648, %v4099_v13  ;;  %vm4190_vm13 = vmor %vm196_vm5, %vm197_vm6 }
  0xc1   :  { %v193_v28 = vsub.f32 1.0, %v192_v18  ;;  %vm221_vm1 = vweird.f32 %v4099_v13 }
  0xc2   :  { %v3477_v2 = vpop.eup %3476  ;;  %v3220_v5 = vmul.f32 -1.442695, %v309_v63  ;;  %v180_v38 = vadd.f32 %v4083_v57, %v179_v21 }
  0xc3   :  { %v4095_v7 = vpop.eup %3478  ;;  %v4097_v11 = vadd.f32 1.0, %v3477_v2  ;;  %v194_v45 = vmul.f32 %v4091_v0, %v193_v28 }
  0xc4   :  { %3480 = vpow2.f32 %v3220_v5  ;;  %v280_v16 = vmul.f32 %v4095_v7, %v4081_v56  ;;  %v184_v55 = vsel %vm4138_vm3, %v4083_v57, %v180_v38  ;;  %vm285_vm8 = vweird.f32 %v4095_v7 }
  0xc5   :  { %3482 = vrcp.f32 %v4097_v11  ;;  %v246_v57 = vadd.f32 %v4056_v30, %v4136_v47  ;;  %v195_v2 = vadd.f32 %v4091_v0, %v194_v45  ;;  %v290_v5 = vand.u32 2147483648, %v4081_v56  ;;  %vm4180_vm11 = vmor %vm284_vm9, %vm285_vm8 }
  0xc6   :  { %3484 = vrcp.f32 %v4093_v3  ;;  %v281_v27 = vsub.f32 1.0, %v280_v16  ;;  %v288_v16 = vand.u32 2147483647, %v4081_v56  ;;  %vm299_vm12 = vweird.f32 %v4097_v11 }
  0xc7   :  { %v151_v25 = vpop.f32.mrf.mxu0  ;;  %3486 = vrcp.f32 %v4099_v13  ;;  %v305_v56 = vand.u32 2147483648, %v4097_v11  ;;  %v303_v33 = vand.u32 2147483647, %v4097_v11  ;;  %v199_v51 = vsel %vm4190_vm13, %v4091_v0, %v195_v2 }
  0xc8   :  { %v310_v26 = vadd.f32 %v3215_v19, %v151_v25  ;;  %v282_v42 = vmul.f32 %v4095_v7, %v281_v27  ;;  %v4174_v25 = vpop.permute.xlu0 %62  ;;  %vm289_vm15 = vcmp.eq.f32.partialorder %v288_v16, 8.507059e+37  ;;  %v242_v30 = vand.u32 2147483648, %v4093_v3 }
  0xc9   :  { %6426 = vst [vmem:[#allocation6_spill] sm:$0xff] %v4174_v25  ;;  %v306_v48 = vor.u32 1.1754944e-38, %v305_v56  ;;  %vm304_vm2 = vcmp.eq.f32.partialorder %v303_v33, 8.507059e+37 }
  0xca   :  { %v3481_v31 = vpop.eup %3480  ;;  %v3221_v36 = vmul.f32 -1.442695, %v310_v26  ;;  %v283_v61 = vadd.f32 %v4095_v7, %v282_v42  ;;  %v189_v42 = vsel %vm4142_vm4, %v188_v50, %v184_v55 }
  0xcb   :  { %v4119_v37 = vpop.eup %3482  ;;  %v4123_v39 = vadd.f32 1.0, %v3481_v31 }
  0xcc   :  { %v4125_v40 = vpop.eup %3484  ;;  %3488 = vpow2.f32 %v3221_v36  ;;  %v295_v43 = vmul.f32 %v4119_v37, %v4097_v11  ;;  %vm300_vm10 = vweird.f32 %v4119_v37  ;;  %v287_v31 = vsel %vm4180_vm11, %v4095_v7, %v283_v61 }
  0xcd   :  { %3490 = vrcp.f32 %v4123_v39  ;;  %v4134_v46 = vpop.eup %3486  ;;  %v232_v54 = vmul.f32 %v4125_v40, %v4093_v3  ;;  %v291_v36 = vor.u32 1.1754944e-38, %v290_v5  ;;  %vm4207_vm14 = vmor %vm299_vm12, %vm300_vm10  ;;  %v247_v7 = vadd.f32 %v4061_v35, %v4101_v15 }
  0xce   :  { %v296_v52 = vsub.f32 1.0, %v295_v43  ;;  %v217_v63 = vmul.f32 %v4134_v46, %v4099_v13  ;;  %v248_v61 = vmul.f32 %v246_v57, %v189_v42  ;;  %vm237_vm4 = vweird.f32 %v4125_v40 }
  0xcf   :  { %v154_v58 = vpop.f32.mrf.mxu0  ;;  %v233_v21 = vsub.f32 1.0, %v232_v54  ;;  %v292_v43 = vsel %vm289_vm15, %v291_v36, %v287_v31  ;;  %v328_v60 = vand.u32 2147483647, %v4123_v39  ;;  %vm222_vm5 = vweird.f32 %v4134_v46  ;;  %v164_v31 = vld [vmem:[%s6377_s0 + $0x20] sm:$0xff] }
  0xd0   :  { %v297_v62 = vmul.f32 %v4119_v37, %v296_v52  ;;  %v349_v32 = vadd.f32 %v154_v58, %v4174_v25  ;;  %v218_v34 = vsub.f32 1.0, %v217_v63  ;;  %v3217_v63 = vld [vmem:[%s6378_s1 + $0x178] sm:$0xff]  ;;  %vm324_vm6 = vweird.f32 %v4123_v39  ;;  %vm4272_vm12 = vmor %vm221_vm1, %vm222_vm5 }
  0xd1   :  { %v234_v0 = vmul.f32 %v4125_v40, %v233_v21  ;;  %v240_v21 = vand.u32 2147483647, %v4093_v3  ;;  %vm329_vm10 = vcmp.eq.f32.partialorder %v328_v60, 8.507059e+37  ;;  %vm226_vm1 = vcmp.eq.f32.partialorder %v225_v53, 8.507059e+37 }
  0xd2   :  { %v3489_v9 = vpop.eup %3488  ;;  %v298_v18 = vadd.f32 %v4119_v37, %v297_v62  ;;  %v351_v54 = vmul.f32 %v349_v32, %v292_v43  ;;  %v219_v58 = vmul.f32 %v4134_v46, %v218_v34  ;;  %v228_v43 = vor.u32 1.1754944e-38, %v227_v59 }
  0xd3   :  { %v4172_v19 = vpop.eup %3490  ;;  %v4176_v26 = vadd.f32 1.0, %v3489_v9  ;;  %v235_v57 = vadd.f32 %v4125_v40, %v234_v0  ;;  %v330_v9 = vand.u32 2147483648, %v4123_v39  ;;  %vm241_vm13 = vcmp.eq.f32.partialorder %v240_v21, 8.507059e+37 }
  0xd4   :  { %v320_v28 = vmul.f32 %v4172_v19, %v4123_v39  ;;  %v302_v11 = vsel %vm4207_vm14, %v4119_v37, %v298_v18  ;;  %v204_v37 = vsel %vm4155_vm7, %v203_v44, %v199_v51  ;;  %vm325_vm3 = vweird.f32 %v4172_v19  ;;  %v165_v44 = vld [vmem:[%s6377_s0 + $0x28] sm:$0xff] }
  0xd5   :  { %3492 = vrcp.f32 %v4176_v26  ;;  %v307_v50 = vsel %vm304_vm2, %v306_v48, %v302_v11  ;;  %v249_v55 = vmul.f32 %v247_v7, %v204_v37  ;;  %v353_v18 = vadd.f32 %v3216_v49, %v351_v54  ;;  %vm4248_vm8 = vmor %vm324_vm6, %vm325_vm3 }
  0xd6   :  { %v321_v41 = vsub.f32 1.0, %v320_v28  ;;  %vm236_vm7 = vweird.f32 %v4093_v3  ;;  %v220_v28 = vadd.f32 %v4134_v46, %v219_v58  ;;  %v331_v51 = vor.u32 1.1754944e-38, %v330_v9 }
  0xd7   :  { %v157_v45 = vpop.f32.mrf.mxu0  ;;  %vm4253_vm9 = vmor %vm236_vm7, %vm237_vm4  ;;  %v251_v32 = vadd.f32 %v249_v55, %v165_v44  ;;  %v345_v36 = vand.u32 2147483648, %v4176_v26  ;;  %v343_v7 = vand.u32 2147483647, %v4176_v26  ;;  %3494 = vtanh.f32 %v353_v18 }
  0xd8   :  { %v322_v52 = vmul.f32 %v4172_v19, %v321_v41  ;;  %v350_v35 = vadd.f32 %v157_v45, %v4114_v29  ;;  %v239_v34 = vsel %vm4253_vm9, %v4125_v40, %v235_v57  ;;  %v250_v11 = vadd.f32 %v248_v61, %v164_v31 }
  0xd9   :  { %v224_v0 = vsel %vm4272_vm12, %v4134_v46, %v220_v28  ;;  %vm339_vm14 = vweird.f32 %v4176_v26  ;;  %v346_v48 = vor.u32 1.1754944e-38, %v345_v36  ;;  %vm344_vm2 = vcmp.eq.f32.partialorder %v343_v7, 8.507059e+37  ;;  %v3235_v28 = vld [vmem:[%s6377_s0 + $0x38] sm:$0xff]  ;;  %v3236_v36 = vld [vmem:[%s6377_s0 + $0x40] sm:$0xff] }
  0xda   :  { %v323_v62 = vadd.f32 %v4172_v19, %v322_v52  ;;  %v352_v2 = vmul.f32 %v350_v35, %v307_v50  ;;  %v229_v35 = vsel %vm226_vm1, %v228_v43, %v224_v0  ;;  %v3245_v43 = vld [vmem:[%s6378_s1 + $0x128] sm:$0xff] }
  0xdb   :  { %v3493_v5 = vpop.eup %3492  ;;  %v254_v49 = vsub.f32 1.0, %v229_v35  ;;  %v258_v9 = vmul.f32 0.0, %v229_v35 }
  0xdc   :  { %v335_v16 = vmul.f32 %v3493_v5, %v4176_v26  ;;  %v354_v27 = vadd.f32 %v3217_v63, %v352_v2  ;;  %v327_v3 = vsel %vm4248_vm8, %v4172_v19, %v323_v62  ;;  %vm340_vm11 = vweird.f32 %v3493_v5 }
  0xdd   :  { %v243_v19 = vor.u32 1.1754944e-38, %v242_v30  ;;  %v332_v40 = vsel %vm329_vm10, %v331_v51, %v327_v3  ;;  %vm341_vm15 = vmor %vm339_vm14, %vm340_vm11  ;;  %v3495_v58 = vpop.eup %3494  ;;  %v3234_v30 = vld [vmem:[%s6377_s0 + $0x30] sm:$0xff]  ;;  %v3244_v3 = vld [vmem:[%s6378_s1 + $0x120] sm:$0xff] }
  0xde   :  { %v336_v33 = vsub.f32 1.0, %v335_v16  ;;  %3496 = vtanh.f32 %v354_v27  ;;  %v357_v52 = vsub.f32 1.0, %v332_v40  ;;  %v361_v13 = vmul.f32 0.0, %v332_v40 }
  0xdf   :  { %v244_v45 = vsel %vm241_vm13, %v243_v19, %v239_v34  ;;  %3498 = vtanh.f32 %v251_v32  ;;  %v3237_v34 = vld [vmem:[%s6377_s0 + $0x48] sm:$0xff] }
  0xe0   :  { %v337_v38 = vmul.f32 %v3493_v5, %v336_v33  ;;  %3500 = vtanh.f32 %v250_v11  ;;  %v255_v61 = vsub.f32 1.0, %v244_v45  ;;  %v359_v59 = vmul.f32 %v3495_v58, %v357_v52 }
  0xe1   :  { %v259_v44 = vmul.f32 0.0, %v244_v45 }
  0xe2   :  { %v338_v42 = vadd.f32 %v3493_v5, %v337_v38 }
  0xe4   :  { %v342_v54 = vsel %vm341_vm15, %v3493_v5, %v338_v42  ;;  %v3497_v37 = vpop.eup %3496  ;;  %v4288_v5 = vadd.f32 %v361_v13, %v359_v59 }
  0xe5   :  { %v347_v46 = vsel %vm344_vm2, %v346_v48, %v342_v54  ;;  %v3499_v62 = vpop.eup %3498 }
  0xe6   :  { %v358_v26 = vsub.f32 1.0, %v347_v46  ;;  %v362_v55 = vmul.f32 0.0, %v347_v46  ;;  %v257_v63 = vmul.f32 %v3499_v62, %v255_v61  ;;  %v3501_v53 = vpop.eup %3500  ;;  %6440 = vst [vmem:[#allocation8_spill] sm:$0xff] %v4288_v5 }
  0xe7   :  { %v256_v57 = vmul.f32 %v3501_v53, %v254_v49 }
  0xe8   :  { %v360_v50 = vmul.f32 %v3497_v37, %v358_v26  ;;  %v4291_v60 = vadd.f32 %v259_v44, %v257_v63  ;;  %v3246_v26 = vld [vmem:[%s6378_s1 + $0x130] sm:$0xff] }
  0xe9   :  { %v4294_v16 = vadd.f32 %v258_v9, %v256_v57 }
  0xea   :  { %v4285_v2 = vadd.f32 %v362_v55, %v360_v50  ;;  %6441 = vst [vmem:[#allocation9_spill] sm:$0xff] %v4291_v60 }
  0xeb   :  { %6442 = vst [vmem:[#allocation10_spill] sm:$0xff] %v4294_v16 }
  0xec   :  { %6439 = vst [vmem:[#allocation7_spill] sm:$0xff] %v4285_v2  ;;  %382 = vmatpush.msra.mxu1 %v4285_v2 }
  0xee   :  { %383 = vmatpush.msra.mxu1 %v4288_v5 }
  0xf0   :  { %384 = vmatpush.msra.mxu1 %v4291_v60 }
  0xf2   :  { %385 = vmatpush.msra.mxu1 %v4294_v16 }
  0xf3   :  { %3222 = vmatmul.msk.f32.vlgmr.msra.gmra.mxu1 %vm70_vm0, %v3939_v1 }
  0xfb   :  { %3223 = vmatmul.msk.f32.gmra.mxu1 %vm70_vm0, %v3949_v4 }
 0x103   :  { %3224 = vmatmul.msk.f32.gmra.mxu1 %vm70_vm0, %v3959_v6 }
 0x10b   :  { %3225 = vmatmul.msk.f32.gmra.mxu1 %vm70_vm0, %v3969_v8 }
 0x113   :  { %3226 = vmatmul.msk.f32.gmra.mxu1 %vm70_vm0, %v3979_v10 }
 0x11b   :  { %3227 = vmatmul.msk.f32.gmra.mxu1 %vm70_vm0, %v3989_v12 }
 0x123   :  { %3228 = vmatmul.msk.f32.gmra.mxu1 %vm70_vm0, %v3999_v14 }
 0x12b   :  { %3229 = vmatmul.msk.f32.gmra.mxu1 %vm70_vm0, %v4012_v17 }
 0x133   :  { %3230 = vmatmul.msk.f32.gmra.mxu1 %vm70_vm0, %v4025_v20 }
 0x13b   :  { %3231 = vmatmul.msk.f32.gmra.mxu1 %vm70_vm0, %v4035_v22 }
 0x143   :  { %3232 = vmatmul.msk.f32.gmra.mxu1 %vm70_vm0, %v4042_v23 }
 0x14b   :  { %3233 = vmatmul.msk.f32.gmra.mxu1 %vm70_vm0, %v4049_v24 }
 0x170   :  { %v387_v1 = vpop.f32.mrf.mxu1 }
 0x171   :  { %v430_v27 = vadd.f32 %v3234_v30, %v387_v1 }
 0x173   :  { %v3240_v39 = vmul.f32 -1.442695, %v430_v27 }
 0x175   :  { %3502 = vpow2.f32 %v3240_v39 }
 0x178   :  { %v390_v4 = vpop.f32.mrf.mxu1 }
 0x179   :  { %v431_v31 = vadd.f32 %v3235_v28, %v390_v4 }
 0x17b   :  { %v3241_v33 = vmul.f32 -1.442695, %v431_v31  ;;  %v3503_v51 = vpop.eup %3502 }
 0x17c   :  { %v4340_v19 = vadd.f32 1.0, %v3503_v51 }
 0x17d   :  { %3504 = vpow2.f32 %v3241_v33 }
 0x17e   :  { %vm445_vm4 = vweird.f32 %v4340_v19 }
 0x180   :  { %v393_v18 = vpop.f32.mrf.mxu1 }
 0x181   :  { %v470_v11 = vadd.f32 %v3236_v36, %v393_v18 }
 0x183   :  { %v3505_v0 = vpop.eup %3504  ;;  %v3242_v45 = vmul.f32 -1.442695, %v470_v11 }
 0x184   :  { %v4346_v48 = vadd.f32 1.0, %v3505_v0 }
 0x186   :  { %v466_v51 = vand.u32 2147483648, %v4346_v48  ;;  %vm460_vm7 = vweird.f32 %v4346_v48 }
 0x188   :  { %v396_v21 = vpop.f32.mrf.mxu1 }
 0x189   :  { %v471_v41 = vadd.f32 %v3237_v34, %v396_v21  ;;  %v3247_v21 = vld [vmem:[%s6378_s1 + $0x138] sm:$0xff]  ;;  %v451_v34 = vand.u32 2147483648, %v4340_v19 }
 0x18b   :  { %v3243_v42 = vmul.f32 -1.442695, %v471_v41 }
 0x190   :  { %v4324_v56 = vpop.f32.mrf.mxu1 }
 0x198   :  { %v4329_v32 = vpop.f32.mrf.mxu1 }
 0x1a0   :  { %v405_v38 = vpop.f32.mrf.mxu1 }
 0x1a1   :  { %v533_v7 = vadd.f32 %v3244_v3, %v405_v38  ;;  %v449_v3 = vand.u32 2147483647, %v4340_v19 }
 0x1a3   :  { %v3250_v40 = vmul.f32 -1.442695, %v533_v7  ;;  %vm4404_vm6 = vcmp.eq.f32.partialorder %v449_v3, 8.507059e+37 }
 0x1a5   :  { %3506 = vpow2.f32 %v3250_v40  ;;  %v464_v40 = vand.u32 2147483647, %v4346_v48 }
 0x1a6   :  { %3508 = vrcp.f32 %v4340_v19 }
 0x1a7   :  { %3510 = vpow2.f32 %v3243_v42  ;;  %vm4417_vm9 = vcmp.eq.f32.partialorder %v464_v40, 8.507059e+37 }
 0x1a8   :  { %v408_v52 = vpop.f32.mrf.mxu1  ;;  %3512 = vpow2.f32 %v3242_v45 }
 0x1a9   :  { %v534_v54 = vadd.f32 %v3245_v43, %v408_v52  ;;  %3514 = vrcp.f32 %v4346_v48 }
 0x1ab   :  { %v3507_v35 = vpop.eup %3506  ;;  %v3251_v46 = vmul.f32 -1.442695, %v534_v54  ;;  %v3248_v54 = vld [vmem:[%s6378_s1 + $0x140] sm:$0xff] }
 0x1ac   :  { %v4349_v58 = vadd.f32 1.0, %v3507_v35  ;;  %v4351_v61 = vpop.eup %3508  ;;  %v452_v35 = vor.u32 1.1754944e-38, %v451_v34 }
 0x1ad   :  { %3516 = vpow2.f32 %v3251_v46  ;;  %v3511_v37 = vpop.eup %3510  ;;  %v441_v49 = vmul.f32 %v4351_v61, %v4340_v19  ;;  %vm446_vm3 = vweird.f32 %v4351_v61  ;;  %v467_v46 = vor.u32 1.1754944e-38, %v466_v51 }
 0x1ae   :  { %3518 = vrcp.f32 %v4349_v58  ;;  %v3513_v50 = vpop.eup %3512  ;;  %v4361_v13 = vadd.f32 1.0, %v3511_v37  ;;  %vm4400_vm5 = vmor %vm445_vm4, %vm446_vm3  ;;  %vm548_vm11 = vweird.f32 %v4349_v58 }
 0x1af   :  { %v4359_v62 = vpop.eup %3514  ;;  %v442_v44 = vsub.f32 1.0, %v441_v49  ;;  %v4367_v1 = vadd.f32 1.0, %v3513_v50 }
 0x1b0   :  { %v411_v59 = vpop.f32.mrf.mxu1  ;;  %v456_v18 = vmul.f32 %v4359_v62, %v4346_v48  ;;  %vm461_vm8 = vweird.f32 %v4359_v62 }
 0x1b1   :  { %v573_v55 = vadd.f32 %v3246_v26, %v411_v59  ;;  %v443_v30 = vmul.f32 %v4351_v61, %v442_v44  ;;  %v489_v19 = vand.u32 2147483647, %v4367_v1  ;;  %v491_v50 = vand.u32 2147483648, %v4367_v1  ;;  %vm4448_vm15 = vmor %vm460_vm7, %vm461_vm8 }
 0x1b2   :  { %v457_v31 = vsub.f32 1.0, %v456_v18  ;;  %v554_v18 = vand.u32 2147483648, %v4349_v58  ;;  %vm485_vm3 = vweird.f32 %v4367_v1 }
 0x1b3   :  { %v3517_v63 = vpop.eup %3516  ;;  %v3252_v53 = vmul.f32 -1.442695, %v573_v55  ;;  %v444_v7 = vadd.f32 %v4351_v61, %v443_v30  ;;  %v552_v30 = vand.u32 2147483647, %v4349_v58 }
 0x1b4   :  { %v4363_v57 = vpop.eup %3518  ;;  %v4365_v9 = vadd.f32 1.0, %v3517_v63  ;;  %v458_v43 = vmul.f32 %v4359_v62, %v457_v31  ;;  %v555_v40 = vor.u32 1.1754944e-38, %v554_v18  ;;  %v3249_v18 = vld [vmem:[%s6378_s1 + $0x148] sm:$0xff] }
 0x1b5   :  { %3520 = vpow2.f32 %v3252_v53  ;;  %v544_v4 = vmul.f32 %v4363_v57, %v4349_v58  ;;  %v448_v49 = vsel %vm4400_vm5, %v4351_v61, %v444_v7  ;;  %vm549_vm10 = vweird.f32 %v4363_v57 }
 0x1b6   :  { %3522 = vrcp.f32 %v4365_v9  ;;  %v510_v61 = vadd.f32 %v4324_v56, %v4136_v47  ;;  %vm4438_vm13 = vmor %vm548_vm11, %vm549_vm10  ;;  %vm563_vm14 = vweird.f32 %v4365_v9  ;;  %vm553_vm2 = vcmp.eq.f32.partialorder %v552_v30, 8.507059e+37 }
 0x1b7   :  { %3524 = vrcp.f32 %v4361_v13  ;;  %v545_v39 = vsub.f32 1.0, %v544_v4  ;;  %v459_v4 = vadd.f32 %v4359_v62, %v458_v43  ;;  %v453_v43 = vsel %vm4404_vm6, %v452_v35, %v448_v49 }
 0x1b8   :  { %v414_v27 = vpop.f32.mrf.mxu1  ;;  %3526 = vrcp.f32 %v4367_v1  ;;  %v506_v58 = vand.u32 2147483648, %v4361_v13 }
 0x1b9   :  { %v574_v28 = vadd.f32 %v3247_v21, %v414_v27  ;;  %v546_v0 = vmul.f32 %v4363_v57, %v545_v39  ;;  %v463_v48 = vsel %vm4448_vm15, %v4359_v62, %v459_v4 }
 0x1bb   :  { %v3521_v33 = vpop.eup %3520  ;;  %v3253_v36 = vmul.f32 -1.442695, %v574_v28  ;;  %v547_v63 = vadd.f32 %v4363_v57, %v546_v0 }
 0x1bc   :  { %v4383_v38 = vpop.eup %3522  ;;  %v4387_v41 = vadd.f32 1.0, %v3521_v33  ;;  %v569_v33 = vand.u32 2147483648, %v4365_v9 }
 0x1bd   :  { %v4389_v11 = vpop.eup %3524  ;;  %3528 = vpow2.f32 %v3253_v36  ;;  %v559_v42 = vmul.f32 %v4383_v38, %v4365_v9  ;;  %vm564_vm12 = vweird.f32 %v4383_v38  ;;  %v551_v34 = vsel %vm4438_vm13, %v4363_v57, %v547_v63 }
 0x1be   :  { %3530 = vrcp.f32 %v4387_v41  ;;  %v4398_v45 = vpop.eup %3526  ;;  %v496_v37 = vmul.f32 %v4389_v11, %v4361_v13  ;;  %v567_v36 = vand.u32 2147483647, %v4365_v9  ;;  %vm4465_vm1 = vmor %vm563_vm14, %vm564_vm12  ;;  %v511_v57 = vadd.f32 %v4329_v32, %v4101_v15 }
 0x1bf   :  { %v560_v26 = vsub.f32 1.0, %v559_v42  ;;  %v481_v44 = vmul.f32 %v4398_v45, %v4367_v1  ;;  %v556_v52 = vsel %vm553_vm2, %v555_v40, %v551_v34  ;;  %vm501_vm6 = vweird.f32 %v4389_v11 }
 0x1c0   :  { %v417_v59 = vpop.f32.mrf.mxu1  ;;  %v497_v39 = vsub.f32 1.0, %v496_v37  ;;  %v570_v37 = vor.u32 1.1754944e-38, %v569_v33  ;;  %vm568_vm4 = vcmp.eq.f32.partialorder %v567_v36, 8.507059e+37  ;;  %v592_v55 = vand.u32 2147483647, %v4387_v41  ;;  %v3238_v36 = vld [vmem:[%s6377_s0 + $0x50] sm:$0xff] }
 0x1c1   :  { %v561_v53 = vmul.f32 %v4383_v38, %v560_v26  ;;  %v613_v51 = vadd.f32 %v417_v59, %v4174_v25  ;;  %v482_v7 = vsub.f32 1.0, %v481_v44  ;;  %v512_v44 = vmul.f32 %v510_v61, %v453_v43 }
 0x1c2   :  { %v498_v62 = vmul.f32 %v4389_v11, %v497_v39  ;;  %vm486_vm7 = vweird.f32 %v4398_v45  ;;  %vm588_vm8 = vweird.f32 %v4387_v41  ;;  %v504_v33 = vand.u32 2147483647, %v4361_v13 }
 0x1c3   :  { %v3529_v21 = vpop.eup %3528  ;;  %v562_v27 = vadd.f32 %v4383_v38, %v561_v53  ;;  %v615_v63 = vmul.f32 %v613_v51, %v556_v52  ;;  %v483_v53 = vmul.f32 %v4398_v45, %v482_v7  ;;  %vm593_vm12 = vcmp.eq.f32.partialorder %v592_v55, 8.507059e+37  ;;  %vm4530_vm14 = vmor %vm485_vm3, %vm486_vm7 }
 0x1c4   :  { %v4434_v28 = vpop.eup %3530  ;;  %v4436_v31 = vadd.f32 1.0, %v3529_v21  ;;  %v499_v61 = vadd.f32 %v4389_v11, %v498_v62  ;;  %v514_v43 = vadd.f32 %v3238_v36, %v512_v44  ;;  %vm505_vm15 = vcmp.eq.f32.partialorder %v504_v33, 8.507059e+37  ;;  %v3269_v36 = vld [vmem:[%s6377_s0 + $0x78] sm:$0xff] }
 0x1c5   :  { %v584_v3 = vmul.f32 %v4434_v28, %v4387_v41  ;;  %v566_v9 = vsel %vm4465_vm1, %v4383_v38, %v562_v27  ;;  %v468_v38 = vsel %vm4417_vm9, %v467_v46, %v463_v48  ;;  %vm589_vm5 = vweird.f32 %v4434_v28  ;;  %v3239_v46 = vld [vmem:[%s6377_s0 + $0x58] sm:$0xff] }
 0x1c6   :  { %3532 = vrcp.f32 %v4436_v31  ;;  %v571_v35 = vsel %vm568_vm4, %v570_v37, %v566_v9  ;;  %v513_v49 = vmul.f32 %v511_v57, %v468_v38  ;;  %v594_v27 = vand.u32 2147483648, %v4387_v41  ;;  %vm4506_vm10 = vmor %vm588_vm8, %vm589_vm5  ;;  %v3276_v41 = vld [vmem:[%s6378_s1 + $0xf0] sm:$0xff] }
 0x1c7   :  { %v585_v42 = vsub.f32 1.0, %v584_v3  ;;  %v617_v56 = vadd.f32 %v3248_v54, %v615_v63  ;;  %vm500_vm9 = vweird.f32 %v4361_v13  ;;  %v484_v51 = vadd.f32 %v4398_v45, %v483_v53  ;;  %v4569_v3 = vld [vmem:[%s6371_s2 + $0x8] sm:$0xff] }
 0x1c8   :  { %v420_v26 = vpop.f32.mrf.mxu1  ;;  %vm4511_vm11 = vmor %vm500_vm9, %vm501_vm6  ;;  %v515_v7 = vadd.f32 %v3239_v46, %v513_v49  ;;  %v595_v0 = vor.u32 1.1754944e-38, %v594_v27  ;;  %v609_v57 = vand.u32 2147483648, %v4436_v31  ;;  %v607_v9 = vand.u32 2147483647, %v4436_v31 }
 0x1c9   :  { %v586_v59 = vmul.f32 %v4434_v28, %v585_v42  ;;  %v614_v32 = vadd.f32 %v420_v26, %v4114_v29  ;;  %v503_v40 = vsel %vm4511_vm11, %v4389_v11, %v499_v61  ;;  %3534 = vtanh.f32 %v617_v56 }
 0x1ca   :  { %v488_v52 = vsel %vm4530_vm14, %v4398_v45, %v484_v51  ;;  %vm603_vm1 = vweird.f32 %v4436_v31  ;;  %v492_v37 = vor.u32 1.1754944e-38, %v491_v50  ;;  %v610_v63 = vor.u32 1.1754944e-38, %v609_v57 }
 0x1cb   :  { %v587_v4 = vadd.f32 %v4434_v28, %v586_v59  ;;  %v616_v21 = vmul.f32 %v614_v32, %v571_v35  ;;  %vm490_vm3 = vcmp.eq.f32.partialorder %v489_v19, 8.507059e+37  ;;  %vm608_vm4 = vcmp.eq.f32.partialorder %v607_v9, 8.507059e+37 }
 0x1cc   :  { %v3533_v30 = vpop.eup %3532  ;;  %v493_v44 = vsel %vm490_vm3, %v492_v37, %v488_v52 }
 0x1cd   :  { %v599_v39 = vmul.f32 %v3533_v30, %v4436_v31  ;;  %v618_v34 = vadd.f32 %v3249_v18, %v616_v21  ;;  %v591_v13 = vsel %vm4506_vm10, %v4434_v28, %v587_v4  ;;  %vm604_vm13 = vweird.f32 %v3533_v30 }
 0x1ce   :  { %v507_v28 = vor.u32 1.1754944e-38, %v506_v58  ;;  %v596_v11 = vsel %vm593_vm12, %v595_v0, %v591_v13  ;;  %vm605_vm2 = vmor %vm603_vm1, %vm604_vm13  ;;  %v518_v49 = vsub.f32 1.0, %v493_v44  ;;  %v522_v56 = vmul.f32 %v493_v44, %v4294_v16  ;;  %v4562_v58 = vld [vmem:[%s6371_s2] sm:$0xff] }
 0x1cf   :  { %v600_v48 = vsub.f32 1.0, %v599_v39  ;;  %3536 = vtanh.f32 %v618_v34  ;;  %v621_v32 = vsub.f32 1.0, %v596_v11  ;;  %v3535_v38 = vpop.eup %3534  ;;  %v625_v1 = vmul.f32 %v596_v11, %v4288_v5  ;;  %v3278_v44 = vld [vmem:[%s6378_s1 + $0x100] sm:$0xff] }
 0x1d0   :  { %v508_v59 = vsel %vm505_vm15, %v507_v28, %v503_v40  ;;  %3538 = vtanh.f32 %v515_v7 }
 0x1d1   :  { %v601_v42 = vmul.f32 %v3533_v30, %v600_v48  ;;  %3540 = vtanh.f32 %v514_v43  ;;  %v519_v54 = vsub.f32 1.0, %v508_v59  ;;  %v623_v50 = vmul.f32 %v3535_v38, %v621_v32  ;;  %v3268_v48 = vld [vmem:[%s6377_s0 + $0x70] sm:$0xff]  ;;  %v3277_v43 = vld [vmem:[%s6378_s1 + $0xf8] sm:$0xff] }
 0x1d2   :  { %v523_v27 = vmul.f32 %v508_v59, %v4291_v60 }
 0x1d3   :  { %v602_v26 = vadd.f32 %v3533_v30, %v601_v42  ;;  %v4548_v55 = vadd.f32 %v625_v1, %v623_v50 }
 0x1d5   :  { %v606_v53 = vsel %vm605_vm2, %v3533_v30, %v602_v26  ;;  %v3537_v35 = vpop.eup %3536  ;;  %6462 = vst [vmem:[#allocation12_spill] sm:$0xff] %v4548_v55 }
 0x1d6   :  { %v611_v45 = vsel %vm608_vm4, %v610_v63, %v606_v53  ;;  %v3539_v21 = vpop.eup %3538 }
 0x1d7   :  { %v622_v31 = vsub.f32 1.0, %v611_v45  ;;  %v626_v18 = vmul.f32 %v611_v45, %v4285_v2  ;;  %v521_v61 = vmul.f32 %v3539_v21, %v519_v54  ;;  %v3541_v19 = vpop.eup %3540 }
 0x1d8   :  { %v520_v30 = vmul.f32 %v3541_v19, %v518_v49 }
 0x1d9   :  { %v624_v4 = vmul.f32 %v3537_v35, %v622_v31  ;;  %v4552_v39 = vadd.f32 %v523_v27, %v521_v61 }
 0x1da   :  { %v4556_v33 = vadd.f32 %v522_v56, %v520_v30  ;;  %v3279_v56 = vld [vmem:[%s6378_s1 + $0x108] sm:$0xff] }
 0x1db   :  { %v4544_v46 = vadd.f32 %v626_v18, %v624_v4 }
 0x1dd   :  { %6461 = vst [vmem:[#allocation11_spill] sm:$0xff] %v4544_v46  ;;  %647 = vmatpush.msra.mxu2 %v4544_v46 }
 0x1df   :  { %648 = vmatpush.msra.mxu2 %v4548_v55 }
 0x1e1   :  { %649 = vmatpush.msra.mxu2 %v4552_v39 }
 0x1e3   :  { %650 = vmatpush.msra.mxu2 %v4556_v33 }
 0x1e4   :  { %3254 = vmatmul.msk.f32.vlgmr.msra.gmra.mxu2 %vm70_vm0, %v4562_v58 }
 0x1ec   :  { %3255 = vmatmul.msk.f32.gmra.mxu2 %vm70_vm0, %v4569_v3 }
 0x1f4   :  { %3256 = vmatmul.msk.f32.gmra.mxu2 %vm70_vm0, %v3959_v6 }
 0x1fc   :  { %3257 = vmatmul.msk.f32.gmra.mxu2 %vm70_vm0, %v3969_v8 }
 0x204   :  { %3258 = vmatmul.msk.f32.gmra.mxu2 %vm70_vm0, %v3979_v10 }
 0x20c   :  { %3259 = vmatmul.msk.f32.gmra.mxu2 %vm70_vm0, %v3989_v12 }
 0x214   :  { %3260 = vmatmul.msk.f32.gmra.mxu2 %vm70_vm0, %v3999_v14  ;;  %v3266_v14 = vld [vmem:[%s6377_s0 + $0x60] sm:$0xff] }
 0x21c   :  { %3261 = vmatmul.msk.f32.gmra.mxu2 %vm70_vm0, %v4012_v17 }
 0x224   :  { %3262 = vmatmul.msk.f32.gmra.mxu2 %vm70_vm0, %v4025_v20 }
 0x22c   :  { %3263 = vmatmul.msk.f32.gmra.mxu2 %vm70_vm0, %v4035_v22  ;;  %v3267_v22 = vld [vmem:[%s6377_s0 + $0x68] sm:$0xff] }
 0x234   :  { %3264 = vmatmul.msk.f32.gmra.mxu2 %vm70_vm0, %v4042_v23 }
 0x23c   :  { %3265 = vmatmul.msk.f32.gmra.mxu2 %vm70_vm0, %v4049_v24 }
 0x267   :  { %v652_v6 = vpop.f32.mrf.mxu2 }
 0x268   :  { %v695_v20 = vadd.f32 %v3266_v14, %v652_v6 }
 0x26a   :  { %v3272_v34 = vmul.f32 -1.442695, %v695_v20 }
 0x26c   :  { %3542 = vpow2.f32 %v3272_v34 }
 0x26f   :  { %v655_v8 = vpop.f32.mrf.mxu2 }
 0x270   :  { %v696_v23 = vadd.f32 %v3267_v22, %v655_v8 }
 0x272   :  { %v3273_v24 = vmul.f32 -1.442695, %v696_v23  ;;  %v3543_v7 = vpop.eup %3542 }
 0x273   :  { %v4612_v57 = vadd.f32 1.0, %v3543_v7 }
 0x274   :  { %3544 = vpow2.f32 %v3273_v24 }
 0x275   :  { %v714_v22 = vand.u32 2147483647, %v4612_v57  ;;  %v716_v34 = vand.u32 2147483648, %v4612_v57  ;;  %vm710_vm6 = vweird.f32 %v4612_v57 }
 0x277   :  { %v658_v10 = vpop.f32.mrf.mxu2  ;;  %vm4676_vm8 = vcmp.eq.f32.partialorder %v714_v22, 8.507059e+37 }
 0x278   :  { %v735_v42 = vadd.f32 %v3268_v48, %v658_v10 }
 0x27a   :  { %v3545_v62 = vpop.eup %3544  ;;  %v3274_v11 = vmul.f32 -1.442695, %v735_v42 }
 0x27b   :  { %v4618_v52 = vadd.f32 1.0, %v3545_v62 }
 0x27d   :  { %v731_v23 = vand.u32 2147483648, %v4618_v52  ;;  %vm725_vm9 = vweird.f32 %v4618_v52 }
 0x27f   :  { %v661_v12 = vpop.f32.mrf.mxu2 }
 0x280   :  { %v736_v0 = vadd.f32 %v3269_v36, %v661_v12 }
 0x282   :  { %v3275_v28 = vmul.f32 -1.442695, %v736_v0 }
 0x287   :  { %v4596_v17 = vpop.f32.mrf.mxu2 }
 0x28f   :  { %v4601_v51 = vpop.f32.mrf.mxu2 }
 0x297   :  { %v670_v13 = vpop.f32.mrf.mxu2 }
 0x298   :  { %v798_v40 = vadd.f32 %v3276_v41, %v670_v13  ;;  %v729_v13 = vand.u32 2147483647, %v4618_v52 }
 0x29a   :  { %v3282_v9 = vmul.f32 -1.442695, %v798_v40  ;;  %vm4689_vm11 = vcmp.eq.f32.partialorder %v729_v13, 8.507059e+37 }
 0x29c   :  { %3546 = vpow2.f32 %v3282_v9 }
 0x29d   :  { %3548 = vrcp.f32 %v4612_v57 }
 0x29e   :  { %3550 = vpow2.f32 %v3275_v28  ;;  %v3280_v28 = vld [vmem:[%s6378_s1 + $0x110] sm:$0xff] }
 0x29f   :  { %v673_v26 = vpop.f32.mrf.mxu2  ;;  %3552 = vpow2.f32 %v3274_v11  ;;  %v732_v11 = vor.u32 1.1754944e-38, %v731_v23 }
 0x2a0   :  { %v799_v37 = vadd.f32 %v3277_v43, %v673_v26  ;;  %3554 = vrcp.f32 %v4618_v52  ;;  %v717_v43 = vor.u32 1.1754944e-38, %v716_v34 }
 0x2a2   :  { %v3547_v59 = vpop.eup %3546  ;;  %v3283_v63 = vmul.f32 -1.442695, %v799_v37 }
 0x2a3   :  { %v4621_v32 = vadd.f32 1.0, %v3547_v59  ;;  %v4623_v53 = vpop.eup %3548 }
 0x2a4   :  { %3556 = vpow2.f32 %v3283_v63  ;;  %v3551_v45 = vpop.eup %3550  ;;  %v706_v38 = vmul.f32 %v4623_v53, %v4612_v57  ;;  %vm711_vm5 = vweird.f32 %v4623_v53 }
 0x2a5   :  { %3558 = vrcp.f32 %v4621_v32  ;;  %v3553_v31 = vpop.eup %3552  ;;  %v4633_v4 = vadd.f32 1.0, %v3551_v45  ;;  %vm4672_vm7 = vmor %vm710_vm6, %vm711_vm5  ;;  %vm813_vm13 = vweird.f32 %v4621_v32 }
 0x2a6   :  { %v4631_v49 = vpop.eup %3554  ;;  %v707_v61 = vsub.f32 1.0, %v706_v38  ;;  %v4639_v19 = vadd.f32 1.0, %v3553_v31 }
 0x2a7   :  { %v676_v54 = vpop.f32.mrf.mxu2  ;;  %v721_v27 = vmul.f32 %v4631_v49, %v4618_v52  ;;  %vm726_vm10 = vweird.f32 %v4631_v49 }
 0x2a8   :  { %v838_v35 = vadd.f32 %v3278_v44, %v676_v54  ;;  %v708_v6 = vmul.f32 %v4623_v53, %v707_v61  ;;  %v754_v57 = vand.u32 2147483647, %v4639_v19  ;;  %v756_v44 = vand.u32 2147483648, %v4639_v19  ;;  %vm4720_vm2 = vmor %vm725_vm9, %vm726_vm10 }
 0x2a9   :  { %v722_v14 = vsub.f32 1.0, %v721_v27  ;;  %v817_v61 = vand.u32 2147483647, %v4621_v32  ;;  %vm750_vm5 = vweird.f32 %v4639_v19 }
 0x2aa   :  { %v3557_v50 = vpop.eup %3556  ;;  %v3284_v18 = vmul.f32 -1.442695, %v838_v35  ;;  %v709_v36 = vadd.f32 %v4623_v53, %v708_v6 }
 0x2ab   :  { %v4635_v21 = vpop.eup %3558  ;;  %v4637_v1 = vadd.f32 1.0, %v3557_v50  ;;  %v723_v42 = vmul.f32 %v4631_v49, %v722_v14  ;;  %v819_v50 = vand.u32 2147483648, %v4621_v32  ;;  %vm818_vm4 = vcmp.eq.f32.partialorder %v817_v61, 8.507059e+37 }
 0x2ac   :  { %3560 = vpow2.f32 %v3284_v18  ;;  %v809_v30 = vmul.f32 %v4635_v21, %v4621_v32  ;;  %v713_v59 = vsel %vm4672_vm7, %v4623_v53, %v709_v36  ;;  %vm814_vm12 = vweird.f32 %v4635_v21  ;;  %v3270_v32 = vld [vmem:[%s6377_s0 + $0x80] sm:$0xff] }
 0x2ad   :  { %3562 = vrcp.f32 %v4637_v1  ;;  %v775_v53 = vadd.f32 %v4596_v17, %v4136_v47  ;;  %v724_v35 = vadd.f32 %v4631_v49, %v723_v42  ;;  %vm4710_vm15 = vmor %vm813_vm13, %vm814_vm12  ;;  %vm828_vm1 = vweird.f32 %v4637_v1 }
 0x2ae   :  { %3564 = vrcp.f32 %v4633_v4  ;;  %v810_v12 = vsub.f32 1.0, %v809_v30  ;;  %v820_v34 = vor.u32 1.1754944e-38, %v819_v50  ;;  %v718_v36 = vsel %vm4676_vm8, %v717_v43, %v713_v59 }
 0x2af   :  { %v679_v8 = vpop.f32.mrf.mxu2  ;;  %3566 = vrcp.f32 %v4639_v19  ;;  %v728_v52 = vsel %vm4720_vm2, %v4631_v49, %v724_v35  ;;  %v769_v61 = vand.u32 2147483647, %v4633_v4 }
 0x2b0   :  { %v839_v10 = vadd.f32 %v3279_v56, %v679_v8  ;;  %v811_v40 = vmul.f32 %v4635_v21, %v810_v12  ;;  %v834_v8 = vand.u32 2147483648, %v4637_v1 }
 0x2b1   :  { %vm770_vm2 = vcmp.eq.f32.partialorder %v769_v61, 8.507059e+37  ;;  %v4859_v61 = vld [vmem:[%s6371_s2 + $0x28] sm:$0xff] }
 0x2b2   :  { %v3561_v20 = vpop.eup %3560  ;;  %v3285_v24 = vmul.f32 -1.442695, %v839_v10  ;;  %v812_v38 = vadd.f32 %v4635_v21, %v811_v40 }
 0x2b3   :  { %v4655_v41 = vpop.eup %3562  ;;  %v4659_v7 = vadd.f32 1.0, %v3561_v20  ;;  %v832_v20 = vand.u32 2147483647, %v4637_v1 }
 0x2b4   :  { %v4661_v48 = vpop.eup %3564  ;;  %3568 = vpow2.f32 %v3285_v24  ;;  %v824_v0 = vmul.f32 %v4655_v41, %v4637_v1  ;;  %vm829_vm14 = vweird.f32 %v4655_v41  ;;  %v816_v12 = vsel %vm4710_vm15, %v4635_v21, %v812_v38  ;;  %v3281_v38 = vld [vmem:[%s6378_s1 + $0x118] sm:$0xff] }
 0x2b5   :  { %3570 = vrcp.f32 %v4659_v7  ;;  %v4670_v9 = vpop.eup %3566  ;;  %v761_v37 = vmul.f32 %v4661_v48, %v4633_v4  ;;  %vm4737_vm3 = vmor %vm828_vm1, %vm829_vm14  ;;  %v776_v21 = vadd.f32 %v4601_v51, %v4101_v15  ;;  %v821_v13 = vsel %vm818_vm4, %v820_v34, %v816_v12 }
 0x2b6   :  { %v825_v26 = vsub.f32 1.0, %v824_v0  ;;  %v746_v31 = vmul.f32 %v4670_v9, %v4639_v19  ;;  %v835_v0 = vor.u32 1.1754944e-38, %v834_v8  ;;  %vm833_vm6 = vcmp.eq.f32.partialorder %v832_v20, 8.507059e+37 }
 0x2b7   :  { %v682_v63 = vpop.f32.mrf.mxu2  ;;  %v762_v56 = vsub.f32 1.0, %v761_v37  ;;  %v777_v37 = vmul.f32 %v775_v53, %v718_v36  ;;  %vm766_vm8 = vweird.f32 %v4661_v48  ;;  %v857_v45 = vand.u32 2147483647, %v4659_v7 }
 0x2b8   :  { %v826_v54 = vmul.f32 %v4655_v41, %v825_v26  ;;  %v878_v14 = vadd.f32 %v682_v63, %v4174_v25  ;;  %v747_v22 = vsub.f32 1.0, %v746_v31  ;;  %v859_v35 = vand.u32 2147483648, %v4659_v7 }
 0x2b9   :  { %v763_v49 = vmul.f32 %v4661_v48, %v762_v56  ;;  %vm751_vm9 = vweird.f32 %v4670_v9  ;;  %vm853_vm10 = vweird.f32 %v4659_v7  ;;  %vm858_vm14 = vcmp.eq.f32.partialorder %v857_v45, 8.507059e+37  ;;  %v4873_v56 = vld [vmem:[%s6371_s2 + $0x38] sm:$0xff] }
 0x2ba   :  { %v3569_v18 = vpop.eup %3568  ;;  %v827_v30 = vadd.f32 %v4655_v41, %v826_v54  ;;  %v880_v62 = vmul.f32 %v878_v14, %v821_v13  ;;  %v748_v26 = vmul.f32 %v4670_v9, %v747_v22  ;;  %v860_v20 = vor.u32 1.1754944e-38, %v859_v35  ;;  %vm4802_vm1 = vmor %vm750_vm5, %vm751_vm9  ;;  %v4838_v35 = vld [vmem:[%s6371_s2 + $0x10] sm:$0xff] }
 0x2bb   :  { %v4706_v27 = vpop.eup %3570  ;;  %v4708_v6 = vadd.f32 1.0, %v3569_v18  ;;  %v764_v53 = vadd.f32 %v4661_v48, %v763_v49  ;;  %v757_v49 = vor.u32 1.1754944e-38, %v756_v44  ;;  %vm755_vm5 = vcmp.eq.f32.partialorder %v754_v57, 8.507059e+37 }
 0x2bc   :  { %v849_v10 = vmul.f32 %v4706_v27, %v4659_v7  ;;  %v831_v1 = vsel %vm4737_vm3, %v4655_v41, %v827_v30  ;;  %v733_v41 = vsel %vm4689_vm11, %v732_v11, %v728_v52  ;;  %vm854_vm7 = vweird.f32 %v4706_v27  ;;  %v3271_v11 = vld [vmem:[%s6377_s0 + $0x88] sm:$0xff]  ;;  %v4894_v7 = vld [vmem:[%s6371_s2 + $0x50] sm:$0xff] }
 0x2bd   :  { %3572 = vrcp.f32 %v4708_v6  ;;  %v836_v43 = vsel %vm833_vm6, %v835_v0, %v831_v1  ;;  %v778_v59 = vmul.f32 %v776_v21, %v733_v41  ;;  %v882_v18 = vadd.f32 %v3280_v28, %v880_v62  ;;  %vm4778_vm12 = vmor %vm853_vm10, %vm854_vm7 }
 0x2be   :  { %v850_v24 = vsub.f32 1.0, %v849_v10  ;;  %vm765_vm11 = vweird.f32 %v4633_v4  ;;  %v771_v30 = vand.u32 2147483648, %v4633_v4  ;;  %v749_v8 = vadd.f32 %v4670_v9, %v748_v26 }
 0x2bf   :  { %v685_v40 = vpop.f32.mrf.mxu2  ;;  %vm4783_vm13 = vmor %vm765_vm11, %vm766_vm8  ;;  %v780_v10 = vadd.f32 %v3271_v11, %v778_v59  ;;  %v874_v22 = vand.u32 2147483648, %v4708_v6  ;;  %v872_v34 = vand.u32 2147483647, %v4708_v6  ;;  %3574 = vtanh.f32 %v882_v18  ;;  %v4852_v18 = vld [vmem:[%s6371_s2 + $0x20] sm:$0xff] }
 0x2c0   :  { %v851_v42 = vmul.f32 %v4706_v27, %v850_v24  ;;  %v879_v51 = vadd.f32 %v685_v40, %v4114_v29  ;;  %v768_v14 = vsel %vm4783_vm13, %v4661_v48, %v764_v53  ;;  %v779_v21 = vadd.f32 %v3270_v32, %v777_v37  ;;  %v4901_v32 = vld [vmem:[%s6371_s2 + $0x58] sm:$0xff] }
 0x2c1   :  { %v753_v24 = vsel %vm4802_vm1, %v4670_v9, %v749_v8  ;;  %vm868_vm3 = vweird.f32 %v4708_v6  ;;  %v875_v13 = vor.u32 1.1754944e-38, %v874_v22  ;;  %vm873_vm6 = vcmp.eq.f32.partialorder %v872_v34, 8.507059e+37  ;;  %v4887_v8 = vld [vmem:[%s6371_s2 + $0x48] sm:$0xff]  ;;  %v3299_v34 = vld [vmem:[%s6377_s0 + $0x98] sm:$0xff] }
 0x2c2   :  { %v852_v63 = vadd.f32 %v4706_v27, %v851_v42  ;;  %v881_v54 = vmul.f32 %v879_v51, %v836_v43  ;;  %v758_v42 = vsel %vm755_vm5, %v757_v49, %v753_v24  ;;  %v3308_v24 = vld [vmem:[%s6378_s1 + $0xc0] sm:$0xff] }
 0x2c3   :  { %v3573_v31 = vpop.eup %3572  ;;  %v783_v37 = vsub.f32 1.0, %v758_v42  ;;  %v787_v11 = vmul.f32 %v758_v42, %v4556_v33 }
 0x2c4   :  { %v864_v50 = vmul.f32 %v3573_v31, %v4708_v6  ;;  %v883_v17 = vadd.f32 %v3281_v38, %v881_v54  ;;  %v856_v4 = vsel %vm4778_vm12, %v4706_v27, %v852_v63  ;;  %vm869_vm15 = vweird.f32 %v3573_v31 }
 0x2c5   :  { %v772_v27 = vor.u32 1.1754944e-38, %v771_v30  ;;  %v861_v48 = vsel %vm858_vm14, %v860_v20, %v856_v4  ;;  %vm870_vm4 = vmor %vm868_vm3, %vm869_vm15  ;;  %v3575_v62 = vpop.eup %3574  ;;  %v4866_v30 = vld [vmem:[%s6371_s2 + $0x30] sm:$0xff] }
 0x2c6   :  { %v865_v12 = vsub.f32 1.0, %v864_v50  ;;  %3576 = vtanh.f32 %v883_v17  ;;  %v886_v40 = vsub.f32 1.0, %v861_v48  ;;  %v890_v19 = vmul.f32 %v861_v48, %v4548_v55  ;;  %v4845_v50 = vld [vmem:[%s6371_s2 + $0x18] sm:$0xff]  ;;  %v4880_v17 = vld [vmem:[%s6371_s2 + $0x40] sm:$0xff]  ;;  %v3298_v20 = vld [vmem:[%s6377_s0 + $0x90] sm:$0xff] }
 0x2c7   :  { %v773_v36 = vsel %vm770_vm2, %v772_v27, %v768_v14  ;;  %3578 = vtanh.f32 %v780_v10 }
 0x2c8   :  { %v866_v52 = vmul.f32 %v3573_v31, %v865_v12  ;;  %3580 = vtanh.f32 %v779_v21  ;;  %v784_v51 = vsub.f32 1.0, %v773_v36  ;;  %v888_v44 = vmul.f32 %v3575_v62, %v886_v40 }
 0x2ca   :  { %v867_v1 = vadd.f32 %v3573_v31, %v866_v52  ;;  %v4820_v54 = vadd.f32 %v890_v19, %v888_v44 }
 0x2cc   :  { %v871_v0 = vsel %vm870_vm4, %v3573_v31, %v867_v1  ;;  %v3577_v26 = vpop.eup %3576  ;;  %v788_v31 = vmul.f32 %v773_v36, %v4552_v39  ;;  %v3301_v1 = vld [vmem:[%s6377_s0 + $0xa8] sm:$0xff]  ;;  %v3300_v36 = vld [vmem:[%s6377_s0 + $0xa0] sm:$0xff] }
 0x2cd   :  { %v876_v9 = vsel %vm873_vm6, %v875_v13, %v871_v0  ;;  %v3579_v43 = vpop.eup %3578 }
 0x2ce   :  { %v887_v6 = vsub.f32 1.0, %v876_v9  ;;  %v891_v28 = vmul.f32 %v876_v9, %v4544_v46  ;;  %v786_v59 = vmul.f32 %v3579_v43, %v784_v51  ;;  %v3581_v57 = vpop.eup %3580 }
 0x2cf   :  { %v785_v38 = vmul.f32 %v3581_v57, %v783_v37 }
 0x2d0   :  { %v889_v41 = vmul.f32 %v3577_v26, %v887_v6  ;;  %v4824_v53 = vadd.f32 %v788_v31, %v786_v59  ;;  %v3309_v26 = vld [vmem:[%s6378_s1 + $0xc8] sm:$0xff] }
 0x2d1   :  { %v4828_v45 = vadd.f32 %v787_v11, %v785_v38  ;;  %v3310_v38 = vld [vmem:[%s6378_s1 + $0xd0] sm:$0xff] }
 0x2d2   :  { %v4816_v63 = vadd.f32 %v891_v28, %v889_v41  ;;  %6481 = vst [vmem:[#allocation13_spill] sm:$0xff] %v4824_v53 }
 0x2d3   :  { %6482 = vst [vmem:[#allocation14_spill] sm:$0xff] %v4828_v45 }
 0x2d4   :  { %912 = vmatpush.msra.mxu3 %v4816_v63 }
 0x2d6   :  { %913 = vmatpush.msra.mxu3 %v4820_v54 }
 0x2d8   :  { %914 = vmatpush.msra.mxu3 %v4824_v53 }
 0x2da   :  { %915 = vmatpush.msra.mxu3 %v4828_v45 }
 0x2db   :  { %3286 = vmatmul.msk.f32.vlgmr.msra.gmra.mxu3 %vm70_vm0, %v4562_v58 }
 0x2e3   :  { %3287 = vmatmul.msk.f32.gmra.mxu3 %vm70_vm0, %v4569_v3 }
 0x2eb   :  { %3288 = vmatmul.msk.f32.gmra.mxu3 %vm70_vm0, %v4838_v35 }
 0x2f3   :  { %3289 = vmatmul.msk.f32.gmra.mxu3 %vm70_vm0, %v4845_v50 }
 0x2fb   :  { %3290 = vmatmul.msk.f32.gmra.mxu3 %vm70_vm0, %v4852_v18 }
 0x303   :  { %3291 = vmatmul.msk.f32.gmra.mxu3 %vm70_vm0, %v4859_v61 }
 0x30b   :  { %3292 = vmatmul.msk.f32.gmra.mxu3 %vm70_vm0, %v4866_v30 }
 0x313   :  { %3293 = vmatmul.msk.f32.gmra.mxu3 %vm70_vm0, %v4873_v56 }
 0x31b   :  { %3294 = vmatmul.msk.f32.gmra.mxu3 %vm70_vm0, %v4880_v17 }
 0x323   :  { %3295 = vmatmul.msk.f32.gmra.mxu3 %vm70_vm0, %v4887_v8 }
 0x32b   :  { %3296 = vmatmul.msk.f32.gmra.mxu3 %vm70_vm0, %v4894_v7 }
 0x333   :  { %3297 = vmatmul.msk.f32.gmra.mxu3 %vm70_vm0, %v4901_v32 }
 0x35e   :  { %v917_v10 = vpop.f32.mrf.mxu3 }
 0x35f   :  { %v960_v52 = vadd.f32 %v3298_v20, %v917_v10 }
 0x361   :  { %v3304_v23 = vmul.f32 -1.442695, %v960_v52 }
 0x363   :  { %3582 = vpow2.f32 %v3304_v23 }
 0x366   :  { %v920_v12 = vpop.f32.mrf.mxu3 }
 0x367   :  { %v961_v27 = vadd.f32 %v3299_v34, %v920_v12 }
 0x369   :  { %v3305_v48 = vmul.f32 -1.442695, %v961_v27  ;;  %v3583_v49 = vpop.eup %3582 }
 0x36a   :  { %v4924_v42 = vadd.f32 1.0, %v3583_v49 }
 0x36b   :  { %3584 = vpow2.f32 %v3305_v48 }
 0x36c   :  { %vm975_vm8 = vweird.f32 %v4924_v42 }
 0x36e   :  { %v923_v4 = vpop.f32.mrf.mxu3 }
 0x36f   :  { %v1000_v9 = vadd.f32 %v3300_v36, %v923_v4  ;;  %v3311_v36 = vld [vmem:[%s6378_s1 + $0xd8] sm:$0xff] }
 0x371   :  { %v3585_v51 = vpop.eup %3584  ;;  %v3306_v37 = vmul.f32 -1.442695, %v1000_v9 }
 0x372   :  { %v4930_v44 = vadd.f32 1.0, %v3585_v51 }
 0x374   :  { %vm990_vm11 = vweird.f32 %v4930_v44 }
 0x376   :  { %v926_v14 = vpop.f32.mrf.mxu3 }
 0x377   :  { %v1001_v0 = vadd.f32 %v3301_v1, %v926_v14 }
 0x379   :  { %v3307_v6 = vmul.f32 -1.442695, %v1001_v0 }
 0x37e   :  { %v4908_v22 = vpop.f32.mrf.mxu3 }
 0x386   :  { %v4913_v21 = vpop.f32.mrf.mxu3 }
 0x38e   :  { %v935_v13 = vpop.f32.mrf.mxu3 }
 0x38f   :  { %v1063_v40 = vadd.f32 %v3308_v24, %v935_v13 }
 0x391   :  { %v3314_v62 = vmul.f32 -1.442695, %v1063_v40 }
 0x393   :  { %3586 = vpow2.f32 %v3314_v62 }
 0x394   :  { %3588 = vrcp.f32 %v4924_v42 }
 0x395   :  { %3590 = vpow2.f32 %v3307_v6  ;;  %v979_v6 = vand.u32 2147483647, %v4924_v42 }
 0x396   :  { %v938_v41 = vpop.f32.mrf.mxu3  ;;  %3592 = vpow2.f32 %v3306_v37  ;;  %v996_v37 = vand.u32 2147483648, %v4930_v44 }
 0x397   :  { %v1064_v28 = vadd.f32 %v3309_v26, %v938_v41  ;;  %3594 = vrcp.f32 %v4930_v44  ;;  %v981_v26 = vand.u32 2147483648, %v4924_v42  ;;  %vm4988_vm10 = vcmp.eq.f32.partialorder %v979_v6, 8.507059e+37 }
 0x399   :  { %v3587_v43 = vpop.eup %3586  ;;  %v3315_v59 = vmul.f32 -1.442695, %v1064_v28 }
 0x39a   :  { %v4933_v19 = vadd.f32 1.0, %v3587_v43  ;;  %v4935_v57 = vpop.eup %3588 }
 0x39b   :  { %3596 = vpow2.f32 %v3315_v59  ;;  %v3591_v31 = vpop.eup %3590  ;;  %v971_v11 = vmul.f32 %v4935_v57, %v4924_v42  ;;  %vm976_vm7 = vweird.f32 %v4935_v57 }
 0x39c   :  { %3598 = vrcp.f32 %v4933_v19  ;;  %v3593_v12 = vpop.eup %3592  ;;  %v4945_v52 = vadd.f32 1.0, %v3591_v31  ;;  %v994_v31 = vand.u32 2147483647, %v4930_v44  ;;  %vm4984_vm9 = vmor %vm975_vm8, %vm976_vm7  ;;  %vm1078_vm15 = vweird.f32 %v4933_v19 }
 0x39d   :  { %v4943_v14 = vpop.eup %3594  ;;  %v972_v27 = vsub.f32 1.0, %v971_v11  ;;  %v4951_v24 = vadd.f32 1.0, %v3593_v12 }
 0x39e   :  { %v941_v10 = vpop.f32.mrf.mxu3  ;;  %v986_v49 = vmul.f32 %v4943_v14, %v4930_v44  ;;  %vm991_vm12 = vweird.f32 %v4943_v14  ;;  %vm5001_vm13 = vcmp.eq.f32.partialorder %v994_v31, 8.507059e+37 }
 0x39f   :  { %v1103_v4 = vadd.f32 %v3310_v38, %v941_v10  ;;  %v973_v13 = vmul.f32 %v4935_v57, %v972_v27  ;;  %v982_v27 = vor.u32 1.1754944e-38, %v981_v26  ;;  %vm5032_vm4 = vmor %vm990_vm11, %vm991_vm12  ;;  %vm1015_vm7 = vweird.f32 %v4951_v24 }
 0x3a0   :  { %v987_v62 = vsub.f32 1.0, %v986_v49 }
 0x3a1   :  { %v3597_v20 = vpop.eup %3596  ;;  %v3316_v34 = vmul.f32 -1.442695, %v1103_v4  ;;  %v974_v43 = vadd.f32 %v4935_v57, %v973_v13 }
 0x3a2   :  { %v4947_v23 = vpop.eup %3598  ;;  %v4949_v48 = vadd.f32 1.0, %v3597_v20  ;;  %v988_v12 = vmul.f32 %v4943_v14, %v987_v62 }
 0x3a3   :  { %3600 = vpow2.f32 %v3316_v34  ;;  %v1074_v1 = vmul.f32 %v4947_v23, %v4933_v19  ;;  %v978_v13 = vsel %vm4984_vm9, %v4935_v57, %v974_v43  ;;  %vm1079_vm14 = vweird.f32 %v4947_v23  ;;  %v3312_v34 = vld [vmem:[%s6378_s1 + $0xe0] sm:$0xff] }
 0x3a4   :  { %3602 = vrcp.f32 %v4949_v48  ;;  %v1040_v57 = vadd.f32 %v4908_v22, %v4136_v47  ;;  %v989_v26 = vadd.f32 %v4943_v14, %v988_v12  ;;  %v1082_v43 = vand.u32 2147483647, %v4933_v19  ;;  %vm5022_vm2 = vmor %vm1078_vm15, %vm1079_vm14 }
 0x3a5   :  { %3604 = vrcp.f32 %v4945_v52  ;;  %v1075_v9 = vsub.f32 1.0, %v1074_v1  ;;  %v997_v1 = vor.u32 1.1754944e-38, %v996_v37  ;;  %v1084_v37 = vand.u32 2147483648, %v4933_v19 }
 0x3a6   :  { %v944_v40 = vpop.f32.mrf.mxu3  ;;  %3606 = vrcp.f32 %v4951_v24  ;;  %vm1093_vm3 = vweird.f32 %v4949_v48  ;;  %v1099_v12 = vand.u32 2147483648, %v4949_v48  ;;  %v993_v44 = vsel %vm5032_vm4, %v4943_v14, %v989_v26 }
 0x3a7   :  { %v1104_v0 = vadd.f32 %v3311_v36, %v944_v40  ;;  %v1076_v11 = vmul.f32 %v4947_v23, %v1075_v9  ;;  %vm1083_vm6 = vcmp.eq.f32.partialorder %v1082_v43, 8.507059e+37 }
 0x3a9   :  { %v3601_v51 = vpop.eup %3600  ;;  %v3317_v41 = vmul.f32 -1.442695, %v1104_v0  ;;  %v1077_v62 = vadd.f32 %v4947_v23, %v1076_v11  ;;  %v1085_v0 = vor.u32 1.1754944e-38, %v1084_v37  ;;  %v1100_v37 = vor.u32 1.1754944e-38, %v1099_v12 }
 0x3aa   :  { %v4967_v28 = vpop.eup %3602  ;;  %v4971_v59 = vadd.f32 1.0, %v3601_v51 }
 0x3ab   :  { %v4973_v38 = vpop.eup %3604  ;;  %3608 = vpow2.f32 %v3317_v41  ;;  %v1089_v10 = vmul.f32 %v4967_v28, %v4949_v48  ;;  %vm1094_vm1 = vweird.f32 %v4967_v28 }
 0x3ac   :  { %3610 = vrcp.f32 %v4971_v59  ;;  %v4982_v4 = vpop.eup %3606  ;;  %v1026_v36 = vmul.f32 %v4973_v38, %v4945_v52  ;;  %vm5049_vm5 = vmor %vm1093_vm3, %vm1094_vm1  ;;  %v1122_v9 = vand.u32 2147483647, %v4971_v59  ;;  %v1124_v12 = vand.u32 2147483648, %v4971_v59 }
 0x3ad   :  { %v1090_v49 = vsub.f32 1.0, %v1089_v10  ;;  %v1011_v6 = vmul.f32 %v4982_v4, %v4951_v24  ;;  %vm1016_vm11 = vweird.f32 %v4982_v4  ;;  %vm1118_vm12 = vweird.f32 %v4971_v59 }
 0x3ae   :  { %v947_v40 = vpop.f32.mrf.mxu3  ;;  %v1027_v10 = vsub.f32 1.0, %v1026_v36  ;;  %v1081_v36 = vsel %vm5022_vm2, %v4947_v23, %v1077_v62  ;;  %v1041_v23 = vadd.f32 %v4913_v21, %v4101_v15  ;;  %v983_v62 = vsel %vm4988_vm10, %v982_v27, %v978_v13  ;;  %vm5114_vm3 = vmor %vm1015_vm7, %vm1016_vm11 }
 0x3af   :  { %v1091_v51 = vmul.f32 %v4967_v28, %v1090_v49  ;;  %v1012_v42 = vsub.f32 1.0, %v1011_v6  ;;  %v1086_v6 = vsel %vm1083_vm6, %v1085_v0, %v1081_v36  ;;  %v1042_v60 = vmul.f32 %v1040_v57, %v983_v62 }
 0x3b0   :  { %v1028_v14 = vmul.f32 %v4973_v38, %v1027_v10  ;;  %vm1031_vm10 = vweird.f32 %v4973_v38  ;;  %vm1123_vm1 = vcmp.eq.f32.partialorder %v1122_v9, 8.507059e+37 }
 0x3b1   :  { %v3609_v41 = vpop.eup %3608  ;;  %v1092_v31 = vadd.f32 %v4967_v28, %v1091_v51  ;;  %v1143_v51 = vadd.f32 %v947_v40, %v4174_v25  ;;  %v1013_v43 = vmul.f32 %v4982_v4, %v1012_v42 }
 0x3b2   :  { %v5018_v11 = vpop.eup %3610  ;;  %v5020_v20 = vadd.f32 1.0, %v3609_v41  ;;  %v1097_v41 = vand.u32 2147483647, %v4949_v48  ;;  %v1029_v57 = vadd.f32 %v4973_v38, %v1028_v14 }
 0x3b3   :  { %v1114_v49 = vmul.f32 %v5018_v11, %v4971_v59  ;;  %v1096_v48 = vsel %vm5049_vm5, %v4967_v28, %v1092_v31  ;;  %v1145_v19 = vmul.f32 %v1143_v51, %v1086_v6  ;;  %v998_v28 = vsel %vm5001_vm13, %v997_v1, %v993_v44  ;;  %v3313_v31 = vld [vmem:[%s6378_s1 + $0xe8] sm:$0xff]  ;;  %v3303_v1 = vld [vmem:[%s6377_s0 + $0xb8] sm:$0xff] }
 0x3b4   :  { %3612 = vrcp.f32 %v5020_v20  ;;  %vm1098_vm8 = vcmp.eq.f32.partialorder %v1097_v41, 8.507059e+37  ;;  %v1043_v13 = vmul.f32 %v1041_v23, %v998_v28  ;;  %vm1119_vm9 = vweird.f32 %v5018_v11 }
 0x3b5   :  { %v1115_v40 = vsub.f32 1.0, %v1114_v49  ;;  %v1101_v27 = vsel %vm1098_vm8, %v1100_v37, %v1096_v48  ;;  %v1147_v36 = vadd.f32 %v3312_v34, %v1145_v19  ;;  %vm1030_vm13 = vweird.f32 %v4945_v52  ;;  %vm5090_vm14 = vmor %vm1118_vm12, %vm1119_vm9  ;;  %v3302_v48 = vld [vmem:[%s6377_s0 + $0xb0] sm:$0xff] }
 0x3b6   :  { %v950_v26 = vpop.f32.mrf.mxu3  ;;  %v1034_v51 = vand.u32 2147483647, %v4945_v52  ;;  %v1036_v41 = vand.u32 2147483648, %v4945_v52  ;;  %vm5095_vm15 = vmor %vm1030_vm13, %vm1031_vm10  ;;  %v1045_v14 = vadd.f32 %v3303_v1, %v1043_v13  ;;  %v1139_v37 = vand.u32 2147483648, %v5020_v20 }
 0x3b7   :  { %v1116_v22 = vmul.f32 %v5018_v11, %v1115_v40  ;;  %v1144_v21 = vadd.f32 %v950_v26, %v4114_v29  ;;  %v1014_v40 = vadd.f32 %v4982_v4, %v1013_v43  ;;  %v1033_v6 = vsel %vm5095_vm15, %v4973_v38, %v1029_v57 }
 0x3b8   :  { %v1125_v26 = vor.u32 1.1754944e-38, %v1124_v12  ;;  %v1137_v19 = vand.u32 2147483647, %v5020_v20  ;;  %3614 = vtanh.f32 %v1147_v36  ;;  %v1044_v43 = vadd.f32 %v3302_v48, %v1042_v60 }
 0x3b9   :  { %v1117_v0 = vadd.f32 %v5018_v11, %v1116_v22  ;;  %v1146_v10 = vmul.f32 %v1144_v21, %v1101_v27  ;;  %v1018_v28 = vsel %vm5114_vm3, %v4982_v4, %v1014_v40  ;;  %vm1035_vm4 = vcmp.eq.f32.partialorder %v1034_v51, 8.507059e+37 }
 0x3ba   :  { %v3613_v42 = vpop.eup %3612  ;;  %vm1133_vm5 = vweird.f32 %v5020_v20  ;;  %v6501_v27 = vand.u32 2147483648, %v4951_v24  ;;  %v6502_v60 = vand.u32 2147483647, %v4951_v24  ;;  %vm1138_vm8 = vcmp.eq.f32.partialorder %v1137_v19, 8.507059e+37 }
 0x3bb   :  { %v1129_v49 = vmul.f32 %v3613_v42, %v5020_v20  ;;  %v1148_v23 = vadd.f32 %v3313_v31, %v1146_v10  ;;  %v1121_v52 = vsel %vm5090_vm14, %v5018_v11, %v1117_v0  ;;  %vm1134_vm2 = vweird.f32 %v3613_v42 }
 0x3bc   :  { %v1037_v11 = vor.u32 1.1754944e-38, %v1036_v41  ;;  %v1126_v38 = vsel %vm1123_vm1, %v1125_v26, %v1121_v52  ;;  %v1022_v13 = vor.u32 1.1754944e-38, %v6501_v27  ;;  %vm1135_vm6 = vmor %vm1133_vm5, %vm1134_vm2  ;;  %v1140_v31 = vor.u32 1.1754944e-38, %v1139_v37  ;;  %v3330_v37 = vld [vmem:[%s6377_s0 + $0xc0] sm:$0xff] }
 0x3bd   :  { %v1130_v62 = vsub.f32 1.0, %v1129_v49  ;;  %3616 = vtanh.f32 %v1148_v23  ;;  %vm1020_vm7 = vcmp.eq.f32.partialorder %v6502_v60, 8.507059e+37  ;;  %v1151_v10 = vsub.f32 1.0, %v1126_v38 }
 0x3be   :  { %v1038_v0 = vsel %vm1035_vm4, %v1037_v11, %v1033_v6  ;;  %3618 = vtanh.f32 %v1045_v14  ;;  %v1023_v1 = vsel %vm1020_vm7, %v1022_v13, %v1018_v28  ;;  %v3615_v9 = vpop.eup %3614  ;;  %v1155_v24 = vmul.f32 %v1126_v38, %v4820_v54 }
 0x3bf   :  { %v1131_v22 = vmul.f32 %v3613_v42, %v1130_v62  ;;  %3620 = vtanh.f32 %v1044_v43  ;;  %v1049_v12 = vsub.f32 1.0, %v1038_v0  ;;  %v1048_v36 = vsub.f32 1.0, %v1023_v1  ;;  %v2655_v43 = vld [vmem:[%s6373_s5] sm:$0xff] }
 0x3c0   :  { %v1153_v51 = vmul.f32 %v3615_v9, %v1151_v10  ;;  %v1053_v62 = vmul.f32 %v1038_v0, %v4824_v53  ;;  %v1052_v6 = vmul.f32 %v1023_v1, %v4828_v45 }
 0x3c1   :  { %v1132_v34 = vadd.f32 %v3613_v42, %v1131_v22  ;;  %v2657_v22 = vld [vmem:[%s6373_s5 + $0x10] sm:$0xff] }
 0x3c2   :  { %v5132_v14 = vadd.f32 %v1155_v24, %v1153_v51  ;;  %v3340_v24 = vld [vmem:[%s6378_s1 + $0x90] sm:$0xff] }
 0x3c3   :  { %v1136_v57 = vsel %vm1135_vm6, %v3613_v42, %v1132_v34  ;;  %v3617_v49 = vpop.eup %3616 }
 0x3c4   :  { %v1141_v4 = vsel %vm1138_vm8, %v1140_v31, %v1136_v57  ;;  %v3619_v23 = vpop.eup %3618  ;;  %6504 = vst [vmem:[#allocation16_spill] sm:$0xff] %v5132_v14 }
 0x3c5   :  { %v1152_v20 = vsub.f32 1.0, %v1141_v4  ;;  %v1156_v44 = vmul.f32 %v1141_v4, %v4816_v63  ;;  %v1051_v40 = vmul.f32 %v3619_v23, %v1049_v12  ;;  %v3621_v48 = vpop.eup %3620 }
 0x3c6   :  { %v1050_v42 = vmul.f32 %v3621_v48, %v1048_v36  ;;  %v3333_v48 = vld [vmem:[%s6377_s0 + $0xd8] sm:$0xff] }
 0x3c7   :  { %v1154_v41 = vmul.f32 %v3617_v49, %v1152_v20  ;;  %v5136_v52 = vadd.f32 %v1053_v62, %v1051_v40 }
 0x3c8   :  { %v5140_v26 = vadd.f32 %v1052_v6, %v1050_v42  ;;  %v3332_v42 = vld [vmem:[%s6377_s0 + $0xd0] sm:$0xff] }
 0x3c9   :  { %v5128_v59 = vadd.f32 %v1156_v44, %v1154_v41  ;;  %6505 = vst [vmem:[#allocation17_spill] sm:$0xff] %v5136_v52  ;;  %v3331_v41 = vld [vmem:[%s6377_s0 + $0xc8] sm:$0xff] }
 0x3ca   :  { %6506 = vst [vmem:[#allocation18_spill] sm:$0xff] %v5140_v26 }
 0x3cb   :  { %6503 = vst [vmem:[#allocation15_spill] sm:$0xff] %v5128_v59  ;;  %1177 = vmatpush.msrb.mxu0 %v5128_v59 }
 0x3cd   :  { %1178 = vmatpush.msrb.mxu0 %v5132_v14 }
 0x3cf   :  { %1179 = vmatpush.msrb.mxu0 %v5136_v52 }
 0x3d1   :  { %1180 = vmatpush.msrb.mxu0 %v5140_v26 }
 0x3d2   :  { %3318 = vmatmul.msk.f32.vlgmr.msrb.gmra.mxu0 %vm70_vm0, %v4562_v58  ;;  %v2602_v58 = vld [vmem:[%s6374_s4 + $0x18] sm:$0xff] }
 0x3d3   :  { %2620 = vperm.xlu2 %3461, %v2602_v58  }
 0x3da   :  { %3319 = vmatmul.msk.f32.gmra.mxu0 %vm70_vm0, %v4569_v3  ;;  %v2601_v3 = vld [vmem:[%s6374_s4 + $0x10] sm:$0xff] }
 0x3db   :  { %2615 = vperm.xlu2 %3461, %v2601_v3  }
 0x3e2   :  { %3320 = vmatmul.msk.f32.gmra.mxu0 %vm70_vm0, %v4838_v35 }
 0x3e3   :  { %2671 = vperm.xlu2 %3461, %v2657_v22  }
 0x3ea   :  { %3321 = vmatmul.msk.f32.gmra.mxu0 %vm70_vm0, %v4845_v50 }
 0x3eb   :  { %2661 = vperm.xlu2 %3461, %v2655_v43  }
 0x3f2   :  { %3322 = vmatmul.msk.f32.gmra.mxu0 %vm70_vm0, %v4852_v18 }
 0x3fa   :  { %3323 = vmatmul.msk.f32.gmra.mxu0 %vm70_vm0, %v4859_v61 }
 0x402   :  { %3324 = vmatmul.msk.f32.gmra.mxu0 %vm70_vm0, %v4866_v30 }
 0x40a   :  { %3325 = vmatmul.msk.f32.gmra.mxu0 %vm70_vm0, %v4873_v56 }
 0x412   :  { %3326 = vmatmul.msk.f32.gmra.mxu0 %vm70_vm0, %v4880_v17 }
 0x41a   :  { %3327 = vmatmul.msk.f32.gmra.mxu0 %vm70_vm0, %v4887_v8 }
 0x422   :  { %3328 = vmatmul.msk.f32.gmra.mxu0 %vm70_vm0, %v4894_v7 }
 0x42a   :  { %3329 = vmatmul.msk.f32.gmra.mxu0 %vm70_vm0, %v4901_v32 }
 0x44f   :  { %v1182_v19 = vpop.f32.mrf.mxu0 }
 0x450   :  { %v1225_v21 = vadd.f32 %v3330_v37, %v1182_v19 }
 0x452   :  { %v3336_v11 = vmul.f32 -1.442695, %v1225_v21  ;;  %v3341_v21 = vld [vmem:[%s6378_s1 + $0x98] sm:$0xff] }
 0x454   :  { %3622 = vpow2.f32 %v3336_v11 }
 0x457   :  { %v1185_v38 = vpop.f32.mrf.mxu0 }
 0x458   :  { %v1226_v44 = vadd.f32 %v3331_v41, %v1185_v38 }
 0x45a   :  { %v3623_v28 = vpop.eup %3622  ;;  %v3337_v40 = vmul.f32 -1.442695, %v1226_v44 }
 0x45b   :  { %v1233_v34 = vadd.f32 1.0, %v3623_v28 }
 0x45d   :  { %3624 = vrcp.f32 %v1233_v34  ;;  %v1246_v1 = vand.u32 2147483648, %v1233_v34  ;;  %vm1240_vm10 = vweird.f32 %v1233_v34  ;;  %v1244_v4 = vand.u32 2147483647, %v1233_v34 }
 0x45e   :  { %3626 = vpow2.f32 %v3337_v40  ;;  %v3343_v40 = vld [vmem:[%s6378_s1 + $0xa8] sm:$0xff] }
 0x45f   :  { %v1188_v27 = vpop.f32.mrf.mxu0  ;;  %v1247_v20 = vor.u32 1.1754944e-38, %v1246_v1  ;;  %vm1245_vm12 = vcmp.eq.f32.partialorder %v1244_v4, 8.507059e+37 }
 0x460   :  { %v1265_v3 = vadd.f32 %v3332_v42, %v1188_v27 }
 0x462   :  { %v3338_v11 = vmul.f32 -1.442695, %v1265_v3 }
 0x463   :  { %v3625_v13 = vpop.eup %3624 }
 0x464   :  { %v1236_v0 = vmul.f32 %v3625_v13, %v1233_v34  ;;  %vm1241_vm9 = vweird.f32 %v3625_v13  ;;  %v3627_v22 = vpop.eup %3626 }
 0x465   :  { %vm1242_vm11 = vmor %vm1240_vm10, %vm1241_vm9  ;;  %v5202_v43 = vadd.f32 1.0, %v3627_v22 }
 0x466   :  { %v1237_v31 = vsub.f32 1.0, %v1236_v0  ;;  %v3342_v0 = vld [vmem:[%s6378_s1 + $0xa0] sm:$0xff] }
 0x467   :  { %v1191_v60 = vpop.f32.mrf.mxu0  ;;  %vm1255_vm13 = vweird.f32 %v5202_v43 }
 0x468   :  { %v1238_v10 = vmul.f32 %v3625_v13, %v1237_v31  ;;  %v1266_v58 = vadd.f32 %v3333_v48, %v1191_v60 }
 0x46a   :  { %v1239_v57 = vadd.f32 %v3625_v13, %v1238_v10  ;;  %v3339_v19 = vmul.f32 -1.442695, %v1266_v58 }
 0x46c   :  { %v1243_v9 = vsel %vm1242_vm11, %v3625_v13, %v1239_v57 }
 0x46d   :  { %v1248_v36 = vsel %vm1245_vm12, %v1247_v20, %v1243_v9 }
 0x46f   :  { %v1194_v12 = vpop.f32.mrf.mxu0 }
 0x470   :  { %v1305_v49 = vadd.f32 %v1194_v12, %v4136_v47 }
 0x472   :  { %v5183_v51 = vmul.f32 %v1305_v49, %v1248_v36 }
 0x477   :  { %v5188_v23 = vpop.f32.mrf.mxu0 }
 0x47f   :  { %v1200_v62 = vpop.f32.mrf.mxu0 }
 0x480   :  { %v1328_v6 = vadd.f32 %v3340_v24, %v1200_v62 }
 0x482   :  { %v3346_v37 = vmul.f32 -1.442695, %v1328_v6 }
 0x484   :  { %3628 = vpow2.f32 %v3346_v37  ;;  %v1259_v37 = vand.u32 2147483647, %v5202_v43 }
 0x485   :  { %3630 = vpow2.f32 %v3339_v19 }
 0x486   :  { %3632 = vpow2.f32 %v3338_v11  ;;  %vm5249_vm14 = vcmp.eq.f32.partialorder %v1259_v37, 8.507059e+37 }
 0x487   :  { %v1203_v38 = vpop.f32.mrf.mxu0  ;;  %3634 = vrcp.f32 %v5202_v43 }
 0x488   :  { %v1329_v28 = vadd.f32 %v3341_v21, %v1203_v38  ;;  %v1261_v21 = vand.u32 2147483648, %v5202_v43 }
 0x48a   :  { %v3629_v34 = vpop.eup %3628  ;;  %v3347_v13 = vmul.f32 -1.442695, %v1329_v28 }
 0x48b   :  { %v5205_v27 = vadd.f32 1.0, %v3629_v34  ;;  %v3631_v31 = vpop.eup %3630 }
 0x48c   :  { %3636 = vpow2.f32 %v3347_v13  ;;  %v3633_v10 = vpop.eup %3632  ;;  %v5213_v9 = vadd.f32 1.0, %v3631_v31 }
 0x48d   :  { %3638 = vrcp.f32 %v5205_v27  ;;  %v5211_v1 = vpop.eup %3634  ;;  %v5219_v36 = vadd.f32 1.0, %v3633_v10  ;;  %v1262_v10 = vor.u32 1.1754944e-38, %v1261_v21  ;;  %vm1343_vm2 = vweird.f32 %v5205_v27 }
 0x48e   :  { %v1251_v44 = vmul.f32 %v5211_v1, %v5202_v43  ;;  %vm1256_vm1 = vweird.f32 %v5211_v1 }
 0x48f   :  { %v1206_v60 = vpop.f32.mrf.mxu0  ;;  %vm5277_vm6 = vmor %vm1255_vm13, %vm1256_vm1  ;;  %vm1280_vm9 = vweird.f32 %v5219_v36 }
 0x490   :  { %v1368_v57 = vadd.f32 %v3342_v0, %v1206_v60  ;;  %v1252_v62 = vsub.f32 1.0, %v1251_v44  ;;  %v1349_v44 = vand.u32 2147483648, %v5205_v27  ;;  %v3335_v60 = vld [vmem:[%s6377_s0 + $0xe8] sm:$0xff] }
 0x492   :  { %v3637_v4 = vpop.eup %3636  ;;  %v3348_v12 = vmul.f32 -1.442695, %v1368_v57  ;;  %v1253_v28 = vmul.f32 %v5211_v1, %v1252_v62 }
 0x493   :  { %v5215_v20 = vpop.eup %3638  ;;  %v5217_v49 = vadd.f32 1.0, %v3637_v4 }
 0x494   :  { %3640 = vpow2.f32 %v3348_v12  ;;  %v1339_v41 = vmul.f32 %v5215_v20, %v5205_v27  ;;  %vm1344_vm15 = vweird.f32 %v5215_v20 }
 0x495   :  { %3642 = vrcp.f32 %v5217_v49  ;;  %vm5269_vm4 = vmor %vm1343_vm2, %vm1344_vm15  ;;  %vm1358_vm5 = vweird.f32 %v5217_v49  ;;  %v1364_v37 = vand.u32 2147483648, %v5217_v49  ;;  %vm1295_vm15 = vweird.f32 %v5213_v9 }
 0x496   :  { %3644 = vrcp.f32 %v5213_v9  ;;  %v1340_v42 = vsub.f32 1.0, %v1339_v41  ;;  %v1254_v41 = vadd.f32 %v5211_v1, %v1253_v28  ;;  %v1362_v28 = vand.u32 2147483647, %v5217_v49 }
 0x497   :  { %v1209_v24 = vpop.f32.mrf.mxu0  ;;  %3646 = vrcp.f32 %v5219_v36 }
 0x498   :  { %v1369_v48 = vadd.f32 %v3343_v40, %v1209_v24  ;;  %v1341_v11 = vmul.f32 %v5215_v20, %v1340_v42  ;;  %v1347_v24 = vand.u32 2147483647, %v5205_v27  ;;  %v1258_v43 = vsel %vm5277_vm6, %v5211_v1, %v1254_v41 }
 0x499   :  { %v1284_v1 = vand.u32 2147483647, %v5219_v36  ;;  %vm1363_vm10 = vcmp.eq.f32.partialorder %v1362_v28, 8.507059e+37  ;;  %v1286_v27 = vand.u32 2147483648, %v5219_v36 }
 0x49a   :  { %v3641_v6 = vpop.eup %3640  ;;  %v3349_v58 = vmul.f32 -1.442695, %v1369_v48  ;;  %v1342_v57 = vadd.f32 %v5215_v20, %v1341_v11  ;;  %vm1348_vm8 = vcmp.eq.f32.partialorder %v1347_v24, 8.507059e+37 }
 0x49b   :  { %v5231_v3 = vpop.eup %3642  ;;  %v5234_v22 = vadd.f32 1.0, %v3641_v6 }
 0x49c   :  { %v5236_v19 = vpop.eup %3644  ;;  %3648 = vpow2.f32 %v3349_v58  ;;  %v1354_v38 = vmul.f32 %v5231_v3, %v5217_v49  ;;  %vm1359_vm3 = vweird.f32 %v5231_v3  ;;  %v1346_v11 = vsel %vm5269_vm4, %v5215_v20, %v1342_v57 }
 0x49d   :  { %3650 = vrcp.f32 %v5234_v22  ;;  %v5244_v34 = vpop.eup %3646  ;;  %v1291_v0 = vmul.f32 %v5236_v19, %v5213_v9  ;;  %vm5294_vm7 = vmor %vm1358_vm5, %vm1359_vm3  ;;  %v1306_v20 = vadd.f32 %v5188_v23, %v4101_v15  ;;  %vm1296_vm12 = vweird.f32 %v5236_v19 }
 0x49e   :  { %v1355_v13 = vsub.f32 1.0, %v1354_v38  ;;  %v1276_v12 = vmul.f32 %v5244_v34, %v5219_v36  ;;  %vm1281_vm13 = vweird.f32 %v5244_v34  ;;  %vm5340_vm2 = vmor %vm1295_vm15, %vm1296_vm12 }
 0x49f   :  { %v1212_v31 = vpop.f32.mrf.mxu0  ;;  %v1292_v62 = vsub.f32 1.0, %v1291_v0  ;;  %v1350_v0 = vor.u32 1.1754944e-38, %v1349_v44  ;;  %v1365_v44 = vor.u32 1.1754944e-38, %v1364_v37  ;;  %vm5359_vm5 = vmor %vm1280_vm9, %vm1281_vm13  ;;  %vm1285_vm9 = vcmp.eq.f32.partialorder %v1284_v1, 8.507059e+37 }
 0x4a0   :  { %v1356_v4 = vmul.f32 %v5231_v3, %v1355_v13  ;;  %v1408_v38 = vadd.f32 %v1212_v31, %v4174_v25  ;;  %v1277_v13 = vsub.f32 1.0, %v1276_v12 }
 0x4a1   :  { %v1293_v57 = vmul.f32 %v5236_v19, %v1292_v62  ;;  %v1351_v12 = vsel %vm1348_vm8, %v1350_v0, %v1346_v11  ;;  %v3345_v11 = vld [vmem:[%s6378_s1 + $0xb8] sm:$0xff] }
 0x4a2   :  { %v3649_v40 = vpop.eup %3648  ;;  %v1357_v48 = vadd.f32 %v5231_v3, %v1356_v4  ;;  %v1410_v58 = vmul.f32 %v1408_v38, %v1351_v12  ;;  %v1278_v24 = vmul.f32 %v5244_v34, %v1277_v13 }
 0x4a3   :  { %v5265_v42 = vpop.eup %3650  ;;  %v5267_v6 = vadd.f32 1.0, %v3649_v40  ;;  %v1294_v13 = vadd.f32 %v5236_v19, %v1293_v57 }
 0x4a4   :  { %v1379_v21 = vmul.f32 %v5265_v42, %v5234_v22  ;;  %v1361_v49 = vsel %vm5294_vm7, %v5231_v3, %v1357_v48  ;;  %v1263_v3 = vsel %vm5249_vm14, %v1262_v10, %v1258_v43  ;;  %v3344_v48 = vld [vmem:[%s6378_s1 + $0xb0] sm:$0xff]  ;;  %vm1384_vm11 = vweird.f32 %v5265_v42 }
 0x4a5   :  { %3652 = vrcp.f32 %v5267_v6  ;;  %v1366_v62 = vsel %vm1363_vm10, %v1365_v44, %v1361_v49  ;;  %v1308_v37 = vmul.f32 %v1306_v20, %v1263_v3  ;;  %v1387_v10 = vand.u32 2147483647, %v5234_v22 }
 0x4a6   :  { %v1380_v31 = vsub.f32 1.0, %v1379_v21  ;;  %v1389_v43 = vand.u32 2147483648, %v5234_v22  ;;  %vm1383_vm14 = vweird.f32 %v5234_v22  ;;  %v1412_v4 = vadd.f32 %v3344_v48, %v1410_v58 }
 0x4a7   :  { %v1215_v41 = vpop.f32.mrf.mxu0  ;;  %v1299_v20 = vand.u32 2147483647, %v5213_v9  ;;  %vm5335_vm1 = vmor %vm1383_vm14, %vm1384_vm11  ;;  %v1279_v12 = vadd.f32 %v5244_v34, %v1278_v24  ;;  %v1310_v44 = vadd.f32 %v3335_v60, %v1308_v37  ;;  %v1298_v58 = vsel %vm5340_vm2, %v5236_v19, %v1294_v13 }
 0x4a8   :  { %v1381_v40 = vmul.f32 %v5265_v42, %v1380_v31  ;;  %v1409_v23 = vadd.f32 %v1215_v41, %v4114_v29  ;;  %v1301_v31 = vand.u32 2147483648, %v5213_v9  ;;  %v3334_v41 = vld [vmem:[%s6377_s0 + $0xe0] sm:$0xff]  ;;  %vm1388_vm3 = vcmp.eq.f32.partialorder %v1387_v10, 8.507059e+37 }
 0x4a9   :  { %v1404_v24 = vand.u32 2147483648, %v5267_v6  ;;  %v1402_v48 = vand.u32 2147483647, %v5267_v6  ;;  %3654 = vtanh.f32 %v1412_v4  ;;  %v1309_v19 = vadd.f32 %v3334_v41, %v5183_v51 }
 0x4aa   :  { %v1382_v21 = vadd.f32 %v5265_v42, %v1381_v40  ;;  %v1411_v38 = vmul.f32 %v1409_v23, %v1366_v62  ;;  %v1390_v23 = vor.u32 1.1754944e-38, %v1389_v43  ;;  %vm1300_vm6 = vcmp.eq.f32.partialorder %v1299_v20, 8.507059e+37 }
 0x4ab   :  { %v3653_v28 = vpop.eup %3652  ;;  %vm1398_vm7 = vweird.f32 %v5267_v6  ;;  %v1405_v36 = vor.u32 1.1754944e-38, %v1404_v24  ;;  %vm1403_vm10 = vcmp.eq.f32.partialorder %v1402_v48, 8.507059e+37  ;;  %v5388_v24 = vld [vmem:[%s6371_s2] sm:$0xff] }
 0x4ac   :  { %v1394_v0 = vmul.f32 %v3653_v28, %v5267_v6  ;;  %v1413_v57 = vadd.f32 %v3345_v11, %v1411_v38  ;;  %v1386_v9 = vsel %vm5335_vm1, %v5265_v42, %v1382_v21  ;;  %vm1399_vm4 = vweird.f32 %v3653_v28 }
 0x4ad   :  { %v1302_v42 = vor.u32 1.1754944e-38, %v1301_v31  ;;  %v1391_v37 = vsel %vm1388_vm3, %v1390_v23, %v1386_v9  ;;  %v1283_v21 = vsel %vm5359_vm5, %v5244_v34, %v1279_v12  ;;  %v1287_v38 = vor.u32 1.1754944e-38, %v1286_v27  ;;  %vm1400_vm8 = vmor %vm1398_vm7, %vm1399_vm4 }
 0x4ae   :  { %v1395_v40 = vsub.f32 1.0, %v1394_v0  ;;  %3656 = vtanh.f32 %v1413_v57  ;;  %v1416_v60 = vsub.f32 1.0, %v1391_v37  ;;  %v1420_v1 = vmul.f32 %v1391_v37, %v5132_v14 }
 0x4af   :  { %v1303_v13 = vsel %vm1300_vm6, %v1302_v42, %v1298_v58  ;;  %3658 = vtanh.f32 %v1310_v44  ;;  %v1288_v10 = vsel %vm1285_vm9, %v1287_v38, %v1283_v21  ;;  %v3655_v0 = vpop.eup %3654 }
 0x4b0   :  { %v1396_v3 = vmul.f32 %v3653_v28, %v1395_v40  ;;  %3660 = vtanh.f32 %v1309_v19  ;;  %v1314_v4 = vsub.f32 1.0, %v1303_v13  ;;  %v1313_v31 = vsub.f32 1.0, %v1288_v10 }
 0x4b1   :  { %v1418_v49 = vmul.f32 %v3655_v0, %v1416_v60  ;;  %v1318_v40 = vmul.f32 %v1303_v13, %v5136_v52  ;;  %v1317_v58 = vmul.f32 %v1288_v10, %v5140_v26  ;;  %v3363_v10 = vld [vmem:[%s6377_s0 + $0xf8] sm:$0xff] }
 0x4b2   :  { %v1397_v11 = vadd.f32 %v3653_v28, %v1396_v3  ;;  %v5395_v3 = vld [vmem:[%s6371_s2 + $0x8] sm:$0xff] }
 0x4b3   :  { %v5374_v44 = vadd.f32 %v1420_v1, %v1418_v49  ;;  %v3364_v49 = vld [vmem:[%s6377_s0 + $0x100] sm:$0xff] }
 0x4b4   :  { %v1401_v51 = vsel %vm1400_vm8, %v3653_v28, %v1397_v11  ;;  %v3657_v34 = vpop.eup %3656 }
 0x4b5   :  { %v1406_v43 = vsel %vm1403_vm10, %v1405_v36, %v1401_v51  ;;  %v3659_v57 = vpop.eup %3658  ;;  %6522 = vst [vmem:[#allocation20_spill] sm:$0xff] %v5374_v44 }
 0x4b6   :  { %v1417_v20 = vsub.f32 1.0, %v1406_v43  ;;  %v1421_v27 = vmul.f32 %v1406_v43, %v5128_v59  ;;  %v1316_v12 = vmul.f32 %v3659_v57, %v1314_v4  ;;  %v3661_v41 = vpop.eup %3660 }
 0x4b7   :  { %v1315_v28 = vmul.f32 %v3661_v41, %v1313_v31 }
 0x4b8   :  { %v1419_v6 = vmul.f32 %v3657_v34, %v1417_v20  ;;  %v5378_v9 = vadd.f32 %v1318_v40, %v1316_v12  ;;  %v3365_v20 = vld [vmem:[%s6377_s0 + $0x108] sm:$0xff]  ;;  %v3372_v34 = vld [vmem:[%s6378_s1 + $0x60] sm:$0xff] }
 0x4b9   :  { %v5382_v23 = vadd.f32 %v1317_v58, %v1315_v28  ;;  %v3373_v28 = vld [vmem:[%s6378_s1 + $0x68] sm:$0xff] }
 0x4ba   :  { %v5370_v22 = vadd.f32 %v1421_v27, %v1419_v6  ;;  %6523 = vst [vmem:[#allocation21_spill] sm:$0xff] %v5378_v9 }
 0x4bb   :  { %6524 = vst [vmem:[#allocation22_spill] sm:$0xff] %v5382_v23 }
 0x4bc   :  { %6521 = vst [vmem:[#allocation19_spill] sm:$0xff] %v5370_v22  ;;  %1440 = vmatpush.msrb.mxu1 %v5370_v22 }
 0x4be   :  { %1441 = vmatpush.msrb.mxu1 %v5374_v44 }
 0x4c0   :  { %1442 = vmatpush.msrb.mxu1 %v5378_v9 }
 0x4c2   :  { %1443 = vmatpush.msrb.mxu1 %v5382_v23 }
 0x4c3   :  { %3350 = vmatmul.msk.f32.vlgmr.msrb.gmra.mxu1 %vm70_vm0, %v5388_v24 }
 0x4cb   :  { %3351 = vmatmul.msk.f32.gmra.mxu1 %vm70_vm0, %v5395_v3 }
 0x4d3   :  { %3352 = vmatmul.msk.f32.gmra.mxu1 %vm70_vm0, %v4838_v35  ;;  %v3362_v35 = vld [vmem:[%s6377_s0 + $0xf0] sm:$0xff] }
 0x4db   :  { %3353 = vmatmul.msk.f32.gmra.mxu1 %vm70_vm0, %v4845_v50 }
 0x4e3   :  { %3354 = vmatmul.msk.f32.gmra.mxu1 %vm70_vm0, %v4852_v18 }
 0x4eb   :  { %3355 = vmatmul.msk.f32.gmra.mxu1 %vm70_vm0, %v4859_v61 }
 0x4f3   :  { %3356 = vmatmul.msk.f32.gmra.mxu1 %vm70_vm0, %v4866_v30 }
 0x4fb   :  { %3357 = vmatmul.msk.f32.gmra.mxu1 %vm70_vm0, %v4873_v56 }
 0x503   :  { %3358 = vmatmul.msk.f32.gmra.mxu1 %vm70_vm0, %v4880_v17 }
 0x50b   :  { %3359 = vmatmul.msk.f32.gmra.mxu1 %vm70_vm0, %v4887_v8 }
 0x513   :  { %3360 = vmatmul.msk.f32.gmra.mxu1 %vm70_vm0, %v4894_v7 }
 0x51b   :  { %3361 = vmatmul.msk.f32.gmra.mxu1 %vm70_vm0, %v4901_v32 }
 0x540   :  { %v1445_v50 = vpop.f32.mrf.mxu1 }
 0x541   :  { %v1488_v18 = vadd.f32 %v3362_v35, %v1445_v50 }
 0x543   :  { %v3368_v61 = vmul.f32 -1.442695, %v1488_v18 }
 0x545   :  { %3662 = vpow2.f32 %v3368_v61 }
 0x548   :  { %v1448_v30 = vpop.f32.mrf.mxu1 }
 0x549   :  { %v1489_v43 = vadd.f32 %v3363_v10, %v1448_v30 }
 0x54b   :  { %v3663_v56 = vpop.eup %3662  ;;  %v3369_v4 = vmul.f32 -1.442695, %v1489_v43 }
 0x54c   :  { %v1496_v17 = vadd.f32 1.0, %v3663_v56 }
 0x54e   :  { %3664 = vrcp.f32 %v1496_v17  ;;  %v1509_v32 = vand.u32 2147483648, %v1496_v17  ;;  %vm1503_vm12 = vweird.f32 %v1496_v17  ;;  %v1507_v21 = vand.u32 2147483647, %v1496_v17 }
 0x54f   :  { %3666 = vpow2.f32 %v3369_v4 }
 0x550   :  { %v1451_v48 = vpop.f32.mrf.mxu1  ;;  %v1510_v13 = vor.u32 1.1754944e-38, %v1509_v32  ;;  %vm1508_vm14 = vcmp.eq.f32.partialorder %v1507_v21, 8.507059e+37 }
 0x551   :  { %v1528_v57 = vadd.f32 %v3364_v49, %v1451_v48 }
 0x553   :  { %v3370_v40 = vmul.f32 -1.442695, %v1528_v57 }
 0x554   :  { %v3665_v8 = vpop.eup %3664 }
 0x555   :  { %v1499_v62 = vmul.f32 %v3665_v8, %v1496_v17  ;;  %vm1504_vm11 = vweird.f32 %v3665_v8  ;;  %v3667_v41 = vpop.eup %3666  ;;  %v3374_v17 = vld [vmem:[%s6378_s1 + $0x70] sm:$0xff] }
 0x556   :  { %vm1505_vm13 = vmor %vm1503_vm12, %vm1504_vm11  ;;  %v5442_v58 = vadd.f32 1.0, %v3667_v41 }
 0x557   :  { %v1500_v42 = vsub.f32 1.0, %v1499_v62 }
 0x558   :  { %v1454_v7 = vpop.f32.mrf.mxu1  ;;  %vm1518_vm3 = vweird.f32 %v5442_v58 }
 0x559   :  { %v1501_v19 = vmul.f32 %v3665_v8, %v1500_v42  ;;  %v1529_v31 = vadd.f32 %v3365_v20, %v1454_v7 }
 0x55b   :  { %v1502_v37 = vadd.f32 %v3665_v8, %v1501_v19  ;;  %v3371_v12 = vmul.f32 -1.442695, %v1529_v31 }
 0x55d   :  { %v1506_v11 = vsel %vm1505_vm13, %v3665_v8, %v1502_v37 }
 0x55e   :  { %v1511_v60 = vsel %vm1508_vm14, %v1510_v13, %v1506_v11 }
 0x560   :  { %v1457_v38 = vpop.f32.mrf.mxu1 }
 0x561   :  { %v1568_v36 = vadd.f32 %v1457_v38, %v4136_v47 }
 0x563   :  { %v5423_v51 = vmul.f32 %v1568_v36, %v1511_v60  ;;  %v3375_v36 = vld [vmem:[%s6378_s1 + $0x78] sm:$0xff] }
 0x568   :  { %v5428_v0 = vpop.f32.mrf.mxu1 }
 0x570   :  { %v1463_v6 = vpop.f32.mrf.mxu1 }
 0x571   :  { %v1591_v27 = vadd.f32 %v3372_v34, %v1463_v6 }
 0x573   :  { %v3378_v1 = vmul.f32 -1.442695, %v1591_v27 }
 0x575   :  { %3668 = vpow2.f32 %v3378_v1 }
 0x576   :  { %3670 = vpow2.f32 %v3371_v12 }
 0x577   :  { %3672 = vpow2.f32 %v3370_v40 }
 0x578   :  { %v1466_v35 = vpop.f32.mrf.mxu1  ;;  %3674 = vrcp.f32 %v5442_v58 }
 0x579   :  { %v1592_v50 = vadd.f32 %v3373_v28, %v1466_v35 }
 0x57b   :  { %v3669_v18 = vpop.eup %3668  ;;  %v3379_v61 = vmul.f32 -1.442695, %v1592_v50 }
 0x57c   :  { %v1599_v30 = vadd.f32 1.0, %v3669_v18  ;;  %v3671_v56 = vpop.eup %3670 }
 0x57d   :  { %3676 = vpow2.f32 %v3379_v61  ;;  %v5448_v48 = vadd.f32 1.0, %v3671_v56  ;;  %v3673_v62 = vpop.eup %3672  ;;  %v1522_v61 = vand.u32 2147483647, %v5442_v58 }
 0x57e   :  { %3678 = vrcp.f32 %v1599_v30  ;;  %v5450_v7 = vpop.eup %3674  ;;  %v5455_v11 = vadd.f32 1.0, %v3673_v62  ;;  %v1612_v12 = vand.u32 2147483648, %v1599_v30  ;;  %vm1606_vm1 = vweird.f32 %v1599_v30 }
 0x57f   :  { %3680 = vrcp.f32 %v5448_v48  ;;  %v1514_v13 = vmul.f32 %v5450_v7, %v5442_v58  ;;  %v1610_v28 = vand.u32 2147483647, %v1599_v30  ;;  %vm1519_vm4 = vweird.f32 %v5450_v7 }
 0x580   :  { %v1469_v8 = vpop.f32.mrf.mxu1  ;;  %vm5501_vm7 = vmor %vm1518_vm3, %vm1519_vm4  ;;  %vm5505_vm8 = vcmp.eq.f32.partialorder %v1522_v61, 8.507059e+37  ;;  %vm1543_vm13 = vweird.f32 %v5455_v11  ;;  %vm1558_vm4 = vweird.f32 %v5448_v48 }
 0x581   :  { %v1631_v42 = vadd.f32 %v3374_v17, %v1469_v8  ;;  %v1515_v34 = vsub.f32 1.0, %v1514_v13  ;;  %v1613_v8 = vor.u32 1.1754944e-38, %v1612_v12  ;;  %vm1611_vm5 = vcmp.eq.f32.partialorder %v1610_v28, 8.507059e+37  ;;  %v3376_v12 = vld [vmem:[%s6378_s1 + $0x80] sm:$0xff] }
 0x583   :  { %v3677_v19 = vpop.eup %3676  ;;  %v3380_v37 = vmul.f32 -1.442695, %v1631_v42  ;;  %v1516_v41 = vmul.f32 %v5450_v7, %v1515_v34 }
 0x584   :  { %v3679_v32 = vpop.eup %3678  ;;  %v5453_v21 = vadd.f32 1.0, %v3677_v19 }
 0x585   :  { %3682 = vpow2.f32 %v3380_v37  ;;  %v1602_v38 = vmul.f32 %v3679_v32, %v1599_v30  ;;  %v5464_v20 = vpop.eup %3680  ;;  %vm1607_vm15 = vweird.f32 %v3679_v32  ;;  %v1524_v30 = vand.u32 2147483648, %v5442_v58 }
 0x586   :  { %3684 = vrcp.f32 %v5453_v21  ;;  %v1554_v35 = vmul.f32 %v5464_v20, %v5448_v48  ;;  %vm5478_vm2 = vmor %vm1606_vm1, %vm1607_vm15  ;;  %v1517_v37 = vadd.f32 %v5450_v7, %v1516_v41  ;;  %v1627_v34 = vand.u32 2147483648, %v5453_v21 }
 0x587   :  { %v1603_v60 = vsub.f32 1.0, %v1602_v38  ;;  %3686 = vrcp.f32 %v5455_v11  ;;  %vm1621_vm9 = vweird.f32 %v5453_v21  ;;  %v1525_v28 = vor.u32 1.1754944e-38, %v1524_v30 }
 0x588   :  { %v1472_v10 = vpop.f32.mrf.mxu1  ;;  %v1555_v13 = vsub.f32 1.0, %v1554_v35  ;;  %v1521_v58 = vsel %vm5501_vm7, %v5450_v7, %v1517_v37  ;;  %v1628_v30 = vor.u32 1.1754944e-38, %v1627_v34  ;;  %vm1559_vm1 = vweird.f32 %v5464_v20 }
 0x589   :  { %v1632_v43 = vadd.f32 %v3375_v36, %v1472_v10  ;;  %v1604_v4 = vmul.f32 %v3679_v32, %v1603_v60 }
 0x58a   :  { %v1556_v50 = vmul.f32 %v5464_v20, %v1555_v13  ;;  %v3377_v13 = vld [vmem:[%s6378_s1 + $0x88] sm:$0xff] }
 0x58b   :  { %v3683_v31 = vpop.eup %3682  ;;  %v3381_v49 = vmul.f32 -1.442695, %v1632_v43  ;;  %v1605_v57 = vadd.f32 %v3679_v32, %v1604_v4  ;;  %v1625_v4 = vand.u32 2147483647, %v5453_v21 }
 0x58c   :  { %v5466_v6 = vpop.eup %3684  ;;  %v5468_v27 = vadd.f32 1.0, %v3683_v31  ;;  %v1557_v34 = vadd.f32 %v5464_v20, %v1556_v50  ;;  %v3367_v31 = vld [vmem:[%s6377_s0 + $0x118] sm:$0xff] }
 0x58d   :  { %3688 = vpow2.f32 %v3381_v49  ;;  %v1617_v1 = vmul.f32 %v5466_v6, %v5453_v21  ;;  %v5474_v40 = vpop.eup %3686  ;;  %v1609_v17 = vsel %vm5478_vm2, %v3679_v32, %v1605_v57  ;;  %vm1622_vm6 = vweird.f32 %v5466_v6 }
 0x58e   :  { %3690 = vrcp.f32 %v5468_v27  ;;  %v1539_v19 = vmul.f32 %v5474_v40, %v5455_v11  ;;  %v1614_v36 = vsel %vm1611_vm5, %v1613_v8, %v1609_v17  ;;  %vm5520_vm10 = vmor %vm1621_vm9, %vm1622_vm6  ;;  %v1569_v21 = vadd.f32 %v5428_v0, %v4101_v15 }
 0x58f   :  { %v1618_v18 = vsub.f32 1.0, %v1617_v1  ;;  %v3880_v1 = vmov 32.0   ;;  %v1652_v7 = vand.u32 2147483648, %v5468_v27  ;;  %vm1626_vm11 = vcmp.eq.f32.partialorder %v1625_v4, 8.507059e+37  ;;  %vm5562_vm5 = vmor %vm1558_vm4, %vm1559_vm1 }
 0x590   :  { %v1475_v56 = vpop.f32.mrf.mxu1  ;;  %3692 = vrcp.f32 %v3880_v1  ;;  %v1540_v41 = vsub.f32 1.0, %v1539_v19  ;;  %vm1544_vm14 = vweird.f32 %v5474_v40  ;;  %v1526_v0 = vsel %vm5505_vm8, %v1525_v28, %v1521_v58  ;;  %v3366_v28 = vld [vmem:[%s6377_s0 + $0x110] sm:$0xff] }
 0x591   :  { %v1671_v62 = vadd.f32 %v1475_v56, %v4174_v25  ;;  %v1619_v42 = vmul.f32 %v5466_v6, %v1618_v18  ;;  %vm1646_vm15 = vweird.f32 %v5468_v27  ;;  %v1653_v4 = vor.u32 1.1754944e-38, %v1652_v7  ;;  %vm5575_vm7 = vmor %vm1543_vm13, %vm1544_vm14 }
 0x592   :  { %v1541_v37 = vmul.f32 %v5474_v40, %v1540_v41 }
 0x593   :  { %v3689_v38 = vpop.eup %3688  ;;  %v1620_v32 = vadd.f32 %v5466_v6, %v1619_v42  ;;  %v1673_v43 = vmul.f32 %v1671_v62, %v1614_v36  ;;  %v1650_v62 = vand.u32 2147483647, %v5468_v27 }
 0x594   :  { %v3691_v60 = vpop.eup %3690  ;;  %v5495_v10 = vadd.f32 1.0, %v3689_v38  ;;  %v1542_v58 = vadd.f32 %v5474_v40, %v1541_v37 }
 0x595   :  { %v1642_v57 = vmul.f32 %v3691_v60, %v5468_v27  ;;  %v1624_v61 = vsel %vm5520_vm10, %v5466_v6, %v1620_v32  ;;  %v1675_v56 = vadd.f32 %v3376_v12, %v1673_v43  ;;  %vm1647_vm12 = vweird.f32 %v3691_v60 }
 0x596   :  { %3694 = vrcp.f32 %v5495_v10  ;;  %v1629_v6 = vsel %vm1626_vm11, %v1628_v30, %v1624_v61  ;;  %v5537_v19 = vpop.eup %3692  ;;  %v1571_v43 = vmul.f32 %v1569_v21, %v1526_v0  ;;  %vm1648_vm2 = vmor %vm1646_vm15, %vm1647_vm12  ;;  %vm1651_vm3 = vcmp.eq.f32.partialorder %v1650_v62, 8.507059e+37 }
 0x597   :  { %v1643_v18 = vsub.f32 1.0, %v1642_v57  ;;  %3696 = vtanh.f32 %v1675_v56  ;;  %v1562_v57 = vand.u32 2147483647, %v5448_v48  ;;  %v1564_v12 = vand.u32 2147483648, %v5448_v48 }
 0x598   :  { %v1478_v17 = vpop.f32.mrf.mxu1  ;;  %v1547_v21 = vand.u32 2147483647, %v5455_v11  ;;  %v1573_v61 = vadd.f32 %v3367_v31, %v1571_v43  ;;  %v1667_v7 = vand.u32 2147483648, %v5495_v10  ;;  %v1561_v48 = vsel %vm5562_vm5, %v5464_v20, %v1557_v34 }
 0x599   :  { %v1644_v8 = vmul.f32 %v3691_v60, %v1643_v18  ;;  %v1672_v42 = vadd.f32 %v1478_v17, %v4114_v29  ;;  %v1665_v17 = vand.u32 2147483647, %v5495_v10  ;;  %vm1563_vm8 = vcmp.eq.f32.partialorder %v1562_v57, 8.507059e+37 }
 0x59a   :  { %v1565_v62 = vor.u32 1.1754944e-38, %v1564_v12  ;;  %v1546_v20 = vsel %vm5575_vm7, %v5474_v40, %v1542_v58  ;;  %vm1661_vm9 = vweird.f32 %v5495_v10  ;;  %vm1548_vm11 = vcmp.eq.f32.partialorder %v1547_v21, 8.507059e+37 }
 0x59b   :  { %v1645_v38 = vadd.f32 %v3691_v60, %v1644_v8  ;;  %v1674_v36 = vmul.f32 %v1672_v42, %v1629_v6  ;;  %v1572_v42 = vadd.f32 %v3366_v28, %v5423_v51  ;;  %vm1666_vm12 = vcmp.eq.f32.partialorder %v1665_v17, 8.507059e+37 }
 0x59c   :  { %v3695_v32 = vpop.eup %3694  ;;  %v2266_v31 = vadd.f32 %v4824_v53, %v4828_v45  ;;  %vm2325_vm13 = vweird.f32 %v5537_v19 }
 0x59d   :  { %v1657_v27 = vmul.f32 %v3695_v32, %v5495_v10  ;;  %v1649_v49 = vsel %vm1648_vm2, %v3691_v60, %v1645_v38  ;;  %v1676_v41 = vadd.f32 %v3377_v13, %v1674_v36  ;;  %v1549_v60 = vand.u32 2147483648, %v5455_v11  ;;  %v3697_v30 = vpop.eup %3696 }
 0x59e   :  { %v1654_v1 = vsel %vm1651_vm3, %v1653_v4, %v1649_v49  ;;  %vm1662_vm6 = vweird.f32 %v3695_v32  ;;  %v1566_v38 = vsel %vm1563_vm8, %v1565_v62, %v1561_v48  ;;  %v1668_v11 = vor.u32 1.1754944e-38, %v1667_v7 }
 0x59f   :  { %v1658_v35 = vsub.f32 1.0, %v1657_v27  ;;  %v1679_v50 = vsub.f32 1.0, %v1654_v1  ;;  %3698 = vtanh.f32 %v1676_v41  ;;  %v1550_v37 = vor.u32 1.1754944e-38, %v1549_v60  ;;  %vm1663_vm10 = vmor %vm1661_vm9, %vm1662_vm6 }
 0x5a0   :  { %3700 = vtanh.f32 %v1573_v61  ;;  %v1683_v51 = vmul.f32 %v1654_v1, %v5374_v44  ;;  %v1577_v4 = vsub.f32 1.0, %v1566_v38  ;;  %v1581_v21 = vmul.f32 %v1566_v38, %v5378_v9 }
 0x5a1   :  { %v1659_v56 = vmul.f32 %v3695_v32, %v1658_v35  ;;  %v1681_v6 = vmul.f32 %v3697_v30, %v1679_v50  ;;  %v1551_v36 = vsel %vm1548_vm11, %v1550_v37, %v1546_v20  ;;  %3702 = vtanh.f32 %v1572_v42 }
 0x5a2   :  { %v1576_v27 = vsub.f32 1.0, %v1551_v36  ;;  %v1580_v7 = vmul.f32 %v1551_v36, %v5382_v23 }
 0x5a3   :  { %v1660_v0 = vadd.f32 %v3695_v32, %v1659_v56  ;;  %v5586_v34 = vadd.f32 %v1683_v51, %v1681_v6 }
 0x5a5   :  { %v1664_v13 = vsel %vm1663_vm10, %v3695_v32, %v1660_v0  ;;  %v3699_v10 = vpop.eup %3698  ;;  %v2321_v32 = vmul.f32 32.0, %v5537_v19  ;;  %v2267_v58 = vadd.f32 %v2266_v31, %v5586_v34 }
 0x5a6   :  { %v1669_v43 = vsel %vm1666_vm12, %v1668_v11, %v1664_v13  ;;  %v3701_v12 = vpop.eup %3700 }
 0x5a7   :  { %v1680_v40 = vsub.f32 1.0, %v1669_v43  ;;  %v1684_v57 = vmul.f32 %v1669_v43, %v5370_v22  ;;  %v1579_v41 = vmul.f32 %v3701_v12, %v1577_v4  ;;  %v3703_v28 = vpop.eup %3702  ;;  %v2322_v60 = vsub.f32 1.0, %v2321_v32 }
 0x5a8   :  { %v1578_v35 = vmul.f32 %v3703_v28, %v1576_v27  ;;  %v5641_v28 = vld [vmem:[%s6371_s2 + $0x20] sm:$0xff] }
 0x5a9   :  { %v1682_v49 = vmul.f32 %v3699_v10, %v1680_v40  ;;  %v5599_v61 = vadd.f32 %v1581_v21, %v1579_v41  ;;  %v2323_v17 = vmul.f32 %v5537_v19, %v2322_v60  ;;  %v5624_v40 = vld [vmem:[%s6371_s2 + $0x10] sm:$0xff] }
 0x5aa   :  { %v5603_v48 = vadd.f32 %v1580_v7, %v1578_v35 }
 0x5ab   :  { %v5592_v1 = vadd.f32 %v1684_v57, %v1682_v49  ;;  %6537 = vst [vmem:[#allocation23_spill] sm:$0xff] %v5599_v61  ;;  %v2324_v62 = vadd.f32 %v5537_v19, %v2323_v17  ;;  %v5631_v49 = vld [vmem:[%s6371_s2 + $0x18] sm:$0xff]  ;;  %v5654_v17 = vpop.permute.xlu0 %2676 }
 0x5ac   :  { %6538 = vst [vmem:[#allocation24_spill] sm:$0xff] %v5603_v48 }
 0x5ad   :  { %1703 = vmatpush.msrb.mxu2 %v5592_v1  ;;  %v2268_v50 = vadd.f32 %v2267_v58, %v5592_v1  ;;  %v5612_v0 = vsel %vm2325_vm13, %v5537_v19, %v2324_v62  ;;  %v5636_v58 = vpop.permute.xlu2 %2620  ;;  %v5663_v62 = vpop.permute.xlu1 %2610 }
 0x5af   :  { %1704 = vmatpush.msrb.mxu2 %v5586_v34  ;;  %v2269_v18 = vrot.slane %v2268_v50, 4 }
 0x5b1   :  { %1705 = vmatpush.msrb.mxu2 %v5599_v61  ;;  %v2270_v56 = vadd.f32 %v2269_v18, %v2268_v50  ;;  %v5648_v50 = vld [vmem:[%s6371_s2 + $0x28] sm:$0xff] }
 0x5b3   :  { %1706 = vmatpush.msrb.mxu2 %v5603_v48  ;;  %v2271_v30 = vrot.slane %v2270_v56, 2 }
 0x5b4   :  { %3382 = vmatmul.msk.f32.vlgmr.msrb.gmra.mxu2 %vm70_vm0, %v5388_v24 }
 0x5b5   :  { %v2272_v8 = vadd.f32 %v2271_v30, %v2270_v56  ;;  %v5652_v60 = vpop.permute.xlu2 %2615  ;;  %v5659_v30 = vld [vmem:[%s6371_s2 + $0x30] sm:$0xff] }
 0x5b7   :  { %v2273_v42 = vrot.slane %v2272_v8, 1 }
 0x5b9   :  { %v2274_v20 = vadd.f32 %v2273_v42, %v2272_v8 }
 0x5bb   :  { %v2329_v6 = vmul.f32 %v5612_v0, %v2274_v20 }
 0x5bc   :  { %3383 = vmatmul.msk.f32.gmra.mxu2 %vm70_vm0, %v5395_v3 }
 0x5bd   :  { %v2343_v37 = vsub.f32 %v4828_v45, %v2329_v6  ;;  %v2344_v38 = vsub.f32 %v4824_v53, %v2329_v6  ;;  %v2345_v24 = vsub.f32 %v5586_v34, %v2329_v6  ;;  %v2346_v11 = vsub.f32 %v5592_v1, %v2329_v6  ;;  %v5665_v20 = vpop.permute.xlu2 %2671 }
 0x5bf   :  { %v2375_v13 = vmul.f32 %v2343_v37, %v2343_v37  ;;  %v2376_v51 = vmul.f32 %v2344_v38, %v2344_v38  ;;  %v2377_v36 = vmul.f32 %v2345_v24, %v2345_v24  ;;  %v2378_v4 = vmul.f32 %v2346_v11, %v2346_v11 }
 0x5c1   :  { %v2417_v43 = vadd.f32 %v2376_v51, %v2375_v13 }
 0x5c3   :  { %v2418_v19 = vadd.f32 %v2417_v43, %v2377_v36 }
 0x5c4   :  { %3384 = vmatmul.msk.f32.gmra.mxu2 %vm70_vm0, %v5624_v40 }
 0x5c5   :  { %v2419_v3 = vadd.f32 %v2418_v19, %v2378_v4 }
 0x5c7   :  { %v2420_v10 = vrot.slane %v2419_v3, 4 }
 0x5c9   :  { %v2421_v31 = vadd.f32 %v2420_v10, %v2419_v3  ;;  %v5672_v3 = vld [vmem:[%s6371_s2 + $0x38] sm:$0xff] }
 0x5cb   :  { %v2422_v27 = vrot.slane %v2421_v31, 2 }
 0x5cc   :  { %3385 = vmatmul.msk.f32.gmra.mxu2 %vm70_vm0, %v5631_v49 }
 0x5cd   :  { %v2423_v57 = vadd.f32 %v2422_v27, %v2421_v31 }
 0x5cf   :  { %v2424_v12 = vrot.slane %v2423_v57, 1 }
 0x5d1   :  { %v2425_v32 = vadd.f32 %v2424_v12, %v2423_v57  ;;  %v5685_v57 = vpop.permute.xlu2 %2661 }
 0x5d3   :  { %v2473_v41 = vmul.f32 %v2425_v32, %v5612_v0  ;;  %v5691_v32 = vld [vmem:[%s6371_s2 + $0x40] sm:$0xff] }
 0x5d4   :  { %3386 = vmatmul.msk.f32.gmra.mxu2 %vm70_vm0, %v5641_v28  ;;  %6539 = vst [vmem:[#allocation25_spill] sm:$0xff] %v5691_v32 }
 0x5d5   :  { %v2481_v35 = vadd.f32 1e-05, %v2473_v41  ;;  %v5698_v41 = vld [vmem:[%s6371_s2 + $0x48] sm:$0xff] }
 0x5d6   :  { %6540 = vst [vmem:[#allocation26_spill] sm:$0xff] %v5698_v41 }
 0x5d7   :  { %3704 = vrsqrt.f32 %v2481_v35  ;;  %vm2513_vm15 = vweird.f32 %v2481_v35 }
 0x5dc   :  { %3387 = vmatmul.msk.f32.gmra.mxu2 %vm70_vm0, %v5648_v50 }
 0x5dd   :  { %v3705_v21 = vpop.eup %3704 }
 0x5de   :  { %v2508_v18 = vmul.f32 %v3705_v21, %v2481_v35  ;;  %vm2514_vm14 = vweird.f32 %v3705_v21  ;;  %v5705_v35 = vld [vmem:[%s6371_s2 + $0x50] sm:$0xff] }
 0x5df   :  { %vm2515_vm1 = vmor %vm2513_vm15, %vm2514_vm14  ;;  %6541 = vst [vmem:[#allocation27_spill] sm:$0xff] %v5705_v35 }
 0x5e0   :  { %v2509_v7 = vmul.f32 %v3705_v21, %v2508_v18  ;;  %v5719_v18 = vld [vmem:[%s6379_s6] sm:$0xff] }
 0x5e2   :  { %v2510_v56 = vmul.f32 0.5, %v2509_v7  ;;  %v5726_v7 = vld [vmem:[%s6379_s6 + $0x8] sm:$0xff] }
 0x5e4   :  { %3388 = vmatmul.msk.f32.gmra.mxu2 %vm70_vm0, %v5659_v30  ;;  %v2511_v8 = vsub.f32 1.5, %v2510_v56  ;;  %v2275_v56 = vadd.f32 %v5136_v52, %v5140_v26 }
 0x5e6   :  { %v2512_v42 = vmul.f32 %v3705_v21, %v2511_v8  ;;  %v2276_v8 = vadd.f32 %v2275_v56, %v5374_v44 }
 0x5e8   :  { %v2516_v6 = vsel %vm2515_vm1, %v3705_v21, %v2512_v42  ;;  %v5712_v21 = vld [vmem:[%s6371_s2 + $0x58] sm:$0xff]  ;;  %v2277_v42 = vadd.f32 %v2276_v8, %v5370_v22 }
 0x5e9   :  { %v2578_v13 = vmul.f32 %v2516_v6, %v2346_v11  ;;  %v2577_v51 = vmul.f32 %v2516_v6, %v2345_v24  ;;  %v2576_v36 = vmul.f32 %v2516_v6, %v2344_v38  ;;  %v2575_v19 = vmul.f32 %v2516_v6, %v2343_v37  ;;  %v5678_v11 = vpop.permute.xlu0 %2605  ;;  %v5682_v37 = vpop.permute.xlu1 %2666  ;;  %6542 = vst [vmem:[#allocation28_spill] sm:$0xff] %v5712_v21  ;;  %v2931_v6 = vld [vmem:[%s6376_s8] sm:$0xff] }
 0x5ea   :  { %2935 = vperm.xlu2 %3461, %v2931_v6  }
 0x5eb   :  { %v2634_v43 = vmul.f32 %v5636_v58, %v2578_v13  ;;  %v2633_v4 = vmul.f32 %v5652_v60, %v2577_v51  ;;  %v2632_v31 = vmul.f32 %v5663_v62, %v2576_v36  ;;  %v2631_v24 = vmul.f32 %v5678_v11, %v2575_v19 }
 0x5ec   :  { %3389 = vmatmul.msk.f32.gmra.mxu2 %vm70_vm0, %v5672_v3  ;;  %v2278_v13 = vrot.slane %v2277_v42, 4 }
 0x5ed   :  { %v2690_v10 = vadd.f32 %v5654_v17, %v2634_v43  ;;  %v2689_v38 = vadd.f32 %v5665_v20, %v2633_v4  ;;  %v2688_v27 = vadd.f32 %v5682_v37, %v2632_v31  ;;  %v2687_v12 = vadd.f32 %v5685_v57, %v2631_v24  ;;  %v3394_v43 = vld [vmem:[%s6377_s0 + $0x120] sm:$0xff]  ;;  %v3395_v24 = vld [vmem:[%s6377_s0 + $0x128] sm:$0xff] }
 0x5ee   :  { %v2279_v51 = vadd.f32 %v2278_v13, %v2277_v42 }
 0x5ef   :  { %2789 = vmatpush.msra.mxu2 %v2690_v10 }
 0x5f0   :  { %v2280_v36 = vrot.slane %v2279_v51, 2 }
 0x5f1   :  { %2790 = vmatpush.msra.mxu2 %v2689_v38 }
 0x5f2   :  { %v2281_v4 = vadd.f32 %v2280_v36, %v2279_v51  ;;  %v3396_v51 = vld [vmem:[%s6377_s0 + $0x130] sm:$0xff] }
 0x5f3   :  { %2791 = vmatpush.msra.mxu2 %v2688_v27 }
 0x5f4   :  { %3390 = vmatmul.msk.f32.gmra.mxu2 %vm70_vm0, %v5691_v32  ;;  %v2282_v31 = vrot.slane %v2281_v4, 1 }
 0x5f5   :  { %2792 = vmatpush.msra.mxu2 %v2687_v12 }
 0x5f6   :  { %v2283_v27 = vadd.f32 %v2282_v31, %v2281_v4 }
 0x5f8   :  { %v2330_v8 = vmul.f32 %v5612_v0, %v2283_v27 }
 0x5fa   :  { %v5748_v36 = vsub.f32 %v5140_v26, %v2330_v8  ;;  %v5764_v26 = vsub.f32 %v5370_v22, %v2330_v8 }
 0x5fc   :  { %3391 = vmatmul.msk.f32.gmra.mxu2 %vm70_vm0, %v5698_v41  ;;  %v2382_v5 = vmul.f32 %v5764_v26, %v5764_v26 }
 0x604   :  { %3392 = vmatmul.msk.f32.gmra.mxu2 %vm70_vm0, %v5705_v35 }
 0x60c   :  { %3393 = vmatmul.msk.f32.gmra.mxu2 %vm70_vm0, %v5712_v21 }
 0x614   :  { %3444 = vmatmul.msk.f32.vlgmr.msra.gmra.mxu2 %vm70_vm0, %v5719_v18 }
 0x61c   :  { %3445 = vmatmul.msk.f32.gmra.mxu2 %vm70_vm0, %v5726_v7 }
 0x637   :  { %v1708_v19 = vpop.f32.mrf.mxu2 }
 0x638   :  { %v1751_v10 = vadd.f32 %v3394_v43, %v1708_v19  ;;  %v5751_v43 = vsub.f32 %v5136_v52, %v2330_v8 }
 0x63a   :  { %v3400_v38 = vmul.f32 -1.442695, %v1751_v10  ;;  %v2379_v10 = vmul.f32 %v5748_v36, %v5748_v36  ;;  %v2380_v31 = vmul.f32 %v5751_v43, %v5751_v43 }
 0x63c   :  { %3706 = vpow2.f32 %v3400_v38 }
 0x63f   :  { %v1711_v12 = vpop.f32.mrf.mxu2 }
 0x640   :  { %v1752_v56 = vadd.f32 %v3395_v24, %v1711_v12 }
 0x642   :  { %v3707_v42 = vpop.eup %3706  ;;  %v3401_v6 = vmul.f32 -1.442695, %v1752_v56  ;;  %v5758_v56 = vsub.f32 %v5374_v44, %v2330_v8 }
 0x643   :  { %v1759_v13 = vadd.f32 1.0, %v3707_v42 }
 0x644   :  { %3708 = vpow2.f32 %v3401_v6  ;;  %v3397_v6 = vld [vmem:[%s6377_s0 + $0x138] sm:$0xff] }
 0x645   :  { %3710 = vrcp.f32 %v1759_v13  ;;  %v1772_v59 = vand.u32 2147483648, %v1759_v13  ;;  %vm1766_vm3 = vweird.f32 %v1759_v13 }
 0x647   :  { %v1714_v4 = vpop.f32.mrf.mxu2 }
 0x648   :  { %v1791_v19 = vadd.f32 %v3396_v51, %v1714_v4  ;;  %v2426_v51 = vadd.f32 %v2380_v31, %v2379_v10 }
 0x64a   :  { %v3709_v38 = vpop.eup %3708  ;;  %v3402_v24 = vmul.f32 -1.442695, %v1791_v19  ;;  %v2381_v19 = vmul.f32 %v5758_v56, %v5758_v56 }
 0x64b   :  { %v3711_v27 = vpop.eup %3710  ;;  %v1760_v12 = vadd.f32 1.0, %v3709_v38 }
 0x64c   :  { %3712 = vpow2.f32 %v3402_v24  ;;  %v1762_v42 = vmul.f32 %v3711_v27, %v1759_v13  ;;  %v2427_v53 = vadd.f32 %v2426_v51, %v2381_v19  ;;  %vm1767_vm2 = vweird.f32 %v3711_v27 }
 0x64d   :  { %3714 = vrcp.f32 %v1760_v12  ;;  %vm5770_vm4 = vmor %vm1766_vm3, %vm1767_vm2  ;;  %vm1781_vm6 = vweird.f32 %v1760_v12 }
 0x64e   :  { %v1763_v52 = vsub.f32 1.0, %v1762_v42  ;;  %v2428_v31 = vadd.f32 %v2427_v53, %v2382_v5  ;;  %v1787_v53 = vand.u32 2147483648, %v1760_v12 }
 0x64f   :  { %v1717_v4 = vpop.f32.mrf.mxu2 }
 0x650   :  { %v1792_v38 = vadd.f32 %v3397_v6, %v1717_v4  ;;  %v1764_v2 = vmul.f32 %v3711_v27, %v1763_v52  ;;  %v1770_v6 = vand.u32 2147483647, %v1759_v13  ;;  %v2429_v51 = vrot.slane %v2428_v31, 4 }
 0x651   :  { %v1785_v13 = vand.u32 2147483647, %v1760_v12 }
 0x652   :  { %v3713_v44 = vpop.eup %3712  ;;  %v3403_v45 = vmul.f32 -1.442695, %v1792_v38  ;;  %v1765_v22 = vadd.f32 %v3711_v27, %v1764_v2  ;;  %vm1771_vm7 = vcmp.eq.f32.partialorder %v1770_v6, 8.507059e+37 }
 0x653   :  { %v3715_v24 = vpop.eup %3714  ;;  %v1799_v16 = vadd.f32 1.0, %v3713_v44  ;;  %vm1786_vm10 = vcmp.eq.f32.partialorder %v1785_v13, 8.507059e+37 }
 0x654   :  { %3716 = vpow2.f32 %v3403_v45  ;;  %v1777_v10 = vmul.f32 %v3715_v24, %v1760_v12  ;;  %vm1782_vm5 = vweird.f32 %v3715_v24  ;;  %v1769_v5 = vsel %vm5770_vm4, %v3711_v27, %v1765_v22  ;;  %v3398_v22 = vld [vmem:[%s6377_s0 + $0x140] sm:$0xff] }
 0x655   :  { %3718 = vrcp.f32 %v1799_v16  ;;  %vm1783_vm8 = vmor %vm1781_vm6, %vm1782_vm5  ;;  %v1812_v27 = vand.u32 2147483648, %v1799_v16  ;;  %vm1806_vm11 = vweird.f32 %v1799_v16 }
 0x656   :  { %v1778_v42 = vsub.f32 1.0, %v1777_v10  ;;  %v1773_v10 = vor.u32 1.1754944e-38, %v1772_v59 }
 0x657   :  { %v1720_v8 = vpop.f32.mrf.mxu2 }
 0x658   :  { %v1779_v14 = vmul.f32 %v3715_v24, %v1778_v42  ;;  %v1831_v2 = vadd.f32 %v1720_v8, %v4136_v47  ;;  %v2430_v42 = vadd.f32 %v2429_v51, %v2428_v31  ;;  %v1774_v23 = vsel %vm1771_vm7, %v1773_v10, %v1769_v5 }
 0x659   :  { %v1810_v31 = vand.u32 2147483647, %v1799_v16  ;;  %v2293_v51 = vadd.f32 %v5599_v61, %v5603_v48 }
 0x65a   :  { %v3717_v4 = vpop.eup %3716  ;;  %v1780_v52 = vadd.f32 %v3715_v24, %v1779_v14  ;;  %v1833_v21 = vmul.f32 %v1831_v2, %v1774_v23  ;;  %v2431_v8 = vrot.slane %v2430_v42, 2  ;;  %v3399_v23 = vld [vmem:[%s6377_s0 + $0x148] sm:$0xff] }
 0x65b   :  { %v3719_v45 = vpop.eup %3718  ;;  %v1800_v19 = vadd.f32 1.0, %v3717_v4  ;;  %v1788_v4 = vor.u32 1.1754944e-38, %v1787_v53  ;;  %vm1811_vm13 = vcmp.eq.f32.partialorder %v1810_v31, 8.507059e+37 }
 0x65c   :  { %v1802_v38 = vmul.f32 %v3719_v45, %v1799_v16  ;;  %v1784_v14 = vsel %vm1783_vm8, %v3715_v24, %v1780_v52  ;;  %vm1807_vm9 = vweird.f32 %v3719_v45  ;;  %v1835_v44 = vadd.f32 %v3398_v22, %v1833_v21 }
 0x65d   :  { %3720 = vrcp.f32 %v1800_v19  ;;  %v1789_v12 = vsel %vm1786_vm10, %v1788_v4, %v1784_v14  ;;  %vm1808_vm12 = vmor %vm1806_vm11, %vm1807_vm9  ;;  %v2432_v16 = vadd.f32 %v2431_v8, %v2430_v42  ;;  %v1827_v10 = vand.u32 2147483648, %v1800_v19 }
 0x65e   :  { %v1803_v9 = vsub.f32 1.0, %v1802_v38  ;;  %v2294_v38 = vadd.f32 %v2293_v51, %v4820_v54  ;;  %3722 = vtanh.f32 %v1835_v44  ;;  %v1825_v21 = vand.u32 2147483647, %v1800_v19 }
 0x65f   :  { %v1723_v35 = vpop.f32.mrf.mxu2  ;;  %vm1821_vm15 = vweird.f32 %v1800_v19  ;;  %v1828_v8 = vor.u32 1.1754944e-38, %v1827_v10 }
 0x660   :  { %v1804_v41 = vmul.f32 %v3719_v45, %v1803_v9  ;;  %v1832_v59 = vadd.f32 %v1723_v35, %v4101_v15  ;;  %v1813_v35 = vor.u32 1.1754944e-38, %v1812_v27  ;;  %v2295_v42 = vadd.f32 %v2294_v38, %v4816_v63 }
 0x661   :  { %vm1826_vm2 = vcmp.eq.f32.partialorder %v1825_v21, 8.507059e+37 }
 0x662   :  { %v1805_v6 = vadd.f32 %v3719_v45, %v1804_v41  ;;  %v1834_v24 = vmul.f32 %v1832_v59, %v1789_v12  ;;  %v3404_v41 = vld [vmem:[%s6378_s1 + $0x30] sm:$0xff] }
 0x663   :  { %v3721_v9 = vpop.eup %3720 }
 0x664   :  { %v1817_v52 = vmul.f32 %v3721_v9, %v1800_v19  ;;  %v1809_v5 = vsel %vm1808_vm12, %v3719_v45, %v1805_v6  ;;  %v1836_v2 = vadd.f32 %v3399_v23, %v1834_v24  ;;  %vm1822_vm14 = vweird.f32 %v3721_v9  ;;  %v3723_v31 = vpop.eup %3722  ;;  %v3405_v24 = vld [vmem:[%s6378_s1 + $0x38] sm:$0xff] }
 0x665   :  { %v1814_v13 = vsel %vm1811_vm13, %v1813_v35, %v1809_v5  ;;  %v2433_v45 = vrot.slane %v2432_v16, 1  ;;  %vm1823_vm1 = vmor %vm1821_vm15, %vm1822_vm14  ;;  %v2296_v35 = vrot.slane %v2295_v42, 4 }
 0x666   :  { %v1818_v53 = vsub.f32 1.0, %v1817_v52  ;;  %3724 = vtanh.f32 %v1836_v2  ;;  %v1839_v27 = vsub.f32 1.0, %v1814_v13  ;;  %v1843_v38 = vmul.f32 %v1814_v13, %v5603_v48 }
 0x667   :  { %v1726_v14 = vpop.f32.mrf.mxu2  ;;  %v2434_v51 = vadd.f32 %v2433_v45, %v2432_v16 }
 0x668   :  { %v1819_v4 = vmul.f32 %v3721_v9, %v1818_v53  ;;  %v1854_v22 = vadd.f32 %v3404_v41, %v1726_v14  ;;  %v1841_v44 = vmul.f32 %v3723_v31, %v1839_v27 }
 0x66a   :  { %v1820_v59 = vadd.f32 %v3721_v9, %v1819_v4  ;;  %v3410_v12 = vmul.f32 -1.442695, %v1854_v22  ;;  %v5799_v21 = vadd.f32 %v1843_v38, %v1841_v44  ;;  %v2297_v22 = vadd.f32 %v2296_v35, %v2295_v42  ;;  %v3407_v35 = vld [vmem:[%s6378_s1 + $0x48] sm:$0xff] }
 0x66c   :  { %v1824_v6 = vsel %vm1823_vm1, %v3721_v9, %v1820_v59  ;;  %3726 = vpow2.f32 %v3410_v12  ;;  %v3725_v5 = vpop.eup %3724  ;;  %v2474_v9 = vmul.f32 %v2434_v51, %v5612_v0  ;;  %v3406_v59 = vld [vmem:[%s6378_s1 + $0x40] sm:$0xff] }
 0x66d   :  { %v1829_v23 = vsel %vm1826_vm2, %v1828_v8, %v1824_v6  ;;  %v2298_v8 = vrot.slane %v2297_v22, 2 }
 0x66e   :  { %v1840_v52 = vsub.f32 1.0, %v1829_v23  ;;  %v1844_v53 = vmul.f32 %v1829_v23, %v5599_v61  ;;  %v5806_v13 = vadd.f32 1e-05, %v2474_v9 }
 0x66f   :  { %v1729_v19 = vpop.f32.mrf.mxu2 }
 0x670   :  { %v1842_v2 = vmul.f32 %v3725_v5, %v1840_v52  ;;  %v1855_v41 = vadd.f32 %v3405_v24, %v1729_v19  ;;  %v2299_v52 = vadd.f32 %v2298_v8, %v2297_v22 }
 0x672   :  { %v3727_v10 = vpop.eup %3726  ;;  %v3411_v14 = vmul.f32 -1.442695, %v1855_v41  ;;  %v5797_v4 = vadd.f32 %v1844_v53, %v1842_v2  ;;  %v2300_v9 = vrot.slane %v2299_v52, 1 }
 0x673   :  { %v1862_v16 = vadd.f32 1.0, %v3727_v10 }
 0x674   :  { %3728 = vpow2.f32 %v3411_v14  ;;  %v2302_v45 = vadd.f32 %v5797_v4, %v5799_v21 }
 0x675   :  { %3730 = vrcp.f32 %v1862_v16  ;;  %vm1869_vm4 = vweird.f32 %v1862_v16 }
 0x676   :  { %v2303_v27 = vadd.f32 %v2302_v45, %v4548_v55  ;;  %3732 = vrsqrt.f32 %v5806_v13 }
 0x677   :  { %v1732_v12 = vpop.f32.mrf.mxu2 }
 0x678   :  { %v1894_v6 = vadd.f32 %v3406_v59, %v1732_v12  ;;  %v2304_v31 = vadd.f32 %v2303_v27, %v4544_v46 }
 0x67a   :  { %v3729_v42 = vpop.eup %3728  ;;  %v3412_v23 = vmul.f32 -1.442695, %v1894_v6  ;;  %v2305_v24 = vrot.slane %v2304_v31, 4 }
 0x67b   :  { %v3731_v51 = vpop.eup %3730  ;;  %v5811_v44 = vadd.f32 1.0, %v3729_v42  ;;  %v2301_v42 = vadd.f32 %v2300_v9, %v2299_v52 }
 0x67c   :  { %3734 = vpow2.f32 %v3412_v23  ;;  %v1865_v5 = vmul.f32 %v3731_v51, %v1862_v16  ;;  %v2306_v19 = vadd.f32 %v2305_v24, %v2304_v31  ;;  %v5817_v53 = vpop.eup %3732  ;;  %vm1870_vm3 = vweird.f32 %v3731_v51 }
 0x67d   :  { %3736 = vrcp.f32 %v5811_v44  ;;  %v2518_v27 = vmul.f32 %v5817_v53, %v5806_v13  ;;  %v1875_v23 = vand.u32 2147483648, %v1862_v16  ;;  %vm5825_vm5 = vmor %vm1869_vm4, %vm1870_vm3  ;;  %v5833_v9 = vmul.f32 %v5612_v0, %v2301_v42 }
 0x67e   :  { %v1866_v2 = vsub.f32 1.0, %v1865_v5  ;;  %v2307_v41 = vrot.slane %v2306_v19, 2  ;;  %v1873_v5 = vand.u32 2147483647, %v1862_v16  ;;  %vm1884_vm8 = vweird.f32 %v5811_v44 }
 0x67f   :  { %v1735_v38 = vpop.f32.mrf.mxu2  ;;  %v2519_v52 = vmul.f32 %v5817_v53, %v2518_v27  ;;  %vm2524_vm2 = vweird.f32 %v5817_v53 }
 0x680   :  { %v1895_v10 = vadd.f32 %v3407_v35, %v1735_v38  ;;  %v1867_v14 = vmul.f32 %v3731_v51, %v1866_v2  ;;  %v2308_v45 = vadd.f32 %v2307_v41, %v2306_v19  ;;  %vm1874_vm6 = vcmp.eq.f32.partialorder %v1873_v5, 8.507059e+37 }
 0x682   :  { %v3735_v59 = vpop.eup %3734  ;;  %v3413_v22 = vmul.f32 -1.442695, %v1895_v10  ;;  %v2309_v12 = vrot.slane %v2308_v45, 1  ;;  %v1868_v31 = vadd.f32 %v3731_v51, %v1867_v14  ;;  %v1876_v10 = vor.u32 1.1754944e-38, %v1875_v23 }
 0x683   :  { %v3737_v8 = vpop.eup %3736  ;;  %v5821_v6 = vadd.f32 1.0, %v3735_v59 }
 0x684   :  { %3738 = vpow2.f32 %v3413_v22  ;;  %v1880_v24 = vmul.f32 %v3737_v8, %v5811_v44  ;;  %v2310_v2 = vadd.f32 %v2309_v12, %v2308_v45  ;;  %v1872_v38 = vsel %vm5825_vm5, %v3731_v51, %v1868_v31 }
 0x685   :  { %3740 = vrcp.f32 %v5821_v6  ;;  %v1888_v22 = vand.u32 2147483647, %v5811_v44  ;;  %v1890_v45 = vand.u32 2147483648, %v5811_v44  ;;  %vm1885_vm7 = vweird.f32 %v3737_v8 }
 0x686   :  { %v1881_v35 = vsub.f32 1.0, %v1880_v24  ;;  %v2333_v16 = vmul.f32 %v5612_v0, %v2310_v2  ;;  %v1877_v24 = vsel %vm1874_vm6, %v1876_v10, %v1872_v38  ;;  %v5852_v2 = vmul.f32 0.5, %v2519_v52  ;;  %vm5859_vm9 = vmor %vm1884_vm8, %vm1885_vm7  ;;  %v3409_v38 = vld [vmem:[%s6378_s1 + $0x58] sm:$0xff] }
 0x687   :  { %v1738_v41 = vpop.f32.mrf.mxu2  ;;  %vm5863_vm10 = vcmp.eq.f32.partialorder %v1888_v22, 8.507059e+37  ;;  %v5872_v44 = vsub.f32 %v5599_v61, %v5833_v9  ;;  %v1915_v22 = vand.u32 2147483648, %v5821_v6  ;;  %vm1909_vm12 = vweird.f32 %v5821_v6 }
 0x688   :  { %v1934_v14 = vadd.f32 %v1738_v41, %v4174_v25  ;;  %v1882_v59 = vmul.f32 %v3737_v8, %v1881_v35  ;;  %v5840_v51 = vsub.f32 %v5799_v21, %v2333_v16  ;;  %v5845_v23 = vsub.f32 %v5797_v4, %v2333_v16  ;;  %v3408_v35 = vld [vmem:[%s6378_s1 + $0x50] sm:$0xff] }
 0x689   :  { %v5856_v41 = vsub.f32 %v5603_v48, %v5833_v9  ;;  %v5880_v15 = vsub.f32 %v4544_v46, %v2333_v16  ;;  %vm2523_vm5 = vweird.f32 %v5806_v13 }
 0x68a   :  { %v3739_v12 = vpop.eup %3738  ;;  %v1883_v19 = vadd.f32 %v3737_v8, %v1882_v59  ;;  %v1936_v42 = vmul.f32 %v1934_v14, %v1877_v24  ;;  %v5868_v14 = vsub.f32 %v4548_v55, %v2333_v16  ;;  %v2391_v24 = vmul.f32 %v5840_v51, %v5840_v51  ;;  %vm2525_vm6 = vmor %vm2523_vm5, %vm2524_vm2 }
 0x68b   :  { %v3741_v27 = vpop.eup %3740  ;;  %v5842_v31 = vadd.f32 1.0, %v3739_v12  ;;  %6547 = vst [vmem:[#allocation29_spill] sm:$0xff] %v5856_v41  ;;  %v1891_v12 = vor.u32 1.1754944e-38, %v1890_v45  ;;  %v2392_v55 = vmul.f32 %v5845_v23, %v5845_v23  ;;  %v2387_v16 = vmul.f32 %v5856_v41, %v5856_v41 }
 0x68c   :  { %v1905_v5 = vmul.f32 %v3741_v27, %v5821_v6  ;;  %v1887_v59 = vsel %vm5859_vm9, %v3737_v8, %v1883_v19  ;;  %v1938_v48 = vadd.f32 %v3408_v35, %v1936_v42  ;;  %vm1910_vm11 = vweird.f32 %v3741_v27 }
 0x68d   :  { %3742 = vrcp.f32 %v5842_v31  ;;  %v1892_v45 = vsel %vm5863_vm10, %v1891_v12, %v1887_v59  ;;  %v2393_v19 = vmul.f32 %v5868_v14, %v5868_v14  ;;  %v2453_v42 = vadd.f32 %v2392_v55, %v2391_v24  ;;  %vm1911_vm13 = vmor %vm1909_vm12, %vm1910_vm11 }
 0x68e   :  { %v1906_v52 = vsub.f32 1.0, %v1905_v5  ;;  %v1913_v5 = vand.u32 2147483647, %v5821_v6  ;;  %v1916_v59 = vor.u32 1.1754944e-38, %v1915_v22  ;;  %3744 = vtanh.f32 %v1938_v48 }
 0x68f   :  { %v1741_v25 = vpop.f32.mrf.mxu2  ;;  %v2394_v55 = vmul.f32 %v5880_v15, %v5880_v15  ;;  %v2454_v12 = vadd.f32 %v2453_v42, %v2393_v19  ;;  %v1930_v22 = vand.u32 2147483648, %v5842_v31  ;;  %v2521_v48 = vsub.f32 1.5, %v5852_v2 }
 0x690   :  { %v1907_v61 = vmul.f32 %v3741_v27, %v1906_v52  ;;  %v1935_v8 = vadd.f32 %v1741_v25, %v4114_v29  ;;  %v2388_v25 = vmul.f32 %v5872_v44, %v5872_v44  ;;  %vm1914_vm14 = vcmp.eq.f32.partialorder %v1913_v5, 8.507059e+37 }
 0x691   :  { %v2455_v29 = vadd.f32 %v2454_v12, %v2394_v55  ;;  %v1928_v5 = vand.u32 2147483647, %v5842_v31  ;;  %vm1924_vm1 = vweird.f32 %v5842_v31 }
 0x692   :  { %v1908_v35 = vadd.f32 %v3741_v27, %v1907_v61  ;;  %v1937_v52 = vmul.f32 %v1935_v8, %v1892_v45  ;;  %v5903_v8 = vsub.f32 %v4820_v54, %v5833_v9  ;;  %v2444_v41 = vadd.f32 %v2388_v25, %v2387_v16 }
 0x693   :  { %v3743_v10 = vpop.eup %3742  ;;  %v2456_v32 = vrot.slane %v2455_v29, 4  ;;  %v1931_v16 = vor.u32 1.1754944e-38, %v1930_v22  ;;  %v2522_v25 = vmul.f32 %v5817_v53, %v2521_v48  ;;  %vm1929_vm4 = vcmp.eq.f32.partialorder %v1928_v5, 8.507059e+37 }
 0x694   :  { %v1920_v61 = vmul.f32 %v3743_v10, %v5842_v31  ;;  %v1912_v6 = vsel %vm1911_vm13, %v3741_v27, %v1908_v35  ;;  %v1939_v46 = vadd.f32 %v3409_v38, %v1937_v52  ;;  %vm1925_vm15 = vweird.f32 %v3743_v10  ;;  %v3745_v27 = vpop.eup %3744 }
 0x695   :  { %v1917_v24 = vsel %vm1914_vm14, %v1916_v59, %v1912_v6  ;;  %v2457_v42 = vadd.f32 %v2456_v32, %v2455_v29  ;;  %v5910_v35 = vsub.f32 %v4816_v63, %v5833_v9  ;;  %v2389_v38 = vmul.f32 %v5903_v8, %v5903_v8  ;;  %vm1926_vm3 = vmor %vm1924_vm1, %vm1925_vm15 }
 0x696   :  { %v1921_v45 = vsub.f32 1.0, %v1920_v61  ;;  %v1942_v47 = vsub.f32 1.0, %v1917_v24  ;;  %3746 = vtanh.f32 %v1939_v46  ;;  %v1946_v32 = vmul.f32 %v1917_v24, %v5586_v34 }
 0x697   :  { %v2458_v59 = vrot.slane %v2457_v42, 2  ;;  %v2445_v46 = vadd.f32 %v2444_v41, %v2389_v38  ;;  %v2390_v31 = vmul.f32 %v5910_v35, %v5910_v35  ;;  %v2526_v41 = vsel %vm2525_vm6, %v5817_v53, %v2522_v25 }
 0x698   :  { %v1922_v19 = vmul.f32 %v3743_v10, %v1921_v45  ;;  %v1944_v2 = vmul.f32 %v3745_v27, %v1942_v47  ;;  %v2257_v24 = vadd.f32 %v4552_v39, %v4556_v33  ;;  %v2582_v5 = vmul.f32 %v2526_v41, %v5764_v26 }
 0x699   :  { %v2459_v55 = vadd.f32 %v2458_v59, %v2457_v42  ;;  %v2581_v38 = vmul.f32 %v2526_v41, %v5758_v56  ;;  %v2580_v25 = vmul.f32 %v2526_v41, %v5751_v43  ;;  %v3874_v43 = vld [vmem:[%s6371_s2] sm:$0xff] }
 0x69a   :  { %v1923_v52 = vadd.f32 %v3743_v10, %v1922_v19  ;;  %v5921_v12 = vadd.f32 %v1946_v32, %v1944_v2 }
 0x69b   :  { %v2460_v6 = vrot.slane %v2459_v55, 1  ;;  %v2637_v26 = vmul.f32 %v5652_v60, %v2581_v38  ;;  %v2636_v32 = vmul.f32 %v5663_v62, %v2580_v25 }
 0x69c   :  { %v1927_v29 = vsel %vm1926_vm3, %v3743_v10, %v1923_v52  ;;  %v3747_v61 = vpop.eup %3746  ;;  %v2446_v10 = vadd.f32 %v2445_v46, %v2390_v31  ;;  %v2258_v19 = vadd.f32 %v2257_v24, %v5921_v12  ;;  %v2579_v46 = vmul.f32 %v2526_v41, %v5748_v36 }
 0x69d   :  { %v1932_v9 = vsel %vm1929_vm4, %v1931_v16, %v1927_v29  ;;  %v2461_v22 = vadd.f32 %v2460_v6, %v2459_v55  ;;  %v2638_v16 = vmul.f32 %v5636_v58, %v2582_v5  ;;  %v2693_v31 = vadd.f32 %v5665_v20, %v2637_v26 }
 0x69e   :  { %v1943_v47 = vsub.f32 1.0, %v1932_v9  ;;  %v1947_v13 = vmul.f32 %v1932_v9, %v5592_v1  ;;  %v2447_v42 = vrot.slane %v2446_v10, 4  ;;  %v2635_v36 = vmul.f32 %v5678_v11, %v2579_v46 }
 0x69f   :  { %v2477_v27 = vmul.f32 %v2461_v22, %v5612_v0  ;;  %v2694_v56 = vadd.f32 %v5654_v17, %v2638_v16  ;;  %v2692_v41 = vadd.f32 %v5682_v37, %v2636_v32 }
 0x6a0   :  { %v1945_v45 = vmul.f32 %v3747_v61, %v1943_v47  ;;  %v2448_v59 = vadd.f32 %v2447_v42, %v2446_v10 }
 0x6a1   :  { %v2485_v52 = vadd.f32 1e-05, %v2477_v27  ;;  %v3875_v27 = vld [vmem:[%s6371_s2 + $0x8] sm:$0xff] }
 0x6a2   :  { %v5929_v48 = vadd.f32 %v1947_v13, %v1945_v45  ;;  %v2449_v55 = vrot.slane %v2448_v59, 2  ;;  %v2691_v45 = vadd.f32 %v5685_v57, %v2635_v36 }
 0x6a3   :  { %3748 = vrsqrt.f32 %v2485_v52  ;;  %vm2553_vm8 = vweird.f32 %v2485_v52 }
 0x6a4   :  { %1966 = vmatpush.msrb.mxu3 %v5929_v48  ;;  %v2259_v53 = vadd.f32 %v2258_v19, %v5929_v48  ;;  %v2450_v24 = vadd.f32 %v2449_v55, %v2448_v59 }
 0x6a6   :  { %1967 = vmatpush.msrb.mxu3 %v5921_v12  ;;  %v2260_v2 = vrot.slane %v2259_v53, 4  ;;  %v2451_v42 = vrot.slane %v2450_v24, 1 }
 0x6a8   :  { %1968 = vmatpush.msrb.mxu3 %v5797_v4  ;;  %v2261_v29 = vadd.f32 %v2260_v2, %v2259_v53 }
 0x6a9   :  { %v3749_v61 = vpop.eup %3748 }
 0x6aa   :  { %1969 = vmatpush.msrb.mxu3 %v5799_v21  ;;  %v2262_v9 = vrot.slane %v2261_v29, 2  ;;  %v2548_v6 = vmul.f32 %v3749_v61, %v2485_v52  ;;  %vm2554_vm7 = vweird.f32 %v3749_v61 }
 0x6ab   :  { %3414 = vmatmul.msk.f32.vlgmr.msrb.gmra.mxu3 %vm70_vm0, %v3874_v43  ;;  %vm2555_vm9 = vmor %vm2553_vm8, %vm2554_vm7 }
 0x6ac   :  { %2812 = vmatpush.msra.mxu3 %v2694_v56  ;;  %v2263_v47 = vadd.f32 %v2262_v9, %v2261_v29  ;;  %v2549_v13 = vmul.f32 %v3749_v61, %v2548_v6  ;;  %v2452_v9 = vadd.f32 %v2451_v42, %v2450_v24 }
 0x6ae   :  { %2813 = vmatpush.msra.mxu3 %v2693_v31  ;;  %v2264_v10 = vrot.slane %v2263_v47, 1  ;;  %v2550_v19 = vmul.f32 0.5, %v2549_v13 }
 0x6b0   :  { %2814 = vmatpush.msra.mxu3 %v2692_v41  ;;  %v2265_v22 = vadd.f32 %v2264_v10, %v2263_v47  ;;  %v2551_v53 = vsub.f32 1.5, %v2550_v19 }
 0x6b2   :  { %2815 = vmatpush.msra.mxu3 %v2691_v45  ;;  %v2328_v5 = vmul.f32 %v5612_v0, %v2265_v22  ;;  %v2552_v25 = vmul.f32 %v3749_v61, %v2551_v53 }
 0x6b3   :  { %3415 = vmatmul.msk.f32.gmra.mxu3 %vm70_vm0, %v3875_v27 }
 0x6b4   :  { %v5960_v38 = vsub.f32 %v4556_v33, %v2328_v5  ;;  %v5963_v2 = vsub.f32 %v4552_v39, %v2328_v5  ;;  %v5966_v16 = vsub.f32 %v5921_v12, %v2328_v5  ;;  %v5969_v59 = vsub.f32 %v5929_v48, %v2328_v5 }
 0x6b5   :  { %v2556_v29 = vsel %vm2555_vm9, %v3749_v61, %v2552_v25 }
 0x6b6   :  { %v2371_v26 = vmul.f32 %v5960_v38, %v5960_v38  ;;  %v2372_v46 = vmul.f32 %v5963_v2, %v5963_v2  ;;  %v2373_v56 = vmul.f32 %v5966_v16, %v5966_v16  ;;  %v2594_v43 = vmul.f32 %v2556_v29, %v5880_v15 }
 0x6b7   :  { %v2593_v52 = vmul.f32 %v2556_v29, %v5868_v14  ;;  %v2592_v55 = vmul.f32 %v2556_v29, %v5845_v23  ;;  %v2374_v31 = vmul.f32 %v5969_v59, %v5969_v59  ;;  %v2591_v41 = vmul.f32 %v2556_v29, %v5840_v51 }
 0x6b8   :  { %v2408_v32 = vadd.f32 %v2372_v46, %v2371_v26  ;;  %v2650_v47 = vmul.f32 %v5636_v58, %v2594_v43  ;;  %v2476_v15 = vmul.f32 %v2452_v9, %v5612_v0 }
 0x6b9   :  { %v2649_v61 = vmul.f32 %v5652_v60, %v2593_v52  ;;  %v2648_v23 = vmul.f32 %v5663_v62, %v2592_v55  ;;  %v2647_v45 = vmul.f32 %v5678_v11, %v2591_v41 }
 0x6ba   :  { %v2409_v36 = vadd.f32 %v2408_v32, %v2373_v56  ;;  %v2706_v14 = vadd.f32 %v5654_v17, %v2650_v47  ;;  %v2484_v22 = vadd.f32 1e-05, %v2476_v15 }
 0x6bb   :  { %3416 = vmatmul.msk.f32.gmra.mxu3 %vm70_vm0, %v5624_v40  ;;  %v2705_v24 = vadd.f32 %v5665_v20, %v2649_v61  ;;  %v2704_v40 = vadd.f32 %v5682_v37, %v2648_v23  ;;  %v2703_v51 = vadd.f32 %v5685_v57, %v2647_v45 }
 0x6bc   :  { %v2410_v6 = vadd.f32 %v2409_v36, %v2374_v31  ;;  %2881 = vmatpush.msrb.mxu2 %v2706_v14  ;;  %3750 = vrsqrt.f32 %v2484_v22  ;;  %vm2543_vm14 = vweird.f32 %v2484_v22 }
 0x6be   :  { %v2411_v10 = vrot.slane %v2410_v6, 4  ;;  %2882 = vmatpush.msrb.mxu2 %v2705_v24 }
 0x6c0   :  { %v2412_v13 = vadd.f32 %v2411_v10, %v2410_v6  ;;  %2883 = vmatpush.msrb.mxu2 %v2704_v40  ;;  %v6553_v40 = vld [vmem:[#allocation25_spill] sm:$0xff] }
 0x6c2   :  { %v2413_v19 = vrot.slane %v2412_v13, 2  ;;  %2884 = vmatpush.msrb.mxu2 %v2703_v51  ;;  %v3751_v53 = vpop.eup %3750 }
 0x6c3   :  { %3417 = vmatmul.msk.f32.gmra.mxu3 %vm70_vm0, %v5631_v49  ;;  %3452 = vmatmul.msk.f32.vlgmr.msrb.gmra.mxu2 %vm70_vm0, %v5719_v18  ;;  %v2538_v46 = vmul.f32 %v3751_v53, %v2484_v22  ;;  %vm2544_vm12 = vweird.f32 %v3751_v53 }
 0x6c4   :  { %v2414_v5 = vadd.f32 %v2413_v19, %v2412_v13  ;;  %vm2545_vm15 = vmor %vm2543_vm14, %vm2544_vm12 }
 0x6c5   :  { %v2539_v49 = vmul.f32 %v3751_v53, %v2538_v46 }
 0x6c6   :  { %v2415_v27 = vrot.slane %v2414_v5, 1 }
 0x6c7   :  { %v2540_v32 = vmul.f32 0.5, %v2539_v49 }
 0x6c8   :  { %v2416_v42 = vadd.f32 %v2415_v27, %v2414_v5 }
 0x6c9   :  { %v2541_v52 = vsub.f32 1.5, %v2540_v32 }
 0x6ca   :  { %v2472_v25 = vmul.f32 %v2416_v42, %v5612_v0  ;;  %v6554_v42 = vld [vmem:[#allocation26_spill] sm:$0xff] }
 0x6cb   :  { %3418 = vmatmul.msk.f32.gmra.mxu3 %vm70_vm0, %v5641_v28  ;;  %3453 = vmatmul.msk.f32.gmra.mxu2 %vm70_vm0, %v5726_v7  ;;  %v2542_v31 = vmul.f32 %v3751_v53, %v2541_v52 }
 0x6cc   :  { %v2480_v26 = vadd.f32 1e-05, %v2472_v25  ;;  %v6556_v25 = vld [vmem:[#allocation28_spill] sm:$0xff] }
 0x6cd   :  { %v2546_v41 = vsel %vm2545_vm15, %v3751_v53, %v2542_v31  ;;  %v6555_v53 = vld [vmem:[#allocation27_spill] sm:$0xff] }
 0x6ce   :  { %3752 = vrsqrt.f32 %v2480_v26  ;;  %vm2503_vm11 = vweird.f32 %v2480_v26  ;;  %v2589_v10 = vmul.f32 %v2546_v41, %v5903_v8 }
 0x6d0   :  { %v2645_v13 = vmul.f32 %v5652_v60, %v2589_v10 }
 0x6d3   :  { %3419 = vmatmul.msk.f32.gmra.mxu3 %vm70_vm0, %v5648_v50 }
 0x6d4   :  { %v3753_v29 = vpop.eup %3752 }
 0x6d5   :  { %v2498_v56 = vmul.f32 %v3753_v29, %v2480_v26  ;;  %vm2504_vm10 = vweird.f32 %v3753_v29  ;;  %v3426_v26 = vld [vmem:[%s6377_s0 + $0x150] sm:$0xff] }
 0x6d6   :  { %vm2505_vm13 = vmor %vm2503_vm11, %vm2504_vm10 }
 0x6d7   :  { %v2499_v9 = vmul.f32 %v3753_v29, %v2498_v56  ;;  %v3427_v56 = vld [vmem:[%s6377_s0 + $0x158] sm:$0xff] }
 0x6d9   :  { %v2500_v43 = vmul.f32 0.5, %v2499_v9 }
 0x6db   :  { %3420 = vmatmul.msk.f32.gmra.mxu3 %vm70_vm0, %v5659_v30  ;;  %v2501_v28 = vsub.f32 1.5, %v2500_v43 }
 0x6dd   :  { %v2502_v55 = vmul.f32 %v3753_v29, %v2501_v28 }
 0x6df   :  { %v2506_v36 = vsel %vm2505_vm13, %v3753_v29, %v2502_v55 }
 0x6e0   :  { %v2574_v50 = vmul.f32 %v2506_v36, %v5969_v59  ;;  %v2573_v47 = vmul.f32 %v2506_v36, %v5966_v16  ;;  %v2572_v61 = vmul.f32 %v2506_v36, %v5963_v2  ;;  %v2571_v15 = vmul.f32 %v2506_v36, %v5960_v38 }
 0x6e1   :  { %v2590_v59 = vmul.f32 %v2546_v41, %v5910_v35  ;;  %v6552_v35 = vld [vmem:[#allocation29_spill] sm:$0xff] }
 0x6e2   :  { %v2630_v6 = vmul.f32 %v5636_v58, %v2574_v50  ;;  %v2629_v30 = vmul.f32 %v5652_v60, %v2573_v47  ;;  %v2628_v23 = vmul.f32 %v5663_v62, %v2572_v61  ;;  %v2627_v16 = vmul.f32 %v5678_v11, %v2571_v15 }
 0x6e3   :  { %3421 = vmatmul.msk.f32.gmra.mxu3 %vm70_vm0, %v5672_v3  ;;  %v2646_v38 = vmul.f32 %v5636_v58, %v2590_v59  ;;  %v2588_v3 = vmul.f32 %v2546_v41, %v5872_v44  ;;  %v2587_v22 = vmul.f32 %v2546_v41, %v6552_v35  ;;  %v2701_v44 = vadd.f32 %v5665_v20, %v2645_v13  ;;  %v3429_v41 = vld [vmem:[%s6377_s0 + $0x168] sm:$0xff] }
 0x6e4   :  { %v2686_v14 = vadd.f32 %v5654_v17, %v2630_v6  ;;  %v2685_v2 = vadd.f32 %v5665_v20, %v2629_v30  ;;  %v2684_v24 = vadd.f32 %v5682_v37, %v2628_v23  ;;  %v2683_v45 = vadd.f32 %v5685_v57, %v2627_v16 }
 0x6e5   :  { %v2702_v8 = vadd.f32 %v5654_v17, %v2646_v38  ;;  %v2644_v19 = vmul.f32 %v5663_v62, %v2588_v3  ;;  %v2643_v51 = vmul.f32 %v5678_v11, %v2587_v22 }
 0x6e6   :  { %2766 = vmatpush.msra.mxu1 %v2686_v14 }
 0x6e7   :  { %v2700_v5 = vadd.f32 %v5682_v37, %v2644_v19  ;;  %v2699_v27 = vadd.f32 %v5685_v57, %v2643_v51 }
 0x6e8   :  { %2767 = vmatpush.msra.mxu1 %v2685_v2 }
 0x6ea   :  { %2768 = vmatpush.msra.mxu1 %v2684_v24 }
 0x6eb   :  { %3422 = vmatmul.msk.f32.gmra.mxu3 %vm70_vm0, %v6553_v40 }
 0x6ec   :  { %2769 = vmatpush.msra.mxu1 %v2683_v45 }
 0x6ed   :  { %3442 = vmatmul.msk.f32.vlgmr.msra.gmra.mxu1 %vm70_vm0, %v5719_v18 }
 0x6ee   :  { %2858 = vmatpush.msrb.mxu1 %v2702_v8 }
 0x6f0   :  { %2859 = vmatpush.msrb.mxu1 %v2701_v44 }
 0x6f2   :  { %2860 = vmatpush.msrb.mxu1 %v2700_v5  ;;  %v6559_v5 = vld [vmem:[#allocation5_spill] sm:$0xff] }
 0x6f3   :  { %3423 = vmatmul.msk.f32.gmra.mxu3 %vm70_vm0, %v6554_v42 }
 0x6f4   :  { %2861 = vmatpush.msrb.mxu1 %v2699_v27 }
 0x6f5   :  { %3443 = vmatmul.msk.f32.gmra.mxu1 %vm70_vm0, %v5726_v7 }
 0x6fb   :  { %3424 = vmatmul.msk.f32.gmra.mxu3 %vm70_vm0, %v6555_v53 }
 0x6fd   :  { %3450 = vmatmul.msk.f32.vlgmr.msrb.gmra.mxu1 %vm70_vm0, %v5719_v18 }
 0x703   :  { %3425 = vmatmul.msk.f32.gmra.mxu3 %vm70_vm0, %v6556_v25 }
 0x705   :  { %3451 = vmatmul.msk.f32.gmra.mxu1 %vm70_vm0, %v5726_v7 }
 0x70b   :  { %3446 = vmatmul.msk.f32.vlgmr.msra.gmra.mxu3 %vm70_vm0, %v5719_v18 }
 0x713   :  { %3447 = vmatmul.msk.f32.gmra.mxu3 %vm70_vm0, %v5726_v7  ;;  %v3428_v7 = vld [vmem:[%s6377_s0 + $0x160] sm:$0xff] }
 0x72e   :  { %v1971_v46 = vpop.f32.mrf.mxu3 }
 0x72f   :  { %v2014_v49 = vadd.f32 %v3426_v26, %v1971_v46 }
 0x731   :  { %v3432_v29 = vmul.f32 -1.442695, %v2014_v49 }
 0x733   :  { %3754 = vpow2.f32 %v3432_v29 }
 0x736   :  { %v1974_v32 = vpop.f32.mrf.mxu3 }
 0x737   :  { %v2015_v9 = vadd.f32 %v3427_v56, %v1974_v32 }
 0x739   :  { %v3755_v43 = vpop.eup %3754  ;;  %v3433_v52 = vmul.f32 -1.442695, %v2015_v9 }
 0x73a   :  { %v2022_v18 = vadd.f32 1.0, %v3755_v43 }
 0x73b   :  { %3756 = vpow2.f32 %v3433_v52  ;;  %v3430_v52 = vld [vmem:[%s6377_s0 + $0x170] sm:$0xff] }
 0x73c   :  { %3758 = vrcp.f32 %v2022_v18  ;;  %v2035_v45 = vand.u32 2147483648, %v2022_v18  ;;  %vm2029_vm2 = vweird.f32 %v2022_v18  ;;  %v2033_v35 = vand.u32 2147483647, %v2022_v18 }
 0x73e   :  { %v1977_v28 = vpop.f32.mrf.mxu3  ;;  %v2036_v25 = vor.u32 1.1754944e-38, %v2035_v45  ;;  %vm2034_vm6 = vcmp.eq.f32.partialorder %v2033_v35, 8.507059e+37 }
 0x73f   :  { %v2054_v55 = vadd.f32 %v3428_v7, %v1977_v28  ;;  %v6561_v28 = vld [vmem:[#allocation22_spill] sm:$0xff] }
 0x741   :  { %v3757_v31 = vpop.eup %3756  ;;  %v3434_v36 = vmul.f32 -1.442695, %v2054_v55  ;;  %v6562_v55 = vld [vmem:[#allocation21_spill] sm:$0xff] }
 0x742   :  { %v3759_v50 = vpop.eup %3758  ;;  %v2023_v47 = vadd.f32 1.0, %v3757_v31  ;;  %v2284_v31 = vadd.f32 %v6562_v55, %v6561_v28 }
 0x743   :  { %3760 = vpow2.f32 %v3434_v36  ;;  %v2025_v61 = vmul.f32 %v3759_v50, %v2022_v18  ;;  %vm2030_vm1 = vweird.f32 %v3759_v50  ;;  %v6560_v18 = vld [vmem:[#allocation3_spill] sm:$0xff] }
 0x744   :  { %3762 = vrcp.f32 %v2023_v47  ;;  %vm6065_vm3 = vmor %vm2029_vm2, %vm2030_vm1  ;;  %v2050_v42 = vand.u32 2147483648, %v2023_v47  ;;  %vm2044_vm5 = vweird.f32 %v2023_v47  ;;  %v2048_v26 = vand.u32 2147483647, %v2023_v47 }
 0x745   :  { %v2026_v30 = vsub.f32 1.0, %v2025_v61 }
 0x746   :  { %v1980_v6 = vpop.f32.mrf.mxu3  ;;  %v2051_v9 = vor.u32 1.1754944e-38, %v2050_v42  ;;  %vm2049_vm9 = vcmp.eq.f32.partialorder %v2048_v26, 8.507059e+37 }
 0x747   :  { %v2055_v15 = vadd.f32 %v3429_v41, %v1980_v6  ;;  %v2027_v16 = vmul.f32 %v3759_v50, %v2026_v30  ;;  %v3431_v41 = vld [vmem:[%s6377_s0 + $0x178] sm:$0xff] }
 0x749   :  { %v3761_v14 = vpop.eup %3760  ;;  %v3435_v23 = vmul.f32 -1.442695, %v2055_v15  ;;  %v2028_v3 = vadd.f32 %v3759_v50, %v2027_v16 }
 0x74a   :  { %v3763_v59 = vpop.eup %3762  ;;  %v2062_v2 = vadd.f32 1.0, %v3761_v14 }
 0x74b   :  { %3764 = vpow2.f32 %v3435_v23  ;;  %v2040_v10 = vmul.f32 %v3763_v59, %v2023_v47  ;;  %vm2045_vm4 = vweird.f32 %v3763_v59  ;;  %v2032_v51 = vsel %vm6065_vm3, %v3759_v50, %v2028_v3 }
 0x74c   :  { %3766 = vrcp.f32 %v2062_v2  ;;  %vm2046_vm7 = vmor %vm2044_vm5, %vm2045_vm4  ;;  %v2037_v49 = vsel %vm2034_vm6, %v2036_v25, %v2032_v51  ;;  %v2075_v36 = vand.u32 2147483648, %v2062_v2  ;;  %vm2069_vm10 = vweird.f32 %v2062_v2 }
 0x74d   :  { %v2041_v24 = vsub.f32 1.0, %v2040_v10  ;;  %v2073_v61 = vand.u32 2147483647, %v2062_v2 }
 0x74e   :  { %v1983_v38 = vpop.f32.mrf.mxu3  ;;  %v2076_v10 = vor.u32 1.1754944e-38, %v2075_v36 }
 0x74f   :  { %v2042_v13 = vmul.f32 %v3763_v59, %v2041_v24  ;;  %v2094_v27 = vadd.f32 %v1983_v38, %v6559_v5  ;;  %v2110_v38 = vld [vmem:[%s6378_s1] sm:$0xff]  ;;  %vm2074_vm12 = vcmp.eq.f32.partialorder %v2073_v61, 8.507059e+37 }
 0x751   :  { %v3765_v22 = vpop.eup %3764  ;;  %v2043_v8 = vadd.f32 %v3763_v59, %v2042_v13  ;;  %v2096_v56 = vmul.f32 %v2094_v27, %v2037_v49 }
 0x752   :  { %v3767_v19 = vpop.eup %3766  ;;  %v2063_v44 = vadd.f32 1.0, %v3765_v22 }
 0x753   :  { %v2065_v53 = vmul.f32 %v3767_v19, %v2062_v2  ;;  %v2047_v29 = vsel %vm2046_vm7, %v3763_v59, %v2043_v8  ;;  %vm2070_vm8 = vweird.f32 %v3767_v19  ;;  %v2098_v15 = vadd.f32 %v3430_v52, %v2096_v56  ;;  %v6563_v59 = vld [vmem:[#allocation16_spill] sm:$0xff]  ;;  %v6564_v8 = vld [vmem:[#allocation15_spill] sm:$0xff] }
 0x754   :  { %3768 = vrcp.f32 %v2063_v44  ;;  %v2052_v50 = vsel %vm2049_vm9, %v2051_v9, %v2047_v29  ;;  %vm2071_vm11 = vmor %vm2069_vm10, %vm2070_vm8  ;;  %v2285_v16 = vadd.f32 %v2284_v31, %v6563_v59  ;;  %v2090_v3 = vand.u32 2147483648, %v2063_v44 }
 0x755   :  { %v2066_v46 = vsub.f32 1.0, %v2065_v53  ;;  %3770 = vtanh.f32 %v2098_v15  ;;  %v2088_v22 = vand.u32 2147483647, %v2063_v44  ;;  %vm2084_vm14 = vweird.f32 %v2063_v44 }
 0x756   :  { %v1986_v32 = vpop.f32.mrf.mxu3  ;;  %v2091_v42 = vor.u32 1.1754944e-38, %v2090_v3 }
 0x757   :  { %v2067_v43 = vmul.f32 %v3767_v19, %v2066_v46  ;;  %v2095_v7 = vadd.f32 %v1986_v32, %v6560_v18  ;;  %vm2089_vm1 = vcmp.eq.f32.partialorder %v2088_v22, 8.507059e+37  ;;  %v2111_v46 = vld [vmem:[%s6378_s1 + $0x8] sm:$0xff] }
 0x759   :  { %v2068_v47 = vadd.f32 %v3767_v19, %v2067_v43  ;;  %v2097_v6 = vmul.f32 %v2095_v7, %v2052_v50 }
 0x75a   :  { %v3769_v30 = vpop.eup %3768 }
 0x75b   :  { %v2080_v14 = vmul.f32 %v3769_v30, %v2063_v44  ;;  %v2072_v23 = vsel %vm2071_vm11, %v3767_v19, %v2068_v47  ;;  %v2099_v24 = vadd.f32 %v3431_v41, %v2097_v6  ;;  %vm2085_vm13 = vweird.f32 %v3769_v30  ;;  %v3771_v25 = vpop.eup %3770  ;;  %v2112_v6 = vld [vmem:[%s6378_s1 + $0x10] sm:$0xff] }
 0x75c   :  { %v2077_v45 = vsel %vm2074_vm12, %v2076_v10, %v2072_v23  ;;  %v2286_v19 = vadd.f32 %v2285_v16, %v6564_v8  ;;  %vm2086_vm15 = vmor %vm2084_vm14, %vm2085_vm13  ;;  %v6566_v16 = vld [vmem:[#allocation7_spill] sm:$0xff] }
 0x75d   :  { %v2081_v2 = vsub.f32 1.0, %v2080_v14  ;;  %3772 = vtanh.f32 %v2099_v24  ;;  %v2102_v5 = vsub.f32 1.0, %v2077_v45  ;;  %v2106_v44 = vmul.f32 %v2077_v45, %v5799_v21 }
 0x75e   :  { %v1989_v13 = vpop.f32.mrf.mxu3  ;;  %v2287_v56 = vrot.slane %v2286_v19, 4 }
 0x75f   :  { %v2082_v35 = vmul.f32 %v3769_v30, %v2081_v2  ;;  %v2116_v40 = vadd.f32 %v2110_v38, %v1989_v13  ;;  %v2104_v49 = vmul.f32 %v3771_v25, %v2102_v5 }
 0x760   :  { %v2288_v47 = vadd.f32 %v2287_v56, %v2286_v19  ;;  %v2113_v19 = vld [vmem:[%s6378_s1 + $0x18] sm:$0xff] }
 0x761   :  { %v2083_v51 = vadd.f32 %v3769_v30, %v2082_v35  ;;  %v3436_v27 = vmul.f32 -1.442695, %v2116_v40  ;;  %v6091_v31 = vadd.f32 %v2106_v44, %v2104_v49 }
 0x762   :  { %v2289_v14 = vrot.slane %v2288_v47, 2 }
 0x763   :  { %v2087_v53 = vsel %vm2086_vm15, %v3769_v30, %v2083_v51  ;;  %3774 = vpow2.f32 %v3436_v27  ;;  %v3773_v32 = vpop.eup %3772  ;;  %v6565_v30 = vld [vmem:[#allocation8_spill] sm:$0xff] }
 0x764   :  { %v2092_v26 = vsel %vm2089_vm1, %v2091_v42, %v2087_v53  ;;  %v2290_v45 = vadd.f32 %v2289_v14, %v2288_v47 }
 0x765   :  { %v2103_v29 = vsub.f32 1.0, %v2092_v26  ;;  %v2107_v52 = vmul.f32 %v2092_v26, %v5797_v4 }
 0x766   :  { %v1992_v9 = vpop.f32.mrf.mxu3  ;;  %v2291_v27 = vrot.slane %v2290_v45, 1 }
 0x767   :  { %v2105_v43 = vmul.f32 %v3773_v32, %v2103_v29  ;;  %v2117_v18 = vadd.f32 %v2111_v46, %v1992_v9 }
 0x768   :  { %v2292_v56 = vadd.f32 %v2291_v27, %v2290_v45 }
 0x769   :  { %v3775_v7 = vpop.eup %3774  ;;  %v6093_v36 = vadd.f32 %v2107_v52, %v2105_v43  ;;  %v3437_v50 = vmul.f32 -1.442695, %v2117_v18 }
 0x76a   :  { %v2124_v61 = vadd.f32 1.0, %v3775_v7 }
 0x76b   :  { %v2311_v41 = vadd.f32 %v6093_v36, %v6091_v31  ;;  %3776 = vpow2.f32 %v3437_v50  ;;  %v6113_v50 = vmul.f32 %v5612_v0, %v2292_v56 }
 0x76c   :  { %3778 = vrcp.f32 %v2124_v61  ;;  %v2137_v52 = vand.u32 2147483648, %v2124_v61  ;;  %vm2131_vm3 = vweird.f32 %v2124_v61  ;;  %v2135_v18 = vand.u32 2147483647, %v2124_v61 }
 0x76d   :  { %v2312_v15 = vadd.f32 %v2311_v41, %v6565_v30  ;;  %v6126_v45 = vsub.f32 %v6561_v28, %v6113_v50 }
 0x76e   :  { %v1995_v23 = vpop.f32.mrf.mxu3  ;;  %v2138_v14 = vor.u32 1.1754944e-38, %v2137_v52  ;;  %vm2136_vm5 = vcmp.eq.f32.partialorder %v2135_v18, 8.507059e+37 }
 0x76f   :  { %v2313_v10 = vadd.f32 %v2312_v15, %v6566_v16  ;;  %v2156_v24 = vadd.f32 %v2112_v6, %v1995_v23  ;;  %v6567_v23 = vld [vmem:[#allocation6_spill] sm:$0xff] }
 0x771   :  { %v3777_v38 = vpop.eup %3776  ;;  %v2314_v2 = vrot.slane %v2313_v10, 4  ;;  %v3438_v3 = vmul.f32 -1.442695, %v2156_v24 }
 0x772   :  { %v3779_v13 = vpop.eup %3778  ;;  %v6102_v35 = vadd.f32 1.0, %v3777_v38 }
 0x773   :  { %v2315_v22 = vadd.f32 %v2314_v2, %v2313_v10  ;;  %3780 = vpow2.f32 %v3438_v3  ;;  %v2127_v40 = vmul.f32 %v3779_v13, %v2124_v61  ;;  %vm2132_vm2 = vweird.f32 %v3779_v13 }
 0x774   :  { %3782 = vrcp.f32 %v6102_v35  ;;  %vm2133_vm4 = vmor %vm2131_vm3, %vm2132_vm2  ;;  %v2152_v3 = vand.u32 2147483648, %v6102_v35  ;;  %vm2146_vm6 = vweird.f32 %v6102_v35 }
 0x775   :  { %v2316_v51 = vrot.slane %v2315_v22, 2  ;;  %v2128_v5 = vsub.f32 1.0, %v2127_v40 }
 0x776   :  { %v1998_v42 = vpop.f32.mrf.mxu3  ;;  %v2153_v56 = vor.u32 1.1754944e-38, %v2152_v3 }
 0x777   :  { %v2317_v53 = vadd.f32 %v2316_v51, %v2315_v22  ;;  %v2157_v25 = vadd.f32 %v2113_v19, %v1998_v42  ;;  %v2129_v26 = vmul.f32 %v3779_v13, %v2128_v5  ;;  %v2114_v42 = vld [vmem:[%s6378_s1 + $0x20] sm:$0xff] }
 0x779   :  { %v3781_v46 = vpop.eup %3780  ;;  %v2318_v49 = vrot.slane %v2317_v53, 1  ;;  %v3439_v29 = vmul.f32 -1.442695, %v2157_v25  ;;  %v2130_v9 = vadd.f32 %v3779_v13, %v2129_v26  ;;  %v6143_v25 = vsub.f32 %v6562_v55, %v6113_v50 }
 0x77a   :  { %v6108_v32 = vadd.f32 1.0, %v3781_v46  ;;  %v3783_v44 = vpop.eup %3782  ;;  %v2150_v26 = vand.u32 2147483647, %v6102_v35 }
 0x77b   :  { %v2319_v43 = vadd.f32 %v2318_v49, %v2317_v53  ;;  %3784 = vpow2.f32 %v3439_v29  ;;  %v2134_v41 = vsel %vm2133_vm4, %v3779_v13, %v2130_v9  ;;  %v2142_v6 = vmul.f32 %v3783_v44, %v6102_v35 }
 0x77c   :  { %3786 = vrcp.f32 %v6108_v32  ;;  %v2139_v2 = vsel %vm2136_vm5, %v2138_v14, %v2134_v41  ;;  %vm2147_vm7 = vweird.f32 %v3783_v44  ;;  %v2175_v49 = vand.u32 2147483647, %v6108_v32 }
 0x77d   :  { %v2334_v7 = vmul.f32 %v5612_v0, %v2319_v43  ;;  %v2143_v61 = vsub.f32 1.0, %v2142_v6  ;;  %v2177_v29 = vand.u32 2147483648, %v6108_v32  ;;  %vm2148_vm9 = vmor %vm2146_vm6, %vm2147_vm7  ;;  %v6568_v6 = vld [vmem:[#allocation4_spill] sm:$0xff]  ;;  %vm2151_vm10 = vcmp.eq.f32.partialorder %v2150_v26, 8.507059e+37 }
 0x77e   :  { %v2001_v47 = vpop.f32.mrf.mxu3  ;;  %vm2171_vm11 = vweird.f32 %v6108_v32  ;;  %vm2176_vm13 = vcmp.eq.f32.partialorder %v2175_v49, 8.507059e+37 }
 0x77f   :  { %v6117_v15 = vsub.f32 %v6093_v36, %v2334_v7  ;;  %v2196_v10 = vadd.f32 %v2001_v47, %v6567_v23  ;;  %v6121_v24 = vsub.f32 %v6091_v31, %v2334_v7  ;;  %v2144_v19 = vmul.f32 %v3783_v44, %v2143_v61 }
 0x780   :  { %v6131_v51 = vsub.f32 %v6565_v30, %v2334_v7  ;;  %v6151_v18 = vsub.f32 %v6566_v16, %v2334_v7  ;;  %v2384_v61 = vmul.f32 %v6143_v25, %v6143_v25  ;;  %v2115_v7 = vld [vmem:[%s6378_s1 + $0x28] sm:$0xff] }
 0x781   :  { %v3785_v38 = vpop.eup %3784  ;;  %v2198_v40 = vmul.f32 %v2196_v10, %v2139_v2  ;;  %v2396_v5 = vmul.f32 %v6117_v15, %v6117_v15  ;;  %v2395_v53 = vmul.f32 %v6121_v24, %v6121_v24  ;;  %v2145_v52 = vadd.f32 %v3783_v44, %v2144_v19 }
 0x782   :  { %v3787_v13 = vpop.eup %3786  ;;  %v6128_v22 = vadd.f32 1.0, %v3785_v38  ;;  %v2397_v47 = vmul.f32 %v6131_v51, %v6131_v51  ;;  %v2383_v10 = vmul.f32 %v6126_v45, %v6126_v45  ;;  %v2178_v19 = vor.u32 1.1754944e-38, %v2177_v29 }
 0x783   :  { %v2167_v27 = vmul.f32 %v3787_v13, %v6108_v32  ;;  %v2200_v9 = vadd.f32 %v2198_v40, %v2114_v42  ;;  %vm2172_vm8 = vweird.f32 %v3787_v13  ;;  %v2462_v14 = vadd.f32 %v2396_v5, %v2395_v53 }
 0x784   :  { %3788 = vrcp.f32 %v6128_v22  ;;  %v2149_v23 = vsel %vm2148_vm9, %v3783_v44, %v2145_v52  ;;  %vm2173_vm12 = vmor %vm2171_vm11, %vm2172_vm8  ;;  %v2398_v5 = vmul.f32 %v6151_v18, %v6151_v18  ;;  %v2192_v29 = vand.u32 2147483648, %v6128_v22 }
 0x785   :  { %v2168_v46 = vsub.f32 1.0, %v2167_v27  ;;  %v2154_v2 = vsel %vm2151_vm10, %v2153_v56, %v2149_v23  ;;  %v2463_v3 = vadd.f32 %v2462_v14, %v2397_v47  ;;  %3790 = vtanh.f32 %v2200_v9 }
 0x786   :  { %v2004_v43 = vpop.f32.mrf.mxu3  ;;  %v2435_v52 = vadd.f32 %v2384_v61, %v2383_v10  ;;  %v2190_v49 = vand.u32 2147483647, %v6128_v22  ;;  %vm2186_vm15 = vweird.f32 %v6128_v22  ;;  %v2193_v10 = vor.u32 1.1754944e-38, %v2192_v29 }
 0x787   :  { %v2169_v41 = vmul.f32 %v3787_v13, %v2168_v46  ;;  %v2197_v35 = vadd.f32 %v2004_v43, %v6568_v6  ;;  %v2464_v26 = vadd.f32 %v2463_v3, %v2398_v5  ;;  %v6169_v46 = vsub.f32 %v6563_v59, %v6113_v50 }
 0x788   :  { %v6175_v6 = vsub.f32 %v6564_v8, %v6113_v50  ;;  %vm2191_vm2 = vcmp.eq.f32.partialorder %v2190_v49, 8.507059e+37 }
 0x789   :  { %v2170_v38 = vadd.f32 %v3787_v13, %v2169_v41  ;;  %v2199_v44 = vmul.f32 %v2197_v35, %v2154_v2  ;;  %v2465_v9 = vrot.slane %v2464_v26, 4  ;;  %v2385_v35 = vmul.f32 %v6169_v46, %v6169_v46 }
 0x78a   :  { %v3789_v40 = vpop.eup %3788  ;;  %v2386_v50 = vmul.f32 %v6175_v6, %v6175_v6 }
 0x78b   :  { %v2182_v27 = vmul.f32 %v3789_v40, %v6128_v22  ;;  %v2174_v42 = vsel %vm2173_vm12, %v3787_v13, %v2170_v38  ;;  %v2201_v32 = vadd.f32 %v2199_v44, %v2115_v7  ;;  %vm2187_vm14 = vweird.f32 %v3789_v40  ;;  %v3791_v41 = vpop.eup %3790 }
 0x78c   :  { %v2179_v53 = vsel %vm2176_vm13, %v2178_v19, %v2174_v42  ;;  %v2466_v13 = vadd.f32 %v2465_v9, %v2464_v26  ;;  %vm2188_vm1 = vmor %vm2186_vm15, %vm2187_vm14  ;;  %v2436_v38 = vadd.f32 %v2435_v52, %v2385_v35  ;;  %v6570_v26 = vld [vmem:[#allocation9_spill] sm:$0xff]  ;;  %vm3058_vm12 = vcmask 1042434  }
 0x78d   :  { %v2183_v56 = vsub.f32 1.0, %v2182_v27  ;;  %v2204_v43 = vsub.f32 1.0, %v2179_v53  ;;  %3792 = vtanh.f32 %v2201_v32  ;;  %v2208_v7 = vmul.f32 %v2179_v53, %v5921_v12  ;;  %v6569_v32 = vld [vmem:[#allocation10_spill] sm:$0xff] }
 0x78e   :  { %v2467_v61 = vrot.slane %v2466_v13, 2  ;;  %v2437_v22 = vadd.f32 %v2436_v38, %v2386_v50  ;;  %vm3061_vm13 = vcmask 1043459   ;;  %vm3064_vm14 = vcmask 1044484  }
 0x78f   :  { %v2184_v47 = vmul.f32 %v3789_v40, %v2183_v56  ;;  %v2206_v23 = vmul.f32 %v3791_v41, %v2204_v43  ;;  %v2248_v56 = vadd.f32 %v6570_v26, %v6569_v32  ;;  %vm3067_vm15 = vcmask 1045509  }
 0x790   :  { %v2468_v19 = vadd.f32 %v2467_v61, %v2466_v13 }
 0x791   :  { %v2185_v14 = vadd.f32 %v3789_v40, %v2184_v47  ;;  %v6183_v44 = vadd.f32 %v2208_v7, %v2206_v23  ;;  %v2438_v47 = vrot.slane %v2437_v22, 4 }
 0x792   :  { %v2469_v42 = vrot.slane %v2468_v19, 1 }
 0x793   :  { %v2189_v2 = vsel %vm2188_vm1, %v3789_v40, %v2185_v14  ;;  %v3793_v27 = vpop.eup %3792  ;;  %v2249_v40 = vadd.f32 %v2248_v56, %v6183_v44  ;;  %v2439_v35 = vadd.f32 %v2438_v47, %v2437_v22  ;;  %vm3070_vm1 = vcmask 1046534  }
 0x794   :  { %v2194_v3 = vsel %vm2191_vm2, %v2193_v10, %v2189_v2  ;;  %v2470_v9 = vadd.f32 %v2469_v42, %v2468_v19  ;;  %vm3073_vm2 = vcmask 1047559  }
 0x795   :  { %v2205_v5 = vsub.f32 1.0, %v2194_v3  ;;  %v2209_v29 = vmul.f32 %v2194_v3, %v5929_v48  ;;  %v2440_v10 = vrot.slane %v2439_v35, 2 }
 0x796   :  { %v2478_v52 = vmul.f32 %v2470_v9, %v5612_v0 }
 0x797   :  { %v2207_v43 = vmul.f32 %v3793_v27, %v2205_v5  ;;  %v2441_v3 = vadd.f32 %v2440_v10, %v2439_v35 }
 0x798   :  { %v2486_v41 = vadd.f32 1e-05, %v2478_v52 }
 0x799   :  { %v6189_v53 = vadd.f32 %v2209_v29, %v2207_v43  ;;  %v2442_v42 = vrot.slane %v2441_v3, 1 }
 0x79a   :  { %3794 = vrsqrt.f32 %v2486_v41  ;;  %vm2563_vm4 = vweird.f32 %v2486_v41 }
 0x79b   :  { %v2250_v49 = vadd.f32 %v2249_v40, %v6189_v53 }
 0x79d   :  { %v2251_v13 = vrot.slane %v2250_v49, 4 }
 0x79f   :  { %v2252_v14 = vadd.f32 %v2251_v13, %v2250_v49 }
 0x7a0   :  { %v3795_v38 = vpop.eup %3794 }
 0x7a1   :  { %v2253_v23 = vrot.slane %v2252_v14, 2  ;;  %v2558_v2 = vmul.f32 %v3795_v38, %v2486_v41  ;;  %vm2564_vm3 = vweird.f32 %v3795_v38 }
 0x7a2   :  { %vm2565_vm5 = vmor %vm2563_vm4, %vm2564_vm3 }
 0x7a3   :  { %v2254_v61 = vadd.f32 %v2253_v23, %v2252_v14  ;;  %v2559_v19 = vmul.f32 %v3795_v38, %v2558_v2  ;;  %v2443_v14 = vadd.f32 %v2442_v42, %v2441_v3 }
 0x7a5   :  { %v2255_v7 = vrot.slane %v2254_v61, 1  ;;  %v2560_v5 = vmul.f32 0.5, %v2559_v19 }
 0x7a7   :  { %v2256_v50 = vadd.f32 %v2255_v7, %v2254_v61  ;;  %v2561_v56 = vsub.f32 1.5, %v2560_v5  ;;  %v2475_v5 = vmul.f32 %v2443_v14, %v5612_v0 }
 0x7a9   :  { %v2327_v27 = vmul.f32 %v5612_v0, %v2256_v50  ;;  %v2562_v9 = vmul.f32 %v3795_v38, %v2561_v56  ;;  %v2483_v56 = vadd.f32 1e-05, %v2475_v5 }
 0x7ab   :  { %v6195_v43 = vsub.f32 %v6569_v32, %v2327_v27  ;;  %v6198_v22 = vsub.f32 %v6570_v26, %v2327_v27  ;;  %v6201_v29 = vsub.f32 %v6183_v44, %v2327_v27  ;;  %v2338_v40 = vsub.f32 %v6189_v53, %v2327_v27 }
 0x7ac   :  { %v2566_v49 = vsel %vm2565_vm5, %v3795_v38, %v2562_v9  ;;  %3796 = vrsqrt.f32 %v2483_v56  ;;  %vm2533_vm10 = vweird.f32 %v2483_v56 }
 0x7ad   :  { %v2367_v52 = vmul.f32 %v6195_v43, %v6195_v43  ;;  %v2368_v47 = vmul.f32 %v6198_v22, %v6198_v22  ;;  %v2369_v13 = vmul.f32 %v6201_v29, %v6201_v29  ;;  %v2598_v23 = vmul.f32 %v2566_v49, %v6151_v18 }
 0x7ae   :  { %v2597_v41 = vmul.f32 %v2566_v49, %v6131_v51  ;;  %v2596_v10 = vmul.f32 %v2566_v49, %v6117_v15  ;;  %v2370_v61 = vmul.f32 %v2338_v40, %v2338_v40  ;;  %v2595_v50 = vmul.f32 %v2566_v49, %v6121_v24  ;;  %v6226_v49 = vld [vmem:[%s6379_s6] sm:$0xff] }
 0x7af   :  { %v2399_v35 = vadd.f32 %v2368_v47, %v2367_v52  ;;  %v2654_v2 = vmul.f32 %v5636_v58, %v2598_v23 }
 0x7b0   :  { %v2653_v19 = vmul.f32 %v5652_v60, %v2597_v41  ;;  %v2652_v3 = vmul.f32 %v5663_v62, %v2596_v10  ;;  %v2651_v15 = vmul.f32 %v5678_v11, %v2595_v50 }
 0x7b1   :  { %v2400_v7 = vadd.f32 %v2399_v35, %v2369_v13  ;;  %v2710_v27 = vadd.f32 %v5654_v17, %v2654_v2 }
 0x7b2   :  { %v2709_v51 = vadd.f32 %v5665_v20, %v2653_v19  ;;  %v2708_v9 = vadd.f32 %v5682_v37, %v2652_v3  ;;  %v2707_v24 = vadd.f32 %v5685_v57, %v2651_v15  ;;  %v3797_v14 = vpop.eup %3796 }
 0x7b3   :  { %v2401_v38 = vadd.f32 %v2400_v7, %v2370_v61  ;;  %2904 = vmatpush.msrb.mxu3 %v2710_v27  ;;  %v2528_v10 = vmul.f32 %v3797_v14, %v2483_v56  ;;  %v3877_v61 = vld [vmem:[%s6379_s6 + $0x8] sm:$0xff]  ;;  %vm2534_vm8 = vweird.f32 %v3797_v14 }
 0x7b4   :  { %vm2535_vm11 = vmor %vm2533_vm10, %vm2534_vm8 }
 0x7b5   :  { %v2402_v18 = vrot.slane %v2401_v38, 4  ;;  %2905 = vmatpush.msrb.mxu3 %v2709_v51  ;;  %v2529_v7 = vmul.f32 %v3797_v14, %v2528_v10 }
 0x7b7   :  { %v2403_v42 = vadd.f32 %v2402_v18, %v2401_v38  ;;  %2906 = vmatpush.msrb.mxu3 %v2708_v9  ;;  %v2530_v50 = vmul.f32 0.5, %v2529_v7 }
 0x7b9   :  { %v2404_v52 = vrot.slane %v2403_v42, 2  ;;  %2907 = vmatpush.msrb.mxu3 %v2707_v24  ;;  %v2531_v27 = vsub.f32 1.5, %v2530_v50 }
 0x7ba   :  { %3454 = vmatmul.msk.f32.vlgmr.msrb.gmra.mxu3 %vm70_vm0, %v6226_v49 }
 0x7bb   :  { %v2405_v47 = vadd.f32 %v2404_v52, %v2403_v42 }
 0x7bd   :  { %v2406_v13 = vrot.slane %v2405_v47, 1 }
 0x7bf   :  { %v2407_v35 = vadd.f32 %v2406_v13, %v2405_v47 }
 0x7c1   :  { %v2471_v23 = vmul.f32 %v2407_v35, %v5612_v0  ;;  %v2532_v0 = vmul.f32 %v3797_v14, %v2531_v27  ;;  %v6264_v27 = vpop.permute.xlu0 %2717 }
 0x7c2   :  { %3455 = vmatmul.msk.f32.gmra.mxu3 %vm70_vm0, %v3877_v61 }
 0x7c3   :  { %v2479_v41 = vadd.f32 1e-05, %v2471_v23  ;;  %v2536_v52 = vsel %vm2535_vm11, %v3797_v14, %v2532_v0 }
 0x7c5   :  { %3798 = vrsqrt.f32 %v2479_v41  ;;  %vm2493_vm7 = vweird.f32 %v2479_v41 }
 0x7cb   :  { %v3799_v2 = vpop.eup %3798 }
 0x7cc   :  { %v2488_v19 = vmul.f32 %v3799_v2, %v2479_v41  ;;  %vm2494_vm6 = vweird.f32 %v3799_v2  ;;  %v2586_v41 = vmul.f32 %v2536_v52, %v6175_v6  ;;  %v2583_v6 = vmul.f32 %v2536_v52, %v6126_v45  ;;  %v2817_v45 = vpop.f32.mrf.mxu3 }
 0x7cd   :  { %vm2495_vm9 = vmor %vm2493_vm7, %vm2494_vm6 }
 0x7ce   :  { %v2489_v38 = vmul.f32 %v3799_v2, %v2488_v19  ;;  %v2642_v14 = vmul.f32 %v5636_v58, %v2586_v41  ;;  %v2818_v41 = vadd.f32 %v2817_v45, %v6264_v27 }
 0x7d0   :  { %v2490_v5 = vmul.f32 0.5, %v2489_v38 }
 0x7d2   :  { %v2491_v3 = vsub.f32 1.5, %v2490_v5 }
 0x7d4   :  { %v2492_v18 = vmul.f32 %v3799_v2, %v2491_v3 }
 0x7d6   :  { %v2496_v51 = vsel %vm2495_vm9, %v3799_v2, %v2492_v18  ;;  %v2698_v2 = vadd.f32 %v5654_v17, %v2642_v14 }
 0x7d7   :  { %v2570_v15 = vmul.f32 %v2496_v51, %v2338_v40  ;;  %v2569_v42 = vmul.f32 %v2496_v51, %v6201_v29  ;;  %v2568_v9 = vmul.f32 %v2496_v51, %v6198_v22  ;;  %v2567_v13 = vmul.f32 %v2496_v51, %v6195_v43 }
 0x7d8   :  { %v2585_v22 = vmul.f32 %v2536_v52, %v6169_v46  ;;  %v2584_v43 = vmul.f32 %v2536_v52, %v6143_v25  ;;  %v2639_v25 = vmul.f32 %v5678_v11, %v2583_v6 }
 0x7d9   :  { %v2626_v24 = vmul.f32 %v5636_v58, %v2570_v15  ;;  %v2625_v47 = vmul.f32 %v5652_v60, %v2569_v42  ;;  %v2624_v23 = vmul.f32 %v5663_v62, %v2568_v9  ;;  %v2623_v29 = vmul.f32 %v5678_v11, %v2567_v13  ;;  %v2820_v11 = vpop.f32.mrf.mxu3 }
 0x7da   :  { %v2641_v7 = vmul.f32 %v5652_v60, %v2585_v22  ;;  %v2640_v19 = vmul.f32 %v5663_v62, %v2584_v43  ;;  %v2695_v60 = vadd.f32 %v5685_v57, %v2639_v25  ;;  %v2771_v62 = vpop.f32.mrf.mxu1 }
 0x7db   :  { %v2682_v35 = vadd.f32 %v5654_v17, %v2626_v24  ;;  %v2681_v40 = vadd.f32 %v5665_v20, %v2625_v47  ;;  %v2680_v56 = vadd.f32 %v5682_v37, %v2624_v23  ;;  %v2679_v10 = vadd.f32 %v5685_v57, %v2623_v29  ;;  %v2794_v17 = vpop.f32.mrf.mxu2  ;;  %v6266_v57 = vpop.permute.xlu1 %2722 }
 0x7dc   :  { %v2697_v58 = vadd.f32 %v5665_v20, %v2641_v7  ;;  %v2696_v46 = vadd.f32 %v5682_v37, %v2640_v19  ;;  %v2795_v3 = vadd.f32 %v2794_v17, %v6264_v27  ;;  %v2821_v13 = vadd.f32 %v2820_v11, %v6266_v57 }
 0x7dd   :  { %2743 = vmatpush.msra.mxu0 %v2682_v35  ;;  %v2772_v22 = vadd.f32 %v2771_v62, %v6264_v27 }
 0x7de   :  { %3800 = vtanh.f32 %v2795_v3 }
 0x7df   :  { %2744 = vmatpush.msra.mxu0 %v2681_v40 }
 0x7e1   :  { %2745 = vmatpush.msra.mxu0 %v2680_v56 }
 0x7e2   :  { %v2774_v50 = vpop.f32.mrf.mxu1 }
 0x7e3   :  { %2746 = vmatpush.msra.mxu0 %v2679_v10  ;;  %v2797_v20 = vpop.f32.mrf.mxu2  ;;  %v2775_v15 = vadd.f32 %v2774_v50, %v6266_v57 }
 0x7e4   :  { %3440 = vmatmul.msk.f32.vlgmr.msra.gmra.mxu0 %vm70_vm0, %v6226_v49  ;;  %v3801_v23 = vpop.eup %3800 }
 0x7e5   :  { %2835 = vmatpush.msrb.mxu0 %v2698_v2 }
 0x7e7   :  { %2836 = vmatpush.msrb.mxu0 %v2697_v58 }
 0x7e9   :  { %2837 = vmatpush.msrb.mxu0 %v2696_v46  ;;  %v2941_v46 = vpop.permute.xlu0 %2940 }
 0x7ea   :  { %v2863_v5 = vpop.f32.mrf.mxu1 }
 0x7eb   :  { %2838 = vmatpush.msrb.mxu0 %v2695_v60  ;;  %v2886_v38 = vpop.f32.mrf.mxu2  ;;  %v2864_v52 = vadd.f32 %v2863_v5, %v6264_v27 }
 0x7ec   :  { %3441 = vmatmul.msk.f32.gmra.mxu0 %vm70_vm0, %v3877_v61 }
 0x7f2   :  { %v2866_v51 = vpop.f32.mrf.mxu1 }
 0x7f3   :  { %v2889_v18 = vpop.f32.mrf.mxu2  ;;  %v2867_v24 = vadd.f32 %v2866_v51, %v6266_v57 }
 0x7f4   :  { %3448 = vmatmul.msk.f32.vlgmr.msrb.gmra.mxu0 %vm70_vm0, %v6226_v49  ;;  %v2798_v49 = vadd.f32 %v2797_v20, %v6266_v57  ;;  %v2890_v0 = vadd.f32 %v2889_v18, %v6266_v57  ;;  %v2936_v20 = vpop.permute.xlu2 %2935 }
 0x7f6   :  { %3802 = vtanh.f32 %v2798_v49 }
 0x7fc   :  { %3449 = vmatmul.msk.f32.gmra.mxu0 %vm70_vm0, %v3877_v61  ;;  %v2887_v61 = vadd.f32 %v2886_v38, %v6264_v27  ;;  %v3803_v40 = vpop.eup %3802  ;;  %vm3055_vm0 = vcmask 1041409  }
 0x7fd   :  { %v2948_v18 = vmul.f32 %v3803_v40, %v2941_v46 }
 0x7fe   :  { %3804 = vtanh.f32 %v2887_v61 }
 0x7ff   :  { %3806 = vtanh.f32 %v2890_v0 }
 0x800   :  { %3808 = vtanh.f32 %v2775_v15 }
 0x801   :  { %3810 = vtanh.f32 %v2864_v52 }
 0x802   :  { %3812 = vtanh.f32 %v2867_v24 }
 0x804   :  { %v3805_v29 = vpop.eup %3804 }
 0x805   :  { %v3807_v14 = vpop.eup %3806  ;;  %v2955_v49 = vmul.f32 %v3805_v29, %v2936_v20 }
 0x806   :  { %v3809_v7 = vpop.eup %3808  ;;  %v2956_v50 = vmul.f32 %v3807_v14, %v2941_v46 }
 0x807   :  { %v3811_v6 = vpop.eup %3810  ;;  %v2946_v61 = vmul.f32 %v3809_v7, %v2941_v46 }
 0x808   :  { %v3813_v2 = vpop.eup %3812  ;;  %v2953_v0 = vmul.f32 %v3811_v6, %v2936_v20  ;;  %v3001_v52 = vadd.f32 %v2956_v50, %v2955_v49 }
 0x809   :  { %v2954_v38 = vmul.f32 %v3813_v2, %v2941_v46 }
 0x80a   :  { %v3002_v40 = vrot.slane %v3001_v52, 4 }
 0x83d   :  { %v2909_v37 = vpop.f32.mrf.mxu3 }
 0x83e   :  { %v2910_v35 = vadd.f32 %v2909_v37, %v6264_v27 }
 0x845   :  { %v2912_v42 = vpop.f32.mrf.mxu3 }
 0x846   :  { %v2913_v47 = vadd.f32 %v2912_v42, %v6266_v57 }
 0x848   :  { %3814 = vtanh.f32 %v2913_v47 }
 0x849   :  { %3816 = vtanh.f32 %v2821_v13  ;;  %v2994_v13 = vadd.f32 %v2954_v38, %v2953_v0 }
 0x84a   :  { %3818 = vtanh.f32 %v2910_v35 }
 0x84b   :  { %3820 = vtanh.f32 %v2818_v41  ;;  %v2995_v7 = vrot.slane %v2994_v13, 4 }
 0x84e   :  { %v3815_v19 = vpop.eup %3814 }
 0x84f   :  { %v3817_v58 = vpop.eup %3816  ;;  %v2958_v17 = vmul.f32 %v3815_v19, %v2941_v46 }
 0x850   :  { %v3819_v25 = vpop.eup %3818  ;;  %v2950_v5 = vmul.f32 %v3817_v58, %v2941_v46  ;;  %v3003_v58 = vadd.f32 %v3002_v40, %v3001_v52 }
 0x851   :  { %v3821_v60 = vpop.eup %3820  ;;  %v2957_v37 = vmul.f32 %v3819_v25, %v2936_v20  ;;  %v2996_v25 = vadd.f32 %v2995_v7, %v2994_v13 }
 0x852   :  { %v2949_v51 = vmul.f32 %v3821_v60, %v2936_v20 }
 0x853   :  { %v3008_v15 = vadd.f32 %v2958_v17, %v2957_v37  ;;  %v2997_v37 = vrot.slane %v2996_v25, 2 }
 0x854   :  { %v2980_v35 = vadd.f32 %v2950_v5, %v2949_v51  ;;  %v3004_v5 = vrot.slane %v3003_v58, 2 }
 0x855   :  { %v3009_v14 = vrot.slane %v3008_v15, 4 }
 0x856   :  { %v2981_v6 = vrot.slane %v2980_v35, 4 }
 0x857   :  { %v3010_v19 = vadd.f32 %v3009_v14, %v3008_v15 }
 0x858   :  { %v2982_v60 = vadd.f32 %v2981_v6, %v2980_v35 }
 0x859   :  { %v3011_v50 = vrot.slane %v3010_v19, 2 }
 0x85b   :  { %v3012_v0 = vadd.f32 %v3011_v50, %v3010_v19 }
 0x85d   :  { %v3013_v35 = vrot.slane %v3012_v0, 1 }
 0x85f   :  { %v3014_v40 = vadd.f32 %v3013_v35, %v3012_v0 }
 0x861   :  { %v2748_v9 = vpop.f32.mrf.mxu0 }
 0x862   :  { %v2749_v43 = vadd.f32 %v2748_v9, %v6264_v27  ;;  %v2947_v9 = vmul.f32 %v3801_v23, %v2936_v20 }
 0x869   :  { %v2751_v56 = vpop.f32.mrf.mxu0 }
 0x86a   :  { %v2752_v10 = vadd.f32 %v2751_v56, %v6266_v57 }
 0x86c   :  { %3822 = vtanh.f32 %v2752_v10 }
 0x86d   :  { %3824 = vtanh.f32 %v2772_v22  ;;  %v2973_v22 = vadd.f32 %v2948_v18, %v2947_v9  ;;  %v2998_v9 = vadd.f32 %v2997_v37, %v2996_v25 }
 0x86e   :  { %3826 = vtanh.f32 %v2749_v43 }
 0x86f   :  { %v2974_v2 = vrot.slane %v2973_v22, 4  ;;  %v2999_v14 = vrot.slane %v2998_v9, 1 }
 0x871   :  { %v2840_v62 = vpop.f32.mrf.mxu0 }
 0x872   :  { %v3823_v45 = vpop.eup %3822  ;;  %v2841_v24 = vadd.f32 %v2840_v62, %v6264_v27  ;;  %v2975_v62 = vadd.f32 %v2974_v2, %v2973_v22  ;;  %v3000_v2 = vadd.f32 %v2999_v14, %v2998_v9 }
 0x873   :  { %v3825_v11 = vpop.eup %3824  ;;  %v2944_v42 = vmul.f32 %v3823_v45, %v2941_v46 }
 0x874   :  { %v3827_v3 = vpop.eup %3826  ;;  %v2945_v47 = vmul.f32 %v3825_v11, %v2936_v20  ;;  %3828 = vtanh.f32 %v2841_v24  ;;  %v2976_v49 = vrot.slane %v2975_v62, 2 }
 0x875   :  { %v2943_v41 = vmul.f32 %v3827_v3, %v2936_v20  ;;  %v2983_v3 = vrot.slane %v2982_v60, 2 }
 0x876   :  { %v2966_v56 = vadd.f32 %v2946_v61, %v2945_v47  ;;  %v2977_v47 = vadd.f32 %v2976_v49, %v2975_v62 }
 0x877   :  { %v2959_v43 = vadd.f32 %v2944_v42, %v2943_v41  ;;  %v3005_v42 = vadd.f32 %v3004_v5, %v3003_v58  ;;  %v2984_v52 = vadd.f32 %v2983_v3, %v2982_v60 }
 0x878   :  { %v2967_v23 = vrot.slane %v2966_v56, 4 }
 0x879   :  { %v2843_v10 = vpop.f32.mrf.mxu0  ;;  %v2960_v27 = vrot.slane %v2959_v43, 4 }
 0x87a   :  { %v2844_v29 = vadd.f32 %v2843_v10, %v6266_v57  ;;  %v3829_v17 = vpop.eup %3828  ;;  %v2968_v45 = vadd.f32 %v2967_v23, %v2966_v56  ;;  %v3006_v56 = vrot.slane %v3005_v42, 1 }
 0x87b   :  { %v2961_v11 = vadd.f32 %v2960_v27, %v2959_v43  ;;  %v2951_v57 = vmul.f32 %v3829_v17, %v2936_v20  ;;  %v2985_v43 = vrot.slane %v2984_v52, 1  ;;  %v2978_v20 = vrot.slane %v2977_v47, 1 }
 0x87c   :  { %3830 = vtanh.f32 %v2844_v29  ;;  %v2969_v61 = vrot.slane %v2968_v45, 2  ;;  %v3007_v6 = vadd.f32 %v3006_v56, %v3005_v42 }
 0x87d   :  { %v2962_v51 = vrot.slane %v2961_v11, 2  ;;  %v2986_v23 = vadd.f32 %v2985_v43, %v2984_v52  ;;  %v2979_v27 = vadd.f32 %v2978_v20, %v2977_v47 }
 0x87e   :  { %v2970_v13 = vadd.f32 %v2969_v61, %v2968_v45 }
 0x87f   :  { %v2963_v41 = vadd.f32 %v2962_v51, %v2961_v11  ;;  %v3018_v25 = vmax.f32 %v2986_v23, %v3014_v40  ;;  %v3017_v62 = vmax.f32 %v2979_v27, %v3007_v6 }
 0x881   :  { %v2964_v29 = vrot.slane %v2963_v41, 1  ;;  %v3020_v11 = vmax.f32 %v3017_v62, %v3018_v25 }
 0x882   :  { %v3831_v38 = vpop.eup %3830 }
 0x883   :  { %v2952_v18 = vmul.f32 %v3831_v38, %v2941_v46  ;;  %v2971_v46 = vrot.slane %v2970_v13, 1  ;;  %v2965_v60 = vadd.f32 %v2964_v29, %v2963_v41 }
 0x885   :  { %v2987_v15 = vadd.f32 %v2952_v18, %v2951_v57  ;;  %v2972_v58 = vadd.f32 %v2971_v46, %v2970_v13 }
 0x887   :  { %v2988_v24 = vrot.slane %v2987_v15, 4  ;;  %v3016_v45 = vmax.f32 %v2972_v58, %v3000_v2 }
 0x889   :  { %v2989_v22 = vadd.f32 %v2988_v24, %v2987_v15 }
 0x88b   :  { %v2990_v10 = vrot.slane %v2989_v22, 2 }
 0x88d   :  { %v2991_v7 = vadd.f32 %v2990_v10, %v2989_v22 }
 0x88f   :  { %v2992_v19 = vrot.slane %v2991_v7, 1 }
 0x891   :  { %v2993_v17 = vadd.f32 %v2992_v19, %v2991_v7 }
 0x893   :  { %v3015_v50 = vmax.f32 %v2965_v60, %v2993_v17 }
 0x895   :  { %v3019_v38 = vmax.f32 %v3015_v50, %v3016_v45 }
 0x897   :  { %v3021_v5 = vmax.f32 %v3019_v38, %v3020_v11 }
 0x899   :  { %v3022_v37 = vsub.f32 %v2965_v60, %v3021_v5  ;;  %v3023_v3 = vsub.f32 %v2972_v58, %v3021_v5  ;;  %v3024_v57 = vsub.f32 %v2979_v27, %v3021_v5  ;;  %v3025_v18 = vsub.f32 %v2986_v23, %v3021_v5 }
 0x89a   :  { %v3026_v49 = vsub.f32 %v2993_v17, %v3021_v5  ;;  %v3027_v61 = vsub.f32 %v3000_v2, %v3021_v5  ;;  %v3028_v0 = vsub.f32 %v3007_v6, %v3021_v5  ;;  %v3029_v9 = vsub.f32 %v3014_v40, %v3021_v5 }
 0x89b   :  { %v3030_v51 = vmul.f32 1.442695, %v3022_v37  ;;  %v3032_v15 = vmul.f32 1.442695, %v3023_v3  ;;  %v3034_v42 = vmul.f32 1.442695, %v3024_v57 }
 0x89c   :  { %v3036_v52 = vmul.f32 1.442695, %v3025_v18  ;;  %v3038_v24 = vmul.f32 1.442695, %v3026_v49  ;;  %v3040_v47 = vmul.f32 1.442695, %v3027_v61 }
 0x89d   :  { %3832 = vpow2.f32 %v3030_v51  ;;  %v3042_v13 = vmul.f32 1.442695, %v3028_v0  ;;  %v3044_v35 = vmul.f32 1.442695, %v3029_v9 }
 0x89e   :  { %3834 = vpow2.f32 %v3032_v15 }
 0x89f   :  { %3836 = vpow2.f32 %v3034_v42 }
 0x8a0   :  { %3838 = vpow2.f32 %v3036_v52 }
 0x8a1   :  { %3840 = vpow2.f32 %v3038_v24 }
 0x8a2   :  { %3842 = vpow2.f32 %v3040_v47 }
 0x8a3   :  { %v3833_v41 = vpop.eup %3832  ;;  %3844 = vpow2.f32 %v3042_v13 }
 0x8a4   :  { %v3835_v22 = vpop.eup %3834  ;;  %3846 = vpow2.f32 %v3044_v35 }
 0x8a5   :  { %v3837_v56 = vpop.eup %3836  ;;  %v3054_v14 = vrot.slane %v3835_v22, 7 }
 0x8a6   :  { %v3839_v43 = vpop.eup %3838  ;;  %v3057_v10 = vrot.slane %v3837_v56, 6 }
 0x8a7   :  { %v3841_v20 = vpop.eup %3840  ;;  %v3056_v46 = vsel %vm3055_vm0, %v3054_v14, %v3833_v41  ;;  %v3060_v40 = vrot.slane %v3839_v43, 5 }
 0x8a8   :  { %v3843_v29 = vpop.eup %3842  ;;  %v3059_v7 = vsel %vm3058_vm12, %v3057_v10, %v3056_v46  ;;  %v3063_v6 = vrot.slane %v3841_v20, 4 }
 0x8a9   :  { %v3845_v2 = vpop.eup %3844  ;;  %v3062_v23 = vsel %vm3061_vm13, %v3060_v40, %v3059_v7  ;;  %v3066_v19 = vrot.slane %v3843_v29, 3 }
 0x8aa   :  { %v3847_v27 = vpop.eup %3846  ;;  %v3065_v58 = vsel %vm3064_vm14, %v3063_v6, %v3062_v23  ;;  %v3069_v25 = vrot.slane %v3845_v2, 2 }
 0x8ab   :  { %v3068_v60 = vsel %vm3067_vm15, %v3066_v19, %v3065_v58  ;;  %v3072_v17 = vrot.slane %v3847_v27, 1  ;;  %v6572_v19 = vld [vmem:[#allocation13_spill] sm:$0xff]  ;;  %v6573_v58 = vld [vmem:[#allocation18_spill] sm:$0xff] }
 0x8ac   :  { %v3071_v62 = vsel %vm3070_vm1, %v3069_v25, %v3068_v60  ;;  %v6574_v25 = vld [vmem:[#allocation17_spill] sm:$0xff]  ;;  %v6575_v60 = vld [vmem:[#allocation20_spill] sm:$0xff] }
 0x8ad   :  { %v3074_v45 = vsel %vm3073_vm2, %v3072_v17, %v3071_v62  ;;  %v6576_v17 = vld [vmem:[#allocation19_spill] sm:$0xff] }
 0x8ae   :  { %v3076_v50 = vrot.slane %v3074_v45, 4 }
 0x8b0   :  { %v3077_v11 = vadd.f32 %v3076_v50, %v3074_v45 }
 0x8b2   :  { %v3078_v38 = vrot.slane %v3077_v11, 2 }
 0x8b4   :  { %v3079_v5 = vadd.f32 %v3078_v38, %v3077_v11  ;;  %v6577_v38 = vld [vmem:[#allocation24_spill] sm:$0xff] }
 0x8b6   :  { %v3080_v37 = vrot.slane %v3079_v5, 1 }
 0x8b8   :  { %v3081_v3 = vadd.f32 %v3080_v37, %v3079_v5  ;;  %v6578_v37 = vld [vmem:[#allocation23_spill] sm:$0xff] }
 0x8ba   :  { %3848 = vrcp.f32 %v3081_v3 }
 0x8c0   :  { %v3849_v57 = vpop.eup %3848 }
 0x8c1   :  { %v3083_v18 = vperm.slane %v3849_v57, 0 }
 0x8c3   :  { %v3084_v49 = vmul.f32 %v3833_v41, %v3083_v18  ;;  %v3085_v61 = vmul.f32 %v3835_v22, %v3083_v18  ;;  %v3086_v0 = vmul.f32 %v3837_v56, %v3083_v18  ;;  %v6291_v51 = vmul.f32 %v3839_v43, %v3083_v18 }
 0x8c4   :  { %v6293_v15 = vmul.f32 %v3841_v20, %v3083_v18  ;;  %v6295_v42 = vmul.f32 %v3843_v29, %v3083_v18  ;;  %v6297_v9 = vmul.f32 %v3845_v2, %v3083_v18  ;;  %v6299_v52 = vmul.f32 %v3847_v27, %v3083_v18  ;;  %v6571_v2 = vld [vmem:[#allocation14_spill] sm:$0xff] }
 0x8c5   :  { %v3092_v24 = vperm.slane %v3084_v49, 0  ;;  %v3093_v47 = vperm.slane %v3085_v61, 0  ;;  %v3094_v13 = vperm.slane %v3086_v0, 0  ;;  %v3095_v35 = vperm.slane %v6291_v51, 0 }
 0x8c6   :  { %v3096_v14 = vperm.slane %v6293_v15, 0  ;;  %v3097_v41 = vperm.slane %v6295_v42, 0  ;;  %v3098_v22 = vperm.slane %v6297_v9, 0  ;;  %v6306_v56 = vperm.slane %v6299_v52, 0 }
 0x8c7   :  { %v3100_v43 = vmul.f32 %v3092_v24, %v6569_v32  ;;  %v3101_v10 = vmul.f32 %v3092_v24, %v6570_v26  ;;  %v3102_v20 = vmul.f32 %v3092_v24, %v6183_v44  ;;  %v3103_v46 = vmul.f32 %v3092_v24, %v6189_v53 }
 0x8c8   :  { %v3104_v40 = vmul.f32 %v3093_v47, %v4556_v33  ;;  %v3105_v29 = vmul.f32 %v3093_v47, %v4552_v39  ;;  %v3106_v7 = vmul.f32 %v3093_v47, %v5921_v12  ;;  %v3107_v6 = vmul.f32 %v3093_v47, %v5929_v48 }
 0x8c9   :  { %v3108_v23 = vmul.f32 %v3094_v13, %v6571_v2  ;;  %v3109_v27 = vmul.f32 %v3094_v13, %v6572_v19  ;;  %v3110_v32 = vmul.f32 %v3094_v13, %v5586_v34  ;;  %v3111_v26 = vmul.f32 %v3094_v13, %v5592_v1 }
 0x8ca   :  { %v3112_v44 = vmul.f32 %v3095_v35, %v6573_v58  ;;  %v3113_v53 = vmul.f32 %v3095_v35, %v6574_v25  ;;  %v3114_v33 = vmul.f32 %v3095_v35, %v6575_v60  ;;  %v3115_v39 = vmul.f32 %v3095_v35, %v6576_v17 }
 0x8cb   :  { %v3116_v12 = vmul.f32 %v3096_v14, %v6561_v28  ;;  %v3117_v48 = vmul.f32 %v3096_v14, %v6562_v55  ;;  %v3118_v62 = vmul.f32 %v3096_v14, %v6563_v59  ;;  %v3119_v45 = vmul.f32 %v3096_v14, %v6564_v8 }
 0x8cc   :  { %v3132_v50 = vadd.f32 %v3104_v40, %v3100_v43  ;;  %v3139_v34 = vadd.f32 %v3105_v29, %v3101_v10  ;;  %v3146_v11 = vadd.f32 %v3106_v7, %v3102_v20  ;;  %v3153_v1 = vadd.f32 %v3107_v6, %v3103_v46 }
 0x8cd   :  { %v3120_v5 = vmul.f32 %v3097_v41, %v6577_v38  ;;  %v3121_v3 = vmul.f32 %v3097_v41, %v6578_v37  ;;  %v3172_v57 = vrot.slane %v3085_v61, 7  ;;  %v3174_v18 = vrot.slane %v3086_v0, 6  ;;  %v6579_v61 = vld [vmem:[#allocation12_spill] sm:$0xff] }
 0x8ce   :  { %v3133_v24 = vadd.f32 %v3132_v50, %v3108_v23  ;;  %v3140_v47 = vadd.f32 %v3139_v34, %v3109_v27  ;;  %v3147_v13 = vadd.f32 %v3146_v11, %v3110_v32  ;;  %v3154_v28 = vadd.f32 %v3153_v1, %v3111_v26 }
 0x8cf   :  { %v3122_v55 = vmul.f32 %v3097_v41, %v4820_v54  ;;  %v3123_v59 = vmul.f32 %v3097_v41, %v4816_v63  ;;  %v3124_v8 = vmul.f32 %v3098_v22, %v5799_v21  ;;  %v3173_v35 = vsel %vm3055_vm0, %v3172_v57, %v3084_v49  ;;  %v6580_v41 = vld [vmem:[#allocation11_spill] sm:$0xff] }
 0x8d0   :  { %v3134_v14 = vadd.f32 %v3133_v24, %v3112_v44  ;;  %v3141_v43 = vadd.f32 %v3140_v47, %v3113_v53  ;;  %v3148_v10 = vadd.f32 %v3147_v13, %v3114_v33  ;;  %v3155_v20 = vadd.f32 %v3154_v28, %v3115_v39 }
 0x8d1   :  { %v3125_v46 = vmul.f32 %v3098_v22, %v5797_v4  ;;  %v3126_v0 = vmul.f32 %v3098_v22, %v6579_v61  ;;  %v3175_v40 = vsel %vm3058_vm12, %v3174_v18, %v3173_v35  ;;  %v3176_v29 = vrot.slane %v6291_v51, 5 }
 0x8d2   :  { %v3135_v7 = vadd.f32 %v3134_v14, %v3116_v12  ;;  %v3142_v54 = vadd.f32 %v3141_v43, %v3117_v48  ;;  %v3149_v6 = vadd.f32 %v3148_v10, %v3118_v62  ;;  %v3156_v63 = vadd.f32 %v3155_v20, %v3119_v45 }
 0x8d3   :  { %v3127_v21 = vmul.f32 %v3098_v22, %v6580_v41  ;;  %v3128_v49 = vmul.f32 %v6306_v56, %v6091_v31  ;;  %v3177_v2 = vsel %vm3061_vm13, %v3176_v29, %v3175_v40  ;;  %v3178_v23 = vrot.slane %v6293_v15, 4 }
 0x8d4   :  { %v3136_v4 = vadd.f32 %v3135_v7, %v3120_v5  ;;  %v3143_v19 = vadd.f32 %v3142_v54, %v3121_v3  ;;  %v3150_v27 = vadd.f32 %v3149_v6, %v3122_v55  ;;  %v3157_v32 = vadd.f32 %v3156_v63, %v3123_v59 }
 0x8d5   :  { %v3129_v51 = vmul.f32 %v6306_v56, %v6093_v36  ;;  %v3130_v26 = vmul.f32 %v6306_v56, %v6565_v30  ;;  %v3179_v58 = vsel %vm3064_vm14, %v3178_v23, %v3177_v2  ;;  %v3180_v22 = vrot.slane %v6295_v42, 3 }
 0x8d6   :  { %v3137_v44 = vadd.f32 %v3136_v4, %v3124_v8  ;;  %v3144_v31 = vadd.f32 %v3143_v19, %v3125_v46  ;;  %v3151_v25 = vadd.f32 %v3150_v27, %v3126_v0  ;;  %v3158_v53 = vadd.f32 %v3157_v32, %v3127_v21 }
 0x8d7   :  { %v3131_v15 = vmul.f32 %v6306_v56, %v6566_v16  ;;  %v3181_v60 = vsel %vm3067_vm15, %v3180_v22, %v3179_v58  ;;  %v3182_v33 = vrot.slane %v6297_v9, 2  ;;  %v3184_v48 = vrot.slane %v6299_v52, 1 }
 0x8d8   :  { %v3138_v17 = vadd.f32 %v3137_v44, %v3128_v49  ;;  %v3145_v36 = vadd.f32 %v3144_v31, %v3129_v51  ;;  %v3152_v39 = vadd.f32 %v3151_v25, %v3130_v26 }
 0x8d9   :  { %v3159_v12 = vadd.f32 %v3158_v53, %v3131_v15  ;;  %v3183_v30 = vsel %vm3070_vm1, %v3182_v33, %v3181_v60 }
 0x8da   :  { %3160 = vst [vmem:[%s6380_s9] sm:$0xff] %v3138_v17  ;;  %v3185_v16 = vsel %vm3073_vm2, %v3184_v48, %v3183_v30 }
 0x8db   :  { %3161 = vst [vmem:[%s6380_s9 + $0x8] sm:$0xff] %v3145_v36 }
 0x8dc   :  { %3162 = vst [vmem:[%s6380_s9 + $0x10] sm:$0xff] %v3152_v39 }
 0x8dd   :  { %3163 = vst [vmem:[%s6380_s9 + $0x18] sm:$0xff] %v3159_v12 }
 0x8de   :  { %3187 = vst [vmem:[%s6381_s10] sm:$0xff] %v3185_v16 }

</bundles_post_ra>
